<compile_context>
chip_gen: v5e
topology: v5e:2x2
jax: 0.10.0
libtpu: 0.0.40
codegen_flags: <defaults>
</compile_context>

<pallas_src>
import functools

import numpy as np
import jax
import jax.numpy as jnp
from jax import lax
from jax.experimental import pallas as pl
from jax.experimental.pallas import tpu as pltpu

EPS = 1e-5  # PyTorch BatchNorm3d default eps


# ----------------------------------------------------------------------------
# Morton (Z-order) permutation for the 16^3 volume + fused gather indices.
# ----------------------------------------------------------------------------
def _morton_perm_3d(nbits):
    n = 1 << nbits
    i = np.arange(n ** 3)
    d = np.zeros_like(i)
    h = np.zeros_like(i)
    w = np.zeros_like(i)
    for b in range(nbits):
        d |= ((i >> (3 * b + 2)) & 1) << b
        h |= ((i >> (3 * b + 1)) & 1) << b
        w |= ((i >> (3 * b + 0)) & 1) << b
    return ((d * n + h) * n + w).astype(np.int64)


_MORTON = _morton_perm_3d(4)          # morton position -> row-major voxel index
_MORTON_INV = np.argsort(_MORTON)     # row-major voxel index -> morton position

# One gather per side folds the NCDHW<->NDHWC transpose + Morton (un)shuffle:
#   stream[b, p*4 + c]     = x[b, c, voxel _MORTON[p]]
#   out[b, c*4096 + voxel] = stream[b, _MORTON_INV[voxel]*4 + c]
_IDX_IN = (np.arange(4)[None, :] * 4096 + _MORTON[:, None]).reshape(-1).astype(np.int32)
_IDX_OUT = (_MORTON_INV[None, :] * 4 + np.arange(4)[:, None]).reshape(-1).astype(np.int32)


# ----------------------------------------------------------------------------
# In-kernel helpers (traced inside the single fused Pallas kernel)
# ----------------------------------------------------------------------------
def _dot(a, b):
    return jnp.dot(a, b, preferred_element_type=jnp.float32)


def _iota(shape, dim):
    return lax.broadcasted_iota(jnp.int32, shape, dim)


def _bn_relu(y, p, co, count):
    """Training-mode BatchNorm + ReLU on y:(M, N); channel of column j = j % co.

    p is the packed (3, N) [bias, gamma, beta] parameter block (bias unused
    here).  Stats are a single stacked (2, N) [sum; sum-of-squares] matrix; for
    wide layouts (N = 8*co) the per-channel reduction uses a factorized one-hot
    pair generated from iota in-kernel -- no (N, N) HBM constant.
    """
    n = y.shape[1]
    inv_count = 1.0 / float(count)
    s1 = jnp.sum(y, axis=0, keepdims=True)
    s2 = jnp.sum(y * y, axis=0, keepdims=True)
    s = jnp.where(_iota((2, n), 0) == 0, s1, s2)                      # (2, N)
    if n != co:  # co is a power of two -> modulo via bitwise AND
        grp = (_iota((n, co), 0) & (co - 1)) == _iota((n, co), 1)     # (N, co)
        bck = (_iota((co, n), 1) & (co - 1)) == _iota((co, n), 0)     # (co, N)
        s = _dot(_dot(s, grp.astype(jnp.float32)), bck.astype(jnp.float32))
    mean = s[0:1, :] * inv_count
    var = jnp.maximum(s[1:2, :] * inv_count - mean * mean, 0.0)       # biased batch var
    inv = lax.rsqrt(var + EPS)
    return jnp.maximum((y - mean) * (inv * p[1:2, :]) + p[2:3, :], 0.0)


def _merge_matmul(a, w):
    """Fused Morton row-merge + matmul.

    Rows 8R..8R+7 of a:(8m, n) are one 2x2x2 patch; returns
    reshape(a, (m, 8n)) @ w without any relayout:
      out = sum_j select_j(a) @ w[j*n:(j+1)*n]   (selection matrices from iota).
    """
    m8, n = a.shape
    m = m8 // 8
    r = _iota((m, m8), 0)
    i = _iota((m, m8), 1)
    out = jnp.zeros((m, w.shape[1]), jnp.float32)
    for j in range(8):
        sel = (i == 8 * r + j).astype(jnp.float32)                    # (m, 8m)
        out = out + _dot(_dot(sel, a), w[j * n:(j + 1) * n, :])
    return out


def _split_matmul(a, w):
    """Fused Morton row-split + matmul (inverse data movement of _merge_matmul).

    out[8R+j, :] = a[R, j*n:(j+1)*n] @ w, i.e. reshape(a, (8m, n)) @ w.
    """
    m = a.shape[0]
    n = w.shape[0]
    i = _iota((8 * m, m), 0)
    r = _iota((8 * m, m), 1)
    out = jnp.zeros((8 * m, w.shape[1]), jnp.float32)
    for j in range(8):
        sct = (i == 8 * r + j).astype(jnp.float32)                    # (8m, m)
        out = out + _dot(sct, _dot(a[:, j * n:(j + 1) * n], w))
    return out


# ----------------------------------------------------------------------------
# The single fused kernel: whole network, activations resident in VMEM.
# ----------------------------------------------------------------------------
def _net_kernel(x_ref,
                w1_ref, p1_ref, w2_ref, p2_ref, w3_ref, p3_ref, w4_ref, p4_ref,
                u1_ref, q1_ref, u2_ref, q2_ref, u3_ref, q3_ref, u4_ref, c4_ref,
                o_ref, *, batch):
    B = batch
    p1, p2, p3, p4 = p1_ref[...], p2_ref[...], p3_ref[...], p4_ref[...]
    q1, q2, q3 = q1_ref[...], q2_ref[...], q3_ref[...]

    # -------------------------------- encoder -------------------------------
    # conv_1 (block-diagonal grouped): (B*64, 256) -> (B*64, 64), ch = col % 8
    a = _bn_relu(_dot(x_ref[...], w1_ref[...]) + p1[0:1, :], p1, 8, B * 512)
    # conv_2: (B*64, 64) -> (B*64, 16)
    a = _bn_relu(_dot(a, w2_ref[...]) + p2[0:1, :], p2, 16, B * 64)
    # conv_3 (fused Morton row-merge): (B*64, 16) -> (B*8, 32)
    a = _bn_relu(_merge_matmul(a, w3_ref[...]) + p3[0:1, :], p3, 32, B * 8)
    # conv_4 (fused Morton row-merge): (B*8, 32) -> (B, 64)
    a = _bn_relu(_merge_matmul(a, w4_ref[...]) + p4[0:1, :], p4, 64, B)
    # -------------------------------- decoder -------------------------------
    # unconv_3: (B, 64) -> (B, 256), ch = col % 32
    a = _bn_relu(_dot(a, u1_ref[...]) + q1[0:1, :], q1, 32, B * 8)
    # unconv_4 (fused Morton row-split): (B, 256) -> (B*8, 128), ch = col % 16
    a = _bn_relu(_split_matmul(a, u2_ref[...]) + q2[0:1, :], q2, 16, B * 64)
    # unconv_5 (fused Morton row-split): (B*8, 128) -> (B*64, 64), ch = col % 8
    a = _bn_relu(_split_matmul(a, u3_ref[...]) + q3[0:1, :], q3, 8, B * 512)
    # unconv_6 (block-diagonal grouped, no BN / ReLU): (B*64, 64) -> (B*64, 256)
    o_ref[...] = _dot(a, u4_ref[...]) + c4_ref[...]


# ----------------------------------------------------------------------------
# pallas_call wrapper (whole problem fits VMEM -> single-block grid)
# ----------------------------------------------------------------------------
_ARB = pltpu.CompilerParams(dimension_semantics=("arbitrary",))


def _spec(shape):
    return pl.BlockSpec(shape, lambda i: (0, 0))


def net_forward(prep, x):
    """Forward pass of Net: one gather, ONE fused Pallas kernel, one gather."""
    B = x.shape[0]
    # NCDHW -> Morton voxel stream (B*64, 256); single fused transpose+gather.
    xs = jnp.take(x.reshape(B, 4 * 4096), prep["idx_in"], axis=1).reshape(B * 64, 256)

    args = (xs,
            prep["w1"], prep["p1"], prep["w2"], prep["p2"],
            prep["w3"], prep["p3"], prep["w4"], prep["p4"],
            prep["u1"], prep["q1"], prep["u2"], prep["q2"],
            prep["u3"], prep["q3"], prep["u4"], prep["c4"])

    out = pl.pallas_call(
        functools.partial(_net_kernel, batch=B),
        out_shape=jax.ShapeDtypeStruct((B * 64, 256), jnp.float32),
        grid=(1,),
        in_specs=[_spec(a.shape) for a in args],
        out_specs=_spec((B * 64, 256)),
        compiler_params=_ARB,
    )(*args)

    # Morton stream -> NCDHW; single fused gather+transpose.
    out = jnp.take(out.reshape(B, 4 * 4096), prep["idx_out"], axis=1)
    return out.reshape(B, 4, 16, 16, 16)


# ----------------------------------------------------------------------------
# One-time weight / constant preparation (hoisted out of the jitted forward)
# ----------------------------------------------------------------------------
def _conv_w_mat(W):    # (Co, Ci, 2,2,2) -> (8*Ci, Co); rows ordered (kd, kh, kw, ci)
    co, ci = W.shape[0], W.shape[1]
    return jnp.transpose(W, (2, 3, 4, 1, 0)).reshape(8 * ci, co)


def _convT_w_mat(W):   # (Ci, Co, 2,2,2) -> (Ci, 8*Co); cols ordered (kd, kh, kw, co)
    ci, co = W.shape[0], W.shape[1]
    return jnp.transpose(W, (0, 2, 3, 4, 1)).reshape(ci, 8 * co)


def _block_diag8(w):   # (K, N) -> (8K, 8N) block diagonal (one block per octree child)
    return jnp.kron(jnp.eye(8, dtype=w.dtype), w)


def _pack_bn(b, g, t, reps):  # (3, reps*C) rows = [bias, gamma, beta]; ch = col % C
    return jnp.stack([jnp.tile(b, reps), jnp.tile(g, reps), jnp.tile(t, reps)], axis=0)


def prepare_params(params):
    """One-time conversion of the PyTorch-layout params to kernel matrices."""
    e1, e2, e3, e4 = params["enc"]
    d1, d2, d3 = params["dec"]
    Wf, bf = params["final"]
    return {
        "w1": _block_diag8(_conv_w_mat(e1[0])), "p1": _pack_bn(e1[1], e1[2], e1[3], 8),
        "w2": _conv_w_mat(e2[0]),               "p2": _pack_bn(e2[1], e2[2], e2[3], 1),
        "w3": _conv_w_mat(e3[0]),               "p3": _pack_bn(e3[1], e3[2], e3[3], 1),
        "w4": _conv_w_mat(e4[0]),               "p4": _pack_bn(e4[1], e4[2], e4[3], 1),
        "u1": _convT_w_mat(d1[0]),              "q1": _pack_bn(d1[1], d1[2], d1[3], 8),
        "u2": _convT_w_mat(d2[0]),              "q2": _pack_bn(d2[1], d2[2], d2[3], 8),
        "u3": _convT_w_mat(d3[0]),              "q3": _pack_bn(d3[1], d3[2], d3[3], 8),
        "u4": _block_diag8(_convT_w_mat(Wf)),
        "c4": jnp.tile(bf, 64).reshape(1, 256),
        "idx_in": jnp.asarray(_IDX_IN),
        "idx_out": jnp.asarray(_IDX_OUT),
    }


# ----------------------------------------------------------------------------
# Parameters (deterministic synthetic init, PyTorch tensor layouts)
# ----------------------------------------------------------------------------
def init_params(key):
    enc_ch = [(4, 8), (8, 16), (16, 32), (32, 64)]
    dec_ch = [(64, 32), (32, 16), (16, 8)]   # decoder layers with BN+ReLU
    fin_ch = (8, 4)                          # unconv_6: no BN / no ReLU
    params = {"enc": [], "dec": [], "final": None}
    keys = iter(jax.random.split(key, 40))

    def bn_params(co):
        g = 1.0 + 0.1 * jax.random.normal(next(keys), (co,), jnp.float32)
        t = 0.1 * jax.random.normal(next(keys), (co,), jnp.float32)
        return g, t

    for ci, co in enc_ch:
        W = jax.random.normal(next(keys), (co, ci, 2, 2, 2), jnp.float32) / np.sqrt(8 * ci)
        b = 0.01 * jax.random.normal(next(keys), (co,), jnp.float32)
        g, t = bn_params(co)
        params["enc"].append((W, b, g, t))
    for ci, co in dec_ch:
        W = jax.random.normal(next(keys), (ci, co, 2, 2, 2), jnp.float32) / np.sqrt(ci)
        b = 0.01 * jax.random.normal(next(keys), (co,), jnp.float32)
        g, t = bn_params(co)
        params["dec"].append((W, b, g, t))
    ci, co = fin_ch
    W = jax.random.normal(next(keys), (ci, co, 2, 2, 2), jnp.float32) / np.sqrt(ci)
    b = 0.01 * jax.random.normal(next(keys), (co,), jnp.float32)
    params["final"] = (W, b)
    return params


# ----------------------------------------------------------------------------
# Pure-JAX reference of the PyTorch module (independent of the Morton layout)
# ----------------------------------------------------------------------------
def _conv3d_ref(x, W, b):          # W: (Co, Ci, 2,2,2), stride 2, no padding
    bsz, ci, d, h, w = x.shape
    xr = x.reshape(bsz, ci, d // 2, 2, h // 2, 2, w // 2, 2)
    y = jnp.einsum("bidkhmwn,oikmn->bodhw", xr, W, precision=lax.Precision.HIGHEST)
    return y + b.reshape(1, -1, 1, 1, 1)


def _convT3d_ref(x, W, b):         # W: (Ci, Co, 2,2,2), stride 2, no padding
    bsz, ci, d, h, w = x.shape
    co = W.shape[1]
    y = jnp.einsum("bidhw,iokmn->bodkhmwn", x, W, precision=lax.Precision.HIGHEST)
    y = y.reshape(bsz, co, 2 * d, 2 * h, 2 * w)
    return y + b.reshape(1, -1, 1, 1, 1)


def _bn_relu_ref(x, g, t):         # training-mode BatchNorm3d + ReLU
    mean = jnp.mean(x, axis=(0, 2, 3, 4), keepdims=True)
    var = jnp.var(x, axis=(0, 2, 3, 4), keepdims=True)
    y = (x - mean) / jnp.sqrt(var + EPS)
    y = y * g.reshape(1, -1, 1, 1, 1) + t.reshape(1, -1, 1, 1, 1)
    return jnp.maximum(y, 0.0)


def net_reference(params, x):
    for W, b, g, t in params["enc"]:
        x = _bn_relu_ref(_conv3d_ref(x, W, b), g, t)
    for W, b, g, t in params["dec"]:
        x = _bn_relu_ref(_convT3d_ref(x, W, b), g, t)
    Wf, bf = params["final"]
    return _convT3d_ref(x, Wf, bf)


if __name__ == "__main__":
    key = jax.random.PRNGKey(0)
    k_param, k_x = jax.random.split(key)

    params = init_params(k_param)
    prep = prepare_params(params)          # one-time weight prep, outside jit
    # input: (batch=2, channels=4, D=H=W=16) -> spatial 1 after 4 stride-2 convs
    x = jax.random.normal(k_x, (2, 4, 16, 16, 16), jnp.float32)

    fwd = jax.jit(net_forward)
    out = jax.block_until_ready(fwd(prep, x))
    assert out.shape == (2, 4, 16, 16, 16), out.shape

    # numerical check vs. a pure-JAX reference of the PyTorch module
    ref = jax.block_until_ready(jax.jit(net_reference)(params, x))
    np.testing.assert_allclose(np.asarray(out), np.asarray(ref), rtol=5e-3, atol=5e-3)

    print("KERNEL_OK")
</pallas_src>

<mosaic_0001>
module attributes {stable_mosaic.version = 11 : i64} {
  func.func @_net_kernel(%arg0: i32, %arg1: memref<128x256xf32, #tpu.memory_space<vmem>>, %arg2: memref<256x64xf32, #tpu.memory_space<vmem>>, %arg3: memref<3x64xf32, #tpu.memory_space<vmem>>, %arg4: memref<64x16xf32, #tpu.memory_space<vmem>>, %arg5: memref<3x16xf32, #tpu.memory_space<vmem>>, %arg6: memref<128x32xf32, #tpu.memory_space<vmem>>, %arg7: memref<3x32xf32, #tpu.memory_space<vmem>>, %arg8: memref<256x64xf32, #tpu.memory_space<vmem>>, %arg9: memref<3x64xf32, #tpu.memory_space<vmem>>, %arg10: memref<64x256xf32, #tpu.memory_space<vmem>>, %arg11: memref<3x256xf32, #tpu.memory_space<vmem>>, %arg12: memref<32x128xf32, #tpu.memory_space<vmem>>, %arg13: memref<3x128xf32, #tpu.memory_space<vmem>>, %arg14: memref<16x64xf32, #tpu.memory_space<vmem>>, %arg15: memref<3x64xf32, #tpu.memory_space<vmem>>, %arg16: memref<64x256xf32, #tpu.memory_space<vmem>>, %arg17: memref<1x256xf32, #tpu.memory_space<vmem>>, %arg18: memref<128x256xf32, #tpu.memory_space<vmem>>) attributes {dimension_semantics = [#tpu.dimension_semantics<arbitrary>], iteration_bounds = array<i64: 1>, scalar_prefetch = 0 : i64, scratch_operands = 0 : i64, tpu.core_type = #tpu.core_type<tc>, window_params = [{pipeline_mode = #tpu.pipeline_mode<synchronous>, transform_indices = @transform_0, window_bounds = array<i64: 128, 256>}, {pipeline_mode = #tpu.pipeline_mode<synchronous>, transform_indices = @transform_1, window_bounds = array<i64: 256, 64>}, {pipeline_mode = #tpu.pipeline_mode<synchronous>, transform_indices = @transform_2, window_bounds = array<i64: 3, 64>}, {pipeline_mode = #tpu.pipeline_mode<synchronous>, transform_indices = @transform_3, window_bounds = array<i64: 64, 16>}, {pipeline_mode = #tpu.pipeline_mode<synchronous>, transform_indices = @transform_4, window_bounds = array<i64: 3, 16>}, {pipeline_mode = #tpu.pipeline_mode<synchronous>, transform_indices = @transform_5, window_bounds = array<i64: 128, 32>}, {pipeline_mode = #tpu.pipeline_mode<synchronous>, transform_indices = @transform_6, window_bounds = array<i64: 3, 32>}, {pipeline_mode = #tpu.pipeline_mode<synchronous>, transform_indices = @transform_7, window_bounds = array<i64: 256, 64>}, {pipeline_mode = #tpu.pipeline_mode<synchronous>, transform_indices = @transform_8, window_bounds = array<i64: 3, 64>}, {pipeline_mode = #tpu.pipeline_mode<synchronous>, transform_indices = @transform_9, window_bounds = array<i64: 64, 256>}, {pipeline_mode = #tpu.pipeline_mode<synchronous>, transform_indices = @transform_10, window_bounds = array<i64: 3, 256>}, {pipeline_mode = #tpu.pipeline_mode<synchronous>, transform_indices = @transform_11, window_bounds = array<i64: 32, 128>}, {pipeline_mode = #tpu.pipeline_mode<synchronous>, transform_indices = @transform_12, window_bounds = array<i64: 3, 128>}, {pipeline_mode = #tpu.pipeline_mode<synchronous>, transform_indices = @transform_13, window_bounds = array<i64: 16, 64>}, {pipeline_mode = #tpu.pipeline_mode<synchronous>, transform_indices = @transform_14, window_bounds = array<i64: 3, 64>}, {pipeline_mode = #tpu.pipeline_mode<synchronous>, transform_indices = @transform_15, window_bounds = array<i64: 64, 256>}, {pipeline_mode = #tpu.pipeline_mode<synchronous>, transform_indices = @transform_16, window_bounds = array<i64: 1, 256>}, {pipeline_mode = #tpu.pipeline_mode<synchronous>, transform_indices = @transform_17, window_bounds = array<i64: 128, 256>}]} {
    %c0 = arith.constant 0 : index
    %c0_0 = arith.constant 0 : index
    %0 = vector.load %arg3[%c0, %c0_0] : memref<3x64xf32, #tpu.memory_space<vmem>>, vector<3x64xf32>
    %c0_1 = arith.constant 0 : index
    %c0_2 = arith.constant 0 : index
    %1 = vector.load %arg5[%c0_1, %c0_2] : memref<3x16xf32, #tpu.memory_space<vmem>>, vector<3x16xf32>
    %c0_3 = arith.constant 0 : index
    %c0_4 = arith.constant 0 : index
    %2 = vector.load %arg7[%c0_3, %c0_4] : memref<3x32xf32, #tpu.memory_space<vmem>>, vector<3x32xf32>
    %c0_5 = arith.constant 0 : index
    %c0_6 = arith.constant 0 : index
    %3 = vector.load %arg9[%c0_5, %c0_6] : memref<3x64xf32, #tpu.memory_space<vmem>>, vector<3x64xf32>
    %c0_7 = arith.constant 0 : index
    %c0_8 = arith.constant 0 : index
    %4 = vector.load %arg11[%c0_7, %c0_8] : memref<3x256xf32, #tpu.memory_space<vmem>>, vector<3x256xf32>
    %c0_9 = arith.constant 0 : index
    %c0_10 = arith.constant 0 : index
    %5 = vector.load %arg13[%c0_9, %c0_10] : memref<3x128xf32, #tpu.memory_space<vmem>>, vector<3x128xf32>
    %c0_11 = arith.constant 0 : index
    %c0_12 = arith.constant 0 : index
    %6 = vector.load %arg15[%c0_11, %c0_12] : memref<3x64xf32, #tpu.memory_space<vmem>>, vector<3x64xf32>
    %c0_13 = arith.constant 0 : index
    %c0_14 = arith.constant 0 : index
    %7 = vector.load %arg1[%c0_13, %c0_14] : memref<128x256xf32, #tpu.memory_space<vmem>>, vector<128x256xf32>
    %c0_15 = arith.constant 0 : index
    %c0_16 = arith.constant 0 : index
    %8 = vector.load %arg2[%c0_15, %c0_16] : memref<256x64xf32, #tpu.memory_space<vmem>>, vector<256x64xf32>
    %cst = arith.constant dense<0.000000e+00> : vector<128x64xf32>
    %9 = tpu.matmul %7, %8, %cst {dimension_numbers = #tpu.dot_dimension_numbers<[1], [0], [0], [1], [0, 0, 1, 1], [], []>} : vector<128x256xf32>, vector<256x64xf32>, vector<128x64xf32> -> vector<128x64xf32>
    %10 = vector.extract_strided_slice %0 {offsets = [0, 0], sizes = [1, 64], strides = [1, 1]} : vector<3x64xf32> to vector<1x64xf32>
    %11 = vector.broadcast %10 : vector<1x64xf32> to vector<128x64xf32>
    %12 = arith.addf %9, %11 : vector<128x64xf32>
    %cst_17 = arith.constant dense<0.000000e+00> : vector<64xf32>
    %13 = vector.multi_reduction <add>, %12, %cst_17 [0] : vector<128x64xf32> to vector<64xf32>
    %14 = vector.shape_cast %13 : vector<64xf32> to vector<1x64xf32>
    %15 = arith.mulf %12, %12 : vector<128x64xf32>
    %cst_18 = arith.constant dense<0.000000e+00> : vector<64xf32>
    %16 = vector.multi_reduction <add>, %15, %cst_18 [0] : vector<128x64xf32> to vector<64xf32>
    %17 = vector.shape_cast %16 : vector<64xf32> to vector<1x64xf32>
    %18 = tpu.iota {dimensions = array<i32: 0>} : vector<2x64xi32>
    %c0_i32 = arith.constant 0 : i32
    %19 = vector.broadcast %c0_i32 : i32 to vector<2x64xi32>
    %20 = arith.cmpi eq, %18, %19 : vector<2x64xi32>
    %21 = vector.shape_cast %14 : vector<1x64xf32> to vector<1x64xf32>
    %22 = vector.broadcast %21 : vector<1x64xf32> to vector<2x64xf32>
    %23 = vector.shape_cast %17 : vector<1x64xf32> to vector<1x64xf32>
    %24 = vector.broadcast %23 : vector<1x64xf32> to vector<2x64xf32>
    %25 = arith.select %20, %22, %24 : vector<2x64xi1>, vector<2x64xf32>
    %26 = tpu.iota {dimensions = array<i32: 0>} : vector<64x8xi32>
    %c7_i32 = arith.constant 7 : i32
    %27 = vector.broadcast %c7_i32 : i32 to vector<64x8xi32>
    %28 = arith.andi %26, %27 : vector<64x8xi32>
    %29 = tpu.iota {dimensions = array<i32: 1>} : vector<64x8xi32>
    %30 = arith.cmpi eq, %28, %29 : vector<64x8xi32>
    %31 = tpu.iota {dimensions = array<i32: 1>} : vector<8x64xi32>
    %c7_i32_19 = arith.constant 7 : i32
    %32 = vector.broadcast %c7_i32_19 : i32 to vector<8x64xi32>
    %33 = arith.andi %31, %32 : vector<8x64xi32>
    %34 = tpu.iota {dimensions = array<i32: 0>} : vector<8x64xi32>
    %35 = arith.cmpi eq, %33, %34 : vector<8x64xi32>
    %36 = arith.extui %30 : vector<64x8xi1> to vector<64x8xi32>
    %37 = arith.sitofp %36 : vector<64x8xi32> to vector<64x8xf32>
    %cst_20 = arith.constant dense<0.000000e+00> : vector<2x8xf32>
    %38 = tpu.matmul %25, %37, %cst_20 {dimension_numbers = #tpu.dot_dimension_numbers<[1], [0], [0], [1], [0, 0, 1, 1], [], []>} : vector<2x64xf32>, vector<64x8xf32>, vector<2x8xf32> -> vector<2x8xf32>
    %39 = arith.extui %35 : vector<8x64xi1> to vector<8x64xi32>
    %40 = arith.sitofp %39 : vector<8x64xi32> to vector<8x64xf32>
    %cst_21 = arith.constant dense<0.000000e+00> : vector<2x64xf32>
    %41 = tpu.matmul %38, %40, %cst_21 {dimension_numbers = #tpu.dot_dimension_numbers<[1], [0], [0], [1], [0, 0, 1, 1], [], []>} : vector<2x8xf32>, vector<8x64xf32>, vector<2x64xf32> -> vector<2x64xf32>
    %42 = vector.extract_strided_slice %41 {offsets = [0, 0], sizes = [1, 64], strides = [1, 1]} : vector<2x64xf32> to vector<1x64xf32>
    %cst_22 = arith.constant 9.765625E-4 : f32
    %43 = vector.broadcast %cst_22 : f32 to vector<1x64xf32>
    %44 = arith.mulf %42, %43 : vector<1x64xf32>
    %45 = vector.extract_strided_slice %41 {offsets = [1, 0], sizes = [1, 64], strides = [1, 1]} : vector<2x64xf32> to vector<1x64xf32>
    %cst_23 = arith.constant 9.765625E-4 : f32
    %46 = vector.broadcast %cst_23 : f32 to vector<1x64xf32>
    %47 = arith.mulf %45, %46 : vector<1x64xf32>
    %48 = arith.mulf %44, %44 : vector<1x64xf32>
    %49 = arith.subf %47, %48 : vector<1x64xf32>
    %cst_24 = arith.constant 0.000000e+00 : f32
    %50 = vector.broadcast %cst_24 : f32 to vector<1x64xf32>
    %51 = arith.maximumf %49, %50 : vector<1x64xf32>
    %cst_25 = arith.constant 9.99999974E-6 : f32
    %52 = vector.broadcast %cst_25 : f32 to vector<1x64xf32>
    %53 = arith.addf %51, %52 : vector<1x64xf32>
    %54 = math.rsqrt %53 : vector<1x64xf32>
    %55 = vector.broadcast %44 : vector<1x64xf32> to vector<128x64xf32>
    %56 = arith.subf %12, %55 : vector<128x64xf32>
    %57 = vector.extract_strided_slice %0 {offsets = [1, 0], sizes = [1, 64], strides = [1, 1]} : vector<3x64xf32> to vector<1x64xf32>
    %58 = arith.mulf %54, %57 : vector<1x64xf32>
    %59 = vector.broadcast %58 : vector<1x64xf32> to vector<128x64xf32>
    %60 = arith.mulf %56, %59 : vector<128x64xf32>
    %61 = vector.extract_strided_slice %0 {offsets = [2, 0], sizes = [1, 64], strides = [1, 1]} : vector<3x64xf32> to vector<1x64xf32>
    %62 = vector.broadcast %61 : vector<1x64xf32> to vector<128x64xf32>
    %63 = arith.addf %60, %62 : vector<128x64xf32>
    %cst_26 = arith.constant 0.000000e+00 : f32
    %64 = vector.broadcast %cst_26 : f32 to vector<128x64xf32>
    %65 = arith.maximumf %63, %64 : vector<128x64xf32>
    %c0_27 = arith.constant 0 : index
    %c0_28 = arith.constant 0 : index
    %66 = vector.load %arg4[%c0_27, %c0_28] : memref<64x16xf32, #tpu.memory_space<vmem>>, vector<64x16xf32>
    %cst_29 = arith.constant dense<0.000000e+00> : vector<128x16xf32>
    %67 = tpu.matmul %65, %66, %cst_29 {dimension_numbers = #tpu.dot_dimension_numbers<[1], [0], [0], [1], [0, 0, 1, 1], [], []>} : vector<128x64xf32>, vector<64x16xf32>, vector<128x16xf32> -> vector<128x16xf32>
    %68 = vector.extract_strided_slice %1 {offsets = [0, 0], sizes = [1, 16], strides = [1, 1]} : vector<3x16xf32> to vector<1x16xf32>
    %69 = vector.broadcast %68 : vector<1x16xf32> to vector<128x16xf32>
    %70 = arith.addf %67, %69 : vector<128x16xf32>
    %cst_30 = arith.constant dense<0.000000e+00> : vector<16xf32>
    %71 = vector.multi_reduction <add>, %70, %cst_30 [0] : vector<128x16xf32> to vector<16xf32>
    %72 = vector.shape_cast %71 : vector<16xf32> to vector<1x16xf32>
    %73 = arith.mulf %70, %70 : vector<128x16xf32>
    %cst_31 = arith.constant dense<0.000000e+00> : vector<16xf32>
    %74 = vector.multi_reduction <add>, %73, %cst_31 [0] : vector<128x16xf32> to vector<16xf32>
    %75 = vector.shape_cast %74 : vector<16xf32> to vector<1x16xf32>
    %76 = tpu.iota {dimensions = array<i32: 0>} : vector<2x16xi32>
    %c0_i32_32 = arith.constant 0 : i32
    %77 = vector.broadcast %c0_i32_32 : i32 to vector<2x16xi32>
    %78 = arith.cmpi eq, %76, %77 : vector<2x16xi32>
    %79 = vector.shape_cast %72 : vector<1x16xf32> to vector<1x16xf32>
    %80 = vector.broadcast %79 : vector<1x16xf32> to vector<2x16xf32>
    %81 = vector.shape_cast %75 : vector<1x16xf32> to vector<1x16xf32>
    %82 = vector.broadcast %81 : vector<1x16xf32> to vector<2x16xf32>
    %83 = arith.select %78, %80, %82 : vector<2x16xi1>, vector<2x16xf32>
    %84 = vector.extract_strided_slice %83 {offsets = [0, 0], sizes = [1, 16], strides = [1, 1]} : vector<2x16xf32> to vector<1x16xf32>
    %cst_33 = arith.constant 7.812500e-03 : f32
    %85 = vector.broadcast %cst_33 : f32 to vector<1x16xf32>
    %86 = arith.mulf %84, %85 : vector<1x16xf32>
    %87 = vector.extract_strided_slice %83 {offsets = [1, 0], sizes = [1, 16], strides = [1, 1]} : vector<2x16xf32> to vector<1x16xf32>
    %cst_34 = arith.constant 7.812500e-03 : f32
    %88 = vector.broadcast %cst_34 : f32 to vector<1x16xf32>
    %89 = arith.mulf %87, %88 : vector<1x16xf32>
    %90 = arith.mulf %86, %86 : vector<1x16xf32>
    %91 = arith.subf %89, %90 : vector<1x16xf32>
    %cst_35 = arith.constant 0.000000e+00 : f32
    %92 = vector.broadcast %cst_35 : f32 to vector<1x16xf32>
    %93 = arith.maximumf %91, %92 : vector<1x16xf32>
    %cst_36 = arith.constant 9.99999974E-6 : f32
    %94 = vector.broadcast %cst_36 : f32 to vector<1x16xf32>
    %95 = arith.addf %93, %94 : vector<1x16xf32>
    %96 = math.rsqrt %95 : vector<1x16xf32>
    %97 = vector.broadcast %86 : vector<1x16xf32> to vector<128x16xf32>
    %98 = arith.subf %70, %97 : vector<128x16xf32>
    %99 = vector.extract_strided_slice %1 {offsets = [1, 0], sizes = [1, 16], strides = [1, 1]} : vector<3x16xf32> to vector<1x16xf32>
    %100 = arith.mulf %96, %99 : vector<1x16xf32>
    %101 = vector.broadcast %100 : vector<1x16xf32> to vector<128x16xf32>
    %102 = arith.mulf %98, %101 : vector<128x16xf32>
    %103 = vector.extract_strided_slice %1 {offsets = [2, 0], sizes = [1, 16], strides = [1, 1]} : vector<3x16xf32> to vector<1x16xf32>
    %104 = vector.broadcast %103 : vector<1x16xf32> to vector<128x16xf32>
    %105 = arith.addf %102, %104 : vector<128x16xf32>
    %cst_37 = arith.constant 0.000000e+00 : f32
    %106 = vector.broadcast %cst_37 : f32 to vector<128x16xf32>
    %107 = arith.maximumf %105, %106 : vector<128x16xf32>
    %c0_38 = arith.constant 0 : index
    %c0_39 = arith.constant 0 : index
    %108 = vector.load %arg6[%c0_38, %c0_39] : memref<128x32xf32, #tpu.memory_space<vmem>>, vector<128x32xf32>
    %109 = tpu.iota {dimensions = array<i32: 0>} : vector<16x128xi32>
    %110 = tpu.iota {dimensions = array<i32: 1>} : vector<16x128xi32>
    %cst_40 = arith.constant 0.000000e+00 : f32
    %111 = vector.broadcast %cst_40 : f32 to vector<16x32xf32>
    %c8_i32 = arith.constant 8 : i32
    %112 = vector.broadcast %c8_i32 : i32 to vector<16x128xi32>
    %113 = arith.muli %112, %109 : vector<16x128xi32>
    %c0_i32_41 = arith.constant 0 : i32
    %114 = vector.broadcast %c0_i32_41 : i32 to vector<16x128xi32>
    %115 = arith.addi %113, %114 : vector<16x128xi32>
    %116 = arith.cmpi eq, %110, %115 : vector<16x128xi32>
    %117 = arith.extui %116 : vector<16x128xi1> to vector<16x128xi32>
    %118 = arith.sitofp %117 : vector<16x128xi32> to vector<16x128xf32>
    %cst_42 = arith.constant dense<0.000000e+00> : vector<16x16xf32>
    %119 = tpu.matmul %118, %107, %cst_42 {dimension_numbers = #tpu.dot_dimension_numbers<[1], [0], [0], [1], [0, 0, 1, 1], [], []>} : vector<16x128xf32>, vector<128x16xf32>, vector<16x16xf32> -> vector<16x16xf32>
    %120 = vector.extract_strided_slice %108 {offsets = [0, 0], sizes = [16, 32], strides = [1, 1]} : vector<128x32xf32> to vector<16x32xf32>
    %cst_43 = arith.constant dense<0.000000e+00> : vector<16x32xf32>
    %121 = tpu.matmul %119, %120, %cst_43 {dimension_numbers = #tpu.dot_dimension_numbers<[1], [0], [0], [1], [0, 0, 1, 1], [], []>} : vector<16x16xf32>, vector<16x32xf32>, vector<16x32xf32> -> vector<16x32xf32>
    %122 = arith.addf %111, %121 : vector<16x32xf32>
    %c8_i32_44 = arith.constant 8 : i32
    %123 = vector.broadcast %c8_i32_44 : i32 to vector<16x128xi32>
    %124 = arith.muli %123, %109 : vector<16x128xi32>
    %c1_i32 = arith.constant 1 : i32
    %125 = vector.broadcast %c1_i32 : i32 to vector<16x128xi32>
    %126 = arith.addi %124, %125 : vector<16x128xi32>
    %127 = arith.cmpi eq, %110, %126 : vector<16x128xi32>
    %128 = arith.extui %127 : vector<16x128xi1> to vector<16x128xi32>
    %129 = arith.sitofp %128 : vector<16x128xi32> to vector<16x128xf32>
    %cst_45 = arith.constant dense<0.000000e+00> : vector<16x16xf32>
    %130 = tpu.matmul %129, %107, %cst_45 {dimension_numbers = #tpu.dot_dimension_numbers<[1], [0], [0], [1], [0, 0, 1, 1], [], []>} : vector<16x128xf32>, vector<128x16xf32>, vector<16x16xf32> -> vector<16x16xf32>
    %131 = vector.extract_strided_slice %108 {offsets = [16, 0], sizes = [16, 32], strides = [1, 1]} : vector<128x32xf32> to vector<16x32xf32>
    %cst_46 = arith.constant dense<0.000000e+00> : vector<16x32xf32>
    %132 = tpu.matmul %130, %131, %cst_46 {dimension_numbers = #tpu.dot_dimension_numbers<[1], [0], [0], [1], [0, 0, 1, 1], [], []>} : vector<16x16xf32>, vector<16x32xf32>, vector<16x32xf32> -> vector<16x32xf32>
    %133 = arith.addf %122, %132 : vector<16x32xf32>
    %c8_i32_47 = arith.constant 8 : i32
    %134 = vector.broadcast %c8_i32_47 : i32 to vector<16x128xi32>
    %135 = arith.muli %134, %109 : vector<16x128xi32>
    %c2_i32 = arith.constant 2 : i32
    %136 = vector.broadcast %c2_i32 : i32 to vector<16x128xi32>
    %137 = arith.addi %135, %136 : vector<16x128xi32>
    %138 = arith.cmpi eq, %110, %137 : vector<16x128xi32>
    %139 = arith.extui %138 : vector<16x128xi1> to vector<16x128xi32>
    %140 = arith.sitofp %139 : vector<16x128xi32> to vector<16x128xf32>
    %cst_48 = arith.constant dense<0.000000e+00> : vector<16x16xf32>
    %141 = tpu.matmul %140, %107, %cst_48 {dimension_numbers = #tpu.dot_dimension_numbers<[1], [0], [0], [1], [0, 0, 1, 1], [], []>} : vector<16x128xf32>, vector<128x16xf32>, vector<16x16xf32> -> vector<16x16xf32>
    %142 = vector.extract_strided_slice %108 {offsets = [32, 0], sizes = [16, 32], strides = [1, 1]} : vector<128x32xf32> to vector<16x32xf32>
    %cst_49 = arith.constant dense<0.000000e+00> : vector<16x32xf32>
    %143 = tpu.matmul %141, %142, %cst_49 {dimension_numbers = #tpu.dot_dimension_numbers<[1], [0], [0], [1], [0, 0, 1, 1], [], []>} : vector<16x16xf32>, vector<16x32xf32>, vector<16x32xf32> -> vector<16x32xf32>
    %144 = arith.addf %133, %143 : vector<16x32xf32>
    %c8_i32_50 = arith.constant 8 : i32
    %145 = vector.broadcast %c8_i32_50 : i32 to vector<16x128xi32>
    %146 = arith.muli %145, %109 : vector<16x128xi32>
    %c3_i32 = arith.constant 3 : i32
    %147 = vector.broadcast %c3_i32 : i32 to vector<16x128xi32>
    %148 = arith.addi %146, %147 : vector<16x128xi32>
    %149 = arith.cmpi eq, %110, %148 : vector<16x128xi32>
    %150 = arith.extui %149 : vector<16x128xi1> to vector<16x128xi32>
    %151 = arith.sitofp %150 : vector<16x128xi32> to vector<16x128xf32>
    %cst_51 = arith.constant dense<0.000000e+00> : vector<16x16xf32>
    %152 = tpu.matmul %151, %107, %cst_51 {dimension_numbers = #tpu.dot_dimension_numbers<[1], [0], [0], [1], [0, 0, 1, 1], [], []>} : vector<16x128xf32>, vector<128x16xf32>, vector<16x16xf32> -> vector<16x16xf32>
    %153 = vector.extract_strided_slice %108 {offsets = [48, 0], sizes = [16, 32], strides = [1, 1]} : vector<128x32xf32> to vector<16x32xf32>
    %cst_52 = arith.constant dense<0.000000e+00> : vector<16x32xf32>
    %154 = tpu.matmul %152, %153, %cst_52 {dimension_numbers = #tpu.dot_dimension_numbers<[1], [0], [0], [1], [0, 0, 1, 1], [], []>} : vector<16x16xf32>, vector<16x32xf32>, vector<16x32xf32> -> vector<16x32xf32>
    %155 = arith.addf %144, %154 : vector<16x32xf32>
    %c8_i32_53 = arith.constant 8 : i32
    %156 = vector.broadcast %c8_i32_53 : i32 to vector<16x128xi32>
    %157 = arith.muli %156, %109 : vector<16x128xi32>
    %c4_i32 = arith.constant 4 : i32
    %158 = vector.broadcast %c4_i32 : i32 to vector<16x128xi32>
    %159 = arith.addi %157, %158 : vector<16x128xi32>
    %160 = arith.cmpi eq, %110, %159 : vector<16x128xi32>
    %161 = arith.extui %160 : vector<16x128xi1> to vector<16x128xi32>
    %162 = arith.sitofp %161 : vector<16x128xi32> to vector<16x128xf32>
    %cst_54 = arith.constant dense<0.000000e+00> : vector<16x16xf32>
    %163 = tpu.matmul %162, %107, %cst_54 {dimension_numbers = #tpu.dot_dimension_numbers<[1], [0], [0], [1], [0, 0, 1, 1], [], []>} : vector<16x128xf32>, vector<128x16xf32>, vector<16x16xf32> -> vector<16x16xf32>
    %164 = vector.extract_strided_slice %108 {offsets = [64, 0], sizes = [16, 32], strides = [1, 1]} : vector<128x32xf32> to vector<16x32xf32>
    %cst_55 = arith.constant dense<0.000000e+00> : vector<16x32xf32>
    %165 = tpu.matmul %163, %164, %cst_55 {dimension_numbers = #tpu.dot_dimension_numbers<[1], [0], [0], [1], [0, 0, 1, 1], [], []>} : vector<16x16xf32>, vector<16x32xf32>, vector<16x32xf32> -> vector<16x32xf32>
    %166 = arith.addf %155, %165 : vector<16x32xf32>
    %c8_i32_56 = arith.constant 8 : i32
    %167 = vector.broadcast %c8_i32_56 : i32 to vector<16x128xi32>
    %168 = arith.muli %167, %109 : vector<16x128xi32>
    %c5_i32 = arith.constant 5 : i32
    %169 = vector.broadcast %c5_i32 : i32 to vector<16x128xi32>
    %170 = arith.addi %168, %169 : vector<16x128xi32>
    %171 = arith.cmpi eq, %110, %170 : vector<16x128xi32>
    %172 = arith.extui %171 : vector<16x128xi1> to vector<16x128xi32>
    %173 = arith.sitofp %172 : vector<16x128xi32> to vector<16x128xf32>
    %cst_57 = arith.constant dense<0.000000e+00> : vector<16x16xf32>
    %174 = tpu.matmul %173, %107, %cst_57 {dimension_numbers = #tpu.dot_dimension_numbers<[1], [0], [0], [1], [0, 0, 1, 1], [], []>} : vector<16x128xf32>, vector<128x16xf32>, vector<16x16xf32> -> vector<16x16xf32>
    %175 = vector.extract_strided_slice %108 {offsets = [80, 0], sizes = [16, 32], strides = [1, 1]} : vector<128x32xf32> to vector<16x32xf32>
    %cst_58 = arith.constant dense<0.000000e+00> : vector<16x32xf32>
    %176 = tpu.matmul %174, %175, %cst_58 {dimension_numbers = #tpu.dot_dimension_numbers<[1], [0], [0], [1], [0, 0, 1, 1], [], []>} : vector<16x16xf32>, vector<16x32xf32>, vector<16x32xf32> -> vector<16x32xf32>
    %177 = arith.addf %166, %176 : vector<16x32xf32>
    %c8_i32_59 = arith.constant 8 : i32
    %178 = vector.broadcast %c8_i32_59 : i32 to vector<16x128xi32>
    %179 = arith.muli %178, %109 : vector<16x128xi32>
    %c6_i32 = arith.constant 6 : i32
    %180 = vector.broadcast %c6_i32 : i32 to vector<16x128xi32>
    %181 = arith.addi %179, %180 : vector<16x128xi32>
    %182 = arith.cmpi eq, %110, %181 : vector<16x128xi32>
    %183 = arith.extui %182 : vector<16x128xi1> to vector<16x128xi32>
    %184 = arith.sitofp %183 : vector<16x128xi32> to vector<16x128xf32>
    %cst_60 = arith.constant dense<0.000000e+00> : vector<16x16xf32>
    %185 = tpu.matmul %184, %107, %cst_60 {dimension_numbers = #tpu.dot_dimension_numbers<[1], [0], [0], [1], [0, 0, 1, 1], [], []>} : vector<16x128xf32>, vector<128x16xf32>, vector<16x16xf32> -> vector<16x16xf32>
    %186 = vector.extract_strided_slice %108 {offsets = [96, 0], sizes = [16, 32], strides = [1, 1]} : vector<128x32xf32> to vector<16x32xf32>
    %cst_61 = arith.constant dense<0.000000e+00> : vector<16x32xf32>
    %187 = tpu.matmul %185, %186, %cst_61 {dimension_numbers = #tpu.dot_dimension_numbers<[1], [0], [0], [1], [0, 0, 1, 1], [], []>} : vector<16x16xf32>, vector<16x32xf32>, vector<16x32xf32> -> vector<16x32xf32>
    %188 = arith.addf %177, %187 : vector<16x32xf32>
    %c8_i32_62 = arith.constant 8 : i32
    %189 = vector.broadcast %c8_i32_62 : i32 to vector<16x128xi32>
    %190 = arith.muli %189, %109 : vector<16x128xi32>
    %c7_i32_63 = arith.constant 7 : i32
    %191 = vector.broadcast %c7_i32_63 : i32 to vector<16x128xi32>
    %192 = arith.addi %190, %191 : vector<16x128xi32>
    %193 = arith.cmpi eq, %110, %192 : vector<16x128xi32>
    %194 = arith.extui %193 : vector<16x128xi1> to vector<16x128xi32>
    %195 = arith.sitofp %194 : vector<16x128xi32> to vector<16x128xf32>
    %cst_64 = arith.constant dense<0.000000e+00> : vector<16x16xf32>
    %196 = tpu.matmul %195, %107, %cst_64 {dimension_numbers = #tpu.dot_dimension_numbers<[1], [0], [0], [1], [0, 0, 1, 1], [], []>} : vector<16x128xf32>, vector<128x16xf32>, vector<16x16xf32> -> vector<16x16xf32>
    %197 = vector.extract_strided_slice %108 {offsets = [112, 0], sizes = [16, 32], strides = [1, 1]} : vector<128x32xf32> to vector<16x32xf32>
    %cst_65 = arith.constant dense<0.000000e+00> : vector<16x32xf32>
    %198 = tpu.matmul %196, %197, %cst_65 {dimension_numbers = #tpu.dot_dimension_numbers<[1], [0], [0], [1], [0, 0, 1, 1], [], []>} : vector<16x16xf32>, vector<16x32xf32>, vector<16x32xf32> -> vector<16x32xf32>
    %199 = arith.addf %188, %198 : vector<16x32xf32>
    %200 = vector.extract_strided_slice %2 {offsets = [0, 0], sizes = [1, 32], strides = [1, 1]} : vector<3x32xf32> to vector<1x32xf32>
    %201 = vector.broadcast %200 : vector<1x32xf32> to vector<16x32xf32>
    %202 = arith.addf %199, %201 : vector<16x32xf32>
    %cst_66 = arith.constant dense<0.000000e+00> : vector<32xf32>
    %203 = vector.multi_reduction <add>, %202, %cst_66 [0] : vector<16x32xf32> to vector<32xf32>
    %204 = vector.shape_cast %203 : vector<32xf32> to vector<1x32xf32>
    %205 = arith.mulf %202, %202 : vector<16x32xf32>
    %cst_67 = arith.constant dense<0.000000e+00> : vector<32xf32>
    %206 = vector.multi_reduction <add>, %205, %cst_67 [0] : vector<16x32xf32> to vector<32xf32>
    %207 = vector.shape_cast %206 : vector<32xf32> to vector<1x32xf32>
    %208 = tpu.iota {dimensions = array<i32: 0>} : vector<2x32xi32>
    %c0_i32_68 = arith.constant 0 : i32
    %209 = vector.broadcast %c0_i32_68 : i32 to vector<2x32xi32>
    %210 = arith.cmpi eq, %208, %209 : vector<2x32xi32>
    %211 = vector.shape_cast %204 : vector<1x32xf32> to vector<1x32xf32>
    %212 = vector.broadcast %211 : vector<1x32xf32> to vector<2x32xf32>
    %213 = vector.shape_cast %207 : vector<1x32xf32> to vector<1x32xf32>
    %214 = vector.broadcast %213 : vector<1x32xf32> to vector<2x32xf32>
    %215 = arith.select %210, %212, %214 : vector<2x32xi1>, vector<2x32xf32>
    %216 = vector.extract_strided_slice %215 {offsets = [0, 0], sizes = [1, 32], strides = [1, 1]} : vector<2x32xf32> to vector<1x32xf32>
    %cst_69 = arith.constant 6.250000e-02 : f32
    %217 = vector.broadcast %cst_69 : f32 to vector<1x32xf32>
    %218 = arith.mulf %216, %217 : vector<1x32xf32>
    %219 = vector.extract_strided_slice %215 {offsets = [1, 0], sizes = [1, 32], strides = [1, 1]} : vector<2x32xf32> to vector<1x32xf32>
    %cst_70 = arith.constant 6.250000e-02 : f32
    %220 = vector.broadcast %cst_70 : f32 to vector<1x32xf32>
    %221 = arith.mulf %219, %220 : vector<1x32xf32>
    %222 = arith.mulf %218, %218 : vector<1x32xf32>
    %223 = arith.subf %221, %222 : vector<1x32xf32>
    %cst_71 = arith.constant 0.000000e+00 : f32
    %224 = vector.broadcast %cst_71 : f32 to vector<1x32xf32>
    %225 = arith.maximumf %223, %224 : vector<1x32xf32>
    %cst_72 = arith.constant 9.99999974E-6 : f32
    %226 = vector.broadcast %cst_72 : f32 to vector<1x32xf32>
    %227 = arith.addf %225, %226 : vector<1x32xf32>
    %228 = math.rsqrt %227 : vector<1x32xf32>
    %229 = vector.broadcast %218 : vector<1x32xf32> to vector<16x32xf32>
    %230 = arith.subf %202, %229 : vector<16x32xf32>
    %231 = vector.extract_strided_slice %2 {offsets = [1, 0], sizes = [1, 32], strides = [1, 1]} : vector<3x32xf32> to vector<1x32xf32>
    %232 = arith.mulf %228, %231 : vector<1x32xf32>
    %233 = vector.broadcast %232 : vector<1x32xf32> to vector<16x32xf32>
    %234 = arith.mulf %230, %233 : vector<16x32xf32>
    %235 = vector.extract_strided_slice %2 {offsets = [2, 0], sizes = [1, 32], strides = [1, 1]} : vector<3x32xf32> to vector<1x32xf32>
    %236 = vector.broadcast %235 : vector<1x32xf32> to vector<16x32xf32>
    %237 = arith.addf %234, %236 : vector<16x32xf32>
    %cst_73 = arith.constant 0.000000e+00 : f32
    %238 = vector.broadcast %cst_73 : f32 to vector<16x32xf32>
    %239 = arith.maximumf %237, %238 : vector<16x32xf32>
    %c0_74 = arith.constant 0 : index
    %c0_75 = arith.constant 0 : index
    %240 = vector.load %arg8[%c0_74, %c0_75] : memref<256x64xf32, #tpu.memory_space<vmem>>, vector<256x64xf32>
    %241 = tpu.iota {dimensions = array<i32: 0>} : vector<2x16xi32>
    %242 = tpu.iota {dimensions = array<i32: 1>} : vector<2x16xi32>
    %cst_76 = arith.constant 0.000000e+00 : f32
    %243 = vector.broadcast %cst_76 : f32 to vector<2x64xf32>
    %c8_i32_77 = arith.constant 8 : i32
    %244 = vector.broadcast %c8_i32_77 : i32 to vector<2x16xi32>
    %245 = arith.muli %244, %241 : vector<2x16xi32>
    %c0_i32_78 = arith.constant 0 : i32
    %246 = vector.broadcast %c0_i32_78 : i32 to vector<2x16xi32>
    %247 = arith.addi %245, %246 : vector<2x16xi32>
    %248 = arith.cmpi eq, %242, %247 : vector<2x16xi32>
    %249 = arith.extui %248 : vector<2x16xi1> to vector<2x16xi32>
    %250 = arith.sitofp %249 : vector<2x16xi32> to vector<2x16xf32>
    %cst_79 = arith.constant dense<0.000000e+00> : vector<2x32xf32>
    %251 = tpu.matmul %250, %239, %cst_79 {dimension_numbers = #tpu.dot_dimension_numbers<[1], [0], [0], [1], [0, 0, 1, 1], [], []>} : vector<2x16xf32>, vector<16x32xf32>, vector<2x32xf32> -> vector<2x32xf32>
    %252 = vector.extract_strided_slice %240 {offsets = [0, 0], sizes = [32, 64], strides = [1, 1]} : vector<256x64xf32> to vector<32x64xf32>
    %cst_80 = arith.constant dense<0.000000e+00> : vector<2x64xf32>
    %253 = tpu.matmul %251, %252, %cst_80 {dimension_numbers = #tpu.dot_dimension_numbers<[1], [0], [0], [1], [0, 0, 1, 1], [], []>} : vector<2x32xf32>, vector<32x64xf32>, vector<2x64xf32> -> vector<2x64xf32>
    %254 = arith.addf %243, %253 : vector<2x64xf32>
    %c8_i32_81 = arith.constant 8 : i32
    %255 = vector.broadcast %c8_i32_81 : i32 to vector<2x16xi32>
    %256 = arith.muli %255, %241 : vector<2x16xi32>
    %c1_i32_82 = arith.constant 1 : i32
    %257 = vector.broadcast %c1_i32_82 : i32 to vector<2x16xi32>
    %258 = arith.addi %256, %257 : vector<2x16xi32>
    %259 = arith.cmpi eq, %242, %258 : vector<2x16xi32>
    %260 = arith.extui %259 : vector<2x16xi1> to vector<2x16xi32>
    %261 = arith.sitofp %260 : vector<2x16xi32> to vector<2x16xf32>
    %cst_83 = arith.constant dense<0.000000e+00> : vector<2x32xf32>
    %262 = tpu.matmul %261, %239, %cst_83 {dimension_numbers = #tpu.dot_dimension_numbers<[1], [0], [0], [1], [0, 0, 1, 1], [], []>} : vector<2x16xf32>, vector<16x32xf32>, vector<2x32xf32> -> vector<2x32xf32>
    %263 = vector.extract_strided_slice %240 {offsets = [32, 0], sizes = [32, 64], strides = [1, 1]} : vector<256x64xf32> to vector<32x64xf32>
    %cst_84 = arith.constant dense<0.000000e+00> : vector<2x64xf32>
    %264 = tpu.matmul %262, %263, %cst_84 {dimension_numbers = #tpu.dot_dimension_numbers<[1], [0], [0], [1], [0, 0, 1, 1], [], []>} : vector<2x32xf32>, vector<32x64xf32>, vector<2x64xf32> -> vector<2x64xf32>
    %265 = arith.addf %254, %264 : vector<2x64xf32>
    %c8_i32_85 = arith.constant 8 : i32
    %266 = vector.broadcast %c8_i32_85 : i32 to vector<2x16xi32>
    %267 = arith.muli %266, %241 : vector<2x16xi32>
    %c2_i32_86 = arith.constant 2 : i32
    %268 = vector.broadcast %c2_i32_86 : i32 to vector<2x16xi32>
    %269 = arith.addi %267, %268 : vector<2x16xi32>
    %270 = arith.cmpi eq, %242, %269 : vector<2x16xi32>
    %271 = arith.extui %270 : vector<2x16xi1> to vector<2x16xi32>
    %272 = arith.sitofp %271 : vector<2x16xi32> to vector<2x16xf32>
    %cst_87 = arith.constant dense<0.000000e+00> : vector<2x32xf32>
    %273 = tpu.matmul %272, %239, %cst_87 {dimension_numbers = #tpu.dot_dimension_numbers<[1], [0], [0], [1], [0, 0, 1, 1], [], []>} : vector<2x16xf32>, vector<16x32xf32>, vector<2x32xf32> -> vector<2x32xf32>
    %274 = vector.extract_strided_slice %240 {offsets = [64, 0], sizes = [32, 64], strides = [1, 1]} : vector<256x64xf32> to vector<32x64xf32>
    %cst_88 = arith.constant dense<0.000000e+00> : vector<2x64xf32>
    %275 = tpu.matmul %273, %274, %cst_88 {dimension_numbers = #tpu.dot_dimension_numbers<[1], [0], [0], [1], [0, 0, 1, 1], [], []>} : vector<2x32xf32>, vector<32x64xf32>, vector<2x64xf32> -> vector<2x64xf32>
    %276 = arith.addf %265, %275 : vector<2x64xf32>
    %c8_i32_89 = arith.constant 8 : i32
    %277 = vector.broadcast %c8_i32_89 : i32 to vector<2x16xi32>
    %278 = arith.muli %277, %241 : vector<2x16xi32>
    %c3_i32_90 = arith.constant 3 : i32
    %279 = vector.broadcast %c3_i32_90 : i32 to vector<2x16xi32>
    %280 = arith.addi %278, %279 : vector<2x16xi32>
    %281 = arith.cmpi eq, %242, %280 : vector<2x16xi32>
    %282 = arith.extui %281 : vector<2x16xi1> to vector<2x16xi32>
    %283 = arith.sitofp %282 : vector<2x16xi32> to vector<2x16xf32>
    %cst_91 = arith.constant dense<0.000000e+00> : vector<2x32xf32>
    %284 = tpu.matmul %283, %239, %cst_91 {dimension_numbers = #tpu.dot_dimension_numbers<[1], [0], [0], [1], [0, 0, 1, 1], [], []>} : vector<2x16xf32>, vector<16x32xf32>, vector<2x32xf32> -> vector<2x32xf32>
    %285 = vector.extract_strided_slice %240 {offsets = [96, 0], sizes = [32, 64], strides = [1, 1]} : vector<256x64xf32> to vector<32x64xf32>
    %cst_92 = arith.constant dense<0.000000e+00> : vector<2x64xf32>
    %286 = tpu.matmul %284, %285, %cst_92 {dimension_numbers = #tpu.dot_dimension_numbers<[1], [0], [0], [1], [0, 0, 1, 1], [], []>} : vector<2x32xf32>, vector<32x64xf32>, vector<2x64xf32> -> vector<2x64xf32>
    %287 = arith.addf %276, %286 : vector<2x64xf32>
    %c8_i32_93 = arith.constant 8 : i32
    %288 = vector.broadcast %c8_i32_93 : i32 to vector<2x16xi32>
    %289 = arith.muli %288, %241 : vector<2x16xi32>
    %c4_i32_94 = arith.constant 4 : i32
    %290 = vector.broadcast %c4_i32_94 : i32 to vector<2x16xi32>
    %291 = arith.addi %289, %290 : vector<2x16xi32>
    %292 = arith.cmpi eq, %242, %291 : vector<2x16xi32>
    %293 = arith.extui %292 : vector<2x16xi1> to vector<2x16xi32>
    %294 = arith.sitofp %293 : vector<2x16xi32> to vector<2x16xf32>
    %cst_95 = arith.constant dense<0.000000e+00> : vector<2x32xf32>
    %295 = tpu.matmul %294, %239, %cst_95 {dimension_numbers = #tpu.dot_dimension_numbers<[1], [0], [0], [1], [0, 0, 1, 1], [], []>} : vector<2x16xf32>, vector<16x32xf32>, vector<2x32xf32> -> vector<2x32xf32>
    %296 = vector.extract_strided_slice %240 {offsets = [128, 0], sizes = [32, 64], strides = [1, 1]} : vector<256x64xf32> to vector<32x64xf32>
    %cst_96 = arith.constant dense<0.000000e+00> : vector<2x64xf32>
    %297 = tpu.matmul %295, %296, %cst_96 {dimension_numbers = #tpu.dot_dimension_numbers<[1], [0], [0], [1], [0, 0, 1, 1], [], []>} : vector<2x32xf32>, vector<32x64xf32>, vector<2x64xf32> -> vector<2x64xf32>
    %298 = arith.addf %287, %297 : vector<2x64xf32>
    %c8_i32_97 = arith.constant 8 : i32
    %299 = vector.broadcast %c8_i32_97 : i32 to vector<2x16xi32>
    %300 = arith.muli %299, %241 : vector<2x16xi32>
    %c5_i32_98 = arith.constant 5 : i32
    %301 = vector.broadcast %c5_i32_98 : i32 to vector<2x16xi32>
    %302 = arith.addi %300, %301 : vector<2x16xi32>
    %303 = arith.cmpi eq, %242, %302 : vector<2x16xi32>
    %304 = arith.extui %303 : vector<2x16xi1> to vector<2x16xi32>
    %305 = arith.sitofp %304 : vector<2x16xi32> to vector<2x16xf32>
    %cst_99 = arith.constant dense<0.000000e+00> : vector<2x32xf32>
    %306 = tpu.matmul %305, %239, %cst_99 {dimension_numbers = #tpu.dot_dimension_numbers<[1], [0], [0], [1], [0, 0, 1, 1], [], []>} : vector<2x16xf32>, vector<16x32xf32>, vector<2x32xf32> -> vector<2x32xf32>
    %307 = vector.extract_strided_slice %240 {offsets = [160, 0], sizes = [32, 64], strides = [1, 1]} : vector<256x64xf32> to vector<32x64xf32>
    %cst_100 = arith.constant dense<0.000000e+00> : vector<2x64xf32>
    %308 = tpu.matmul %306, %307, %cst_100 {dimension_numbers = #tpu.dot_dimension_numbers<[1], [0], [0], [1], [0, 0, 1, 1], [], []>} : vector<2x32xf32>, vector<32x64xf32>, vector<2x64xf32> -> vector<2x64xf32>
    %309 = arith.addf %298, %308 : vector<2x64xf32>
    %c8_i32_101 = arith.constant 8 : i32
    %310 = vector.broadcast %c8_i32_101 : i32 to vector<2x16xi32>
    %311 = arith.muli %310, %241 : vector<2x16xi32>
    %c6_i32_102 = arith.constant 6 : i32
    %312 = vector.broadcast %c6_i32_102 : i32 to vector<2x16xi32>
    %313 = arith.addi %311, %312 : vector<2x16xi32>
    %314 = arith.cmpi eq, %242, %313 : vector<2x16xi32>
    %315 = arith.extui %314 : vector<2x16xi1> to vector<2x16xi32>
    %316 = arith.sitofp %315 : vector<2x16xi32> to vector<2x16xf32>
    %cst_103 = arith.constant dense<0.000000e+00> : vector<2x32xf32>
    %317 = tpu.matmul %316, %239, %cst_103 {dimension_numbers = #tpu.dot_dimension_numbers<[1], [0], [0], [1], [0, 0, 1, 1], [], []>} : vector<2x16xf32>, vector<16x32xf32>, vector<2x32xf32> -> vector<2x32xf32>
    %318 = vector.extract_strided_slice %240 {offsets = [192, 0], sizes = [32, 64], strides = [1, 1]} : vector<256x64xf32> to vector<32x64xf32>
    %cst_104 = arith.constant dense<0.000000e+00> : vector<2x64xf32>
    %319 = tpu.matmul %317, %318, %cst_104 {dimension_numbers = #tpu.dot_dimension_numbers<[1], [0], [0], [1], [0, 0, 1, 1], [], []>} : vector<2x32xf32>, vector<32x64xf32>, vector<2x64xf32> -> vector<2x64xf32>
    %320 = arith.addf %309, %319 : vector<2x64xf32>
    %c8_i32_105 = arith.constant 8 : i32
    %321 = vector.broadcast %c8_i32_105 : i32 to vector<2x16xi32>
    %322 = arith.muli %321, %241 : vector<2x16xi32>
    %c7_i32_106 = arith.constant 7 : i32
    %323 = vector.broadcast %c7_i32_106 : i32 to vector<2x16xi32>
    %324 = arith.addi %322, %323 : vector<2x16xi32>
    %325 = arith.cmpi eq, %242, %324 : vector<2x16xi32>
    %326 = arith.extui %325 : vector<2x16xi1> to vector<2x16xi32>
    %327 = arith.sitofp %326 : vector<2x16xi32> to vector<2x16xf32>
    %cst_107 = arith.constant dense<0.000000e+00> : vector<2x32xf32>
    %328 = tpu.matmul %327, %239, %cst_107 {dimension_numbers = #tpu.dot_dimension_numbers<[1], [0], [0], [1], [0, 0, 1, 1], [], []>} : vector<2x16xf32>, vector<16x32xf32>, vector<2x32xf32> -> vector<2x32xf32>
    %329 = vector.extract_strided_slice %240 {offsets = [224, 0], sizes = [32, 64], strides = [1, 1]} : vector<256x64xf32> to vector<32x64xf32>
    %cst_108 = arith.constant dense<0.000000e+00> : vector<2x64xf32>
    %330 = tpu.matmul %328, %329, %cst_108 {dimension_numbers = #tpu.dot_dimension_numbers<[1], [0], [0], [1], [0, 0, 1, 1], [], []>} : vector<2x32xf32>, vector<32x64xf32>, vector<2x64xf32> -> vector<2x64xf32>
    %331 = arith.addf %320, %330 : vector<2x64xf32>
    %332 = vector.extract_strided_slice %3 {offsets = [0, 0], sizes = [1, 64], strides = [1, 1]} : vector<3x64xf32> to vector<1x64xf32>
    %333 = vector.broadcast %332 : vector<1x64xf32> to vector<2x64xf32>
    %334 = arith.addf %331, %333 : vector<2x64xf32>
    %cst_109 = arith.constant dense<0.000000e+00> : vector<64xf32>
    %335 = vector.multi_reduction <add>, %334, %cst_109 [0] : vector<2x64xf32> to vector<64xf32>
    %336 = vector.shape_cast %335 : vector<64xf32> to vector<1x64xf32>
    %337 = arith.mulf %334, %334 : vector<2x64xf32>
    %cst_110 = arith.constant dense<0.000000e+00> : vector<64xf32>
    %338 = vector.multi_reduction <add>, %337, %cst_110 [0] : vector<2x64xf32> to vector<64xf32>
    %339 = vector.shape_cast %338 : vector<64xf32> to vector<1x64xf32>
    %340 = tpu.iota {dimensions = array<i32: 0>} : vector<2x64xi32>
    %c0_i32_111 = arith.constant 0 : i32
    %341 = vector.broadcast %c0_i32_111 : i32 to vector<2x64xi32>
    %342 = arith.cmpi eq, %340, %341 : vector<2x64xi32>
    %343 = vector.shape_cast %336 : vector<1x64xf32> to vector<1x64xf32>
    %344 = vector.broadcast %343 : vector<1x64xf32> to vector<2x64xf32>
    %345 = vector.shape_cast %339 : vector<1x64xf32> to vector<1x64xf32>
    %346 = vector.broadcast %345 : vector<1x64xf32> to vector<2x64xf32>
    %347 = arith.select %342, %344, %346 : vector<2x64xi1>, vector<2x64xf32>
    %348 = vector.extract_strided_slice %347 {offsets = [0, 0], sizes = [1, 64], strides = [1, 1]} : vector<2x64xf32> to vector<1x64xf32>
    %cst_112 = arith.constant 5.000000e-01 : f32
    %349 = vector.broadcast %cst_112 : f32 to vector<1x64xf32>
    %350 = arith.mulf %348, %349 : vector<1x64xf32>
    %351 = vector.extract_strided_slice %347 {offsets = [1, 0], sizes = [1, 64], strides = [1, 1]} : vector<2x64xf32> to vector<1x64xf32>
    %cst_113 = arith.constant 5.000000e-01 : f32
    %352 = vector.broadcast %cst_113 : f32 to vector<1x64xf32>
    %353 = arith.mulf %351, %352 : vector<1x64xf32>
    %354 = arith.mulf %350, %350 : vector<1x64xf32>
    %355 = arith.subf %353, %354 : vector<1x64xf32>
    %cst_114 = arith.constant 0.000000e+00 : f32
    %356 = vector.broadcast %cst_114 : f32 to vector<1x64xf32>
    %357 = arith.maximumf %355, %356 : vector<1x64xf32>
    %cst_115 = arith.constant 9.99999974E-6 : f32
    %358 = vector.broadcast %cst_115 : f32 to vector<1x64xf32>
    %359 = arith.addf %357, %358 : vector<1x64xf32>
    %360 = math.rsqrt %359 : vector<1x64xf32>
    %361 = vector.broadcast %350 : vector<1x64xf32> to vector<2x64xf32>
    %362 = arith.subf %334, %361 : vector<2x64xf32>
    %363 = vector.extract_strided_slice %3 {offsets = [1, 0], sizes = [1, 64], strides = [1, 1]} : vector<3x64xf32> to vector<1x64xf32>
    %364 = arith.mulf %360, %363 : vector<1x64xf32>
    %365 = vector.broadcast %364 : vector<1x64xf32> to vector<2x64xf32>
    %366 = arith.mulf %362, %365 : vector<2x64xf32>
    %367 = vector.extract_strided_slice %3 {offsets = [2, 0], sizes = [1, 64], strides = [1, 1]} : vector<3x64xf32> to vector<1x64xf32>
    %368 = vector.broadcast %367 : vector<1x64xf32> to vector<2x64xf32>
    %369 = arith.addf %366, %368 : vector<2x64xf32>
    %cst_116 = arith.constant 0.000000e+00 : f32
    %370 = vector.broadcast %cst_116 : f32 to vector<2x64xf32>
    %371 = arith.maximumf %369, %370 : vector<2x64xf32>
    %c0_117 = arith.constant 0 : index
    %c0_118 = arith.constant 0 : index
    %372 = vector.load %arg10[%c0_117, %c0_118] : memref<64x256xf32, #tpu.memory_space<vmem>>, vector<64x256xf32>
    %cst_119 = arith.constant dense<0.000000e+00> : vector<2x256xf32>
    %373 = tpu.matmul %371, %372, %cst_119 {dimension_numbers = #tpu.dot_dimension_numbers<[1], [0], [0], [1], [0, 0, 1, 1], [], []>} : vector<2x64xf32>, vector<64x256xf32>, vector<2x256xf32> -> vector<2x256xf32>
    %374 = vector.extract_strided_slice %4 {offsets = [0, 0], sizes = [1, 256], strides = [1, 1]} : vector<3x256xf32> to vector<1x256xf32>
    %375 = vector.broadcast %374 : vector<1x256xf32> to vector<2x256xf32>
    %376 = arith.addf %373, %375 : vector<2x256xf32>
    %cst_120 = arith.constant dense<0.000000e+00> : vector<256xf32>
    %377 = vector.multi_reduction <add>, %376, %cst_120 [0] : vector<2x256xf32> to vector<256xf32>
    %378 = vector.shape_cast %377 : vector<256xf32> to vector<1x256xf32>
    %379 = arith.mulf %376, %376 : vector<2x256xf32>
    %cst_121 = arith.constant dense<0.000000e+00> : vector<256xf32>
    %380 = vector.multi_reduction <add>, %379, %cst_121 [0] : vector<2x256xf32> to vector<256xf32>
    %381 = vector.shape_cast %380 : vector<256xf32> to vector<1x256xf32>
    %382 = tpu.iota {dimensions = array<i32: 0>} : vector<2x256xi32>
    %c0_i32_122 = arith.constant 0 : i32
    %383 = vector.broadcast %c0_i32_122 : i32 to vector<2x256xi32>
    %384 = arith.cmpi eq, %382, %383 : vector<2x256xi32>
    %385 = vector.shape_cast %378 : vector<1x256xf32> to vector<1x256xf32>
    %386 = vector.broadcast %385 : vector<1x256xf32> to vector<2x256xf32>
    %387 = vector.shape_cast %381 : vector<1x256xf32> to vector<1x256xf32>
    %388 = vector.broadcast %387 : vector<1x256xf32> to vector<2x256xf32>
    %389 = arith.select %384, %386, %388 : vector<2x256xi1>, vector<2x256xf32>
    %390 = tpu.iota {dimensions = array<i32: 0>} : vector<256x32xi32>
    %c31_i32 = arith.constant 31 : i32
    %391 = vector.broadcast %c31_i32 : i32 to vector<256x32xi32>
    %392 = arith.andi %390, %391 : vector<256x32xi32>
    %393 = tpu.iota {dimensions = array<i32: 1>} : vector<256x32xi32>
    %394 = arith.cmpi eq, %392, %393 : vector<256x32xi32>
    %395 = tpu.iota {dimensions = array<i32: 1>} : vector<32x256xi32>
    %c31_i32_123 = arith.constant 31 : i32
    %396 = vector.broadcast %c31_i32_123 : i32 to vector<32x256xi32>
    %397 = arith.andi %395, %396 : vector<32x256xi32>
    %398 = tpu.iota {dimensions = array<i32: 0>} : vector<32x256xi32>
    %399 = arith.cmpi eq, %397, %398 : vector<32x256xi32>
    %400 = arith.extui %394 : vector<256x32xi1> to vector<256x32xi32>
    %401 = arith.sitofp %400 : vector<256x32xi32> to vector<256x32xf32>
    %cst_124 = arith.constant dense<0.000000e+00> : vector<2x32xf32>
    %402 = tpu.matmul %389, %401, %cst_124 {dimension_numbers = #tpu.dot_dimension_numbers<[1], [0], [0], [1], [0, 0, 1, 1], [], []>} : vector<2x256xf32>, vector<256x32xf32>, vector<2x32xf32> -> vector<2x32xf32>
    %403 = arith.extui %399 : vector<32x256xi1> to vector<32x256xi32>
    %404 = arith.sitofp %403 : vector<32x256xi32> to vector<32x256xf32>
    %cst_125 = arith.constant dense<0.000000e+00> : vector<2x256xf32>
    %405 = tpu.matmul %402, %404, %cst_125 {dimension_numbers = #tpu.dot_dimension_numbers<[1], [0], [0], [1], [0, 0, 1, 1], [], []>} : vector<2x32xf32>, vector<32x256xf32>, vector<2x256xf32> -> vector<2x256xf32>
    %406 = vector.extract_strided_slice %405 {offsets = [0, 0], sizes = [1, 256], strides = [1, 1]} : vector<2x256xf32> to vector<1x256xf32>
    %cst_126 = arith.constant 6.250000e-02 : f32
    %407 = vector.broadcast %cst_126 : f32 to vector<1x256xf32>
    %408 = arith.mulf %406, %407 : vector<1x256xf32>
    %409 = vector.extract_strided_slice %405 {offsets = [1, 0], sizes = [1, 256], strides = [1, 1]} : vector<2x256xf32> to vector<1x256xf32>
    %cst_127 = arith.constant 6.250000e-02 : f32
    %410 = vector.broadcast %cst_127 : f32 to vector<1x256xf32>
    %411 = arith.mulf %409, %410 : vector<1x256xf32>
    %412 = arith.mulf %408, %408 : vector<1x256xf32>
    %413 = arith.subf %411, %412 : vector<1x256xf32>
    %cst_128 = arith.constant 0.000000e+00 : f32
    %414 = vector.broadcast %cst_128 : f32 to vector<1x256xf32>
    %415 = arith.maximumf %413, %414 : vector<1x256xf32>
    %cst_129 = arith.constant 9.99999974E-6 : f32
    %416 = vector.broadcast %cst_129 : f32 to vector<1x256xf32>
    %417 = arith.addf %415, %416 : vector<1x256xf32>
    %418 = math.rsqrt %417 : vector<1x256xf32>
    %419 = vector.broadcast %408 : vector<1x256xf32> to vector<2x256xf32>
    %420 = arith.subf %376, %419 : vector<2x256xf32>
    %421 = vector.extract_strided_slice %4 {offsets = [1, 0], sizes = [1, 256], strides = [1, 1]} : vector<3x256xf32> to vector<1x256xf32>
    %422 = arith.mulf %418, %421 : vector<1x256xf32>
    %423 = vector.broadcast %422 : vector<1x256xf32> to vector<2x256xf32>
    %424 = arith.mulf %420, %423 : vector<2x256xf32>
    %425 = vector.extract_strided_slice %4 {offsets = [2, 0], sizes = [1, 256], strides = [1, 1]} : vector<3x256xf32> to vector<1x256xf32>
    %426 = vector.broadcast %425 : vector<1x256xf32> to vector<2x256xf32>
    %427 = arith.addf %424, %426 : vector<2x256xf32>
    %cst_130 = arith.constant 0.000000e+00 : f32
    %428 = vector.broadcast %cst_130 : f32 to vector<2x256xf32>
    %429 = arith.maximumf %427, %428 : vector<2x256xf32>
    %c0_131 = arith.constant 0 : index
    %c0_132 = arith.constant 0 : index
    %430 = vector.load %arg12[%c0_131, %c0_132] : memref<32x128xf32, #tpu.memory_space<vmem>>, vector<32x128xf32>
    %431 = tpu.iota {dimensions = array<i32: 0>} : vector<16x2xi32>
    %432 = tpu.iota {dimensions = array<i32: 1>} : vector<16x2xi32>
    %cst_133 = arith.constant 0.000000e+00 : f32
    %433 = vector.broadcast %cst_133 : f32 to vector<16x128xf32>
    %c8_i32_134 = arith.constant 8 : i32
    %434 = vector.broadcast %c8_i32_134 : i32 to vector<16x2xi32>
    %435 = arith.muli %434, %432 : vector<16x2xi32>
    %c0_i32_135 = arith.constant 0 : i32
    %436 = vector.broadcast %c0_i32_135 : i32 to vector<16x2xi32>
    %437 = arith.addi %435, %436 : vector<16x2xi32>
    %438 = arith.cmpi eq, %431, %437 : vector<16x2xi32>
    %439 = arith.extui %438 : vector<16x2xi1> to vector<16x2xi32>
    %440 = arith.sitofp %439 : vector<16x2xi32> to vector<16x2xf32>
    %441 = vector.extract_strided_slice %429 {offsets = [0, 0], sizes = [2, 32], strides = [1, 1]} : vector<2x256xf32> to vector<2x32xf32>
    %cst_136 = arith.constant dense<0.000000e+00> : vector<2x128xf32>
    %442 = tpu.matmul %441, %430, %cst_136 {dimension_numbers = #tpu.dot_dimension_numbers<[1], [0], [0], [1], [0, 0, 1, 1], [], []>} : vector<2x32xf32>, vector<32x128xf32>, vector<2x128xf32> -> vector<2x128xf32>
    %cst_137 = arith.constant dense<0.000000e+00> : vector<16x128xf32>
    %443 = tpu.matmul %440, %442, %cst_137 {dimension_numbers = #tpu.dot_dimension_numbers<[1], [0], [0], [1], [0, 0, 1, 1], [], []>} : vector<16x2xf32>, vector<2x128xf32>, vector<16x128xf32> -> vector<16x128xf32>
    %444 = arith.addf %433, %443 : vector<16x128xf32>
    %c8_i32_138 = arith.constant 8 : i32
    %445 = vector.broadcast %c8_i32_138 : i32 to vector<16x2xi32>
    %446 = arith.muli %445, %432 : vector<16x2xi32>
    %c1_i32_139 = arith.constant 1 : i32
    %447 = vector.broadcast %c1_i32_139 : i32 to vector<16x2xi32>
    %448 = arith.addi %446, %447 : vector<16x2xi32>
    %449 = arith.cmpi eq, %431, %448 : vector<16x2xi32>
    %450 = arith.extui %449 : vector<16x2xi1> to vector<16x2xi32>
    %451 = arith.sitofp %450 : vector<16x2xi32> to vector<16x2xf32>
    %452 = vector.extract_strided_slice %429 {offsets = [0, 32], sizes = [2, 32], strides = [1, 1]} : vector<2x256xf32> to vector<2x32xf32>
    %cst_140 = arith.constant dense<0.000000e+00> : vector<2x128xf32>
    %453 = tpu.matmul %452, %430, %cst_140 {dimension_numbers = #tpu.dot_dimension_numbers<[1], [0], [0], [1], [0, 0, 1, 1], [], []>} : vector<2x32xf32>, vector<32x128xf32>, vector<2x128xf32> -> vector<2x128xf32>
    %cst_141 = arith.constant dense<0.000000e+00> : vector<16x128xf32>
    %454 = tpu.matmul %451, %453, %cst_141 {dimension_numbers = #tpu.dot_dimension_numbers<[1], [0], [0], [1], [0, 0, 1, 1], [], []>} : vector<16x2xf32>, vector<2x128xf32>, vector<16x128xf32> -> vector<16x128xf32>
    %455 = arith.addf %444, %454 : vector<16x128xf32>
    %c8_i32_142 = arith.constant 8 : i32
    %456 = vector.broadcast %c8_i32_142 : i32 to vector<16x2xi32>
    %457 = arith.muli %456, %432 : vector<16x2xi32>
    %c2_i32_143 = arith.constant 2 : i32
    %458 = vector.broadcast %c2_i32_143 : i32 to vector<16x2xi32>
    %459 = arith.addi %457, %458 : vector<16x2xi32>
    %460 = arith.cmpi eq, %431, %459 : vector<16x2xi32>
    %461 = arith.extui %460 : vector<16x2xi1> to vector<16x2xi32>
    %462 = arith.sitofp %461 : vector<16x2xi32> to vector<16x2xf32>
    %463 = vector.extract_strided_slice %429 {offsets = [0, 64], sizes = [2, 32], strides = [1, 1]} : vector<2x256xf32> to vector<2x32xf32>
    %cst_144 = arith.constant dense<0.000000e+00> : vector<2x128xf32>
    %464 = tpu.matmul %463, %430, %cst_144 {dimension_numbers = #tpu.dot_dimension_numbers<[1], [0], [0], [1], [0, 0, 1, 1], [], []>} : vector<2x32xf32>, vector<32x128xf32>, vector<2x128xf32> -> vector<2x128xf32>
    %cst_145 = arith.constant dense<0.000000e+00> : vector<16x128xf32>
    %465 = tpu.matmul %462, %464, %cst_145 {dimension_numbers = #tpu.dot_dimension_numbers<[1], [0], [0], [1], [0, 0, 1, 1], [], []>} : vector<16x2xf32>, vector<2x128xf32>, vector<16x128xf32> -> vector<16x128xf32>
    %466 = arith.addf %455, %465 : vector<16x128xf32>
    %c8_i32_146 = arith.constant 8 : i32
    %467 = vector.broadcast %c8_i32_146 : i32 to vector<16x2xi32>
    %468 = arith.muli %467, %432 : vector<16x2xi32>
    %c3_i32_147 = arith.constant 3 : i32
    %469 = vector.broadcast %c3_i32_147 : i32 to vector<16x2xi32>
    %470 = arith.addi %468, %469 : vector<16x2xi32>
    %471 = arith.cmpi eq, %431, %470 : vector<16x2xi32>
    %472 = arith.extui %471 : vector<16x2xi1> to vector<16x2xi32>
    %473 = arith.sitofp %472 : vector<16x2xi32> to vector<16x2xf32>
    %474 = vector.extract_strided_slice %429 {offsets = [0, 96], sizes = [2, 32], strides = [1, 1]} : vector<2x256xf32> to vector<2x32xf32>
    %cst_148 = arith.constant dense<0.000000e+00> : vector<2x128xf32>
    %475 = tpu.matmul %474, %430, %cst_148 {dimension_numbers = #tpu.dot_dimension_numbers<[1], [0], [0], [1], [0, 0, 1, 1], [], []>} : vector<2x32xf32>, vector<32x128xf32>, vector<2x128xf32> -> vector<2x128xf32>
    %cst_149 = arith.constant dense<0.000000e+00> : vector<16x128xf32>
    %476 = tpu.matmul %473, %475, %cst_149 {dimension_numbers = #tpu.dot_dimension_numbers<[1], [0], [0], [1], [0, 0, 1, 1], [], []>} : vector<16x2xf32>, vector<2x128xf32>, vector<16x128xf32> -> vector<16x128xf32>
    %477 = arith.addf %466, %476 : vector<16x128xf32>
    %c8_i32_150 = arith.constant 8 : i32
    %478 = vector.broadcast %c8_i32_150 : i32 to vector<16x2xi32>
    %479 = arith.muli %478, %432 : vector<16x2xi32>
    %c4_i32_151 = arith.constant 4 : i32
    %480 = vector.broadcast %c4_i32_151 : i32 to vector<16x2xi32>
    %481 = arith.addi %479, %480 : vector<16x2xi32>
    %482 = arith.cmpi eq, %431, %481 : vector<16x2xi32>
    %483 = arith.extui %482 : vector<16x2xi1> to vector<16x2xi32>
    %484 = arith.sitofp %483 : vector<16x2xi32> to vector<16x2xf32>
    %485 = vector.extract_strided_slice %429 {offsets = [0, 128], sizes = [2, 32], strides = [1, 1]} : vector<2x256xf32> to vector<2x32xf32>
    %cst_152 = arith.constant dense<0.000000e+00> : vector<2x128xf32>
    %486 = tpu.matmul %485, %430, %cst_152 {dimension_numbers = #tpu.dot_dimension_numbers<[1], [0], [0], [1], [0, 0, 1, 1], [], []>} : vector<2x32xf32>, vector<32x128xf32>, vector<2x128xf32> -> vector<2x128xf32>
    %cst_153 = arith.constant dense<0.000000e+00> : vector<16x128xf32>
    %487 = tpu.matmul %484, %486, %cst_153 {dimension_numbers = #tpu.dot_dimension_numbers<[1], [0], [0], [1], [0, 0, 1, 1], [], []>} : vector<16x2xf32>, vector<2x128xf32>, vector<16x128xf32> -> vector<16x128xf32>
    %488 = arith.addf %477, %487 : vector<16x128xf32>
    %c8_i32_154 = arith.constant 8 : i32
    %489 = vector.broadcast %c8_i32_154 : i32 to vector<16x2xi32>
    %490 = arith.muli %489, %432 : vector<16x2xi32>
    %c5_i32_155 = arith.constant 5 : i32
    %491 = vector.broadcast %c5_i32_155 : i32 to vector<16x2xi32>
    %492 = arith.addi %490, %491 : vector<16x2xi32>
    %493 = arith.cmpi eq, %431, %492 : vector<16x2xi32>
    %494 = arith.extui %493 : vector<16x2xi1> to vector<16x2xi32>
    %495 = arith.sitofp %494 : vector<16x2xi32> to vector<16x2xf32>
    %496 = vector.extract_strided_slice %429 {offsets = [0, 160], sizes = [2, 32], strides = [1, 1]} : vector<2x256xf32> to vector<2x32xf32>
    %cst_156 = arith.constant dense<0.000000e+00> : vector<2x128xf32>
    %497 = tpu.matmul %496, %430, %cst_156 {dimension_numbers = #tpu.dot_dimension_numbers<[1], [0], [0], [1], [0, 0, 1, 1], [], []>} : vector<2x32xf32>, vector<32x128xf32>, vector<2x128xf32> -> vector<2x128xf32>
    %cst_157 = arith.constant dense<0.000000e+00> : vector<16x128xf32>
    %498 = tpu.matmul %495, %497, %cst_157 {dimension_numbers = #tpu.dot_dimension_numbers<[1], [0], [0], [1], [0, 0, 1, 1], [], []>} : vector<16x2xf32>, vector<2x128xf32>, vector<16x128xf32> -> vector<16x128xf32>
    %499 = arith.addf %488, %498 : vector<16x128xf32>
    %c8_i32_158 = arith.constant 8 : i32
    %500 = vector.broadcast %c8_i32_158 : i32 to vector<16x2xi32>
    %501 = arith.muli %500, %432 : vector<16x2xi32>
    %c6_i32_159 = arith.constant 6 : i32
    %502 = vector.broadcast %c6_i32_159 : i32 to vector<16x2xi32>
    %503 = arith.addi %501, %502 : vector<16x2xi32>
    %504 = arith.cmpi eq, %431, %503 : vector<16x2xi32>
    %505 = arith.extui %504 : vector<16x2xi1> to vector<16x2xi32>
    %506 = arith.sitofp %505 : vector<16x2xi32> to vector<16x2xf32>
    %507 = vector.extract_strided_slice %429 {offsets = [0, 192], sizes = [2, 32], strides = [1, 1]} : vector<2x256xf32> to vector<2x32xf32>
    %cst_160 = arith.constant dense<0.000000e+00> : vector<2x128xf32>
    %508 = tpu.matmul %507, %430, %cst_160 {dimension_numbers = #tpu.dot_dimension_numbers<[1], [0], [0], [1], [0, 0, 1, 1], [], []>} : vector<2x32xf32>, vector<32x128xf32>, vector<2x128xf32> -> vector<2x128xf32>
    %cst_161 = arith.constant dense<0.000000e+00> : vector<16x128xf32>
    %509 = tpu.matmul %506, %508, %cst_161 {dimension_numbers = #tpu.dot_dimension_numbers<[1], [0], [0], [1], [0, 0, 1, 1], [], []>} : vector<16x2xf32>, vector<2x128xf32>, vector<16x128xf32> -> vector<16x128xf32>
    %510 = arith.addf %499, %509 : vector<16x128xf32>
    %c8_i32_162 = arith.constant 8 : i32
    %511 = vector.broadcast %c8_i32_162 : i32 to vector<16x2xi32>
    %512 = arith.muli %511, %432 : vector<16x2xi32>
    %c7_i32_163 = arith.constant 7 : i32
    %513 = vector.broadcast %c7_i32_163 : i32 to vector<16x2xi32>
    %514 = arith.addi %512, %513 : vector<16x2xi32>
    %515 = arith.cmpi eq, %431, %514 : vector<16x2xi32>
    %516 = arith.extui %515 : vector<16x2xi1> to vector<16x2xi32>
    %517 = arith.sitofp %516 : vector<16x2xi32> to vector<16x2xf32>
    %518 = vector.extract_strided_slice %429 {offsets = [0, 224], sizes = [2, 32], strides = [1, 1]} : vector<2x256xf32> to vector<2x32xf32>
    %cst_164 = arith.constant dense<0.000000e+00> : vector<2x128xf32>
    %519 = tpu.matmul %518, %430, %cst_164 {dimension_numbers = #tpu.dot_dimension_numbers<[1], [0], [0], [1], [0, 0, 1, 1], [], []>} : vector<2x32xf32>, vector<32x128xf32>, vector<2x128xf32> -> vector<2x128xf32>
    %cst_165 = arith.constant dense<0.000000e+00> : vector<16x128xf32>
    %520 = tpu.matmul %517, %519, %cst_165 {dimension_numbers = #tpu.dot_dimension_numbers<[1], [0], [0], [1], [0, 0, 1, 1], [], []>} : vector<16x2xf32>, vector<2x128xf32>, vector<16x128xf32> -> vector<16x128xf32>
    %521 = arith.addf %510, %520 : vector<16x128xf32>
    %522 = vector.extract_strided_slice %5 {offsets = [0, 0], sizes = [1, 128], strides = [1, 1]} : vector<3x128xf32> to vector<1x128xf32>
    %523 = vector.broadcast %522 : vector<1x128xf32> to vector<16x128xf32>
    %524 = arith.addf %521, %523 : vector<16x128xf32>
    %cst_166 = arith.constant dense<0.000000e+00> : vector<128xf32>
    %525 = vector.multi_reduction <add>, %524, %cst_166 [0] : vector<16x128xf32> to vector<128xf32>
    %526 = vector.shape_cast %525 : vector<128xf32> to vector<1x128xf32>
    %527 = arith.mulf %524, %524 : vector<16x128xf32>
    %cst_167 = arith.constant dense<0.000000e+00> : vector<128xf32>
    %528 = vector.multi_reduction <add>, %527, %cst_167 [0] : vector<16x128xf32> to vector<128xf32>
    %529 = vector.shape_cast %528 : vector<128xf32> to vector<1x128xf32>
    %530 = tpu.iota {dimensions = array<i32: 0>} : vector<2x128xi32>
    %c0_i32_168 = arith.constant 0 : i32
    %531 = vector.broadcast %c0_i32_168 : i32 to vector<2x128xi32>
    %532 = arith.cmpi eq, %530, %531 : vector<2x128xi32>
    %533 = vector.shape_cast %526 : vector<1x128xf32> to vector<1x128xf32>
    %534 = vector.broadcast %533 : vector<1x128xf32> to vector<2x128xf32>
    %535 = vector.shape_cast %529 : vector<1x128xf32> to vector<1x128xf32>
    %536 = vector.broadcast %535 : vector<1x128xf32> to vector<2x128xf32>
    %537 = arith.select %532, %534, %536 : vector<2x128xi1>, vector<2x128xf32>
    %538 = tpu.iota {dimensions = array<i32: 0>} : vector<128x16xi32>
    %c15_i32 = arith.constant 15 : i32
    %539 = vector.broadcast %c15_i32 : i32 to vector<128x16xi32>
    %540 = arith.andi %538, %539 : vector<128x16xi32>
    %541 = tpu.iota {dimensions = array<i32: 1>} : vector<128x16xi32>
    %542 = arith.cmpi eq, %540, %541 : vector<128x16xi32>
    %543 = tpu.iota {dimensions = array<i32: 1>} : vector<16x128xi32>
    %c15_i32_169 = arith.constant 15 : i32
    %544 = vector.broadcast %c15_i32_169 : i32 to vector<16x128xi32>
    %545 = arith.andi %543, %544 : vector<16x128xi32>
    %546 = tpu.iota {dimensions = array<i32: 0>} : vector<16x128xi32>
    %547 = arith.cmpi eq, %545, %546 : vector<16x128xi32>
    %548 = arith.extui %542 : vector<128x16xi1> to vector<128x16xi32>
    %549 = arith.sitofp %548 : vector<128x16xi32> to vector<128x16xf32>
    %cst_170 = arith.constant dense<0.000000e+00> : vector<2x16xf32>
    %550 = tpu.matmul %537, %549, %cst_170 {dimension_numbers = #tpu.dot_dimension_numbers<[1], [0], [0], [1], [0, 0, 1, 1], [], []>} : vector<2x128xf32>, vector<128x16xf32>, vector<2x16xf32> -> vector<2x16xf32>
    %551 = arith.extui %547 : vector<16x128xi1> to vector<16x128xi32>
    %552 = arith.sitofp %551 : vector<16x128xi32> to vector<16x128xf32>
    %cst_171 = arith.constant dense<0.000000e+00> : vector<2x128xf32>
    %553 = tpu.matmul %550, %552, %cst_171 {dimension_numbers = #tpu.dot_dimension_numbers<[1], [0], [0], [1], [0, 0, 1, 1], [], []>} : vector<2x16xf32>, vector<16x128xf32>, vector<2x128xf32> -> vector<2x128xf32>
    %554 = vector.extract_strided_slice %553 {offsets = [0, 0], sizes = [1, 128], strides = [1, 1]} : vector<2x128xf32> to vector<1x128xf32>
    %cst_172 = arith.constant 7.812500e-03 : f32
    %555 = vector.broadcast %cst_172 : f32 to vector<1x128xf32>
    %556 = arith.mulf %554, %555 : vector<1x128xf32>
    %557 = vector.extract_strided_slice %553 {offsets = [1, 0], sizes = [1, 128], strides = [1, 1]} : vector<2x128xf32> to vector<1x128xf32>
    %cst_173 = arith.constant 7.812500e-03 : f32
    %558 = vector.broadcast %cst_173 : f32 to vector<1x128xf32>
    %559 = arith.mulf %557, %558 : vector<1x128xf32>
    %560 = arith.mulf %556, %556 : vector<1x128xf32>
    %561 = arith.subf %559, %560 : vector<1x128xf32>
    %cst_174 = arith.constant 0.000000e+00 : f32
    %562 = vector.broadcast %cst_174 : f32 to vector<1x128xf32>
    %563 = arith.maximumf %561, %562 : vector<1x128xf32>
    %cst_175 = arith.constant 9.99999974E-6 : f32
    %564 = vector.broadcast %cst_175 : f32 to vector<1x128xf32>
    %565 = arith.addf %563, %564 : vector<1x128xf32>
    %566 = math.rsqrt %565 : vector<1x128xf32>
    %567 = vector.broadcast %556 : vector<1x128xf32> to vector<16x128xf32>
    %568 = arith.subf %524, %567 : vector<16x128xf32>
    %569 = vector.extract_strided_slice %5 {offsets = [1, 0], sizes = [1, 128], strides = [1, 1]} : vector<3x128xf32> to vector<1x128xf32>
    %570 = arith.mulf %566, %569 : vector<1x128xf32>
    %571 = vector.broadcast %570 : vector<1x128xf32> to vector<16x128xf32>
    %572 = arith.mulf %568, %571 : vector<16x128xf32>
    %573 = vector.extract_strided_slice %5 {offsets = [2, 0], sizes = [1, 128], strides = [1, 1]} : vector<3x128xf32> to vector<1x128xf32>
    %574 = vector.broadcast %573 : vector<1x128xf32> to vector<16x128xf32>
    %575 = arith.addf %572, %574 : vector<16x128xf32>
    %cst_176 = arith.constant 0.000000e+00 : f32
    %576 = vector.broadcast %cst_176 : f32 to vector<16x128xf32>
    %577 = arith.maximumf %575, %576 : vector<16x128xf32>
    %c0_177 = arith.constant 0 : index
    %c0_178 = arith.constant 0 : index
    %578 = vector.load %arg14[%c0_177, %c0_178] : memref<16x64xf32, #tpu.memory_space<vmem>>, vector<16x64xf32>
    %579 = tpu.iota {dimensions = array<i32: 0>} : vector<128x16xi32>
    %580 = tpu.iota {dimensions = array<i32: 1>} : vector<128x16xi32>
    %cst_179 = arith.constant 0.000000e+00 : f32
    %581 = vector.broadcast %cst_179 : f32 to vector<128x64xf32>
    %c8_i32_180 = arith.constant 8 : i32
    %582 = vector.broadcast %c8_i32_180 : i32 to vector<128x16xi32>
    %583 = arith.muli %582, %580 : vector<128x16xi32>
    %c0_i32_181 = arith.constant 0 : i32
    %584 = vector.broadcast %c0_i32_181 : i32 to vector<128x16xi32>
    %585 = arith.addi %583, %584 : vector<128x16xi32>
    %586 = arith.cmpi eq, %579, %585 : vector<128x16xi32>
    %587 = arith.extui %586 : vector<128x16xi1> to vector<128x16xi32>
    %588 = arith.sitofp %587 : vector<128x16xi32> to vector<128x16xf32>
    %589 = vector.extract_strided_slice %577 {offsets = [0, 0], sizes = [16, 16], strides = [1, 1]} : vector<16x128xf32> to vector<16x16xf32>
    %cst_182 = arith.constant dense<0.000000e+00> : vector<16x64xf32>
    %590 = tpu.matmul %589, %578, %cst_182 {dimension_numbers = #tpu.dot_dimension_numbers<[1], [0], [0], [1], [0, 0, 1, 1], [], []>} : vector<16x16xf32>, vector<16x64xf32>, vector<16x64xf32> -> vector<16x64xf32>
    %cst_183 = arith.constant dense<0.000000e+00> : vector<128x64xf32>
    %591 = tpu.matmul %588, %590, %cst_183 {dimension_numbers = #tpu.dot_dimension_numbers<[1], [0], [0], [1], [0, 0, 1, 1], [], []>} : vector<128x16xf32>, vector<16x64xf32>, vector<128x64xf32> -> vector<128x64xf32>
    %592 = arith.addf %581, %591 : vector<128x64xf32>
    %c8_i32_184 = arith.constant 8 : i32
    %593 = vector.broadcast %c8_i32_184 : i32 to vector<128x16xi32>
    %594 = arith.muli %593, %580 : vector<128x16xi32>
    %c1_i32_185 = arith.constant 1 : i32
    %595 = vector.broadcast %c1_i32_185 : i32 to vector<128x16xi32>
    %596 = arith.addi %594, %595 : vector<128x16xi32>
    %597 = arith.cmpi eq, %579, %596 : vector<128x16xi32>
    %598 = arith.extui %597 : vector<128x16xi1> to vector<128x16xi32>
    %599 = arith.sitofp %598 : vector<128x16xi32> to vector<128x16xf32>
    %600 = vector.extract_strided_slice %577 {offsets = [0, 16], sizes = [16, 16], strides = [1, 1]} : vector<16x128xf32> to vector<16x16xf32>
    %cst_186 = arith.constant dense<0.000000e+00> : vector<16x64xf32>
    %601 = tpu.matmul %600, %578, %cst_186 {dimension_numbers = #tpu.dot_dimension_numbers<[1], [0], [0], [1], [0, 0, 1, 1], [], []>} : vector<16x16xf32>, vector<16x64xf32>, vector<16x64xf32> -> vector<16x64xf32>
    %cst_187 = arith.constant dense<0.000000e+00> : vector<128x64xf32>
    %602 = tpu.matmul %599, %601, %cst_187 {dimension_numbers = #tpu.dot_dimension_numbers<[1], [0], [0], [1], [0, 0, 1, 1], [], []>} : vector<128x16xf32>, vector<16x64xf32>, vector<128x64xf32> -> vector<128x64xf32>
    %603 = arith.addf %592, %602 : vector<128x64xf32>
    %c8_i32_188 = arith.constant 8 : i32
    %604 = vector.broadcast %c8_i32_188 : i32 to vector<128x16xi32>
    %605 = arith.muli %604, %580 : vector<128x16xi32>
    %c2_i32_189 = arith.constant 2 : i32
    %606 = vector.broadcast %c2_i32_189 : i32 to vector<128x16xi32>
    %607 = arith.addi %605, %606 : vector<128x16xi32>
    %608 = arith.cmpi eq, %579, %607 : vector<128x16xi32>
    %609 = arith.extui %608 : vector<128x16xi1> to vector<128x16xi32>
    %610 = arith.sitofp %609 : vector<128x16xi32> to vector<128x16xf32>
    %611 = vector.extract_strided_slice %577 {offsets = [0, 32], sizes = [16, 16], strides = [1, 1]} : vector<16x128xf32> to vector<16x16xf32>
    %cst_190 = arith.constant dense<0.000000e+00> : vector<16x64xf32>
    %612 = tpu.matmul %611, %578, %cst_190 {dimension_numbers = #tpu.dot_dimension_numbers<[1], [0], [0], [1], [0, 0, 1, 1], [], []>} : vector<16x16xf32>, vector<16x64xf32>, vector<16x64xf32> -> vector<16x64xf32>
    %cst_191 = arith.constant dense<0.000000e+00> : vector<128x64xf32>
    %613 = tpu.matmul %610, %612, %cst_191 {dimension_numbers = #tpu.dot_dimension_numbers<[1], [0], [0], [1], [0, 0, 1, 1], [], []>} : vector<128x16xf32>, vector<16x64xf32>, vector<128x64xf32> -> vector<128x64xf32>
    %614 = arith.addf %603, %613 : vector<128x64xf32>
    %c8_i32_192 = arith.constant 8 : i32
    %615 = vector.broadcast %c8_i32_192 : i32 to vector<128x16xi32>
    %616 = arith.muli %615, %580 : vector<128x16xi32>
    %c3_i32_193 = arith.constant 3 : i32
    %617 = vector.broadcast %c3_i32_193 : i32 to vector<128x16xi32>
    %618 = arith.addi %616, %617 : vector<128x16xi32>
    %619 = arith.cmpi eq, %579, %618 : vector<128x16xi32>
    %620 = arith.extui %619 : vector<128x16xi1> to vector<128x16xi32>
    %621 = arith.sitofp %620 : vector<128x16xi32> to vector<128x16xf32>
    %622 = vector.extract_strided_slice %577 {offsets = [0, 48], sizes = [16, 16], strides = [1, 1]} : vector<16x128xf32> to vector<16x16xf32>
    %cst_194 = arith.constant dense<0.000000e+00> : vector<16x64xf32>
    %623 = tpu.matmul %622, %578, %cst_194 {dimension_numbers = #tpu.dot_dimension_numbers<[1], [0], [0], [1], [0, 0, 1, 1], [], []>} : vector<16x16xf32>, vector<16x64xf32>, vector<16x64xf32> -> vector<16x64xf32>
    %cst_195 = arith.constant dense<0.000000e+00> : vector<128x64xf32>
    %624 = tpu.matmul %621, %623, %cst_195 {dimension_numbers = #tpu.dot_dimension_numbers<[1], [0], [0], [1], [0, 0, 1, 1], [], []>} : vector<128x16xf32>, vector<16x64xf32>, vector<128x64xf32> -> vector<128x64xf32>
    %625 = arith.addf %614, %624 : vector<128x64xf32>
    %c8_i32_196 = arith.constant 8 : i32
    %626 = vector.broadcast %c8_i32_196 : i32 to vector<128x16xi32>
    %627 = arith.muli %626, %580 : vector<128x16xi32>
    %c4_i32_197 = arith.constant 4 : i32
    %628 = vector.broadcast %c4_i32_197 : i32 to vector<128x16xi32>
    %629 = arith.addi %627, %628 : vector<128x16xi32>
    %630 = arith.cmpi eq, %579, %629 : vector<128x16xi32>
    %631 = arith.extui %630 : vector<128x16xi1> to vector<128x16xi32>
    %632 = arith.sitofp %631 : vector<128x16xi32> to vector<128x16xf32>
    %633 = vector.extract_strided_slice %577 {offsets = [0, 64], sizes = [16, 16], strides = [1, 1]} : vector<16x128xf32> to vector<16x16xf32>
    %cst_198 = arith.constant dense<0.000000e+00> : vector<16x64xf32>
    %634 = tpu.matmul %633, %578, %cst_198 {dimension_numbers = #tpu.dot_dimension_numbers<[1], [0], [0], [1], [0, 0, 1, 1], [], []>} : vector<16x16xf32>, vector<16x64xf32>, vector<16x64xf32> -> vector<16x64xf32>
    %cst_199 = arith.constant dense<0.000000e+00> : vector<128x64xf32>
    %635 = tpu.matmul %632, %634, %cst_199 {dimension_numbers = #tpu.dot_dimension_numbers<[1], [0], [0], [1], [0, 0, 1, 1], [], []>} : vector<128x16xf32>, vector<16x64xf32>, vector<128x64xf32> -> vector<128x64xf32>
    %636 = arith.addf %625, %635 : vector<128x64xf32>
    %c8_i32_200 = arith.constant 8 : i32
    %637 = vector.broadcast %c8_i32_200 : i32 to vector<128x16xi32>
    %638 = arith.muli %637, %580 : vector<128x16xi32>
    %c5_i32_201 = arith.constant 5 : i32
    %639 = vector.broadcast %c5_i32_201 : i32 to vector<128x16xi32>
    %640 = arith.addi %638, %639 : vector<128x16xi32>
    %641 = arith.cmpi eq, %579, %640 : vector<128x16xi32>
    %642 = arith.extui %641 : vector<128x16xi1> to vector<128x16xi32>
    %643 = arith.sitofp %642 : vector<128x16xi32> to vector<128x16xf32>
    %644 = vector.extract_strided_slice %577 {offsets = [0, 80], sizes = [16, 16], strides = [1, 1]} : vector<16x128xf32> to vector<16x16xf32>
    %cst_202 = arith.constant dense<0.000000e+00> : vector<16x64xf32>
    %645 = tpu.matmul %644, %578, %cst_202 {dimension_numbers = #tpu.dot_dimension_numbers<[1], [0], [0], [1], [0, 0, 1, 1], [], []>} : vector<16x16xf32>, vector<16x64xf32>, vector<16x64xf32> -> vector<16x64xf32>
    %cst_203 = arith.constant dense<0.000000e+00> : vector<128x64xf32>
    %646 = tpu.matmul %643, %645, %cst_203 {dimension_numbers = #tpu.dot_dimension_numbers<[1], [0], [0], [1], [0, 0, 1, 1], [], []>} : vector<128x16xf32>, vector<16x64xf32>, vector<128x64xf32> -> vector<128x64xf32>
    %647 = arith.addf %636, %646 : vector<128x64xf32>
    %c8_i32_204 = arith.constant 8 : i32
    %648 = vector.broadcast %c8_i32_204 : i32 to vector<128x16xi32>
    %649 = arith.muli %648, %580 : vector<128x16xi32>
    %c6_i32_205 = arith.constant 6 : i32
    %650 = vector.broadcast %c6_i32_205 : i32 to vector<128x16xi32>
    %651 = arith.addi %649, %650 : vector<128x16xi32>
    %652 = arith.cmpi eq, %579, %651 : vector<128x16xi32>
    %653 = arith.extui %652 : vector<128x16xi1> to vector<128x16xi32>
    %654 = arith.sitofp %653 : vector<128x16xi32> to vector<128x16xf32>
    %655 = vector.extract_strided_slice %577 {offsets = [0, 96], sizes = [16, 16], strides = [1, 1]} : vector<16x128xf32> to vector<16x16xf32>
    %cst_206 = arith.constant dense<0.000000e+00> : vector<16x64xf32>
    %656 = tpu.matmul %655, %578, %cst_206 {dimension_numbers = #tpu.dot_dimension_numbers<[1], [0], [0], [1], [0, 0, 1, 1], [], []>} : vector<16x16xf32>, vector<16x64xf32>, vector<16x64xf32> -> vector<16x64xf32>
    %cst_207 = arith.constant dense<0.000000e+00> : vector<128x64xf32>
    %657 = tpu.matmul %654, %656, %cst_207 {dimension_numbers = #tpu.dot_dimension_numbers<[1], [0], [0], [1], [0, 0, 1, 1], [], []>} : vector<128x16xf32>, vector<16x64xf32>, vector<128x64xf32> -> vector<128x64xf32>
    %658 = arith.addf %647, %657 : vector<128x64xf32>
    %c8_i32_208 = arith.constant 8 : i32
    %659 = vector.broadcast %c8_i32_208 : i32 to vector<128x16xi32>
    %660 = arith.muli %659, %580 : vector<128x16xi32>
    %c7_i32_209 = arith.constant 7 : i32
    %661 = vector.broadcast %c7_i32_209 : i32 to vector<128x16xi32>
    %662 = arith.addi %660, %661 : vector<128x16xi32>
    %663 = arith.cmpi eq, %579, %662 : vector<128x16xi32>
    %664 = arith.extui %663 : vector<128x16xi1> to vector<128x16xi32>
    %665 = arith.sitofp %664 : vector<128x16xi32> to vector<128x16xf32>
    %666 = vector.extract_strided_slice %577 {offsets = [0, 112], sizes = [16, 16], strides = [1, 1]} : vector<16x128xf32> to vector<16x16xf32>
    %cst_210 = arith.constant dense<0.000000e+00> : vector<16x64xf32>
    %667 = tpu.matmul %666, %578, %cst_210 {dimension_numbers = #tpu.dot_dimension_numbers<[1], [0], [0], [1], [0, 0, 1, 1], [], []>} : vector<16x16xf32>, vector<16x64xf32>, vector<16x64xf32> -> vector<16x64xf32>
    %cst_211 = arith.constant dense<0.000000e+00> : vector<128x64xf32>
    %668 = tpu.matmul %665, %667, %cst_211 {dimension_numbers = #tpu.dot_dimension_numbers<[1], [0], [0], [1], [0, 0, 1, 1], [], []>} : vector<128x16xf32>, vector<16x64xf32>, vector<128x64xf32> -> vector<128x64xf32>
    %669 = arith.addf %658, %668 : vector<128x64xf32>
    %670 = vector.extract_strided_slice %6 {offsets = [0, 0], sizes = [1, 64], strides = [1, 1]} : vector<3x64xf32> to vector<1x64xf32>
    %671 = vector.broadcast %670 : vector<1x64xf32> to vector<128x64xf32>
    %672 = arith.addf %669, %671 : vector<128x64xf32>
    %cst_212 = arith.constant dense<0.000000e+00> : vector<64xf32>
    %673 = vector.multi_reduction <add>, %672, %cst_212 [0] : vector<128x64xf32> to vector<64xf32>
    %674 = vector.shape_cast %673 : vector<64xf32> to vector<1x64xf32>
    %675 = arith.mulf %672, %672 : vector<128x64xf32>
    %cst_213 = arith.constant dense<0.000000e+00> : vector<64xf32>
    %676 = vector.multi_reduction <add>, %675, %cst_213 [0] : vector<128x64xf32> to vector<64xf32>
    %677 = vector.shape_cast %676 : vector<64xf32> to vector<1x64xf32>
    %678 = tpu.iota {dimensions = array<i32: 0>} : vector<2x64xi32>
    %c0_i32_214 = arith.constant 0 : i32
    %679 = vector.broadcast %c0_i32_214 : i32 to vector<2x64xi32>
    %680 = arith.cmpi eq, %678, %679 : vector<2x64xi32>
    %681 = vector.shape_cast %674 : vector<1x64xf32> to vector<1x64xf32>
    %682 = vector.broadcast %681 : vector<1x64xf32> to vector<2x64xf32>
    %683 = vector.shape_cast %677 : vector<1x64xf32> to vector<1x64xf32>
    %684 = vector.broadcast %683 : vector<1x64xf32> to vector<2x64xf32>
    %685 = arith.select %680, %682, %684 : vector<2x64xi1>, vector<2x64xf32>
    %686 = tpu.iota {dimensions = array<i32: 0>} : vector<64x8xi32>
    %c7_i32_215 = arith.constant 7 : i32
    %687 = vector.broadcast %c7_i32_215 : i32 to vector<64x8xi32>
    %688 = arith.andi %686, %687 : vector<64x8xi32>
    %689 = tpu.iota {dimensions = array<i32: 1>} : vector<64x8xi32>
    %690 = arith.cmpi eq, %688, %689 : vector<64x8xi32>
    %691 = tpu.iota {dimensions = array<i32: 1>} : vector<8x64xi32>
    %c7_i32_216 = arith.constant 7 : i32
    %692 = vector.broadcast %c7_i32_216 : i32 to vector<8x64xi32>
    %693 = arith.andi %691, %692 : vector<8x64xi32>
    %694 = tpu.iota {dimensions = array<i32: 0>} : vector<8x64xi32>
    %695 = arith.cmpi eq, %693, %694 : vector<8x64xi32>
    %696 = arith.extui %690 : vector<64x8xi1> to vector<64x8xi32>
    %697 = arith.sitofp %696 : vector<64x8xi32> to vector<64x8xf32>
    %cst_217 = arith.constant dense<0.000000e+00> : vector<2x8xf32>
    %698 = tpu.matmul %685, %697, %cst_217 {dimension_numbers = #tpu.dot_dimension_numbers<[1], [0], [0], [1], [0, 0, 1, 1], [], []>} : vector<2x64xf32>, vector<64x8xf32>, vector<2x8xf32> -> vector<2x8xf32>
    %699 = arith.extui %695 : vector<8x64xi1> to vector<8x64xi32>
    %700 = arith.sitofp %699 : vector<8x64xi32> to vector<8x64xf32>
    %cst_218 = arith.constant dense<0.000000e+00> : vector<2x64xf32>
    %701 = tpu.matmul %698, %700, %cst_218 {dimension_numbers = #tpu.dot_dimension_numbers<[1], [0], [0], [1], [0, 0, 1, 1], [], []>} : vector<2x8xf32>, vector<8x64xf32>, vector<2x64xf32> -> vector<2x64xf32>
    %702 = vector.extract_strided_slice %701 {offsets = [0, 0], sizes = [1, 64], strides = [1, 1]} : vector<2x64xf32> to vector<1x64xf32>
    %cst_219 = arith.constant 9.765625E-4 : f32
    %703 = vector.broadcast %cst_219 : f32 to vector<1x64xf32>
    %704 = arith.mulf %702, %703 : vector<1x64xf32>
    %705 = vector.extract_strided_slice %701 {offsets = [1, 0], sizes = [1, 64], strides = [1, 1]} : vector<2x64xf32> to vector<1x64xf32>
    %cst_220 = arith.constant 9.765625E-4 : f32
    %706 = vector.broadcast %cst_220 : f32 to vector<1x64xf32>
    %707 = arith.mulf %705, %706 : vector<1x64xf32>
    %708 = arith.mulf %704, %704 : vector<1x64xf32>
    %709 = arith.subf %707, %708 : vector<1x64xf32>
    %cst_221 = arith.constant 0.000000e+00 : f32
    %710 = vector.broadcast %cst_221 : f32 to vector<1x64xf32>
    %711 = arith.maximumf %709, %710 : vector<1x64xf32>
    %cst_222 = arith.constant 9.99999974E-6 : f32
    %712 = vector.broadcast %cst_222 : f32 to vector<1x64xf32>
    %713 = arith.addf %711, %712 : vector<1x64xf32>
    %714 = math.rsqrt %713 : vector<1x64xf32>
    %715 = vector.broadcast %704 : vector<1x64xf32> to vector<128x64xf32>
    %716 = arith.subf %672, %715 : vector<128x64xf32>
    %717 = vector.extract_strided_slice %6 {offsets = [1, 0], sizes = [1, 64], strides = [1, 1]} : vector<3x64xf32> to vector<1x64xf32>
    %718 = arith.mulf %714, %717 : vector<1x64xf32>
    %719 = vector.broadcast %718 : vector<1x64xf32> to vector<128x64xf32>
    %720 = arith.mulf %716, %719 : vector<128x64xf32>
    %721 = vector.extract_strided_slice %6 {offsets = [2, 0], sizes = [1, 64], strides = [1, 1]} : vector<3x64xf32> to vector<1x64xf32>
    %722 = vector.broadcast %721 : vector<1x64xf32> to vector<128x64xf32>
    %723 = arith.addf %720, %722 : vector<128x64xf32>
    %cst_223 = arith.constant 0.000000e+00 : f32
    %724 = vector.broadcast %cst_223 : f32 to vector<128x64xf32>
    %725 = arith.maximumf %723, %724 : vector<128x64xf32>
    %c0_224 = arith.constant 0 : index
    %c0_225 = arith.constant 0 : index
    %726 = vector.load %arg16[%c0_224, %c0_225] : memref<64x256xf32, #tpu.memory_space<vmem>>, vector<64x256xf32>
    %cst_226 = arith.constant dense<0.000000e+00> : vector<128x256xf32>
    %727 = tpu.matmul %725, %726, %cst_226 {dimension_numbers = #tpu.dot_dimension_numbers<[1], [0], [0], [1], [0, 0, 1, 1], [], []>} : vector<128x64xf32>, vector<64x256xf32>, vector<128x256xf32> -> vector<128x256xf32>
    %c0_227 = arith.constant 0 : index
    %c0_228 = arith.constant 0 : index
    %728 = vector.load %arg17[%c0_227, %c0_228] : memref<1x256xf32, #tpu.memory_space<vmem>>, vector<1x256xf32>
    %729 = vector.broadcast %728 : vector<1x256xf32> to vector<128x256xf32>
    %730 = arith.addf %727, %729 : vector<128x256xf32>
    %c0_229 = arith.constant 0 : index
    %c0_230 = arith.constant 0 : index
    %731 = vector.load %arg18[%c0_229, %c0_230] : memref<128x256xf32, #tpu.memory_space<vmem>>, vector<128x256xf32>
    tpu.vector_store %arg18[%c0_229, %c0_230], %730 {strides = array<i32>} : memref<128x256xf32, #tpu.memory_space<vmem>>, vector<128x256xf32>,
    return
  }
  func.func @transform_0(%arg0: i32) -> (i32, i32) {
    %c0_i32 = arith.constant 0 : i32
    %c0_i32_0 = arith.constant 0 : i32
    %c0_i32_1 = arith.constant 0 : i32
    return %c0_i32, %c0_i32_0 : i32, i32
  }
  func.func @transform_1(%arg0: i32) -> (i32, i32) {
    %c0_i32 = arith.constant 0 : i32
    %c0_i32_0 = arith.constant 0 : i32
    %c0_i32_1 = arith.constant 0 : i32
    return %c0_i32, %c0_i32_0 : i32, i32
  }
  func.func @transform_2(%arg0: i32) -> (i32, i32) {
    %c0_i32 = arith.constant 0 : i32
    %c0_i32_0 = arith.constant 0 : i32
    %c0_i32_1 = arith.constant 0 : i32
    return %c0_i32, %c0_i32_0 : i32, i32
  }
  func.func @transform_3(%arg0: i32) -> (i32, i32) {
    %c0_i32 = arith.constant 0 : i32
    %c0_i32_0 = arith.constant 0 : i32
    %c0_i32_1 = arith.constant 0 : i32
    return %c0_i32, %c0_i32_0 : i32, i32
  }
  func.func @transform_4(%arg0: i32) -> (i32, i32) {
    %c0_i32 = arith.constant 0 : i32
    %c0_i32_0 = arith.constant 0 : i32
    %c0_i32_1 = arith.constant 0 : i32
    return %c0_i32, %c0_i32_0 : i32, i32
  }
  func.func @transform_5(%arg0: i32) -> (i32, i32) {
    %c0_i32 = arith.constant 0 : i32
    %c0_i32_0 = arith.constant 0 : i32
    %c0_i32_1 = arith.constant 0 : i32
    return %c0_i32, %c0_i32_0 : i32, i32
  }
  func.func @transform_6(%arg0: i32) -> (i32, i32) {
    %c0_i32 = arith.constant 0 : i32
    %c0_i32_0 = arith.constant 0 : i32
    %c0_i32_1 = arith.constant 0 : i32
    return %c0_i32, %c0_i32_0 : i32, i32
  }
  func.func @transform_7(%arg0: i32) -> (i32, i32) {
    %c0_i32 = arith.constant 0 : i32
    %c0_i32_0 = arith.constant 0 : i32
    %c0_i32_1 = arith.constant 0 : i32
    return %c0_i32, %c0_i32_0 : i32, i32
  }
  func.func @transform_8(%arg0: i32) -> (i32, i32) {
    %c0_i32 = arith.constant 0 : i32
    %c0_i32_0 = arith.constant 0 : i32
    %c0_i32_1 = arith.constant 0 : i32
    return %c0_i32, %c0_i32_0 : i32, i32
  }
  func.func @transform_9(%arg0: i32) -> (i32, i32) {
    %c0_i32 = arith.constant 0 : i32
    %c0_i32_0 = arith.constant 0 : i32
    %c0_i32_1 = arith.constant 0 : i32
    return %c0_i32, %c0_i32_0 : i32, i32
  }
  func.func @transform_10(%arg0: i32) -> (i32, i32) {
    %c0_i32 = arith.constant 0 : i32
    %c0_i32_0 = arith.constant 0 : i32
    %c0_i32_1 = arith.constant 0 : i32
    return %c0_i32, %c0_i32_0 : i32, i32
  }
  func.func @transform_11(%arg0: i32) -> (i32, i32) {
    %c0_i32 = arith.constant 0 : i32
    %c0_i32_0 = arith.constant 0 : i32
    %c0_i32_1 = arith.constant 0 : i32
    return %c0_i32, %c0_i32_0 : i32, i32
  }
  func.func @transform_12(%arg0: i32) -> (i32, i32) {
    %c0_i32 = arith.constant 0 : i32
    %c0_i32_0 = arith.constant 0 : i32
    %c0_i32_1 = arith.constant 0 : i32
    return %c0_i32, %c0_i32_0 : i32, i32
  }
  func.func @transform_13(%arg0: i32) -> (i32, i32) {
    %c0_i32 = arith.constant 0 : i32
    %c0_i32_0 = arith.constant 0 : i32
    %c0_i32_1 = arith.constant 0 : i32
    return %c0_i32, %c0_i32_0 : i32, i32
  }
  func.func @transform_14(%arg0: i32) -> (i32, i32) {
    %c0_i32 = arith.constant 0 : i32
    %c0_i32_0 = arith.constant 0 : i32
    %c0_i32_1 = arith.constant 0 : i32
    return %c0_i32, %c0_i32_0 : i32, i32
  }
  func.func @transform_15(%arg0: i32) -> (i32, i32) {
    %c0_i32 = arith.constant 0 : i32
    %c0_i32_0 = arith.constant 0 : i32
    %c0_i32_1 = arith.constant 0 : i32
    return %c0_i32, %c0_i32_0 : i32, i32
  }
  func.func @transform_16(%arg0: i32) -> (i32, i32) {
    %c0_i32 = arith.constant 0 : i32
    %c0_i32_0 = arith.constant 0 : i32
    %c0_i32_1 = arith.constant 0 : i32
    return %c0_i32, %c0_i32_0 : i32, i32
  }
  func.func @transform_17(%arg0: i32) -> (i32, i32) {
    %c0_i32 = arith.constant 0 : i32
    %c0_i32_0 = arith.constant 0 : i32
    %c0_i32_1 = arith.constant 0 : i32
    return %c0_i32, %c0_i32_0 : i32, i32
  }
}

</mosaic_0001>

<bundles_post_ra>
// kernel: net_forward.1
= control target key start
LH: loop header
LB: loop body
LE: loop exit
PB: predicated region body
PF: predicated region fallthrough
CT: control target
= control target key end

     0   :  { %vm8817_vm0 = vcmask 523264   ;;  %vm8816_vm11 = vcmask 64512   ;;  %vm8824_vm15 = vcmask 130048   ;;  %s5605_s30 = smov 48   ;;  %s5606_s18 = smov 16   ;;  %s8796_s1 = inlined_call_operand.vmem [shape: f32[256,64], index: 1, kind: input, shape index: {}]   ;;  %s8797_s0 = inlined_call_operand.vmem [shape: f32[128,256], index: 0, kind: input, shape index: {}]   ;;  %s8798_s2 = inlined_call_operand.vmem [shape: f32[3,64], index: 2, kind: input, shape index: {}]   ;;  %s8799_s3 = inlined_call_operand.vmem [shape: f32[64,16], index: 3, kind: input, shape index: {}]   ;;  %s8800_s4 = inlined_call_operand.vmem [shape: f32[3,16], index: 4, kind: input, shape index: {}]   ;;  %s8801_s5 = inlined_call_operand.vmem [shape: f32[128,32], index: 5, kind: input, shape index: {}]   ;;  %s8802_s6 = inlined_call_operand.vmem [shape: f32[3,32], index: 6, kind: input, shape index: {}]   ;;  %s8803_s7 = inlined_call_operand.vmem [shape: f32[256,64], index: 7, kind: input, shape index: {}]   ;;  %s8804_s8 = inlined_call_operand.vmem [shape: f32[3,64], index: 8, kind: input, shape index: {}]   ;;  %s8805_s9 = inlined_call_operand.vmem [shape: f32[64,256], index: 9, kind: input, shape index: {}]   ;;  %s8806_s10 = inlined_call_operand.vmem [shape: f32[3,256], index: 10, kind: input, shape index: {}]   ;;  %s8807_s11 = inlined_call_operand.vmem [shape: f32[32,128], index: 11, kind: input, shape index: {}]   ;;  %s8808_s12 = inlined_call_operand.vmem [shape: f32[3,128], index: 12, kind: input, shape index: {}]   ;;  %s8809_s13 = inlined_call_operand.vmem [shape: f32[16,64], index: 13, kind: input, shape index: {}]   ;;  %s8810_s14 = inlined_call_operand.vmem [shape: f32[3,64], index: 14, kind: input, shape index: {}]   ;;  %s8811_s15 = inlined_call_operand.vmem [shape: f32[64,256], index: 15, kind: input, shape index: {}]   ;;  %s8812_s16 = inlined_call_operand.vmem [shape: f32[1,256], index: 16, kind: input, shape index: {}]   ;;  %s8813_s17 = inlined_call_operand.vmem [shape: f32[128,256], index: 17, kind: output, shape index: {}]  }
   0x1   :  { %8846 = sst [smem:[#allocation37_spill]] %s8796_s1  ;;  %s5604_s1 = smov 80  }
   0x2   :  { %8847 = sst [smem:[#allocation38_spill]] %s8797_s0 }
   0x3   :  { %s8848_s26 = sld [smem:[#allocation37_spill]] }
   0x4   :  { %s8849_s20 = sld [smem:[#allocation38_spill]] }
   0x9   :  { %v110_v0 = vld [vmem:[%s8848_s26 + $0x78] sm:$0xff]  ;;  %v109_v1 = vld [vmem:[%s8848_s26 + $0x70] sm:$0xff]  ;;  %v108_v4 = vld [vmem:[%s8848_s26 + $0x68] sm:$0xff] }
   0xa   :  { %v126_v2 = vld [vmem:[%s8848_s26 + $0xf8] sm:$0xff]  ;;  %128 = vmatpush.msra.mxu0 %v110_v0  ;;  %v125_v3 = vld [vmem:[%s8848_s26 + $0xf0] sm:$0xff]  ;;  %v124_v5 = vld [vmem:[%s8848_s26 + $0xe8] sm:$0xff] }
   0xb   :  { %193 = vmatpush.msra.mxu1 %v126_v2  ;;  %v107_v6 = vld [vmem:[%s8848_s26 + $0x60] sm:$0xff]  ;;  %v106_v8 = vld [vmem:[%s8848_s26 + $0x58] sm:$0xff]  ;;  %v105_v10 = vld [vmem:[%s8848_s26 + $0x50] sm:$0xff] }
   0xc   :  { %129 = vmatpush.msra.mxu0 %v109_v1  ;;  %v123_v7 = vld [vmem:[%s8848_s26 + $0xe0] sm:$0xff]  ;;  %v122_v9 = vld [vmem:[%s8848_s26 + $0xd8] sm:$0xff]  ;;  %v121_v11 = vld [vmem:[%s8848_s26 + $0xd0] sm:$0xff] }
   0xd   :  { %194 = vmatpush.msra.mxu1 %v125_v3  ;;  %v104_v12 = vld [vmem:[%s8848_s26 + $0x48] sm:$0xff]  ;;  %v103_v14 = vld [vmem:[%s8848_s26 + $0x40] sm:$0xff]  ;;  %v102_v16 = vld [vmem:[%s8848_s26 + $0x38] sm:$0xff] }
   0xe   :  { %130 = vmatpush.msra.mxu0 %v108_v4  ;;  %v120_v13 = vld [vmem:[%s8848_s26 + $0xc8] sm:$0xff]  ;;  %v119_v15 = vld [vmem:[%s8848_s26 + $0xc0] sm:$0xff]  ;;  %v118_v17 = vld [vmem:[%s8848_s26 + $0xb8] sm:$0xff] }
   0xf   :  { %195 = vmatpush.msra.mxu1 %v124_v5  ;;  %v101_v18 = vld [vmem:[%s8848_s26 + $0x30] sm:$0xff]  ;;  %v100_v20 = vld [vmem:[%s8848_s26 + $0x28] sm:$0xff]  ;;  %v99_v22 = vld [vmem:[%s8848_s26 + $0x20] sm:$0xff] }
  0x10   :  { %131 = vmatpush.msra.mxu0 %v107_v6  ;;  %v117_v19 = vld [vmem:[%s8848_s26 + $0xb0] sm:$0xff]  ;;  %v116_v21 = vld [vmem:[%s8848_s26 + $0xa8] sm:$0xff]  ;;  %v115_v23 = vld [vmem:[%s8848_s26 + $0xa0] sm:$0xff] }
  0x11   :  { %196 = vmatpush.msra.mxu1 %v123_v7  ;;  %v98_v24 = vld [vmem:[%s8848_s26 + $0x18] sm:$0xff]  ;;  %v97_v26 = vld [vmem:[%s8848_s26 + $0x10] sm:$0xff]  ;;  %v96_v28 = vld [vmem:[%s8848_s26 + $0x8] sm:$0xff] }
  0x12   :  { %132 = vmatpush.msra.mxu0 %v106_v8  ;;  %v114_v25 = vld [vmem:[%s8848_s26 + $0x98] sm:$0xff]  ;;  %v113_v27 = vld [vmem:[%s8848_s26 + $0x90] sm:$0xff]  ;;  %v112_v29 = vld [vmem:[%s8848_s26 + $0x88] sm:$0xff] }
  0x13   :  { %197 = vmatpush.msra.mxu1 %v122_v9  ;;  %v95_v30 = vld [vmem:[%s8848_s26] sm:$0xff]  ;;  %v64_v33 = vld [vmem:[%s8849_s20 + $0x8] sm:$0xff]  ;;  %v65_v34 = vld [vmem:[%s8849_s20 + $0x10] sm:$0xff] }
  0x14   :  { %133 = vmatpush.msra.mxu0 %v105_v10  ;;  %v111_v31 = vld [vmem:[%s8848_s26 + $0x80] sm:$0xff]  ;;  %v66_v35 = vld [vmem:[%s8849_s20 + $0x18] sm:$0xff]  ;;  %v68_v37 = vld [vmem:[%s8849_s20 + $0x28] sm:$0xff] }
  0x15   :  { %198 = vmatpush.msra.mxu1 %v121_v11  ;;  %v63_v32 = vld [vmem:[%s8849_s20] sm:$0xff]  ;;  %v69_v38 = vld [vmem:[%s8849_s20 + $0x30] sm:$0xff]  ;;  %v70_v39 = vld [vmem:[%s8849_s20 + $0x38] sm:$0xff] }
  0x16   :  { %134 = vmatpush.msra.mxu0 %v104_v12  ;;  %v67_v36 = vld [vmem:[%s8849_s20 + $0x20] sm:$0xff]  ;;  %v72_v41 = vld [vmem:[%s8849_s20 + $0x48] sm:$0xff]  ;;  %v73_v42 = vld [vmem:[%s8849_s20 + $0x50] sm:$0xff] }
  0x17   :  { %199 = vmatpush.msra.mxu1 %v120_v13  ;;  %v71_v40 = vld [vmem:[%s8849_s20 + $0x40] sm:$0xff]  ;;  %v74_v43 = vld [vmem:[%s8849_s20 + $0x58] sm:$0xff]  ;;  %v76_v45 = vld [vmem:[%s8849_s20 + $0x68] sm:$0xff] }
  0x18   :  { %135 = vmatpush.msra.mxu0 %v103_v14  ;;  %v75_v44 = vld [vmem:[%s8849_s20 + $0x60] sm:$0xff]  ;;  %v77_v46 = vld [vmem:[%s8849_s20 + $0x70] sm:$0xff]  ;;  %v78_v47 = vld [vmem:[%s8849_s20 + $0x78] sm:$0xff] }
  0x19   :  { %200 = vmatpush.msra.mxu1 %v119_v15  ;;  %v79_v48 = vld [vmem:[%s8849_s20 + $0x80] sm:$0xff]  ;;  %v80_v49 = vld [vmem:[%s8849_s20 + $0x88] sm:$0xff]  ;;  %v81_v50 = vld [vmem:[%s8849_s20 + $0x90] sm:$0xff] }
  0x1a   :  { %136 = vmatpush.msra.mxu0 %v102_v16  ;;  %v82_v51 = vld [vmem:[%s8849_s20 + $0x98] sm:$0xff]  ;;  %v83_v52 = vld [vmem:[%s8849_s20 + $0xa0] sm:$0xff]  ;;  %v84_v53 = vld [vmem:[%s8849_s20 + $0xa8] sm:$0xff] }
  0x1b   :  { %201 = vmatpush.msra.mxu1 %v118_v17  ;;  %v85_v54 = vld [vmem:[%s8849_s20 + $0xb0] sm:$0xff]  ;;  %v86_v55 = vld [vmem:[%s8849_s20 + $0xb8] sm:$0xff]  ;;  %v87_v56 = vld [vmem:[%s8849_s20 + $0xc0] sm:$0xff] }
  0x1c   :  { %137 = vmatpush.msra.mxu0 %v101_v18  ;;  %v88_v57 = vld [vmem:[%s8849_s20 + $0xc8] sm:$0xff]  ;;  %v89_v58 = vld [vmem:[%s8849_s20 + $0xd0] sm:$0xff]  ;;  %v90_v59 = vld [vmem:[%s8849_s20 + $0xd8] sm:$0xff] }
  0x1d   :  { %202 = vmatpush.msra.mxu1 %v117_v19  ;;  %v91_v60 = vld [vmem:[%s8849_s20 + $0xe0] sm:$0xff]  ;;  %v92_v61 = vld [vmem:[%s8849_s20 + $0xe8] sm:$0xff]  ;;  %v93_v62 = vld [vmem:[%s8849_s20 + $0xf0] sm:$0xff] }
  0x1e   :  { %138 = vmatpush.msra.mxu0 %v100_v20  ;;  %v94_v63 = vld [vmem:[%s8849_s20 + $0xf8] sm:$0xff]  ;;  %v5898_v18 = vld [vmem:[%s8798_s2] sm:$0x7]  ;;  %s5602_s2 = smov 64  }
  0x1f   :  { %203 = vmatpush.msra.mxu1 %v116_v21  ;;  %v5905_v21 = vperm.slane %v5898_v18, 0 }
  0x20   :  { %139 = vmatpush.msra.mxu0 %v99_v22 }
  0x21   :  { %204 = vmatpush.msra.mxu1 %v115_v23 }
  0x22   :  { %140 = vmatpush.msra.mxu0 %v98_v24 }
  0x23   :  { %205 = vmatpush.msra.mxu1 %v114_v25 }
  0x24   :  { %141 = vmatpush.msra.mxu0 %v97_v26 }
  0x25   :  { %206 = vmatpush.msra.mxu1 %v113_v27 }
  0x26   :  { %142 = vmatpush.msra.mxu0 %v96_v28 }
  0x27   :  { %207 = vmatpush.msra.mxu1 %v112_v29 }
  0x28   :  { %143 = vmatpush.msra.mxu0 %v95_v30 }
  0x29   :  { %208 = vmatpush.msra.mxu1 %v111_v31  ;;  %144 = vmatmul.f32.vlgmr.msra.gmra.mxu0 %v63_v32 }
  0x2a   :  { %209 = vmatmul.f32.vlgmr.msra.gmra.mxu1 %v64_v33 }
  0x31   :  { %147 = vmatmul.f32.gmra.mxu0 %v65_v34  ;;  %v349_v34 = vlaneseq }
  0x32   :  { %212 = vmatmul.f32.gmra.mxu1 %v66_v35 }
  0x39   :  { %150 = vmatmul.f32.gmra.mxu0 %v67_v36 }
  0x3a   :  { %215 = vmatmul.f32.gmra.mxu1 %v68_v37 }
  0x41   :  { %153 = vmatmul.f32.gmra.mxu0 %v69_v38 }
  0x42   :  { %218 = vmatmul.f32.gmra.mxu1 %v70_v39 }
  0x49   :  { %156 = vmatmul.f32.gmra.mxu0 %v71_v40  ;;  %v5936_v40 = vshrl.u32 %v349_v34, 7 }
  0x4a   :  { %221 = vmatmul.f32.gmra.mxu1 %v72_v41 }
  0x4b   :  { %8850 = vst [vmem:[#allocation2_spill] sm:$0xff] %v5936_v40  ;;  %vm8825_vm9 = vcmp.eq.s32.totalorder %v5936_v40, 0 }
  0x51   :  { %159 = vmatmul.f32.gmra.mxu0 %v73_v42 }
  0x52   :  { %224 = vmatmul.f32.gmra.mxu1 %v74_v43 }
  0x59   :  { %162 = vmatmul.f32.gmra.mxu0 %v75_v44 }
  0x5a   :  { %227 = vmatmul.f32.gmra.mxu1 %v76_v45 }
  0x61   :  { %165 = vmatmul.f32.gmra.mxu0 %v77_v46  ;;  %v5946_v46 = vadd.s32 56, %v5936_v40 }
  0x62   :  { %230 = vmatmul.f32.gmra.mxu1 %v78_v47 }
  0x69   :  { %168 = vmatmul.f32.gmra.mxu0 %v79_v48 }
  0x6a   :  { %233 = vmatmul.f32.gmra.mxu1 %v80_v49 }
  0x71   :  { %171 = vmatmul.f32.gmra.mxu0 %v81_v50 }
  0x72   :  { %236 = vmatmul.f32.gmra.mxu1 %v82_v51 }
  0x79   :  { %174 = vmatmul.f32.gmra.mxu0 %v83_v52  ;;  %v367_v52 = vand.u32 7, %v5946_v46 }
  0x7a   :  { %239 = vmatmul.f32.gmra.mxu1 %v84_v53  ;;  %v5953_v53 = vand.u32 127, %v349_v34 }
  0x7c   :  { %vm5961_vm1 = vcmp.eq.s32.totalorder %v367_v52, %v5953_v53 }
  0x81   :  { %177 = vmatmul.f32.gmra.mxu0 %v85_v54 }
  0x82   :  { %242 = vmatmul.f32.gmra.mxu1 %v86_v55 }
  0x89   :  { %180 = vmatmul.f32.gmra.mxu0 %v87_v56  ;;  %v5956_v56 = vadd.s32 48, %v5936_v40 }
  0x8a   :  { %245 = vmatmul.f32.gmra.mxu1 %v88_v57 }
  0x91   :  { %183 = vmatmul.f32.gmra.mxu0 %v89_v58 }
  0x92   :  { %248 = vmatmul.f32.gmra.mxu1 %v90_v59  ;;  %v5966_v59 = vadd.s32 40, %v5936_v40 }
  0x99   :  { %186 = vmatmul.f32.gmra.mxu0 %v91_v60 }
  0x9a   :  { %251 = vmatmul.f32.gmra.mxu1 %v92_v61 }
  0xa1   :  { %189 = vmatmul.f32.gmra.mxu0 %v93_v62 }
  0xa2   :  { %254 = vmatmul.f32.gmra.mxu1 %v94_v63 }
  0xa6   :  { %v145_v0 = vpop.f32.mrf.mxu0 }
  0xa7   :  { %v210_v1 = vpop.f32.mrf.mxu1  ;;  %v146_v23 = vadd.f32 %v145_v0, %v5905_v21 }
  0xa9   :  { %v5916_v28 = vadd.f32 %v210_v1, %v146_v23  ;;  %v8843_v1 = vmov 1.0  }
  0xaa   :  { %5001 = vmatpush.msk.msra.mxu2 %vm5961_vm1, %v8843_v1 }
  0xab   :  { %v296_v32 = vmul.f32 %v5916_v28, %v5916_v28  ;;  %v259_v41 = vsel %vm8817_vm0, %v5916_v28, 0.0 }
  0xad   :  { %v312_v42 = vsel %vm8817_vm0, %v296_v32, 0.0 }
  0xae   :  { %v148_v2 = vpop.f32.mrf.mxu0 }
  0xaf   :  { %v213_v3 = vpop.f32.mrf.mxu1  ;;  %v149_v22 = vadd.f32 %v148_v2, %v5905_v21  ;;  %v366_v2 = vand.u32 7, %v5956_v56 }
  0xb1   :  { %v5914_v27 = vadd.f32 %v213_v3, %v149_v22  ;;  %vm5987_vm2 = vcmp.eq.s32.totalorder %v366_v2, %v5953_v53 }
  0xb2   :  { %5002 = vmatpush.msk.msra.mxu2 %vm5987_vm2, %v8843_v1 }
  0xb3   :  { %v297_v31 = vmul.f32 %v5914_v27, %v5914_v27  ;;  %v260_v38 = vsel %vm8817_vm0, %v5914_v27, 0.0 }
  0xb4   :  { %v261_v47 = vadd.f32 %v260_v38, %v259_v41 }
  0xb5   :  { %v313_v39 = vsel %vm8817_vm0, %v297_v31, 0.0 }
  0xb6   :  { %v151_v4 = vpop.f32.mrf.mxu0  ;;  %v314_v48 = vadd.f32 %v313_v39, %v312_v42 }
  0xb7   :  { %v216_v5 = vpop.f32.mrf.mxu1  ;;  %v152_v24 = vadd.f32 %v151_v4, %v5905_v21 }
  0xb9   :  { %v5918_v29 = vadd.f32 %v216_v5, %v152_v24  ;;  %v365_v5 = vand.u32 7, %v5966_v59 }
  0xbb   :  { %v298_v33 = vmul.f32 %v5918_v29, %v5918_v29  ;;  %v262_v43 = vsel %vm8817_vm0, %v5918_v29, 0.0  ;;  %vm6008_vm3 = vcmp.eq.s32.totalorder %v365_v5, %v5953_v53 }
  0xbc   :  { %v263_v54 = vadd.f32 %v262_v43, %v261_v47  ;;  %5003 = vmatpush.msk.msra.mxu2 %vm6008_vm3, %v8843_v1 }
  0xbd   :  { %v315_v44 = vsel %vm8817_vm0, %v298_v33, 0.0 }
  0xbe   :  { %v154_v6 = vpop.f32.mrf.mxu0  ;;  %v316_v55 = vadd.f32 %v315_v44, %v314_v48 }
  0xbf   :  { %v219_v7 = vpop.f32.mrf.mxu1  ;;  %v155_v30 = vadd.f32 %v154_v6, %v5905_v21  ;;  %v5984_v6 = vadd.s32 32, %v5936_v40 }
  0xc1   :  { %v5927_v35 = vadd.f32 %v219_v7, %v155_v30 }
  0xc3   :  { %v299_v49 = vmul.f32 %v5927_v35, %v5927_v35  ;;  %v264_v60 = vsel %vm8817_vm0, %v5927_v35, 0.0 }
  0xc4   :  { %v265_v22 = vadd.f32 %v264_v60, %v263_v54  ;;  %v8864_v60 = vmov 0 }
  0xc5   :  { %v317_v61 = vsel %vm8817_vm0, %v299_v49, 0.0  ;;  %v8861_v49 = vmov 0 }
  0xc6   :  { %v157_v8 = vpop.f32.mrf.mxu0  ;;  %v318_v33 = vadd.f32 %v317_v61, %v316_v55 }
  0xc7   :  { %v222_v9 = vpop.f32.mrf.mxu1  ;;  %v158_v45 = vadd.f32 %v157_v8, %v5905_v21  ;;  %v5992_v8 = vadd.s32 24, %v5936_v40 }
  0xc9   :  { %v5958_v57 = vadd.f32 %v222_v9, %v158_v45  ;;  %v5995_v9 = vadd.s32 16, %v5936_v40  ;;  %v363_v24 = vand.u32 7, %v5992_v8 }
  0xcb   :  { %v362_v30 = vand.u32 7, %v5995_v9  ;;  %vm6035_vm5 = vcmp.eq.s32.totalorder %v363_v24, %v5953_v53 }
  0xcd   :  { %vm6055_vm6 = vcmp.eq.s32.totalorder %v362_v30, %v5953_v53 }
  0xce   :  { %v160_v10 = vpop.f32.mrf.mxu0  ;;  %v8862_v49 = vsel %vm6055_vm6, 4294967295, %v8861_v49 }
  0xcf   :  { %v225_v11 = vpop.f32.mrf.mxu1  ;;  %v161_v50 = vadd.f32 %v160_v10, %v5905_v21  ;;  %v5998_v10 = vadd.s32 8, %v5936_v40  ;;  %8863 = vst [vmem:[#allocation3_spill] sm:$0xff] %v8862_v49 }
  0xd1   :  { %v5971_v62 = vadd.f32 %v225_v11, %v161_v50  ;;  %v300_v11 = vmul.f32 %v5958_v57, %v5958_v57 }
  0xd3   :  { %v301_v31 = vmul.f32 %v5971_v62, %v5971_v62  ;;  %v319_v39 = vsel %vm8817_vm0, %v300_v11, 0.0  ;;  %v268_v41 = vsel %vm8817_vm0, %v5971_v62, 0.0 }
  0xd4   :  { %v320_v52 = vadd.f32 %v319_v39, %v318_v33 }
  0xd5   :  { %v321_v50 = vsel %vm8817_vm0, %v301_v31, 0.0 }
  0xd6   :  { %v163_v12 = vpop.f32.mrf.mxu0  ;;  %v322_v5 = vadd.f32 %v321_v50, %v320_v52 }
  0xd7   :  { %v228_v13 = vpop.f32.mrf.mxu1  ;;  %v164_v51 = vadd.f32 %v163_v12, %v5905_v21 }
  0xd9   :  { %v5979_v3 = vadd.f32 %v228_v13, %v164_v51 }
  0xdb   :  { %v302_v34 = vmul.f32 %v5979_v3, %v5979_v3 }
  0xdd   :  { %v323_v55 = vsel %vm8817_vm0, %v302_v34, 0.0 }
  0xde   :  { %v166_v14 = vpop.f32.mrf.mxu0  ;;  %v324_v24 = vadd.f32 %v323_v55, %v322_v5 }
  0xdf   :  { %v5889_v15 = vpop.f32.mrf.mxu1  ;;  %v167_v4 = vadd.f32 %v166_v14, %v5905_v21  ;;  %v364_v14 = vand.u32 7, %v5984_v6 }
  0xe1   :  { %v6022_v32 = vadd.f32 %v5889_v15, %v167_v4  ;;  %vm6028_vm4 = vcmp.eq.s32.totalorder %v364_v14, %v5953_v53  ;;  %v361_v15 = vand.u32 7, %v5998_v10  ;;  %v8867_v14 = vmov 0 }
  0xe2   :  { %5004 = vmatpush.msk.msra.mxu2 %vm6028_vm4, %v8843_v1 }
  0xe3   :  { %v303_v51 = vmul.f32 %v6022_v32, %v6022_v32  ;;  %vm6072_vm7 = vcmp.eq.s32.totalorder %v361_v15, %v5953_v53  ;;  %v272_v61 = vsel %vm8817_vm0, %v6022_v32, 0.0 }
  0xe4   :  { %5005 = vmatpush.msk.msra.mxu2 %vm6035_vm5, %v8843_v1  ;;  %v8865_v60 = vsel %vm6072_vm7, 4294967295, %v8864_v60 }
  0xe5   :  { %8866 = vst [vmem:[#allocation4_spill] sm:$0xff] %v8865_v60 }
  0xe6   :  { %v5891_v16 = vpop.f32.mrf.mxu0  ;;  %5006 = vmatpush.msk.msra.mxu2 %vm6055_vm6, %v8843_v1 }
  0xe7   :  { %v5893_v17 = vpop.f32.mrf.mxu1  ;;  %v170_v12 = vadd.f32 %v5891_v16, %v5905_v21  ;;  %v266_v16 = vsel %vm8817_vm0, %v5958_v57, 0.0 }
  0xe8   :  { %v267_v44 = vadd.f32 %v266_v16, %v265_v22  ;;  %v325_v22 = vsel %vm8817_vm0, %v303_v51, 0.0  ;;  %5007 = vmatpush.msk.msra.mxu2 %vm6072_vm7, %v8843_v1 }
  0xe9   :  { %v6044_v42 = vadd.f32 %v5893_v17, %v170_v12  ;;  %v360_v17 = vand.u32 7, %v5936_v40 }
  0xea   :  { %v269_v54 = vadd.f32 %v268_v41, %v267_v44 }
  0xeb   :  { %v304_v2 = vmul.f32 %v6044_v42, %v6044_v42  ;;  %vm6090_vm8 = vcmp.eq.s32.totalorder %v360_v17, %v5953_v53 }
  0xec   :  { %v8868_v14 = vsel %vm6090_vm8, 4294967295, %v8867_v14  ;;  %5008 = vmatpush.msk.msra.mxu2 %vm6090_vm8, %v8843_v1  ;;  %v9023_v38 = vld [vmem:[#allocation4_spill] sm:$0xff] }
  0xed   :  { %8869 = vst [vmem:[#allocation5_spill] sm:$0xff] %v8868_v14  ;;  %v327_v16 = vsel %vm8817_vm0, %v304_v2, 0.0 }
  0xee   :  { %v5900_v19 = vpop.f32.mrf.mxu0 }
  0xef   :  { %v5902_v20 = vpop.f32.mrf.mxu1  ;;  %v173_v23 = vadd.f32 %v5900_v19, %v5905_v21 }
  0xf1   :  { %v6052_v45 = vadd.f32 %v5902_v20, %v173_v23 }
  0xf3   :  { %v305_v12 = vmul.f32 %v6052_v45, %v6052_v45  ;;  %v276_v31 = vsel %vm8817_vm0, %v6052_v45, 0.0 }
  0xf5   :  { %v329_v39 = vsel %vm8817_vm0, %v305_v12, 0.0 }
  0xf6   :  { %v5910_v25 = vpop.f32.mrf.mxu0 }
  0xf7   :  { %v5912_v26 = vpop.f32.mrf.mxu1  ;;  %v176_v43 = vadd.f32 %v5910_v25, %v5905_v21  ;;  %v270_v25 = vsel %vm8817_vm0, %v5979_v3, 0.0 }
  0xf8   :  { %v271_v11 = vadd.f32 %v270_v25, %v269_v54 }
  0xfa   :  { %v273_v30 = vadd.f32 %v272_v61, %v271_v11 }
  0xfe   :  { %v5929_v36 = vpop.f32.mrf.mxu0 }
  0xff   :  { %v5931_v37 = vpop.f32.mrf.mxu1  ;;  %v179_v20 = vadd.f32 %v5929_v36, %v5905_v21  ;;  %v6081_v36 = vadd.f32 %v5912_v26, %v176_v43  ;;  %v274_v26 = vsel %vm8817_vm0, %v6044_v42, 0.0 }
 0x100   :  { %v275_v15 = vadd.f32 %v274_v26, %v273_v30 }
 0x101   :  { %v306_v33 = vmul.f32 %v6081_v36, %v6081_v36  ;;  %v278_v44 = vsel %vm8817_vm0, %v6081_v36, 0.0 }
 0x102   :  { %v277_v25 = vadd.f32 %v276_v31, %v275_v15 }
 0x103   :  { %v331_v51 = vsel %vm8817_vm0, %v306_v33, 0.0 }
 0x104   :  { %v279_v61 = vadd.f32 %v278_v44, %v277_v25 }
 0x106   :  { %v181_v63 = vpop.f32.mrf.mxu0 }
 0x107   :  { %v5973_v0 = vpop.f32.mrf.mxu1  ;;  %v182_v4 = vadd.f32 %v181_v63, %v5905_v21  ;;  %v6098_v63 = vadd.f32 %v5931_v37, %v179_v20  ;;  %v326_v37 = vadd.f32 %v325_v22, %v324_v24 }
 0x109   :  { %v6110_v34 = vadd.f32 %v5973_v0, %v182_v4  ;;  %v328_v50 = vadd.f32 %v327_v16, %v326_v37  ;;  %v280_v20 = vsel %vm8817_vm0, %v6098_v63, 0.0 }
 0x10a   :  { %v281_v11 = vadd.f32 %v280_v20, %v279_v61 }
 0x10b   :  { %v308_v52 = vmul.f32 %v6110_v34, %v6110_v34  ;;  %v330_v55 = vadd.f32 %v329_v39, %v328_v50 }
 0x10d   :  { %v332_v5 = vadd.f32 %v331_v51, %v330_v55  ;;  %v335_v12 = vsel %vm8817_vm0, %v308_v52, 0.0 }
 0x10e   :  { %v184_v47 = vpop.f32.mrf.mxu0 }
 0x10f   :  { %v249_v48 = vpop.f32.mrf.mxu1  ;;  %v185_v23 = vadd.f32 %v184_v47, %v5905_v21  ;;  %v307_v47 = vmul.f32 %v6098_v63, %v6098_v63 }
 0x111   :  { %v6120_v17 = vadd.f32 %v249_v48, %v185_v23  ;;  %v333_v2 = vsel %vm8817_vm0, %v307_v47, 0.0  ;;  %v282_v48 = vsel %vm8817_vm0, %v6110_v34, 0.0 }
 0x112   :  { %v334_v23 = vadd.f32 %v333_v2, %v332_v5  ;;  %v283_v24 = vadd.f32 %v282_v48, %v281_v11 }
 0x113   :  { %v309_v4 = vmul.f32 %v6120_v17, %v6120_v17  ;;  %v284_v22 = vsel %vm8817_vm0, %v6120_v17, 0.0 }
 0x114   :  { %v336_v15 = vadd.f32 %v335_v12, %v334_v23  ;;  %v285_v39 = vadd.f32 %v284_v22, %v283_v24 }
 0x115   :  { %v337_v31 = vsel %vm8817_vm0, %v309_v4, 0.0 }
 0x116   :  { %v187_v41 = vpop.f32.mrf.mxu0  ;;  %v338_v44 = vadd.f32 %v337_v31, %v336_v15  ;;  %v536_v15 = vld [vmem:[%s8799_s3 + $0x28] sm:$0xff] }
 0x117   :  { %v252_v43 = vpop.f32.mrf.mxu1  ;;  %v188_v0 = vadd.f32 %v187_v41, %v5905_v21 }
 0x119   :  { %v6128_v54 = vadd.f32 %v252_v43, %v188_v0 }
 0x11b   :  { %v310_v26 = vmul.f32 %v6128_v54, %v6128_v54  ;;  %v286_v33 = vsel %vm8817_vm0, %v6128_v54, 0.0 }
 0x11c   :  { %v287_v47 = vadd.f32 %v286_v33, %v285_v39  ;;  %v538_v33 = vld [vmem:[%s8799_s3 + $0x38] sm:$0xff]  ;;  %v535_v39 = vld [vmem:[%s8799_s3 + $0x20] sm:$0xff] }
 0x11d   :  { %v339_v41 = vsel %vm8817_vm0, %v310_v26, 0.0  ;;  %596 = vmatpush.msrb.mxu1 %v538_v33 }
 0x11e   :  { %v190_v30 = vpop.f32.mrf.mxu0  ;;  %v340_v25 = vadd.f32 %v339_v41, %v338_v44 }
 0x11f   :  { %v255_v16 = vpop.f32.mrf.mxu1  ;;  %v191_v37 = vadd.f32 %v190_v30, %v5905_v21  ;;  %v378_v30 = vand.u32 7, %v5953_v53 }
 0x121   :  { %v6145_v43 = vadd.f32 %v255_v16, %v191_v37  ;;  %vm6158_vm10 = vcmp.eq.s32.totalorder %v378_v30, %v5936_v40  ;;  %v8870_v16 = vmov 0  ;;  %v537_v37 = vld [vmem:[%s8799_s3 + $0x30] sm:$0xff]  ;;  %v6198_v30 = vperm.slane %v5898_v18, 2 }
 0x122   :  { %v8871_v16 = vsel %vm6158_vm10, 4294967295, %v8870_v16  ;;  %5011 = vmatpush.msk.msra.mxu3 %vm6158_vm10, %v8843_v1  ;;  %597 = vmatpush.msrb.mxu1 %v537_v37 }
 0x123   :  { %v288_v0 = vsel %vm8817_vm0, %v6145_v43, 0.0  ;;  %v311_v50 = vmul.f32 %v6145_v43, %v6145_v43  ;;  %8872 = vst [vmem:[#allocation6_spill] sm:$0xff] %v8871_v16 }
 0x124   :  { %v289_v51 = vadd.f32 %v288_v0, %v287_v47  ;;  %5561 = vmatpush.msrb.mxu3 %v538_v33  ;;  %598 = vmatpush.msrb.mxu1 %v536_v15  ;;  %v534_v47 = vld [vmem:[%s8799_s3 + $0x18] sm:$0xff]  ;;  %v533_v0 = vld [vmem:[%s8799_s3 + $0x10] sm:$0xff] }
 0x125   :  { %v341_v20 = vsel %vm8817_vm0, %v311_v50, 0.0 }
 0x126   :  { %v290_v52 = vrot.slane %v289_v51, 4  ;;  %v342_v21 = vadd.f32 %v341_v20, %v340_v25  ;;  %5562 = vmatpush.msrb.mxu3 %v537_v37  ;;  %599 = vmatpush.msrb.mxu1 %v535_v39  ;;  %v532_v25 = vld [vmem:[%s8799_s3 + $0x8] sm:$0xff]  ;;  %v531_v20 = vld [vmem:[%s8799_s3] sm:$0xff]  ;;  %s5601_s3 = smov 96  }
 0x128   :  { %v291_v55 = vadd.f32 %v290_v52, %v289_v51  ;;  %v343_v61 = vrot.slane %v342_v21, 4  ;;  %5563 = vmatpush.msrb.mxu3 %v536_v15  ;;  %600 = vmatpush.msrb.mxu1 %v534_v47 }
 0x12a   :  { %v292_v2 = vrot.slane %v291_v55, 2  ;;  %v344_v48 = vadd.f32 %v343_v61, %v342_v21  ;;  %5564 = vmatpush.msrb.mxu3 %v535_v39  ;;  %601 = vmatpush.msrb.mxu1 %v533_v0 }
 0x12c   :  { %v293_v4 = vadd.f32 %v292_v2, %v291_v55  ;;  %v345_v5 = vrot.slane %v344_v48, 2  ;;  %5565 = vmatpush.msrb.mxu3 %v534_v47  ;;  %602 = vmatpush.msrb.mxu1 %v532_v25 }
 0x12e   :  { %v294_v11 = vrot.slane %v293_v4, 1  ;;  %v346_v12 = vadd.f32 %v345_v5, %v344_v48  ;;  %5566 = vmatpush.msrb.mxu3 %v533_v0  ;;  %603 = vmatpush.msrb.mxu1 %v531_v20 }
 0x130   :  { %v347_v22 = vrot.slane %v346_v12, 1  ;;  %v295_v26 = vadd.f32 %v294_v11, %v293_v4  ;;  %5567 = vmatpush.msrb.mxu3 %v532_v25 }
 0x132   :  { %v348_v23 = vadd.f32 %v347_v22, %v346_v12  ;;  %5568 = vmatpush.msrb.mxu3 %v531_v20 }
 0x134   :  { %v352_v24 = vsel %vm8825_vm9, %v295_v26, %v348_v23 }
 0x135   :  { %5009 = vmatmul.msk.f32.vlgmr.msra.gmra.mxu2 %vm8817_vm0, %v352_v24 }
 0x1b8   :  { %v416_v31 = vpop.f32.mrf.mxu2 }
 0x1b9   :  { %5012 = vmatmul.msk.f32.vlgmr.msra.gmra.mxu3 %vm8816_vm11, %v416_v31 }
 0x23c   :  { %v442_v41 = vpop.f32.mrf.mxu3 }
 0x23d   :  { %v445_v44 = vmul.f32 0.0009765625, %v442_v41 }
 0x23f   :  { %v446_v50 = vmul.f32 %v445_v44, %v445_v44  ;;  %v6190_v12 = vperm.slane %v445_v44, 0 }
 0x241   :  { %v448_v51 = vrot.slane %v446_v50, 7  ;;  %v464_v24 = vsub.f32 %v5916_v28, %v6190_v12  ;;  %v470_v31 = vsub.f32 %v5979_v3, %v6190_v12  ;;  %v465_v41 = vsub.f32 %v5914_v27, %v6190_v12 }
 0x242   :  { %v471_v28 = vsub.f32 %v6022_v32, %v6190_v12  ;;  %v478_v0 = vsub.f32 %v6128_v54, %v6190_v12  ;;  %v479_v50 = vsub.f32 %v6145_v43, %v6190_v12  ;;  %v466_v54 = vsub.f32 %v5918_v29, %v6190_v12 }
 0x243   :  { %v450_v52 = vsub.f32 %v445_v44, %v448_v51  ;;  %v467_v29 = vsub.f32 %v5927_v35, %v6190_v12  ;;  %v468_v35 = vsub.f32 %v5958_v57, %v6190_v12  ;;  %v469_v57 = vsub.f32 %v5971_v62, %v6190_v12 }
 0x244   :  { %v476_v62 = vsub.f32 %v6110_v34, %v6190_v12 }
 0x245   :  { %v451_v21 = vmax.f32 %v450_v52, 0.0  ;;  %v472_v52 = vsub.f32 %v6044_v42, %v6190_v12  ;;  %v473_v42 = vsub.f32 %v6052_v45, %v6190_v12  ;;  %v474_v45 = vsub.f32 %v6081_v36, %v6190_v12 }
 0x246   :  { %v475_v36 = vsub.f32 %v6098_v63, %v6190_v12 }
 0x247   :  { %v452_v55 = vadd.f32 1e-05, %v451_v21 }
 0x249   :  { %5582 = vrsqrt.f32 %v452_v55  ;;  %vm459_vm13 = vweird.f32 %v452_v55 }
 0x24f   :  { %v5583_v61 = vpop.eup %5582 }
 0x250   :  { %v454_v2 = vmul.f32 %v5583_v61, %v452_v55  ;;  %vm460_vm12 = vweird.f32 %v5583_v61 }
 0x251   :  { %vm461_vm14 = vmor %vm459_vm13, %vm460_vm12 }
 0x252   :  { %v455_v48 = vmul.f32 %v5583_v61, %v454_v2 }
 0x254   :  { %v456_v4 = vmul.f32 0.5, %v455_v48 }
 0x256   :  { %v457_v5 = vsub.f32 1.5, %v456_v4 }
 0x258   :  { %v458_v11 = vmul.f32 %v5583_v61, %v457_v5 }
 0x25a   :  { %v462_v22 = vsel %vm461_vm14, %v5583_v61, %v458_v11 }
 0x25b   :  { %v480_v26 = vmul.f32 %v462_v22, %v5898_v18 }
 0x25d   :  { %v6193_v23 = vperm.slane %v480_v26, 1 }
 0x25f   :  { %v482_v33 = vmul.f32 %v6193_v23, %v464_v24  ;;  %v488_v37 = vmul.f32 %v6193_v23, %v470_v31  ;;  %v483_v47 = vmul.f32 %v6193_v23, %v465_v41  ;;  %v489_v3 = vmul.f32 %v6193_v23, %v471_v28 }
 0x260   :  { %v496_v27 = vmul.f32 %v6193_v23, %v478_v0  ;;  %v497_v51 = vmul.f32 %v6193_v23, %v479_v50  ;;  %v484_v61 = vmul.f32 %v6193_v23, %v466_v54  ;;  %v490_v2 = vmul.f32 %v6193_v23, %v472_v52 }
 0x261   :  { %v499_v15 = vadd.f32 %v6198_v30, %v482_v33  ;;  %v505_v39 = vadd.f32 %v6198_v30, %v488_v37  ;;  %v500_v32 = vadd.f32 %v6198_v30, %v483_v47  ;;  %v506_v25 = vadd.f32 %v6198_v30, %v489_v3 }
 0x262   :  { %v513_v20 = vadd.f32 %v6198_v30, %v496_v27  ;;  %v514_v21 = vadd.f32 %v6198_v30, %v497_v51  ;;  %v501_v48 = vadd.f32 %v6198_v30, %v484_v61  ;;  %v507_v4 = vadd.f32 %v6198_v30, %v490_v2 }
 0x263   :  { %v515_v44 = vmax.f32 %v499_v15, 0.0  ;;  %v521_v18 = vmax.f32 %v505_v39, 0.0  ;;  %v516_v55 = vmax.f32 %v500_v32, 0.0  ;;  %v522_v43 = vmax.f32 %v506_v25, 0.0 }
 0x264   :  { %v517_v5 = vmax.f32 %v501_v48, 0.0  ;;  %v523_v11 = vmax.f32 %v507_v4, 0.0  ;;  %v485_v22 = vmul.f32 %v6193_v23, %v467_v29  ;;  %v491_v26 = vmul.f32 %v6193_v23, %v473_v42 }
 0x265   :  { %5013 = vmatmul.msk.f32.vlgmr.msrb.gmra.mxu1 %vm8817_vm0, %v515_v44  ;;  %5019 = vmatmul.msk.f32.vlgmr.msrb.gmra.mxu3 %vm8817_vm0, %v521_v18  ;;  %v486_v15 = vmul.f32 %v6193_v23, %v468_v35  ;;  %v492_v39 = vmul.f32 %v6193_v23, %v474_v45  ;;  %v487_v47 = vmul.f32 %v6193_v23, %v469_v57  ;;  %v530_v61 = vmax.f32 %v514_v21, 0.0 }
 0x266   :  { %v502_v24 = vadd.f32 %v6198_v30, %v485_v22  ;;  %v508_v31 = vadd.f32 %v6198_v30, %v491_v26  ;;  %v493_v3 = vmul.f32 %v6193_v23, %v475_v36  ;;  %v494_v63 = vmul.f32 %v6193_v23, %v476_v62 }
 0x267   :  { %v503_v41 = vadd.f32 %v6198_v30, %v486_v15  ;;  %v509_v28 = vadd.f32 %v6198_v30, %v492_v39  ;;  %v504_v0 = vadd.f32 %v6198_v30, %v487_v47  ;;  %v477_v51 = vsub.f32 %v6120_v17, %v6190_v12 }
 0x268   :  { %v518_v33 = vmax.f32 %v502_v24, 0.0  ;;  %v524_v37 = vmax.f32 %v508_v31, 0.0  ;;  %v510_v50 = vadd.f32 %v6198_v30, %v493_v3  ;;  %v511_v25 = vadd.f32 %v6198_v30, %v494_v63 }
 0x269   :  { %v519_v44 = vmax.f32 %v503_v41, 0.0  ;;  %v525_v18 = vmax.f32 %v509_v28, 0.0  ;;  %v520_v27 = vmax.f32 %v504_v0, 0.0  ;;  %v495_v52 = vmul.f32 %v6193_v23, %v477_v51 }
 0x26a   :  { %v526_v32 = vmax.f32 %v510_v50, 0.0  ;;  %v527_v54 = vmax.f32 %v511_v25, 0.0 }
 0x26b   :  { %v512_v34 = vadd.f32 %v6198_v30, %v495_v52  ;;  %v6281_v30 = vld [vmem:[%s8800_s4] sm:$0x7] }
 0x26c   :  { %v6284_v42 = vperm.slane %v6281_v30, 0 }
 0x26d   :  { %5014 = vmatmul.msk.f32.gmra.mxu1 %vm8817_vm0, %v516_v55  ;;  %5020 = vmatmul.msk.f32.gmra.mxu3 %vm8817_vm0, %v522_v43  ;;  %v528_v55 = vmax.f32 %v512_v34, 0.0  ;;  %v529_v43 = vmax.f32 %v513_v20, 0.0 }
 0x275   :  { %5015 = vmatmul.msk.f32.gmra.mxu1 %vm8817_vm0, %v517_v5  ;;  %5021 = vmatmul.msk.f32.gmra.mxu3 %vm8817_vm0, %v523_v11 }
 0x27d   :  { %5016 = vmatmul.msk.f32.gmra.mxu1 %vm8817_vm0, %v518_v33  ;;  %5022 = vmatmul.msk.f32.gmra.mxu3 %vm8817_vm0, %v524_v37 }
 0x285   :  { %5017 = vmatmul.msk.f32.gmra.mxu1 %vm8817_vm0, %v519_v44  ;;  %5023 = vmatmul.msk.f32.gmra.mxu3 %vm8817_vm0, %v525_v18 }
 0x28d   :  { %5018 = vmatmul.msk.f32.gmra.mxu1 %vm8817_vm0, %v520_v27  ;;  %5024 = vmatmul.msk.f32.gmra.mxu3 %vm8817_vm0, %v526_v32 }
 0x295   :  { %5025 = vmatmul.msk.f32.gmra.mxu3 %vm8817_vm0, %v527_v54 }
 0x29d   :  { %5026 = vmatmul.msk.f32.gmra.mxu3 %vm8817_vm0, %v528_v55 }
 0x2a5   :  { %5027 = vmatmul.msk.f32.gmra.mxu3 %vm8817_vm0, %v529_v43 }
 0x2ad   :  { %5028 = vmatmul.msk.f32.gmra.mxu3 %vm8817_vm0, %v530_v61 }
 0x2e2   :  { %v605_v2 = vpop.f32.mrf.mxu1 }
 0x2e3   :  { %v6290_v5 = vadd.f32 %v605_v2, %v6284_v42 }
 0x2e5   :  { %v691_v31 = vmul.f32 %v6290_v5, %v6290_v5  ;;  %v654_v15 = vsel %vm8824_vm15, %v6290_v5, 0.0 }
 0x2e7   :  { %v707_v57 = vsel %vm8824_vm15, %v691_v31, 0.0 }
 0x2e8   :  { %v623_v48 = vpop.f32.mrf.mxu3 }
 0x2e9   :  { %v6331_v54 = vadd.f32 %v623_v48, %v6284_v42 }
 0x2ea   :  { %v608_v4 = vpop.f32.mrf.mxu1 }
 0x2eb   :  { %v6287_v21 = vadd.f32 %v608_v4, %v6284_v42 }
 0x2ed   :  { %v692_v26 = vmul.f32 %v6287_v21, %v6287_v21  ;;  %v655_v35 = vsel %vm8824_vm15, %v6287_v21, 0.0 }
 0x2ee   :  { %v656_v36 = vadd.f32 %v655_v35, %v654_v15 }
 0x2ef   :  { %v708_v39 = vsel %vm8824_vm15, %v692_v26, 0.0  ;;  %v665_v26 = vsel %vm8824_vm15, %v6331_v54, 0.0 }
 0x2f0   :  { %v626_v17 = vpop.f32.mrf.mxu3  ;;  %v709_v50 = vadd.f32 %v708_v39, %v707_v57 }
 0x2f2   :  { %v611_v12 = vpop.f32.mrf.mxu1 }
 0x2f3   :  { %v6293_v22 = vadd.f32 %v611_v12, %v6284_v42 }
 0x2f5   :  { %v693_v45 = vmul.f32 %v6293_v22, %v6293_v22  ;;  %v657_v41 = vsel %vm8824_vm15, %v6293_v22, 0.0 }
 0x2f6   :  { %v658_v62 = vadd.f32 %v657_v41, %v656_v36 }
 0x2f7   :  { %v710_v18 = vsel %vm8824_vm15, %v693_v45, 0.0 }
 0x2f8   :  { %v629_v29 = vpop.f32.mrf.mxu3  ;;  %v711_v25 = vadd.f32 %v710_v18, %v709_v50 }
 0x2f9   :  { %v6348_v15 = vadd.f32 %v629_v29, %v6284_v42 }
 0x2fa   :  { %v614_v23 = vpop.f32.mrf.mxu1 }
 0x2fb   :  { %v6298_v24 = vadd.f32 %v614_v23, %v6284_v42  ;;  %v697_v23 = vmul.f32 %v6331_v54, %v6331_v54  ;;  %v699_v36 = vmul.f32 %v6348_v15, %v6348_v15 }
 0x2fd   :  { %v694_v28 = vmul.f32 %v6298_v24, %v6298_v24  ;;  %v659_v47 = vsel %vm8824_vm15, %v6298_v24, 0.0  ;;  %v718_v35 = vsel %vm8824_vm15, %v697_v23, 0.0 }
 0x2fe   :  { %v660_v51 = vadd.f32 %v659_v47, %v658_v62  ;;  %v669_v47 = vsel %vm8824_vm15, %v6348_v15, 0.0 }
 0x2ff   :  { %v712_v27 = vsel %vm8824_vm15, %v694_v28, 0.0 }
 0x300   :  { %v632_v20 = vpop.f32.mrf.mxu3  ;;  %v713_v55 = vadd.f32 %v712_v27, %v711_v25 }
 0x302   :  { %v617_v11 = vpop.f32.mrf.mxu1 }
 0x303   :  { %v6307_v33 = vadd.f32 %v617_v11, %v6284_v42  ;;  %v6340_v11 = vadd.f32 %v626_v17, %v6284_v42 }
 0x305   :  { %v695_v3 = vmul.f32 %v6307_v33, %v6307_v33  ;;  %v661_v32 = vsel %vm8824_vm15, %v6307_v33, 0.0  ;;  %v698_v45 = vmul.f32 %v6340_v11, %v6340_v11  ;;  %v667_v28 = vsel %vm8824_vm15, %v6340_v11, 0.0 }
 0x306   :  { %v662_v43 = vadd.f32 %v661_v32, %v660_v51 }
 0x307   :  { %v714_v52 = vsel %vm8824_vm15, %v695_v3, 0.0  ;;  %v720_v57 = vsel %vm8824_vm15, %v698_v45, 0.0  ;;  %v722_v3 = vsel %vm8824_vm15, %v699_v36, 0.0 }
 0x308   :  { %v635_v37 = vpop.f32.mrf.mxu3  ;;  %v715_v4 = vadd.f32 %v714_v52, %v713_v55 }
 0x309   :  { %v6364_v62 = vadd.f32 %v635_v37, %v6284_v42 }
 0x30a   :  { %v620_v44 = vpop.f32.mrf.mxu1 }
 0x30b   :  { %v6323_v0 = vadd.f32 %v620_v44, %v6284_v42  ;;  %v6356_v44 = vadd.f32 %v632_v20, %v6284_v42  ;;  %v701_v51 = vmul.f32 %v6364_v62, %v6364_v62  ;;  %v673_v55 = vsel %vm8824_vm15, %v6364_v62, 0.0 }
 0x30d   :  { %v696_v63 = vmul.f32 %v6323_v0, %v6323_v0  ;;  %v663_v34 = vsel %vm8824_vm15, %v6323_v0, 0.0  ;;  %v700_v50 = vmul.f32 %v6356_v44, %v6356_v44 }
 0x30e   :  { %v664_v12 = vadd.f32 %v663_v34, %v662_v43 }
 0x30f   :  { %v716_v2 = vsel %vm8824_vm15, %v696_v63, 0.0  ;;  %v671_v63 = vsel %vm8824_vm15, %v6356_v44, 0.0  ;;  %v724_v25 = vsel %vm8824_vm15, %v700_v50, 0.0 }
 0x310   :  { %v638_v61 = vpop.f32.mrf.mxu3  ;;  %v717_v48 = vadd.f32 %v716_v2, %v715_v4  ;;  %v666_v31 = vadd.f32 %v665_v26, %v664_v12  ;;  %v726_v2 = vsel %vm8824_vm15, %v701_v51, 0.0 }
 0x311   :  { %v6372_v52 = vadd.f32 %v638_v61, %v6284_v42 }
 0x312   :  { %v719_v39 = vadd.f32 %v718_v35, %v717_v48  ;;  %v668_v17 = vadd.f32 %v667_v28, %v666_v31 }
 0x313   :  { %v702_v4 = vmul.f32 %v6372_v52, %v6372_v52  ;;  %v675_v61 = vsel %vm8824_vm15, %v6372_v52, 0.0 }
 0x314   :  { %v721_v18 = vadd.f32 %v720_v57, %v719_v39  ;;  %v670_v29 = vadd.f32 %v669_v47, %v668_v17 }
 0x315   :  { %v728_v45 = vsel %vm8824_vm15, %v702_v4, 0.0 }
 0x316   :  { %v723_v27 = vadd.f32 %v722_v3, %v721_v18  ;;  %v672_v20 = vadd.f32 %v671_v63, %v670_v29 }
 0x318   :  { %v641_v41 = vpop.f32.mrf.mxu3  ;;  %v725_v34 = vadd.f32 %v724_v25, %v723_v27  ;;  %v674_v43 = vadd.f32 %v673_v55, %v672_v20 }
 0x319   :  { %v6377_v37 = vadd.f32 %v641_v41, %v6284_v42 }
 0x31a   :  { %v727_v23 = vadd.f32 %v726_v2, %v725_v34  ;;  %v676_v35 = vadd.f32 %v675_v61, %v674_v43 }
 0x31b   :  { %v703_v26 = vmul.f32 %v6377_v37, %v6377_v37  ;;  %v677_v39 = vsel %vm8824_vm15, %v6377_v37, 0.0 }
 0x31c   :  { %v729_v28 = vadd.f32 %v728_v45, %v727_v23  ;;  %v678_v18 = vadd.f32 %v677_v39, %v676_v35 }
 0x31d   :  { %v730_v17 = vsel %vm8824_vm15, %v703_v26, 0.0 }
 0x31e   :  { %v731_v3 = vadd.f32 %v730_v17, %v729_v28 }
 0x320   :  { %v644_v32 = vpop.f32.mrf.mxu3 }
 0x321   :  { %v6383_v12 = vadd.f32 %v644_v32, %v6284_v42 }
 0x323   :  { %v704_v41 = vmul.f32 %v6383_v12, %v6383_v12  ;;  %v679_v57 = vsel %vm8824_vm15, %v6383_v12, 0.0 }
 0x324   :  { %v680_v50 = vadd.f32 %v679_v57, %v678_v18 }
 0x325   :  { %v732_v47 = vsel %vm8824_vm15, %v704_v41, 0.0 }
 0x326   :  { %v733_v20 = vadd.f32 %v732_v47, %v731_v3 }
 0x328   :  { %v647_v48 = vpop.f32.mrf.mxu3 }
 0x329   :  { %v6390_v31 = vadd.f32 %v647_v48, %v6284_v42 }
 0x32b   :  { %v705_v36 = vmul.f32 %v6390_v31, %v6390_v31  ;;  %v681_v29 = vsel %vm8824_vm15, %v6390_v31, 0.0 }
 0x32c   :  { %v682_v25 = vadd.f32 %v681_v29, %v680_v50 }
 0x32d   :  { %v734_v32 = vsel %vm8824_vm15, %v705_v36, 0.0 }
 0x32e   :  { %v735_v55 = vadd.f32 %v734_v32, %v733_v20 }
 0x330   :  { %v650_v27 = vpop.f32.mrf.mxu3 }
 0x331   :  { %v651_v63 = vadd.f32 %v650_v27, %v6284_v42 }
 0x333   :  { %v683_v51 = vsel %vm8824_vm15, %v651_v63, 0.0  ;;  %v706_v34 = vmul.f32 %v651_v63, %v651_v63 }
 0x334   :  { %v684_v43 = vadd.f32 %v683_v51, %v682_v25 }
 0x335   :  { %v736_v2 = vsel %vm8824_vm15, %v706_v34, 0.0 }
 0x336   :  { %v685_v4 = vrot.slane %v684_v43, 4  ;;  %v737_v23 = vadd.f32 %v736_v2, %v735_v55 }
 0x338   :  { %v686_v48 = vadd.f32 %v685_v4, %v684_v43  ;;  %v738_v61 = vrot.slane %v737_v23, 4 }
 0x33a   :  { %v687_v26 = vrot.slane %v686_v48, 2  ;;  %v739_v35 = vadd.f32 %v738_v61, %v737_v23  ;;  %v6415_v23 = vperm.slane %v6281_v30, 2 }
 0x33c   :  { %v688_v45 = vadd.f32 %v687_v26, %v686_v48  ;;  %v740_v39 = vrot.slane %v739_v35, 2 }
 0x33e   :  { %v689_v41 = vrot.slane %v688_v45, 1  ;;  %v741_v28 = vadd.f32 %v740_v39, %v739_v35 }
 0x340   :  { %v742_v42 = vrot.slane %v741_v28, 1  ;;  %v690_v17 = vadd.f32 %v689_v41, %v688_v45 }
 0x342   :  { %v743_v57 = vadd.f32 %v742_v42, %v741_v28 }
 0x344   :  { %v744_v36 = vsel %vm8825_vm9, %v690_v17, %v743_v57 }
 0x345   :  { %v745_v18 = vmul.f32 0.0078125, %v744_v36 }
 0x347   :  { %v746_v47 = vmul.f32 %v745_v18, %v745_v18  ;;  %v6411_v43 = vperm.slane %v745_v18, 0 }
 0x349   :  { %v748_v29 = vrot.slane %v746_v47, 7  ;;  %v779_v48 = vsub.f32 %v651_v63, %v6411_v43  ;;  %v778_v26 = vsub.f32 %v6390_v31, %v6411_v43  ;;  %v777_v35 = vsub.f32 %v6383_v12, %v6411_v43 }
 0x34a   :  { %v775_v31 = vsub.f32 %v6372_v52, %v6411_v43  ;;  %v774_v36 = vsub.f32 %v6364_v62, %v6411_v43  ;;  %v773_v52 = vsub.f32 %v6356_v44, %v6411_v43 }
 0x34b   :  { %v750_v3 = vsub.f32 %v745_v18, %v748_v29 }
 0x34d   :  { %v751_v50 = vmax.f32 %v750_v3, 0.0 }
 0x34f   :  { %v752_v27 = vadd.f32 1e-05, %v751_v50  ;;  %v772_v50 = vsub.f32 %v6348_v15, %v6411_v43 }
 0x351   :  { %5584 = vrsqrt.f32 %v752_v27  ;;  %vm759_vm13 = vweird.f32 %v752_v27 }
 0x357   :  { %v5585_v32 = vpop.eup %5584 }
 0x358   :  { %v754_v20 = vmul.f32 %v5585_v32, %v752_v27  ;;  %vm760_vm12 = vweird.f32 %v5585_v32 }
 0x359   :  { %vm761_vm14 = vmor %vm759_vm13, %vm760_vm12 }
 0x35a   :  { %v755_v25 = vmul.f32 %v5585_v32, %v754_v20  ;;  %v771_v20 = vsub.f32 %v6340_v11, %v6411_v43 }
 0x35c   :  { %v756_v51 = vmul.f32 0.5, %v755_v25 }
 0x35e   :  { %v757_v34 = vsub.f32 1.5, %v756_v51 }
 0x360   :  { %v758_v55 = vmul.f32 %v5585_v32, %v757_v34  ;;  %v770_v34 = vsub.f32 %v6331_v54, %v6411_v43 }
 0x362   :  { %v762_v2 = vsel %vm761_vm14, %v5585_v32, %v758_v55 }
 0x363   :  { %v780_v4 = vmul.f32 %v762_v2, %v6281_v30  ;;  %v776_v30 = vsub.f32 %v6377_v37, %v6411_v43 }
 0x365   :  { %v6418_v61 = vperm.slane %v780_v4, 1  ;;  %v769_v4 = vsub.f32 %v6323_v0, %v6411_v43 }
 0x367   :  { %v797_v45 = vmul.f32 %v6418_v61, %v779_v48  ;;  %v796_v39 = vmul.f32 %v6418_v61, %v778_v26  ;;  %v795_v41 = vmul.f32 %v6418_v61, %v777_v35  ;;  %v794_v42 = vmul.f32 %v6418_v61, %v776_v30 }
 0x368   :  { %v793_v57 = vmul.f32 %v6418_v61, %v775_v31  ;;  %v792_v47 = vmul.f32 %v6418_v61, %v774_v36  ;;  %v791_v3 = vmul.f32 %v6418_v61, %v773_v52  ;;  %v790_v32 = vmul.f32 %v6418_v61, %v772_v50 }
 0x369   :  { %v814_v28 = vadd.f32 %v6415_v23, %v797_v45  ;;  %v813_v63 = vadd.f32 %v6415_v23, %v796_v39  ;;  %v812_v12 = vadd.f32 %v6415_v23, %v795_v41  ;;  %v811_v18 = vadd.f32 %v6415_v23, %v794_v42 }
 0x36a   :  { %v810_v62 = vadd.f32 %v6415_v23, %v793_v57  ;;  %v809_v44 = vadd.f32 %v6415_v23, %v792_v47  ;;  %v808_v15 = vadd.f32 %v6415_v23, %v791_v3  ;;  %v789_v51 = vmul.f32 %v6418_v61, %v771_v20 }
 0x36b   :  { %v6434_v17 = vmax.f32 %v814_v28, 0.0  ;;  %v6442_v37 = vmax.f32 %v813_v63, 0.0  ;;  %v6450_v29 = vmax.f32 %v812_v12, 0.0  ;;  %v6458_v27 = vmax.f32 %v811_v18, 0.0 }
 0x36c   :  { %v6466_v25 = vmax.f32 %v810_v62, 0.0  ;;  %v6474_v55 = vmax.f32 %v809_v44, 0.0  ;;  %v807_v11 = vadd.f32 %v6415_v23, %v790_v32  ;;  %v788_v2 = vmul.f32 %v6418_v61, %v770_v34  ;;  %v832_v34 = vld [vmem:[%s8801_s5 + $0x8] sm:$0xff] }
 0x36d   :  { %855 = vmatpush.msrb.mxu2 %v6434_v17  ;;  %1037 = vmatpush.msrb.mxu0 %v6434_v17  ;;  %v6482_v48 = vmax.f32 %v808_v15, 0.0  ;;  %v806_v54 = vadd.f32 %v6415_v23, %v789_v51  ;;  %v787_v26 = vmul.f32 %v6418_v61, %v769_v4  ;;  %v768_v35 = vsub.f32 %v6307_v33, %v6411_v43  ;;  %v834_v15 = vld [vmem:[%s8801_s5 + $0x18] sm:$0xff]  ;;  %v833_v51 = vld [vmem:[%s8801_s5 + $0x10] sm:$0xff] }
 0x36e   :  { %v6490_v45 = vmax.f32 %v807_v11, 0.0  ;;  %v805_v0 = vadd.f32 %v6415_v23, %v788_v2  ;;  %v767_v41 = vsub.f32 %v6298_v24, %v6411_v43  ;;  %v766_v63 = vsub.f32 %v6293_v22, %v6411_v43  ;;  %v831_v11 = vld [vmem:[%s8801_s5] sm:$0xff] }
 0x36f   :  { %856 = vmatpush.msrb.mxu2 %v6442_v37  ;;  %1038 = vmatpush.msrb.mxu0 %v6442_v37  ;;  %v786_v39 = vmul.f32 %v6418_v61, %v768_v35  ;;  %v6498_v30 = vmax.f32 %v806_v54, 0.0  ;;  %v804_v33 = vadd.f32 %v6415_v23, %v787_v26  ;;  %v765_v12 = vsub.f32 %v6287_v21, %v6411_v43 }
 0x370   :  { %v785_v28 = vmul.f32 %v6418_v61, %v767_v41  ;;  %v6506_v42 = vmax.f32 %v805_v0, 0.0  ;;  %v784_v31 = vmul.f32 %v6418_v61, %v766_v63  ;;  %v764_v18 = vsub.f32 %v6290_v5, %v6411_v43 }
 0x371   :  { %857 = vmatpush.msrb.mxu2 %v6450_v29  ;;  %1039 = vmatpush.msrb.mxu0 %v6450_v29  ;;  %v803_v24 = vadd.f32 %v6415_v23, %v786_v39  ;;  %v6514_v57 = vmax.f32 %v804_v33, 0.0  ;;  %v783_v36 = vmul.f32 %v6418_v61, %v765_v12  ;;  %v6537_v50 = vmul.u32 8, %v5936_v40  ;;  %v835_v12 = vld [vmem:[%s8801_s5 + $0x20] sm:$0xff] }
 0x372   :  { %v802_v22 = vadd.f32 %v6415_v23, %v785_v28  ;;  %v801_v21 = vadd.f32 %v6415_v23, %v784_v31  ;;  %v782_v52 = vmul.f32 %v6418_v61, %v764_v18  ;;  %v836_v31 = vld [vmem:[%s8801_s5 + $0x28] sm:$0xff]  ;;  %v839_v18 = vld [vmem:[%s8801_s5 + $0x40] sm:$0xff] }
 0x373   :  { %858 = vmatpush.msrb.mxu2 %v6458_v27  ;;  %1040 = vmatpush.msrb.mxu0 %v6458_v27  ;;  %v6522_v47 = vmax.f32 %v803_v24, 0.0  ;;  %v800_v3 = vadd.f32 %v6415_v23, %v783_v36  ;;  %vm849_vm12 = vcmp.eq.s32.totalorder %v5953_v53, %v6537_v50  ;;  %v6588_v32 = vadd.s32 1, %v6537_v50 }
 0x374   :  { %v6528_v62 = vmax.f32 %v802_v22, 0.0  ;;  %v6533_v5 = vmax.f32 %v801_v21, 0.0  ;;  %v799_v43 = vadd.f32 %v6415_v23, %v782_v52  ;;  %v6560_v23 = vmul.u32 8, %v5998_v10  ;;  %1018 = vmatpush.msra.mxu3 %v836_v31  ;;  %v840_v22 = vld [vmem:[%s8801_s5 + $0x48] sm:$0xff]  ;;  %v838_v21 = vld [vmem:[%s8801_s5 + $0x38] sm:$0xff] }
 0x375   :  { %859 = vmatpush.msrb.mxu2 %v6466_v25  ;;  %1041 = vmatpush.msrb.mxu0 %v6466_v25  ;;  %v6541_v61 = vmax.f32 %v800_v3, 0.0  ;;  %vm880_vm14 = vcmp.eq.s32.totalorder %v5953_v53, %v6588_v32  ;;  %v6627_v35 = vadd.s32 3, %v6537_v50  ;;  %v6647_v39 = vadd.s32 2, %v6537_v50  ;;  %v837_v3 = vld [vmem:[%s8801_s5 + $0x30] sm:$0xff]  ;;  %v1397_v32 = vld [vmem:[%s8803_s7 + $0x18] sm:$0xff] }
 0x376   :  { %v6545_v44 = vmax.f32 %v799_v43, 0.0  ;;  %vm850_vm13 = vcmp.eq.s32.totalorder %v5953_v53, %v6560_v23  ;;  %v879_v20 = vadd.s32 1, %v6560_v23  ;;  %v1030_v0 = vadd.s32 3, %v6560_v23  ;;  %1019 = vmatpush.msra.mxu3 %v835_v12  ;;  %1080 = vmatpush.msra.mxu1 %v838_v21 }
 0x377   :  { %860 = vmatpush.msrb.mxu2 %v6474_v55  ;;  %1042 = vmatpush.msrb.mxu0 %v6474_v55  ;;  %vm8818_vm0 = vcmp.eq.s32.totalorder %v5953_v53, %v6647_v39  ;;  %v968_v41 = vadd.s32 2, %v6560_v23  ;;  %v6669_v33 = vadd.s32 5, %v6537_v50  ;;  %v1154_v28 = vadd.s32 5, %v6560_v23 }
 0x378   :  { %vm1032_vm11 = vcmp.eq.s32.totalorder %v5953_v53, %v1030_v0  ;;  %v6687_v63 = vadd.s32 4, %v6537_v50  ;;  %v1092_v24 = vadd.s32 4, %v6560_v23  ;;  %1142 = vmatpush.msrb.mxu3 %v840_v22  ;;  %1081 = vmatpush.msra.mxu1 %v837_v3 }
 0x379   :  { %861 = vmatpush.msrb.mxu2 %v6482_v48  ;;  %1043 = vmatpush.msrb.mxu0 %v6482_v48 }
 0x37a   :  { %1143 = vmatpush.msrb.mxu3 %v839_v18 }
 0x37b   :  { %862 = vmatpush.msrb.mxu2 %v6490_v45  ;;  %1044 = vmatpush.msrb.mxu0 %v6490_v45 }
 0x37d   :  { %863 = vmatpush.msrb.mxu2 %v6498_v30  ;;  %1045 = vmatpush.msrb.mxu0 %v6498_v30 }
 0x37f   :  { %864 = vmatpush.msrb.mxu2 %v6506_v42  ;;  %1046 = vmatpush.msrb.mxu0 %v6506_v42 }
 0x381   :  { %865 = vmatpush.msrb.mxu2 %v6514_v57  ;;  %1047 = vmatpush.msrb.mxu0 %v6514_v57 }
 0x383   :  { %866 = vmatpush.msrb.mxu2 %v6522_v47  ;;  %1048 = vmatpush.msrb.mxu0 %v6522_v47 }
 0x385   :  { %867 = vmatpush.msrb.mxu2 %v6528_v62  ;;  %1049 = vmatpush.msrb.mxu0 %v6528_v62 }
 0x387   :  { %868 = vmatpush.msrb.mxu2 %v6533_v5  ;;  %1050 = vmatpush.msrb.mxu0 %v6533_v5 }
 0x389   :  { %869 = vmatpush.msrb.mxu2 %v6541_v61  ;;  %1051 = vmatpush.msrb.mxu0 %v6541_v61 }
 0x38b   :  { %870 = vmatpush.msrb.mxu2 %v6545_v44  ;;  %1052 = vmatpush.msrb.mxu0 %v6545_v44 }
 0x38c   :  { %5031 = vmatmul.msk.f32.vlgmr.msrb.gmra.mxu2 %vm849_vm12, %v8843_v1 }
 0x38d   :  { %886 = vmatpush.msra.mxu2 %v6434_v17  ;;  %1161 = vmatpush.msra.mxu0 %v6434_v17 }
 0x38f   :  { %887 = vmatpush.msra.mxu2 %v6442_v37  ;;  %1162 = vmatpush.msra.mxu0 %v6442_v37 }
 0x391   :  { %888 = vmatpush.msra.mxu2 %v6450_v29  ;;  %1163 = vmatpush.msra.mxu0 %v6450_v29 }
 0x393   :  { %889 = vmatpush.msra.mxu2 %v6458_v27  ;;  %1164 = vmatpush.msra.mxu0 %v6458_v27 }
 0x394   :  { %5032 = vmatmul.msk.f32.gmra.mxu2 %vm850_vm13, %v8843_v1  ;;  %vm881_vm13 = vcmp.eq.s32.totalorder %v5953_v53, %v879_v20 }
 0x395   :  { %890 = vmatpush.msra.mxu2 %v6466_v25  ;;  %1165 = vmatpush.msra.mxu0 %v6466_v25 }
 0x397   :  { %891 = vmatpush.msra.mxu2 %v6474_v55  ;;  %1166 = vmatpush.msra.mxu0 %v6474_v55 }
 0x399   :  { %892 = vmatpush.msra.mxu2 %v6482_v48  ;;  %1167 = vmatpush.msra.mxu0 %v6482_v48 }
 0x39b   :  { %893 = vmatpush.msra.mxu2 %v6490_v45  ;;  %1168 = vmatpush.msra.mxu0 %v6490_v45 }
 0x39d   :  { %894 = vmatpush.msra.mxu2 %v6498_v30  ;;  %1169 = vmatpush.msra.mxu0 %v6498_v30 }
 0x39f   :  { %895 = vmatpush.msra.mxu2 %v6506_v42  ;;  %1170 = vmatpush.msra.mxu0 %v6506_v42 }
 0x3a1   :  { %896 = vmatpush.msra.mxu2 %v6514_v57  ;;  %1171 = vmatpush.msra.mxu0 %v6514_v57 }
 0x3a3   :  { %897 = vmatpush.msra.mxu2 %v6522_v47  ;;  %1172 = vmatpush.msra.mxu0 %v6522_v47 }
 0x3a5   :  { %898 = vmatpush.msra.mxu2 %v6528_v62  ;;  %1173 = vmatpush.msra.mxu0 %v6528_v62 }
 0x3a7   :  { %899 = vmatpush.msra.mxu2 %v6533_v5  ;;  %1174 = vmatpush.msra.mxu0 %v6533_v5 }
 0x3a9   :  { %900 = vmatpush.msra.mxu2 %v6541_v61  ;;  %1175 = vmatpush.msra.mxu0 %v6541_v61 }
 0x3ab   :  { %901 = vmatpush.msra.mxu2 %v6545_v44  ;;  %1176 = vmatpush.msra.mxu0 %v6545_v44 }
 0x3ac   :  { %5035 = vmatmul.msk.f32.vlgmr.msra.gmra.mxu2 %vm880_vm14, %v8843_v1 }
 0x3ad   :  { %929 = vmatpush.msrb.mxu2 %v834_v15 }
 0x3af   :  { %930 = vmatpush.msrb.mxu2 %v833_v51 }
 0x3b1   :  { %958 = vmatpush.msra.mxu2 %v832_v34 }
 0x3b3   :  { %959 = vmatpush.msra.mxu2 %v831_v11  ;;  %v842_v11 = vld [vmem:[%s8801_s5 + $0x58] sm:$0xff] }
 0x3b4   :  { %5036 = vmatmul.msk.f32.gmra.mxu2 %vm881_vm13, %v8843_v1  ;;  %vm1031_vm13 = vcmp.eq.s32.totalorder %v5953_v53, %v6627_v35  ;;  %1204 = vmatpush.msrb.mxu1 %v842_v11  ;;  %v1396_v35 = vld [vmem:[%s8803_s7 + $0x10] sm:$0xff] }
 0x3b5   :  { %5049 = vmatmul.msk.f32.vlgmr.msrb.gmra.mxu0 %vm1031_vm13, %v8843_v1 }
 0x3bd   :  { %5050 = vmatmul.msk.f32.gmra.mxu0 %vm1032_vm11, %v8843_v1  ;;  %vm970_vm11 = vcmp.eq.s32.totalorder %v5953_v53, %v968_v41 }
 0x40f   :  { %v872_v2 = vpop.f32.mrf.mxu2 }
 0x417   :  { %v875_v4 = vpop.f32.mrf.mxu2 }
 0x42f   :  { %v903_v54 = vpop.f32.mrf.mxu2 }
 0x430   :  { %5037 = vmatmul.msk.f32.vlgmr.msrb.gmra.mxu2 %vm8824_vm15, %v903_v54 }
 0x431   :  { %975 = vmatpush.msrb.mxu2 %v6434_v17 }
 0x432   :  { %v1054_v43 = vpop.f32.mrf.mxu0 }
 0x433   :  { %976 = vmatpush.msrb.mxu2 %v6442_v37  ;;  %5051 = vmatmul.msk.f32.vlgmr.msra.gmra.mxu1 %vm8824_vm15, %v1054_v43 }
 0x435   :  { %977 = vmatpush.msrb.mxu2 %v6450_v29 }
 0x437   :  { %978 = vmatpush.msrb.mxu2 %v6458_v27  ;;  %v906_v26 = vpop.f32.mrf.mxu2 }
 0x438   :  { %5038 = vmatmul.msk.f32.gmra.mxu2 %vm8824_vm15, %v906_v26 }
 0x439   :  { %979 = vmatpush.msrb.mxu2 %v6466_v25 }
 0x43a   :  { %v1057_v15 = vpop.f32.mrf.mxu0 }
 0x43b   :  { %980 = vmatpush.msrb.mxu2 %v6474_v55  ;;  %5052 = vmatmul.msk.f32.gmra.mxu1 %vm8824_vm15, %v1057_v15 }
 0x43d   :  { %981 = vmatpush.msrb.mxu2 %v6482_v48 }
 0x43f   :  { %982 = vmatpush.msrb.mxu2 %v6490_v45 }
 0x440   :  { %5039 = vmatmul.msk.f32.vlgmr.msra.gmra.mxu2 %vm8824_vm15, %v872_v2  ;;  %v841_v2 = vld [vmem:[%s8801_s5 + $0x50] sm:$0xff] }
 0x441   :  { %983 = vmatpush.msrb.mxu2 %v6498_v30  ;;  %1205 = vmatpush.msrb.mxu1 %v841_v2 }
 0x443   :  { %984 = vmatpush.msrb.mxu2 %v6506_v42 }
 0x445   :  { %985 = vmatpush.msrb.mxu2 %v6514_v57 }
 0x447   :  { %986 = vmatpush.msrb.mxu2 %v6522_v47 }
 0x448   :  { %5040 = vmatmul.msk.f32.gmra.mxu2 %vm8824_vm15, %v875_v4  ;;  %v6756_v4 = vadd.s32 7, %v6537_v50 }
 0x449   :  { %987 = vmatpush.msrb.mxu2 %v6528_v62 }
 0x44b   :  { %988 = vmatpush.msrb.mxu2 %v6533_v5 }
 0x44d   :  { %989 = vmatpush.msrb.mxu2 %v6541_v61 }
 0x44f   :  { %990 = vmatpush.msrb.mxu2 %v6545_v44 }
 0x450   :  { %5043 = vmatmul.msk.f32.vlgmr.msrb.gmra.mxu2 %vm8818_vm0, %v8843_v1  ;;  %vm8819_vm0 = vcmp.eq.s32.totalorder %v5953_v53, %v6669_v33 }
 0x451   :  { %1099 = vmatpush.msra.mxu2 %v6434_v17  ;;  %5061 = vmatmul.msk.f32.vlgmr.msra.gmra.mxu0 %vm8819_vm0, %v8843_v1  ;;  %vm8820_vm0 = vcmp.eq.s32.totalorder %v5953_v53, %v6687_v63 }
 0x453   :  { %1100 = vmatpush.msra.mxu2 %v6442_v37 }
 0x455   :  { %1101 = vmatpush.msra.mxu2 %v6450_v29 }
 0x457   :  { %1102 = vmatpush.msra.mxu2 %v6458_v27 }
 0x458   :  { %5044 = vmatmul.msk.f32.gmra.mxu2 %vm970_vm11, %v8843_v1  ;;  %vm1156_vm11 = vcmp.eq.s32.totalorder %v5953_v53, %v1154_v28 }
 0x459   :  { %1103 = vmatpush.msra.mxu2 %v6466_v25  ;;  %5062 = vmatmul.msk.f32.gmra.mxu0 %vm1156_vm11, %v8843_v1  ;;  %vm1094_vm11 = vcmp.eq.s32.totalorder %v5953_v53, %v1092_v24 }
 0x45b   :  { %1104 = vmatpush.msra.mxu2 %v6474_v55 }
 0x45d   :  { %1105 = vmatpush.msra.mxu2 %v6482_v48 }
 0x45f   :  { %1106 = vmatpush.msra.mxu2 %v6490_v45 }
 0x461   :  { %1107 = vmatpush.msra.mxu2 %v6498_v30 }
 0x463   :  { %1108 = vmatpush.msra.mxu2 %v6506_v42 }
 0x465   :  { %1109 = vmatpush.msra.mxu2 %v6514_v57 }
 0x467   :  { %1110 = vmatpush.msra.mxu2 %v6522_v47 }
 0x469   :  { %1111 = vmatpush.msra.mxu2 %v6528_v62 }
 0x46b   :  { %1112 = vmatpush.msra.mxu2 %v6533_v5 }
 0x46d   :  { %1113 = vmatpush.msra.mxu2 %v6541_v61 }
 0x46f   :  { %1114 = vmatpush.msra.mxu2 %v6545_v44 }
 0x470   :  { %5055 = vmatmul.msk.f32.vlgmr.msra.gmra.mxu2 %vm8820_vm0, %v8843_v1 }
 0x471   :  { %1285 = vmatpush.msrb.mxu2 %v6434_v17 }
 0x473   :  { %1286 = vmatpush.msrb.mxu2 %v6442_v37 }
 0x475   :  { %1287 = vmatpush.msrb.mxu2 %v6450_v29 }
 0x477   :  { %1288 = vmatpush.msrb.mxu2 %v6458_v27 }
 0x478   :  { %5056 = vmatmul.msk.f32.gmra.mxu2 %vm1094_vm11, %v8843_v1  ;;  %vm8821_vm11 = vcmp.eq.s32.totalorder %v5953_v53, %v6756_v4 }
 0x479   :  { %1289 = vmatpush.msrb.mxu2 %v6466_v25 }
 0x47b   :  { %1290 = vmatpush.msrb.mxu2 %v6474_v55 }
 0x47d   :  { %1291 = vmatpush.msrb.mxu2 %v6482_v48 }
 0x47f   :  { %1292 = vmatpush.msrb.mxu2 %v6490_v45 }
 0x481   :  { %1293 = vmatpush.msrb.mxu2 %v6498_v30 }
 0x483   :  { %1294 = vmatpush.msrb.mxu2 %v6506_v42 }
 0x485   :  { %1295 = vmatpush.msrb.mxu2 %v6514_v57 }
 0x487   :  { %1296 = vmatpush.msrb.mxu2 %v6522_v47 }
 0x489   :  { %1297 = vmatpush.msrb.mxu2 %v6528_v62 }
 0x48b   :  { %1298 = vmatpush.msrb.mxu2 %v6533_v5 }
 0x48d   :  { %1299 = vmatpush.msrb.mxu2 %v6541_v61 }
 0x48f   :  { %1300 = vmatpush.msrb.mxu2 %v6545_v44 }
 0x490   :  { %5073 = vmatmul.msk.f32.vlgmr.msrb.gmra.mxu2 %vm8821_vm11, %v8843_v1 }
 0x4b0   :  { %v1083_v41 = vpop.f32.mrf.mxu1 }
 0x4b3   :  { %v6726_v36 = vpop.f32.mrf.mxu2 }
 0x4b8   :  { %v1086_v28 = vpop.f32.mrf.mxu1 }
 0x4bb   :  { %v6734_v52 = vpop.f32.mrf.mxu2 }
 0x4c3   :  { %v6740_v20 = vpop.f32.mrf.mxu2 }
 0x4c4   :  { %v962_v31 = vadd.f32 %v6740_v20, %v6726_v36 }
 0x4cb   :  { %v6743_v51 = vpop.f32.mrf.mxu2 }
 0x4cc   :  { %v965_v21 = vadd.f32 %v6743_v51, %v6734_v52 }
 0x4ce   :  { %v1178_v26 = vpop.f32.mrf.mxu0 }
 0x4cf   :  { %5063 = vmatmul.msk.f32.vlgmr.msrb.gmra.mxu1 %vm8824_vm15, %v1178_v26 }
 0x4d3   :  { %v992_v34 = vpop.f32.mrf.mxu2 }
 0x4d4   :  { %5045 = vmatmul.msk.f32.vlgmr.msra.gmra.mxu3 %vm8824_vm15, %v992_v34 }
 0x4d5   :  { %1223 = vmatpush.msra.mxu3 %v6434_v17  ;;  %v1278_v17 = vadd.s32 7, %v6560_v23 }
 0x4d7   :  { %1224 = vmatpush.msra.mxu3 %v6442_v37  ;;  %v1181_v37 = vpop.f32.mrf.mxu0  ;;  %vm1280_vm0 = vcmp.eq.s32.totalorder %v5953_v53, %v1278_v17 }
 0x4d8   :  { %5064 = vmatmul.msk.f32.gmra.mxu1 %vm8824_vm15, %v1181_v37  ;;  %5074 = vmatmul.msk.f32.gmra.mxu2 %vm1280_vm0, %v8843_v1 }
 0x4d9   :  { %1225 = vmatpush.msra.mxu3 %v6450_v29 }
 0x4db   :  { %1226 = vmatpush.msra.mxu3 %v6458_v27  ;;  %v995_v54 = vpop.f32.mrf.mxu2 }
 0x4dc   :  { %5046 = vmatmul.msk.f32.gmra.mxu3 %vm8824_vm15, %v995_v54  ;;  %v58_v54 = vld [vmem:[%s8802_s6] sm:$0x7] }
 0x4dd   :  { %1227 = vmatpush.msra.mxu3 %v6466_v25  ;;  %v6786_v25 = vadd.s32 6, %v6537_v50  ;;  %v1339_v36 = vperm.slane %v58_v54, 0 }
 0x4df   :  { %1228 = vmatpush.msra.mxu3 %v6474_v55  ;;  %vm8823_vm0 = vcmp.eq.s32.totalorder %v5953_v53, %v6786_v25  ;;  %v1216_v55 = vadd.s32 6, %v6560_v23 }
 0x4e1   :  { %1229 = vmatpush.msra.mxu3 %v6482_v48  ;;  %vm1218_vm11 = vcmp.eq.s32.totalorder %v5953_v53, %v1216_v55  ;;  %v846_v48 = vld [vmem:[%s8801_s5 + $0x78] sm:$0xff] }
 0x4e2   :  { %1328 = vmatpush.msrb.mxu0 %v846_v48 }
 0x4e3   :  { %1230 = vmatpush.msra.mxu3 %v6490_v45 }
 0x4e5   :  { %1231 = vmatpush.msra.mxu3 %v6498_v30  ;;  %v845_v30 = vld [vmem:[%s8801_s5 + $0x70] sm:$0xff] }
 0x4e6   :  { %1329 = vmatpush.msrb.mxu0 %v845_v30 }
 0x4e7   :  { %1232 = vmatpush.msra.mxu3 %v6506_v42  ;;  %v844_v42 = vld [vmem:[%s8801_s5 + $0x68] sm:$0xff] }
 0x4e8   :  { %1266 = vmatpush.msra.mxu1 %v844_v42 }
 0x4e9   :  { %1233 = vmatpush.msra.mxu3 %v6514_v57 }
 0x4eb   :  { %1234 = vmatpush.msra.mxu3 %v6522_v47  ;;  %v843_v47 = vld [vmem:[%s8801_s5 + $0x60] sm:$0xff] }
 0x4ec   :  { %1267 = vmatpush.msra.mxu1 %v843_v47 }
 0x4ed   :  { %1235 = vmatpush.msra.mxu3 %v6528_v62 }
 0x4ef   :  { %1236 = vmatpush.msra.mxu3 %v6533_v5 }
 0x4f1   :  { %1237 = vmatpush.msra.mxu3 %v6541_v61 }
 0x4f3   :  { %v1116_v29 = vpop.f32.mrf.mxu2  ;;  %1238 = vmatpush.msra.mxu3 %v6545_v44 }
 0x4f4   :  { %5057 = vmatmul.msk.f32.vlgmr.msrb.gmra.mxu3 %vm8824_vm15, %v1116_v29 }
 0x4f5   :  { %5569 = vmatpush.msrb.mxu3 %v846_v48 }
 0x4f7   :  { %5570 = vmatpush.msrb.mxu3 %v845_v30 }
 0x4fb   :  { %v1119_v27 = vpop.f32.mrf.mxu2 }
 0x4fc   :  { %5058 = vmatmul.msk.f32.gmra.mxu3 %vm8824_vm15, %v1119_v27 }
 0x504   :  { %5067 = vmatmul.msk.f32.vlgmr.msra.gmra.mxu3 %vm8823_vm0, %v8843_v1 }
 0x50c   :  { %5068 = vmatmul.msk.f32.gmra.mxu3 %vm1218_vm11, %v8843_v1  ;;  %vm8822_vm11 = vcmask 261120  }
 0x513   :  { %v1302_v45 = vpop.f32.mrf.mxu2 }
 0x514   :  { %5075 = vmatmul.msk.f32.vlgmr.msrb.gmra.mxu0 %vm8824_vm15, %v1302_v45 }
 0x54c   :  { %v1207_v24 = vpop.f32.mrf.mxu1 }
 0x555   :  { %v1210_v22 = vpop.f32.mrf.mxu1 }
 0x557   :  { %v1021_v57 = vpop.f32.mrf.mxu3 }
 0x558   :  { %v1027_v12 = vadd.f32 %v1021_v57, %v962_v31 }
 0x55a   :  { %v1089_v18 = vadd.f32 %v1083_v41, %v1027_v12 }
 0x55b   :  { %v1305_v62 = vpop.f32.mrf.mxu2 }
 0x55c   :  { %5076 = vmatmul.msk.f32.vlgmr.msrb.gmra.mxu3 %vm8824_vm15, %v1305_v62 }
 0x55f   :  { %v1024_v5 = vpop.f32.mrf.mxu3 }
 0x560   :  { %v1028_v43 = vadd.f32 %v1024_v5, %v965_v21 }
 0x562   :  { %v1090_v11 = vadd.f32 %v1086_v28, %v1028_v43 }
 0x577   :  { %v1145_v61 = vpop.f32.mrf.mxu3 }
 0x578   :  { %v1151_v3 = vadd.f32 %v1145_v61, %v1089_v18 }
 0x57a   :  { %v1213_v15 = vadd.f32 %v1207_v24, %v1151_v3 }
 0x57f   :  { %v1148_v44 = vpop.f32.mrf.mxu3 }
 0x580   :  { %v1152_v26 = vadd.f32 %v1148_v44, %v1090_v11 }
 0x582   :  { %v1214_v20 = vadd.f32 %v1210_v22, %v1152_v26 }
 0x587   :  { %v1240_v23 = vpop.f32.mrf.mxu3 }
 0x588   :  { %5069 = vmatmul.msk.f32.vlgmr.msra.gmra.mxu1 %vm8824_vm15, %v1240_v23 }
 0x58f   :  { %v1243_v0 = vpop.f32.mrf.mxu3 }
 0x590   :  { %5070 = vmatmul.msk.f32.gmra.mxu1 %vm8824_vm15, %v1243_v0 }
 0x591   :  { %v1331_v17 = vpop.f32.mrf.mxu0 }
 0x5df   :  { %v1334_v27 = vpop.f32.mrf.mxu3 }
 0x605   :  { %v1269_v34 = vpop.f32.mrf.mxu1 }
 0x606   :  { %v1275_v2 = vadd.f32 %v1269_v34, %v1213_v15 }
 0x608   :  { %v1337_v37 = vadd.f32 %v1331_v17, %v1275_v2 }
 0x60a   :  { %v1340_v55 = vadd.f32 %v1339_v36, %v1337_v37 }
 0x60c   :  { %v1352_v51 = vmul.f32 %v1340_v55, %v1340_v55  ;;  %v1343_v30 = vsel %vm8822_vm11, %v1340_v55, 0.0 }
 0x60d   :  { %v1272_v29 = vpop.f32.mrf.mxu1 }
 0x60e   :  { %v1276_v48 = vadd.f32 %v1272_v29, %v1214_v20  ;;  %v1354_v62 = vsel %vm8822_vm11, %v1352_v51, 0.0 }
 0x610   :  { %v1338_v52 = vadd.f32 %v1334_v27, %v1276_v48 }
 0x612   :  { %v1341_v45 = vadd.f32 %v1339_v36, %v1338_v52 }
 0x614   :  { %v1344_v42 = vsel %vm8822_vm11, %v1341_v45, 0.0  ;;  %v1353_v57 = vmul.f32 %v1341_v45, %v1341_v45 }
 0x615   :  { %v1345_v47 = vadd.f32 %v1344_v42, %v1343_v30  ;;  %v1389_v42 = vperm.slane %v58_v54, 2 }
 0x616   :  { %v1355_v5 = vsel %vm8822_vm11, %v1353_v57, 0.0 }
 0x617   :  { %v1346_v61 = vrot.slane %v1345_v47, 4  ;;  %v1356_v44 = vadd.f32 %v1355_v5, %v1354_v62 }
 0x619   :  { %v1347_v23 = vadd.f32 %v1346_v61, %v1345_v47  ;;  %v1357_v0 = vrot.slane %v1356_v44, 4 }
 0x61b   :  { %v1348_v41 = vrot.slane %v1347_v23, 2  ;;  %v1358_v28 = vadd.f32 %v1357_v0, %v1356_v44 }
 0x61d   :  { %v1349_v24 = vadd.f32 %v1348_v41, %v1347_v23  ;;  %v1359_v31 = vrot.slane %v1358_v28, 2 }
 0x61f   :  { %v1350_v12 = vrot.slane %v1349_v24, 1  ;;  %v1360_v22 = vadd.f32 %v1359_v31, %v1358_v28  ;;  %v8828_v28 = vmov 0.0  }
 0x621   :  { %v1361_v18 = vrot.slane %v1360_v22, 1  ;;  %v1351_v21 = vadd.f32 %v1350_v12, %v1349_v24  ;;  %v5029_v24 = vsel %vm849_vm12, 1.0, %v8828_v28  ;;  %vm8874_vm12 = vcmask 130048  }
 0x623   :  { %v1362_v3 = vadd.f32 %v1361_v18, %v1360_v22  ;;  %v1394_v22 = vld [vmem:[%s8803_s7] sm:$0xff]  ;;  %v1399_v18 = vld [vmem:[%s8803_s7 + $0x28] sm:$0xff] }
 0x625   :  { %v1363_v43 = vsel %vm8825_vm9, %v1351_v21, %v1362_v3  ;;  %v1398_v21 = vld [vmem:[%s8803_s7 + $0x20] sm:$0xff]  ;;  %v1408_v3 = vld [vmem:[%s8803_s7 + $0x70] sm:$0xff] }
 0x626   :  { %v1364_v15 = vmul.f32 0.0625, %v1363_v43  ;;  %v1405_v43 = vld [vmem:[%s8803_s7 + $0x58] sm:$0xff] }
 0x628   :  { %v1365_v34 = vmul.f32 %v1364_v15, %v1364_v15  ;;  %v1382_v52 = vperm.slane %v1364_v15, 0 }
 0x62a   :  { %v1367_v11 = vrot.slane %v1365_v34, 7  ;;  %v1383_v57 = vsub.f32 %v1340_v55, %v1382_v52  ;;  %v1384_v47 = vsub.f32 %v1341_v45, %v1382_v52  ;;  %v5047_v55 = vsel %vm1031_vm13, 1.0, %v8828_v28  ;;  %v1404_v34 = vld [vmem:[%s8803_s7 + $0x50] sm:$0xff] }
 0x62b   :  { %vm8878_vm13 = vcmp.eq.s32.totalorder %v5953_v53, %v6669_v33  ;;  %v1412_v52 = vld [vmem:[%s8803_s7 + $0x90] sm:$0xff] }
 0x62c   :  { %v1369_v2 = vsub.f32 %v1364_v15, %v1367_v11  ;;  %v5059_v45 = vsel %vm8878_vm13, 1.0, %v8828_v28  ;;  %v1407_v15 = vld [vmem:[%s8803_s7 + $0x68] sm:$0xff]  ;;  %v1406_v11 = vld [vmem:[%s8803_s7 + $0x60] sm:$0xff] }
 0x62e   :  { %v1370_v26 = vmax.f32 %v1369_v2, 0.0  ;;  %v1403_v2 = vld [vmem:[%s8803_s7 + $0x48] sm:$0xff] }
 0x630   :  { %v1371_v17 = vadd.f32 1e-05, %v1370_v26  ;;  %v1402_v26 = vld [vmem:[%s8803_s7 + $0x40] sm:$0xff] }
 0x632   :  { %5586 = vrsqrt.f32 %v1371_v17  ;;  %vm1378_vm0 = vweird.f32 %v1371_v17 }
 0x638   :  { %v5587_v37 = vpop.eup %5586 }
 0x639   :  { %v1373_v36 = vmul.f32 %v5587_v37, %v1371_v17  ;;  %vm1379_vm11 = vweird.f32 %v5587_v37  ;;  %v1417_v17 = vld [vmem:[%s8803_s7 + $0xb8] sm:$0xff] }
 0x63a   :  { %vm1380_vm15 = vmor %vm1378_vm0, %vm1379_vm11 }
 0x63b   :  { %v1374_v20 = vmul.f32 %v5587_v37, %v1373_v36  ;;  %vm8875_vm0 = vmmov %vm8874_vm12  ;;  %v1416_v36 = vld [vmem:[%s8803_s7 + $0xb0] sm:$0xff] }
 0x63c   :  { %vm8877_vm11 = vmmov %vm8875_vm0 }
 0x63d   :  { %v1375_v29 = vmul.f32 0.5, %v1374_v20  ;;  %vm8883_vm13 = vmmov %vm8875_vm0  ;;  %v1415_v20 = vld [vmem:[%s8803_s7 + $0xa8] sm:$0xff] }
 0x63e   :  { %vm8884_vm9 = vmmov %vm8875_vm0 }
 0x63f   :  { %v1376_v27 = vsub.f32 1.5, %v1375_v29  ;;  %v1413_v29 = vld [vmem:[%s8803_s7 + $0x98] sm:$0xff] }
 0x641   :  { %v1377_v48 = vmul.f32 %v5587_v37, %v1376_v27  ;;  %v1414_v27 = vld [vmem:[%s8803_s7 + $0xa0] sm:$0xff] }
 0x643   :  { %v1381_v51 = vsel %vm1380_vm15, %v5587_v37, %v1377_v48  ;;  %vm8873_vm15 = vcmp.eq.s32.totalorder %v5953_v53, %v6647_v39  ;;  %v1395_v39 = vld [vmem:[%s8803_s7 + $0x8] sm:$0xff] }
 0x644   :  { %v1385_v30 = vmul.f32 %v1381_v51, %v58_v54  ;;  %v5033_v54 = vsel %vm880_vm14, 1.0, %v8828_v28  ;;  %v5041_v50 = vsel %vm8873_vm15, 1.0, %v8828_v28  ;;  %vm8876_vm14 = vmmov %vm8875_vm0  ;;  %vm8879_vm15 = vcmp.eq.s32.totalorder %v5953_v53, %v6687_v63  ;;  %v1401_v63 = vld [vmem:[%s8803_s7 + $0x38] sm:$0xff] }
 0x645   :  { %v5053_v31 = vsel %vm8879_vm15, 1.0, %v8828_v28  ;;  %v1425_v51 = vld [vmem:[%s8803_s7 + $0xf8] sm:$0xff] }
 0x646   :  { %v1386_v62 = vperm.slane %v1385_v30, 1 }
 0x648   :  { %v1387_v5 = vmul.f32 %v1386_v62, %v1383_v57  ;;  %v1388_v61 = vmul.f32 %v1386_v62, %v1384_v47  ;;  %v1411_v57 = vld [vmem:[%s8803_s7 + $0x88] sm:$0xff]  ;;  %v1424_v47 = vld [vmem:[%s8803_s7 + $0xf0] sm:$0xff]  ;;  %v1410_v62 = vld [vmem:[%s8803_s7 + $0x80] sm:$0xff] }
 0x64a   :  { %v1390_v44 = vadd.f32 %v1389_v42, %v1387_v5  ;;  %v1391_v23 = vadd.f32 %v1389_v42, %v1388_v61  ;;  %v1423_v5 = vld [vmem:[%s8803_s7 + $0xe8] sm:$0xff]  ;;  %v1421_v61 = vld [vmem:[%s8803_s7 + $0xd8] sm:$0xff] }
 0x64c   :  { %v1393_v0 = vmax.f32 %v1391_v23, 0.0  ;;  %v1392_v41 = vmax.f32 %v1390_v44, 0.0  ;;  %v1422_v44 = vld [vmem:[%s8803_s7 + $0xe0] sm:$0xff]  ;;  %v1420_v23 = vld [vmem:[%s8803_s7 + $0xd0] sm:$0xff] }
 0x64e   :  { %1443 = vmatpush.msrb.mxu1 %v1393_v0  ;;  %1466 = vmatpush.msra.mxu3 %v1393_v0 }
 0x64f   :  { %1535 = vmatpush.msra.mxu0 %v1393_v0  ;;  %1582 = vmatpush.msra.mxu2 %v1393_v0 }
 0x650   :  { %1444 = vmatpush.msrb.mxu1 %v1392_v41  ;;  %1467 = vmatpush.msra.mxu3 %v1392_v41 }
 0x651   :  { %1536 = vmatpush.msra.mxu0 %v1392_v41  ;;  %1583 = vmatpush.msra.mxu2 %v1392_v41 }
 0x652   :  { %5077 = vmatmul.msk.f32.vlgmr.msrb.gmra.mxu1 %vm8874_vm12, %v5029_v24  ;;  %5078 = vmatmul.msk.f32.vlgmr.msra.gmra.mxu3 %vm8875_vm0, %v5033_v54  ;;  %vm8880_vm12 = vmmov %vm8875_vm0  ;;  %v1418_v54 = vld [vmem:[%s8803_s7 + $0xc0] sm:$0xff] }
 0x653   :  { %1629 = vmatpush.msrb.mxu0 %v1393_v0  ;;  %1676 = vmatpush.msrb.mxu2 %v1393_v0 }
 0x654   :  { %5081 = vmatmul.msk.f32.vlgmr.msra.gmra.mxu0 %vm8876_vm14, %v5041_v50  ;;  %5083 = vmatmul.msk.f32.vlgmr.msra.gmra.mxu2 %vm8877_vm11, %v5047_v55  ;;  %vm8881_vm14 = vcmp.eq.s32.totalorder %v5953_v53, %v6756_v4  ;;  %vm8882_vm11 = vcmp.eq.s32.totalorder %v5953_v53, %v6786_v25  ;;  %v1400_v4 = vld [vmem:[%s8803_s7 + $0x30] sm:$0xff]  ;;  %v1409_v25 = vld [vmem:[%s8803_s7 + $0x78] sm:$0xff] }
 0x655   :  { %1630 = vmatpush.msrb.mxu0 %v1392_v41  ;;  %1677 = vmatpush.msrb.mxu2 %v1392_v41  ;;  %v5071_v12 = vsel %vm8881_vm14, 1.0, %v8828_v28  ;;  %v5065_v33 = vsel %vm8882_vm11, 1.0, %v8828_v28 }
 0x656   :  { %1510 = vmatpush.msrb.mxu3 %v1397_v32  ;;  %1487 = vmatpush.msra.mxu1 %v1401_v63 }
 0x657   :  { %1723 = vmatpush.msra.mxu0 %v1393_v0  ;;  %1770 = vmatpush.msra.mxu2 %v1393_v0 }
 0x658   :  { %1511 = vmatpush.msrb.mxu3 %v1396_v35  ;;  %1488 = vmatpush.msra.mxu1 %v1400_v4 }
 0x659   :  { %1724 = vmatpush.msra.mxu0 %v1392_v41  ;;  %1771 = vmatpush.msra.mxu2 %v1392_v41  ;;  %v1419_v41 = vld [vmem:[%s8803_s7 + $0xc8] sm:$0xff] }
 0x65a   :  { %1512 = vmatpush.msrb.mxu3 %v1395_v39  ;;  %1489 = vmatpush.msra.mxu1 %v1399_v18 }
 0x65c   :  { %5087 = vmatmul.msk.f32.vlgmr.msrb.gmra.mxu2 %vm8880_vm12, %v5059_v45  ;;  %5085 = vmatmul.msk.f32.vlgmr.msrb.gmra.mxu0 %vm8875_vm0, %v5053_v31 }
 0x65d   :  { %1513 = vmatpush.msrb.mxu3 %v1394_v22  ;;  %1490 = vmatpush.msra.mxu1 %v1398_v21 }
 0x65f   :  { %1603 = vmatpush.msra.mxu3 %v1409_v25  ;;  %1556 = vmatpush.msrb.mxu1 %v1405_v43  ;;  %v6973_v25 = vld [vmem:[%s8804_s8] sm:$0x7] }
 0x661   :  { %1604 = vmatpush.msra.mxu3 %v1408_v3  ;;  %1557 = vmatpush.msrb.mxu1 %v1404_v34 }
 0x663   :  { %1605 = vmatpush.msra.mxu3 %v1407_v15  ;;  %1558 = vmatpush.msrb.mxu1 %v1403_v2  ;;  %v1800_v15 = vperm.slane %v6973_v25, 0 }
 0x664   :  { %5091 = vmatmul.msk.f32.vlgmr.msra.gmra.mxu2 %vm8883_vm13, %v5071_v12  ;;  %5089 = vmatmul.msk.f32.vlgmr.msra.gmra.mxu0 %vm8884_vm9, %v5065_v33  ;;  %vm8885_vm9 = vcmask 261120  }
 0x665   :  { %1606 = vmatpush.msra.mxu3 %v1406_v11  ;;  %1559 = vmatpush.msrb.mxu1 %v1402_v26  ;;  %vm8886_vm15 = vmmov %vm8885_vm9 }
 0x666   :  { %vm8887_vm12 = vmmov %vm8885_vm9 }
 0x667   :  { %vm8888_vm0 = vmmov %vm8885_vm9 }
 0x668   :  { %vm8889_vm14 = vmmov %vm8888_vm0 }
 0x669   :  { %vm8890_vm11 = vmmov %vm8888_vm0 }
 0x66a   :  { %vm8891_vm13 = vmmov %vm8888_vm0 }
 0x6cf   :  { %v1446_v37 = vpop.f32.mrf.mxu1 }
 0x6d0   :  { %5080 = vmatmul.msk.f32.vlgmr.msrb.gmra.mxu3 %vm8885_vm9, %v1446_v37  ;;  %vm8892_vm9 = vmmov %vm8888_vm0 }
 0x6d1   :  { %1697 = vmatpush.msrb.mxu3 %v1417_v17  ;;  %v1538_v42 = vpop.f32.mrf.mxu0 }
 0x6d3   :  { %1698 = vmatpush.msrb.mxu3 %v1416_v36 }
 0x6d5   :  { %v1469_v48 = vpop.f32.mrf.mxu3  ;;  %1699 = vmatpush.msrb.mxu3 %v1415_v20 }
 0x6d6   :  { %5079 = vmatmul.msk.f32.vlgmr.msra.gmra.mxu1 %vm8886_vm15, %v1469_v48  ;;  %vm1802_vm15 = vcmask 517120  }
 0x6d7   :  { %v1585_v30 = vpop.f32.mrf.mxu2  ;;  %1650 = vmatpush.msra.mxu1 %v1413_v29  ;;  %1700 = vmatpush.msrb.mxu3 %v1414_v27 }
 0x6d8   :  { %5084 = vmatmul.msk.f32.vlgmr.msra.gmra.mxu3 %vm8887_vm12, %v1585_v30  ;;  %vm8893_vm12 = vcmp.eq.s32.totalorder %v5936_v40, 0 }
 0x6d9   :  { %1651 = vmatpush.msra.mxu1 %v1412_v52  ;;  %1791 = vmatpush.msra.mxu3 %v1425_v51  ;;  %v1632_v24 = vpop.f32.mrf.mxu0 }
 0x6db   :  { %1652 = vmatpush.msra.mxu1 %v1411_v57  ;;  %1792 = vmatpush.msra.mxu3 %v1424_v47 }
 0x6dd   :  { %1653 = vmatpush.msra.mxu1 %v1410_v62  ;;  %1793 = vmatpush.msra.mxu3 %v1423_v5 }
 0x6de   :  { %5082 = vmatmul.msk.f32.vlgmr.msrb.gmra.mxu1 %vm8888_vm0, %v1538_v42 }
 0x6df   :  { %v1679_v0 = vpop.f32.mrf.mxu2  ;;  %1744 = vmatpush.msrb.mxu1 %v1421_v61  ;;  %1794 = vmatpush.msra.mxu3 %v1422_v44  ;;  %v1859_v61 = vld [vmem:[%s8805_s9 + $0x70] sm:$0xff]  ;;  %v1860_v44 = vld [vmem:[%s8805_s9 + $0x78] sm:$0xff] }
 0x6e0   :  { %5088 = vmatmul.msk.f32.vlgmr.msrb.gmra.mxu3 %vm8889_vm14, %v1679_v0  ;;  %1879 = vmatpush.msrb.mxu0 %v1859_v61  ;;  %v1857_v0 = vld [vmem:[%s8805_s9 + $0x60] sm:$0xff] }
 0x6e1   :  { %1745 = vmatpush.msrb.mxu1 %v1420_v23  ;;  %v1726_v50 = vpop.f32.mrf.mxu0 }
 0x6e2   :  { %1880 = vmatpush.msrb.mxu0 %v1857_v0 }
 0x6e3   :  { %1746 = vmatpush.msrb.mxu1 %v1419_v41  ;;  %v1858_v41 = vld [vmem:[%s8805_s9 + $0x68] sm:$0xff] }
 0x6e5   :  { %1747 = vmatpush.msrb.mxu1 %v1418_v54  ;;  %v1855_v54 = vld [vmem:[%s8805_s9 + $0x50] sm:$0xff] }
 0x6e6   :  { %5086 = vmatmul.msk.f32.vlgmr.msra.gmra.mxu1 %vm8890_vm11, %v1632_v24  ;;  %1881 = vmatpush.msrb.mxu0 %v1855_v54 }
 0x6e7   :  { %v1773_v55 = vpop.f32.mrf.mxu2  ;;  %1899 = vmatpush.msra.mxu1 %v1860_v44 }
 0x6e8   :  { %5092 = vmatmul.msk.f32.vlgmr.msra.gmra.mxu3 %vm8891_vm13, %v1773_v55  ;;  %v1856_v55 = vld [vmem:[%s8805_s9 + $0x58] sm:$0xff] }
 0x6e9   :  { %1900 = vmatpush.msra.mxu1 %v1858_v41 }
 0x6eb   :  { %1901 = vmatpush.msra.mxu1 %v1856_v55 }
 0x6ee   :  { %5090 = vmatmul.msk.f32.vlgmr.msrb.gmra.mxu1 %vm8892_vm9, %v1726_v50 }
 0x753   :  { %v1492_v32 = vpop.f32.mrf.mxu1  ;;  %v1515_v35 = vpop.f32.mrf.mxu3 }
 0x754   :  { %v1516_v31 = vadd.f32 %v1515_v35, %v1492_v32  ;;  %v1853_v32 = vld [vmem:[%s8805_s9 + $0x40] sm:$0xff]  ;;  %v1854_v35 = vld [vmem:[%s8805_s9 + $0x48] sm:$0xff] }
 0x755   :  { %1882 = vmatpush.msrb.mxu0 %v1853_v32  ;;  %1902 = vmatpush.msra.mxu1 %v1854_v35 }
 0x75b   :  { %v1561_v39 = vpop.f32.mrf.mxu1  ;;  %v1608_v45 = vpop.f32.mrf.mxu3 }
 0x75c   :  { %v1564_v12 = vadd.f32 %v1561_v39, %v1516_v31  ;;  %v1851_v39 = vld [vmem:[%s8805_s9 + $0x30] sm:$0xff] }
 0x75d   :  { %1883 = vmatpush.msrb.mxu0 %v1851_v39 }
 0x75e   :  { %v1611_v22 = vadd.f32 %v1608_v45, %v1564_v12  ;;  %v1852_v45 = vld [vmem:[%s8805_s9 + $0x38] sm:$0xff]  ;;  %v1849_v12 = vld [vmem:[%s8805_s9 + $0x20] sm:$0xff] }
 0x75f   :  { %1903 = vmatpush.msra.mxu1 %v1852_v45  ;;  %1884 = vmatpush.msrb.mxu0 %v1849_v12 }
 0x763   :  { %v1655_v33 = vpop.f32.mrf.mxu1  ;;  %v1702_v63 = vpop.f32.mrf.mxu3 }
 0x764   :  { %v1658_v4 = vadd.f32 %v1655_v33, %v1611_v22  ;;  %v1850_v33 = vld [vmem:[%s8805_s9 + $0x28] sm:$0xff]  ;;  %v1967_v22 = vadd.s32 248, %v5936_v40 }
 0x765   :  { %1904 = vmatpush.msra.mxu1 %v1850_v33  ;;  %v1842_v33 = vperm.slane %v6973_v25, 2 }
 0x766   :  { %v1705_v18 = vadd.f32 %v1702_v63, %v1658_v4  ;;  %v7025_v63 = vadd.s32 120, %v5936_v40  ;;  %v1847_v4 = vld [vmem:[%s8805_s9 + $0x10] sm:$0xff] }
 0x767   :  { %1885 = vmatpush.msrb.mxu0 %v1847_v4 }
 0x76b   :  { %v1749_v21 = vpop.f32.mrf.mxu1  ;;  %v1796_v3 = vpop.f32.mrf.mxu3 }
 0x76c   :  { %v1752_v43 = vadd.f32 %v1749_v21, %v1705_v18  ;;  %v7032_v18 = vadd.s32 112, %v5936_v40  ;;  %v1966_v21 = vadd.s32 240, %v5936_v40 }
 0x76e   :  { %v1799_v34 = vadd.f32 %v1796_v3, %v1752_v43  ;;  %v7036_v3 = vadd.s32 104, %v5936_v40  ;;  %v1965_v43 = vadd.s32 232, %v5936_v40 }
 0x770   :  { %v6976_v11 = vadd.f32 %v1800_v15, %v1799_v34  ;;  %v1848_v34 = vld [vmem:[%s8805_s9 + $0x18] sm:$0xff] }
 0x771   :  { %1905 = vmatpush.msra.mxu1 %v1848_v34 }
 0x772   :  { %v1803_v2 = vsel %vm1802_vm15, %v6976_v11, 0.0  ;;  %v1810_v26 = vmul.f32 %v6976_v11, %v6976_v11 }
 0x773   :  { %v1804_v17 = vrot.slane %v1803_v2, 4 }
 0x774   :  { %v1811_v37 = vsel %vm1802_vm15, %v1810_v26, 0.0  ;;  %v1999_v26 = vand.u32 31, %v1967_v22 }
 0x775   :  { %v1805_v36 = vadd.f32 %v1804_v17, %v1803_v2  ;;  %v1812_v20 = vrot.slane %v1811_v37, 4  ;;  %v1983_v2 = vand.u32 31, %v7025_v63  ;;  %v7044_v17 = vadd.s32 96, %v5936_v40 }
 0x776   :  { %vm2031_vm14 = vcmp.eq.s32.totalorder %v1999_v26, %v5953_v53 }
 0x777   :  { %v1806_v29 = vrot.slane %v1805_v36, 2  ;;  %v1813_v27 = vadd.f32 %v1812_v20, %v1811_v37  ;;  %v1982_v37 = vand.u32 31, %v7032_v18  ;;  %v1981_v20 = vand.u32 31, %v7036_v3  ;;  %5143 = vmatpush.msk.msrb.mxu3 %vm2031_vm14, %v8843_v1 }
 0x778   :  { %vm2015_vm0 = vcmp.eq.s32.totalorder %v1983_v2, %v5953_v53 }
 0x779   :  { %v1807_v48 = vadd.f32 %v1806_v29, %v1805_v36  ;;  %v1814_v52 = vrot.slane %v1813_v27, 2  ;;  %v1998_v36 = vand.u32 31, %v1966_v21  ;;  %v1997_v29 = vand.u32 31, %v1965_v43  ;;  %5127 = vmatpush.msk.msrb.mxu2 %vm2015_vm0, %v8843_v1 }
 0x77a   :  { %vm2014_vm11 = vcmp.eq.s32.totalorder %v1982_v37, %v5953_v53  ;;  %vm2013_vm9 = vcmp.eq.s32.totalorder %v1981_v20, %v5953_v53  ;;  %v7097_v43 = vadd.s32 72, %v5936_v40  ;;  %v1959_v37 = vadd.s32 184, %v5936_v40 }
 0x77b   :  { %v1808_v51 = vrot.slane %v1807_v48, 1  ;;  %v1815_v30 = vadd.f32 %v1814_v52, %v1813_v27  ;;  %v1845_v27 = vld [vmem:[%s8805_s9] sm:$0xff]  ;;  %vm2030_vm13 = vcmp.eq.s32.totalorder %v1998_v36, %v5953_v53  ;;  %v1980_v52 = vand.u32 31, %v7044_v17  ;;  %5128 = vmatpush.msk.msrb.mxu2 %vm2014_vm11, %v8843_v1 }
 0x77c   :  { %1886 = vmatpush.msrb.mxu0 %v1845_v27  ;;  %vm2029_vm15 = vcmp.eq.s32.totalorder %v1997_v29, %v5953_v53  ;;  %5144 = vmatpush.msk.msrb.mxu3 %vm2030_vm13, %v8843_v1  ;;  %v1975_v36 = vand.u32 31, %v5946_v46  ;;  %v1958_v20 = vadd.s32 176, %v5936_v40  ;;  %v1991_v29 = vand.u32 31, %v1959_v37 }
 0x77d   :  { %v1816_v42 = vrot.slane %v1815_v30, 1  ;;  %v1809_v57 = vadd.f32 %v1808_v51, %v1807_v48  ;;  %v1846_v48 = vld [vmem:[%s8805_s9 + $0x8] sm:$0xff]  ;;  %v1964_v51 = vadd.s32 224, %v5936_v40  ;;  %5129 = vmatpush.msk.msrb.mxu2 %vm2013_vm9, %v8843_v1  ;;  %v1974_v27 = vand.u32 31, %v5956_v56 }
 0x77e   :  { %1906 = vmatpush.msra.mxu1 %v1846_v48  ;;  %5145 = vmatpush.msk.msrb.mxu3 %vm2029_vm15, %v8843_v1  ;;  %v1973_v48 = vand.u32 31, %v5966_v59 }
 0x77f   :  { %v1817_v47 = vadd.f32 %v1816_v42, %v1815_v30  ;;  %v7063_v30 = vadd.s32 88, %v5936_v40  ;;  %v1963_v42 = vadd.s32 216, %v5936_v40 }
 0x781   :  { %v1818_v62 = vsel %vm8893_vm12, %v1809_v57, %v1817_v47  ;;  %v7069_v57 = vadd.s32 80, %v5936_v40  ;;  %v1962_v47 = vadd.s32 208, %v5936_v40  ;;  %v1979_v61 = vand.u32 31, %v7063_v30 }
 0x782   :  { %v6983_v5 = vmul.f32 0.5, %v1818_v62  ;;  %v1996_v62 = vand.u32 31, %v1964_v51  ;;  %v1995_v44 = vand.u32 31, %v1963_v42  ;;  %vm2012_vm12 = vcmp.eq.s32.totalorder %v1980_v52, %v5953_v53 }
 0x783   :  { %v1994_v0 = vand.u32 31, %v1962_v47  ;;  %vm2011_vm14 = vcmp.eq.s32.totalorder %v1979_v61, %v5953_v53  ;;  %5130 = vmatpush.msk.msrb.mxu2 %vm2012_vm12, %v8843_v1  ;;  %v1990_v52 = vand.u32 31, %v1958_v20  ;;  %v1957_v51 = vadd.s32 168, %v5936_v40 }
 0x784   :  { %v1820_v23 = vmul.f32 %v6983_v5, %v6983_v5  ;;  %vm2028_vm0 = vcmp.eq.s32.totalorder %v1996_v62, %v5953_v53  ;;  %vm2027_vm11 = vcmp.eq.s32.totalorder %v1995_v44, %v5953_v53  ;;  %v1837_v35 = vperm.slane %v6983_v5, 0 }
 0x785   :  { %5146 = vmatpush.msk.msrb.mxu3 %vm2028_vm0, %v8843_v1  ;;  %vm2026_vm8 = vcmp.eq.s32.totalorder %v1994_v0, %v5953_v53  ;;  %5131 = vmatpush.msk.msrb.mxu2 %vm2011_vm14, %v8843_v1  ;;  %vm8894_vm0 = vcmask 523264   ;;  %v1972_v42 = vand.u32 31, %v5984_v6  ;;  %v1956_v47 = vadd.s32 160, %v5936_v40 }
 0x786   :  { %v1822_v24 = vrot.slane %v1820_v23, 7  ;;  %v1978_v23 = vand.u32 31, %v7069_v57  ;;  %v1989_v62 = vand.u32 31, %v1957_v51  ;;  %v1971_v61 = vand.u32 31, %v5992_v8 }
 0x787   :  { %5147 = vmatpush.msk.msrb.mxu3 %vm2027_vm11, %v8843_v1  ;;  %v1988_v44 = vand.u32 31, %v1956_v47  ;;  %v1954_v0 = vadd.s32 144, %v5936_v40 }
 0x788   :  { %v1824_v50 = vsub.f32 %v6983_v5, %v1822_v24  ;;  %vm2010_vm13 = vcmp.eq.s32.totalorder %v1978_v23, %v5953_v53  ;;  %v1961_v5 = vadd.s32 200, %v5936_v40  ;;  %v1955_v23 = vadd.s32 152, %v5936_v40 }
 0x789   :  { %5132 = vmatpush.msk.msrb.mxu2 %vm2010_vm13, %v8843_v1  ;;  %5148 = vmatpush.msk.msrb.mxu3 %vm2026_vm8, %v8843_v1  ;;  %vm8895_vm8 = vmmov %vm8894_vm0 }
 0x78a   :  { %v1825_v31 = vmax.f32 %v1824_v50, 0.0  ;;  %v1993_v34 = vand.u32 31, %v1961_v5 }
 0x78c   :  { %v1826_v15 = vadd.f32 1e-05, %v1825_v31  ;;  %v1838_v31 = vsub.f32 %v6976_v11, %v1837_v35  ;;  %v7102_v11 = vadd.s32 64, %v5936_v40  ;;  %vm2025_vm11 = vcmp.eq.s32.totalorder %v1993_v34, %v5953_v53 }
 0x78d   :  { %5149 = vmatpush.msk.msrb.mxu3 %vm2025_vm11, %v8843_v1  ;;  %vm2021_vm11 = vcmp.eq.s32.totalorder %v1989_v62, %v5953_v53 }
 0x78e   :  { %5588 = vrsqrt.f32 %v1826_v15  ;;  %vm1833_vm15 = vweird.f32 %v1826_v15  ;;  %v1976_v2 = vand.u32 31, %v7102_v11 }
 0x790   :  { %vm2008_vm13 = vcmp.eq.s32.totalorder %v1976_v2, %v5953_v53 }
 0x794   :  { %v5589_v41 = vpop.eup %5588 }
 0x795   :  { %v1828_v24 = vmul.f32 %v5589_v41, %v1826_v15  ;;  %vm1834_vm9 = vweird.f32 %v5589_v41  ;;  %v1977_v15 = vand.u32 31, %v7097_v43 }
 0x796   :  { %vm1835_vm12 = vmor %vm1833_vm15, %vm1834_vm9  ;;  %vm2007_vm15 = vcmp.eq.s32.totalorder %v1975_v36, %v5953_v53 }
 0x797   :  { %v1829_v54 = vmul.f32 %v5589_v41, %v1828_v24  ;;  %vm2009_vm14 = vcmp.eq.s32.totalorder %v1977_v15, %v5953_v53  ;;  %v1953_v24 = vadd.s32 136, %v5936_v40 }
 0x798   :  { %5133 = vmatpush.msk.msrb.mxu2 %vm2009_vm14, %v8843_v1  ;;  %vm2005_vm14 = vcmp.eq.s32.totalorder %v1973_v48, %v5953_v53 }
 0x799   :  { %v1830_v55 = vmul.f32 0.5, %v1829_v54  ;;  %v1987_v54 = vand.u32 31, %v1955_v23  ;;  %v1985_v35 = vand.u32 31, %v1953_v24 }
 0x79a   :  { %5134 = vmatpush.msk.msrb.mxu2 %vm2008_vm13, %v8843_v1  ;;  %vm2004_vm13 = vcmp.eq.s32.totalorder %v1972_v42, %v5953_v53 }
 0x79b   :  { %v1831_v50 = vsub.f32 1.5, %v1830_v55  ;;  %v1986_v55 = vand.u32 31, %v1954_v0 }
 0x79c   :  { %5135 = vmatpush.msk.msrb.mxu2 %vm2007_vm15, %v8843_v1  ;;  %vm2003_vm15 = vcmp.eq.s32.totalorder %v1971_v61, %v5953_v53 }
 0x79d   :  { %v1832_v32 = vmul.f32 %v5589_v41, %v1831_v50  ;;  %v1969_v50 = vand.u32 31, %v5998_v10 }
 0x79f   :  { %v1836_v39 = vsel %vm1835_vm12, %v5589_v41, %v1832_v32  ;;  %vm2023_vm12 = vcmp.eq.s32.totalorder %v1991_v29, %v5953_v53  ;;  %v1970_v41 = vand.u32 31, %v5995_v9  ;;  %v1952_v32 = vadd.s32 128, %v5936_v40 }
 0x7a0   :  { %v1839_v45 = vmul.f32 %v1836_v39, %v6973_v25  ;;  %v1960_v25 = vadd.s32 192, %v5936_v40  ;;  %v1968_v39 = vand.u32 31, %v5936_v40 }
 0x7a2   :  { %v1840_v12 = vperm.slane %v1839_v45, 1  ;;  %v1992_v26 = vand.u32 31, %v1960_v25  ;;  %v7150_v45 = vand.u32 31, %v5953_v53 }
 0x7a4   :  { %v1841_v22 = vmul.f32 %v1840_v12, %v1838_v31  ;;  %vm2024_vm9 = vcmp.eq.s32.totalorder %v1992_v26, %v5953_v53  ;;  %v1984_v31 = vand.u32 31, %v1952_v32  ;;  %v2032_v12 = vadd.s32 128, %v5953_v53 }
 0x7a5   :  { %5150 = vmatpush.msk.msrb.mxu3 %vm2024_vm9, %v8843_v1  ;;  %vm2020_vm9 = vcmp.eq.s32.totalorder %v1988_v44, %v5953_v53 }
 0x7a6   :  { %v1843_v4 = vadd.f32 %v1842_v33, %v1841_v22  ;;  %v7164_v33 = vld [vmem:[%s8806_s10] sm:$0x77]  ;;  %v7169_v22 = vand.u32 31, %v2032_v12 }
 0x7a7   :  { %5151 = vmatpush.msk.msrb.mxu3 %vm2023_vm12, %v8843_v1  ;;  %vm2019_vm12 = vcmp.eq.s32.totalorder %v1987_v54, %v5953_v53 }
 0x7a8   :  { %v1844_v21 = vmax.f32 %v1843_v4, 0.0  ;;  %vm2042_vm7 = vcmp.eq.s32.totalorder %v7169_v22, %v5992_v8  ;;  %v1862_v4 = vperm.slane %v7164_v33, 0 }
 0x7a9   :  { %5172 = vmatpush.msk.msrb.mxu1 %vm2042_vm7, %v8843_v1  ;;  %vm8896_vm7 = vcmp.eq.s32.totalorder %v5936_v40, 0 }
 0x7aa   :  { %5093 = vmatmul.msk.f32.vlgmr.msrb.gmra.mxu0 %vm8894_vm0, %v1844_v21  ;;  %5094 = vmatmul.msk.f32.vlgmr.msra.gmra.mxu1 %vm8895_vm8, %v1844_v21  ;;  %vm2006_vm0 = vcmp.eq.s32.totalorder %v1974_v27, %v5953_v53  ;;  %vm2022_vm8 = vcmp.eq.s32.totalorder %v1990_v52, %v5953_v53  ;;  %v1863_v21 = vperm.slane %v7164_v33, 4  ;;  %v1866_v5 = vperm.slane %v1862_v4, 0 }
 0x7ab   :  { %5136 = vmatpush.msk.msrb.mxu2 %vm2006_vm0, %v8843_v1  ;;  %5152 = vmatpush.msk.msrb.mxu3 %vm2022_vm8, %v8843_v1  ;;  %vm2002_vm0 = vcmp.eq.s32.totalorder %v1970_v41, %v5953_v53  ;;  %vm2018_vm8 = vcmp.eq.s32.totalorder %v1986_v55, %v5953_v53 }
 0x7ac   :  { %v1867_v15 = vperm.slane %v1863_v21, 0 }
 0x7ad   :  { %5137 = vmatpush.msk.msrb.mxu2 %vm2005_vm14, %v8843_v1  ;;  %5153 = vmatpush.msk.msrb.mxu3 %vm2021_vm11, %v8843_v1  ;;  %vm2001_vm14 = vcmp.eq.s32.totalorder %v1969_v50, %v5953_v53  ;;  %vm2041_vm11 = vcmp.eq.s32.totalorder %v7150_v45, %v5992_v8 }
 0x7ae   :  { %5167 = vmatpush.msk.msra.mxu0 %vm2041_vm11, %v8843_v1  ;;  %vm2037_vm11 = vcmp.eq.s32.totalorder %v7150_v45, %v5998_v10 }
 0x7af   :  { %5138 = vmatpush.msk.msrb.mxu2 %vm2004_vm13, %v8843_v1  ;;  %5154 = vmatpush.msk.msrb.mxu3 %vm2020_vm9, %v8843_v1  ;;  %vm2039_vm13 = vcmp.eq.s32.totalorder %v7150_v45, %v5995_v9  ;;  %vm2017_vm9 = vcmp.eq.s32.totalorder %v1985_v35, %v5953_v53 }
 0x7b0   :  { %5168 = vmatpush.msk.msra.mxu0 %vm2039_vm13, %v8843_v1  ;;  %vm2038_vm13 = vcmp.eq.s32.totalorder %v7169_v22, %v5998_v10 }
 0x7b1   :  { %5139 = vmatpush.msk.msrb.mxu2 %vm2003_vm15, %v8843_v1  ;;  %5155 = vmatpush.msk.msrb.mxu3 %vm2019_vm12, %v8843_v1  ;;  %vm2000_vm15 = vcmp.eq.s32.totalorder %v1968_v39, %v5953_v53  ;;  %vm2016_vm12 = vcmp.eq.s32.totalorder %v1984_v31, %v5953_v53 }
 0x7b2   :  { %5169 = vmatpush.msk.msra.mxu0 %vm2037_vm11, %v8843_v1 }
 0x7b3   :  { %5140 = vmatpush.msk.msrb.mxu2 %vm2002_vm0, %v8843_v1  ;;  %5156 = vmatpush.msk.msrb.mxu3 %vm2018_vm8, %v8843_v1  ;;  %vm2040_vm0 = vcmp.eq.s32.totalorder %v7169_v22, %v5995_v9  ;;  %vm1911_vm8 = vcmask 1041408  }
 0x7b4   :  { %5173 = vmatpush.msk.msrb.mxu1 %vm2040_vm0, %v8843_v1 }
 0x7b5   :  { %5141 = vmatpush.msk.msrb.mxu2 %vm2001_vm14, %v8843_v1  ;;  %5157 = vmatpush.msk.msrb.mxu3 %vm2017_vm9, %v8843_v1  ;;  %vm8897_vm14 = vmmov %vm8896_vm7  ;;  %vm2035_vm9 = vcmp.eq.s32.totalorder %v7150_v45, %v5936_v40  ;;  %v7222_v45 = vld [vmem:[%s8807_s11 + $0x18] sm:$0xff] }
 0x7b6   :  { %5174 = vmatpush.msk.msrb.mxu1 %vm2038_vm13, %v8843_v1  ;;  %5170 = vmatpush.msk.msra.mxu0 %vm2035_vm9, %v8843_v1 }
 0x7b7   :  { %5142 = vmatpush.msk.msrb.mxu2 %vm2000_vm15, %v8843_v1  ;;  %5158 = vmatpush.msk.msrb.mxu3 %vm2016_vm12, %v8843_v1  ;;  %vm2036_vm15 = vcmp.eq.s32.totalorder %v7169_v22, %v5936_v40  ;;  %vm8898_vm12 = vcmask 261120   ;;  %v7227_v22 = vld [vmem:[%s8807_s11 + $0x10] sm:$0xff] }
 0x7b8   :  { %5175 = vmatpush.msk.msrb.mxu1 %vm2036_vm15, %v8843_v1  ;;  %vm8899_vm0 = vmmov %vm8898_vm12  ;;  %2292 = vmatpush.msrb.mxu0 %v7222_v45 }
 0x7b9   :  { %2419 = vmatpush.msra.mxu2 %v7222_v45 }
 0x7ba   :  { %2323 = vmatpush.msra.mxu1 %v7222_v45  ;;  %2293 = vmatpush.msrb.mxu0 %v7227_v22 }
 0x7bb   :  { %2420 = vmatpush.msra.mxu2 %v7227_v22 }
 0x7bc   :  { %2324 = vmatpush.msra.mxu1 %v7227_v22 }
 0x827   :  { %v1888_v34 = vpop.f32.mrf.mxu0  ;;  %v1908_v25 = vpop.f32.mrf.mxu1 }
 0x828   :  { %v7187_v2 = vadd.f32 %v1888_v34, %v1866_v5  ;;  %v7189_v26 = vadd.f32 %v1908_v25, %v1867_v15 }
 0x82a   :  { %v1912_v37 = vsel %vm1911_vm8, %v7187_v2, 0.0  ;;  %v1926_v36 = vmul.f32 %v7187_v2, %v7187_v2  ;;  %v1919_v20 = vsel %vm1911_vm8, %v7189_v26, 0.0  ;;  %v1927_v29 = vmul.f32 %v7189_v26, %v7189_v26 }
 0x82b   :  { %v1913_v27 = vrot.slane %v1912_v37, 4  ;;  %v1920_v48 = vrot.slane %v1919_v20, 4 }
 0x82c   :  { %v1928_v52 = vsel %vm1911_vm8, %v1926_v36, 0.0  ;;  %v1935_v51 = vsel %vm1911_vm8, %v1927_v29, 0.0 }
 0x82d   :  { %v1914_v42 = vadd.f32 %v1913_v27, %v1912_v37  ;;  %v1929_v47 = vrot.slane %v1928_v52, 4  ;;  %v1921_v62 = vadd.f32 %v1920_v48, %v1919_v20  ;;  %v1936_v61 = vrot.slane %v1935_v51, 4  ;;  %v7234_v27 = vld [vmem:[%s8807_s11 + $0x8] sm:$0xff] }
 0x82e   :  { %2294 = vmatpush.msrb.mxu0 %v7234_v27  ;;  %2325 = vmatpush.msra.mxu1 %v7234_v27 }
 0x82f   :  { %v1915_v44 = vrot.slane %v1914_v42, 2  ;;  %v1930_v23 = vadd.f32 %v1929_v47, %v1928_v52  ;;  %v1922_v0 = vrot.slane %v1921_v62, 2  ;;  %v1937_v41 = vadd.f32 %v1936_v61, %v1935_v51  ;;  %v7242_v47 = vld [vmem:[%s8807_s11] sm:$0xff]  ;;  %2421 = vmatpush.msra.mxu2 %v7234_v27  ;;  %s5600_s11 = smov 32  }
 0x830   :  { %2295 = vmatpush.msrb.mxu0 %v7242_v47  ;;  %2326 = vmatpush.msra.mxu1 %v7242_v47 }
 0x831   :  { %v1916_v24 = vadd.f32 %v1915_v44, %v1914_v42  ;;  %v1931_v54 = vrot.slane %v1930_v23, 2  ;;  %v1923_v55 = vadd.f32 %v1922_v0, %v1921_v62  ;;  %v1938_v50 = vrot.slane %v1937_v41, 2  ;;  %2422 = vmatpush.msra.mxu2 %v7242_v47 }
 0x833   :  { %v1917_v32 = vrot.slane %v1916_v24, 1  ;;  %v1932_v35 = vadd.f32 %v1931_v54, %v1930_v23  ;;  %v1924_v39 = vrot.slane %v1923_v55, 1  ;;  %v1939_v31 = vadd.f32 %v1938_v50, %v1937_v41 }
 0x835   :  { %v1933_v12 = vrot.slane %v1932_v35, 1  ;;  %v1940_v4 = vrot.slane %v1939_v31, 1  ;;  %v1918_v21 = vadd.f32 %v1917_v32, %v1916_v24  ;;  %v1925_v15 = vadd.f32 %v1924_v39, %v1923_v55 }
 0x837   :  { %v1934_v5 = vadd.f32 %v1933_v12, %v1932_v35  ;;  %v1941_v34 = vadd.f32 %v1940_v4, %v1939_v31 }
 0x839   :  { %v1942_v25 = vsel %vm8896_vm7, %v1918_v21, %v1934_v5  ;;  %v1943_v37 = vsel %vm8897_vm14, %v1925_v15, %v1941_v34 }
 0x83a   :  { %2123 = vmatmul.f32.vlgmr.msrb.gmra.mxu2 %v1942_v25  ;;  %2143 = vmatmul.f32.vlgmr.msrb.gmra.mxu3 %v1943_v37  ;;  %v2246_v25 = vperm.slane %v7164_v33, 1 }
 0x83b   :  { %2484 = vmatpush.msrb.mxu2 %v7222_v45 }
 0x83d   :  { %2485 = vmatpush.msrb.mxu2 %v7227_v22 }
 0x83f   :  { %2486 = vmatpush.msrb.mxu2 %v7234_v27 }
 0x841   :  { %2487 = vmatpush.msrb.mxu2 %v7242_v47 }
 0x8bd   :  { %v2124_v36 = vpop.f32.mrf.mxu2  ;;  %v2144_v20 = vpop.f32.mrf.mxu3 }
 0x8be   :  { %v2145_v29 = vadd.f32 %v2144_v20, %v2124_v36  ;;  %v2247_v36 = vperm.slane %v7164_v33, 5 }
 0x8c0   :  { %5171 = vmatmul.msk.f32.vlgmr.msra.gmra.mxu0 %vm8898_vm12, %v2145_v29  ;;  %5176 = vmatmul.msk.f32.vlgmr.msrb.gmra.mxu1 %vm8899_vm0, %v2145_v29  ;;  %vm8900_vm12 = vmmov %vm8899_vm0 }
 0x93d   :  { %v2183_v48 = vpop.f32.mrf.mxu0  ;;  %v2203_v52 = vpop.f32.mrf.mxu1 }
 0x93e   :  { %v2206_v51 = vmul.f32 0.0625, %v2183_v48  ;;  %v2207_v42 = vmul.f32 0.0625, %v2203_v52  ;;  %v2256_v48 = vperm.slane %v7164_v33, 2 }
 0x940   :  { %v2208_v62 = vmul.f32 %v2206_v51, %v2206_v51  ;;  %v2209_v61 = vmul.f32 %v2207_v42, %v2207_v42  ;;  %v2242_v20 = vperm.slane %v2206_v51, 0  ;;  %v2243_v52 = vperm.slane %v2207_v42, 0 }
 0x942   :  { %v2212_v44 = vrot.slane %v2208_v62, 7  ;;  %v2213_v23 = vrot.slane %v2209_v61, 7  ;;  %v2257_v62 = vperm.slane %v7164_v33, 6 }
 0x944   :  { %v2216_v0 = vsub.f32 %v2206_v51, %v2212_v44  ;;  %v2217_v41 = vsub.f32 %v2207_v42, %v2213_v23  ;;  %v2261_v51 = vperm.slane %v2257_v62, 2 }
 0x946   :  { %v2218_v24 = vmax.f32 %v2216_v0, 0.0  ;;  %v2219_v54 = vmax.f32 %v2217_v41, 0.0  ;;  %v2244_v41 = vsub.f32 %v7187_v2, %v2242_v20  ;;  %v7270_v2 = vmul.u32 8, %v5953_v53 }
 0x948   :  { %v2220_v55 = vadd.f32 1e-05, %v2218_v24  ;;  %v2221_v50 = vadd.f32 1e-05, %v2219_v54  ;;  %v2260_v54 = vperm.slane %v2256_v48, 2  ;;  %v7323_v62 = vadd.s32 3, %v7270_v2 }
 0x94a   :  { %5590 = vrsqrt.f32 %v2220_v55  ;;  %vm2228_vm11 = vweird.f32 %v2220_v55  ;;  %vm2238_vm9 = vweird.f32 %v2221_v50 }
 0x94b   :  { %5592 = vrsqrt.f32 %v2221_v50 }
 0x950   :  { %v5591_v32 = vpop.eup %5590 }
 0x951   :  { %v5593_v35 = vpop.eup %5592  ;;  %v2223_v39 = vmul.f32 %v5591_v32, %v2220_v55  ;;  %vm2229_vm7 = vweird.f32 %v5591_v32  ;;  %v2245_v55 = vsub.f32 %v7189_v26, %v2243_v52 }
 0x952   :  { %v2233_v31 = vmul.f32 %v5593_v35, %v2221_v50  ;;  %vm2239_vm14 = vweird.f32 %v5593_v35  ;;  %vm2230_vm13 = vmor %vm2228_vm11, %vm2229_vm7  ;;  %vm2271_vm7 = vcmp.eq.s32.totalorder %v5936_v40, %v7270_v2  ;;  %vm2331_vm11 = vcmask 15360  }
 0x953   :  { %v2224_v12 = vmul.f32 %v5591_v32, %v2223_v39  ;;  %vm2240_vm15 = vmor %vm2238_vm9, %vm2239_vm14 }
 0x954   :  { %v2234_v4 = vmul.f32 %v5593_v35, %v2233_v31  ;;  %vm8901_vm14 = vmmov %vm8899_vm0 }
 0x955   :  { %v2225_v21 = vmul.f32 0.5, %v2224_v12  ;;  %vm8902_vm9 = vmmov %vm8899_vm0 }
 0x956   :  { %v2235_v5 = vmul.f32 0.5, %v2234_v4 }
 0x957   :  { %v2226_v15 = vsub.f32 1.5, %v2225_v21 }
 0x958   :  { %v2236_v34 = vsub.f32 1.5, %v2235_v5 }
 0x959   :  { %v2227_v37 = vmul.f32 %v5591_v32, %v2226_v15 }
 0x95a   :  { %v2237_v29 = vmul.f32 %v5593_v35, %v2236_v34  ;;  %v7295_v34 = vadd.s32 1, %v7270_v2 }
 0x95b   :  { %v2231_v61 = vsel %vm2230_vm13, %v5591_v32, %v2227_v37  ;;  %v7276_v32 = vsel %vm2271_vm7, 1.0, %v8828_v28  ;;  %vm2272_vm13 = vcmp.eq.s32.totalorder %v5998_v10, %v7270_v2 }
 0x95c   :  { %v2241_v44 = vsel %vm2240_vm15, %v5593_v35, %v2237_v29  ;;  %v2250_v23 = vmul.f32 %v2246_v25, %v2231_v61  ;;  %v7287_v15 = vsel %vm2272_vm13, 1.0, %v8828_v28  ;;  %vm8903_vm15 = vmmov %vm8899_vm0  ;;  %vm2462_vm13 = vcmp.eq.s32.totalorder %v5936_v40, %v7323_v62 }
 0x95d   :  { %v2251_v0 = vmul.f32 %v2247_v36, %v2241_v44  ;;  %v7308_v36 = vadd.s32 2, %v7270_v2 }
 0x95e   :  { %v2252_v24 = vperm.slane %v2250_v23, 1  ;;  %v7340_v23 = vsel %vm2462_vm13, 1.0, %v8828_v28 }
 0x95f   :  { %v2253_v39 = vperm.slane %v2251_v0, 1  ;;  %vm2397_vm7 = vcmp.eq.s32.totalorder %v5936_v40, %v7308_v36  ;;  %v7344_v0 = vadd.s32 4, %v7270_v2 }
 0x960   :  { %v2254_v31 = vmul.f32 %v2252_v24, %v2244_v41  ;;  %v7320_v48 = vsel %vm2397_vm7, 1.0, %v8828_v28 }
 0x961   :  { %v2255_v50 = vmul.f32 %v2253_v39, %v2245_v55  ;;  %8904 = vst [vmem:[#allocation7_spill] sm:$0xff] %v7344_v0 }
 0x962   :  { %v2262_v12 = vadd.f32 %v2260_v54, %v2254_v31 }
 0x963   :  { %v2263_v4 = vadd.f32 %v2261_v51, %v2255_v50 }
 0x964   :  { %v2264_v21 = vmax.f32 %v2262_v12, 0.0 }
 0x965   :  { %v2265_v42 = vmax.f32 %v2263_v4, 0.0 }
 0x966   :  { %2468 = vrot.lane.b32.xlu1 %v2264_v21, %s5600_s11  ;;  %2307 = vrot.lane.b32.xlu0 %v2264_v21, %s5601_s3 }
 0x967   :  { %2727 = vrot.lane.b32.xlu2 %v2265_v42, %s5600_s11  ;;  %5179 = vmatmul.msk.f32.vlgmr.msrb.gmra.mxu0 %vm8900_vm12, %v2264_v21  ;;  %vm2301_vm12 = vcmp.eq.s32.totalorder %v5936_v40, %v7295_v34 }
 0x968   :  { %v7300_v25 = vsel %vm2301_vm12, 1.0, %v8828_v28  ;;  %vm8905_vm12 = vcmask 261120   ;;  %v9020_v58 = vld [vmem:[#allocation7_spill] sm:$0xff] }
 0x969   :  { %vm8906_vm7 = vmmov %vm8905_vm12 }
 0x96e   :  { %2597 = vrot.lane.b32.xlu1 %v2265_v42, %s5601_s3  ;;  %2403 = vrot.lane.b32.xlu0 %v2264_v21, %s5602_s2 }
 0x96f   :  { %2662 = vrot.lane.b32.xlu2 %v2265_v42, %s5602_s2 }
 0x9c1   :  { %v2728_v54 = vpop.permute.xlu2 %2727 }
 0x9c9   :  { %v2663_v50 = vpop.permute.xlu2 %2662 }
 0x9d8   :  { %v2308_v33 = vpop.permute.xlu0 %2307  ;;  %v2469_v5 = vpop.permute.xlu1 %2468 }
 0x9d9   :  { %5182 = vmatmul.msk.f32.vlgmr.msra.gmra.mxu1 %vm8899_vm0, %v2308_v33  ;;  %vm2302_vm0 = vcmp.eq.s32.totalorder %v5998_v10, %v7295_v34 }
 0x9da   :  { %v7311_v20 = vsel %vm2302_vm0, 1.0, %v8828_v28  ;;  %vm2528_vm0 = vcmp.eq.s32.totalorder %v5998_v10, %v7344_v0 }
 0x9db   :  { %v7377_v31 = vsel %vm2528_vm0, 1.0, %v8828_v28 }
 0x9e0   :  { %v2404_v26 = vpop.permute.xlu0 %2403  ;;  %v2598_v51 = vpop.permute.xlu1 %2597 }
 0x9e1   :  { %5191 = vmatmul.msk.f32.vlgmr.msra.gmra.mxu2 %vm8901_vm14, %v2404_v26  ;;  %vm2398_vm14 = vcmp.eq.s32.totalorder %v5998_v10, %v7308_v36 }
 0x9e2   :  { %v7337_v44 = vsel %vm2398_vm14, 1.0, %v8828_v28  ;;  %vm8907_vm14 = vmmov %vm8906_vm7 }
 0x9e4   :  { %v2297_v35 = vpop.f32.mrf.mxu0 }
 0x9e5   :  { %5186 = vmatpush.msk.msrb.mxu1 %vm1911_vm8, %v2297_v35  ;;  %v7418_v35 = vadd.s32 7, %v7270_v2 }
 0x9e6   :  { %5187 = vmatmul.msk.f32.vlgmr.msrb.gmra.mxu1 %vm2331_vm11, %v7276_v32 }
 0x9e7   :  { %2548 = vmatpush.msra.mxu1 %v7222_v45  ;;  %8909 = vst [vmem:[#allocation9_spill] sm:$0xff] %v7418_v35 }
 0x9e9   :  { %5197 = vmatmul.msk.f32.vlgmr.msrb.gmra.mxu2 %vm8902_vm9, %v2469_v5  ;;  %2549 = vmatpush.msra.mxu1 %v7227_v22  ;;  %vm2527_vm9 = vcmp.eq.s32.totalorder %v5936_v40, %v7344_v0 }
 0x9ea   :  { %v7359_v24 = vsel %vm2527_vm9, 1.0, %v8828_v28 }
 0x9eb   :  { %2550 = vmatpush.msra.mxu1 %v7234_v27 }
 0x9ed   :  { %2551 = vmatpush.msra.mxu1 %v7242_v47 }
 0x9ee   :  { %5188 = vmatmul.msk.f32.gmra.mxu1 %vm2331_vm11, %v7287_v15 }
 0x9f6   :  { %5203 = vmatmul.msk.f32.vlgmr.msra.gmra.mxu1 %vm8903_vm15, %v2265_v42  ;;  %vm2463_vm15 = vcmp.eq.s32.totalorder %v5998_v10, %v7323_v62 }
 0x9f7   :  { %v7362_v39 = vsel %vm2463_vm15, 1.0, %v8828_v28 }
 0xa56   :  { %v2328_v37 = vpop.f32.mrf.mxu1 }
 0xa57   :  { %5183 = vmatpush.msk.msra.mxu0 %vm1911_vm8, %v2328_v37 }
 0xa58   :  { %5184 = vmatmul.msk.f32.vlgmr.msra.gmra.mxu0 %vm2331_vm11, %v7300_v25 }
 0xa60   :  { %5185 = vmatmul.msk.f32.gmra.mxu0 %vm2331_vm11, %v7311_v20 }
 0xa63   :  { %v7317_v29 = vpop.f32.mrf.mxu1 }
 0xa64   :  { %v2424_v52 = vpop.f32.mrf.mxu2 }
 0xa65   :  { %5192 = vmatpush.msk.msra.mxu3 %vm1911_vm8, %v2424_v52 }
 0xa66   :  { %5193 = vmatmul.msk.f32.vlgmr.msra.gmra.mxu3 %vm2331_vm11, %v7320_v48 }
 0xa67   :  { %2613 = vmatpush.msrb.mxu3 %v7222_v45 }
 0xa69   :  { %2614 = vmatpush.msrb.mxu3 %v7227_v22 }
 0xa6b   :  { %v7334_v61 = vpop.f32.mrf.mxu1  ;;  %2615 = vmatpush.msrb.mxu3 %v7234_v27 }
 0xa6c   :  { %v2489_v41 = vpop.f32.mrf.mxu2 }
 0xa6d   :  { %5198 = vmatpush.msk.msrb.mxu0 %vm1911_vm8, %v2489_v41  ;;  %2616 = vmatpush.msrb.mxu3 %v7242_v47 }
 0xa6e   :  { %5194 = vmatmul.msk.f32.gmra.mxu3 %vm2331_vm11, %v7337_v44  ;;  %5199 = vmatmul.msk.f32.vlgmr.msrb.gmra.mxu0 %vm2331_vm11, %v7340_v23 }
 0xa6f   :  { %2678 = vmatpush.msra.mxu3 %v7222_v45 }
 0xa71   :  { %2679 = vmatpush.msra.mxu3 %v7227_v22 }
 0xa73   :  { %v2553_v55 = vpop.f32.mrf.mxu1  ;;  %2680 = vmatpush.msra.mxu3 %v7234_v27 }
 0xa74   :  { %5204 = vmatpush.msk.msra.mxu2 %vm1911_vm8, %v2553_v55 }
 0xa75   :  { %5205 = vmatmul.msk.f32.vlgmr.msra.gmra.mxu2 %vm2331_vm11, %v7359_v24  ;;  %2681 = vmatpush.msra.mxu3 %v7242_v47 }
 0xa76   :  { %5200 = vmatmul.msk.f32.gmra.mxu0 %vm2331_vm11, %v7362_v39  ;;  %5209 = vmatmul.msk.f32.vlgmr.msrb.gmra.mxu3 %vm8905_vm12, %v2598_v51  ;;  %vm2721_vm12 = vcmp.eq.s32.totalorder %v5936_v40, %v7418_v35  ;;  %v2820_v51 = vand.u32 15, %v7025_v63 }
 0xa77   :  { %2743 = vmatpush.msrb.mxu2 %v7222_v45  ;;  %v7430_v37 = vsel %vm2721_vm12, 1.0, %v8828_v28 }
 0xa78   :  { %8910 = vst [vmem:[#allocation10_spill] sm:$0xff] %v7430_v37 }
 0xa79   :  { %2744 = vmatpush.msrb.mxu2 %v7227_v22  ;;  %v7390_v22 = vadd.s32 5, %v7270_v2 }
 0xa7b   :  { %2745 = vmatpush.msrb.mxu2 %v7234_v27  ;;  %vm2591_vm13 = vcmp.eq.s32.totalorder %v5936_v40, %v7390_v22  ;;  %vm2592_vm9 = vcmp.eq.s32.totalorder %v5998_v10, %v7390_v22 }
 0xa7c   :  { %v7397_v4 = vsel %vm2591_vm13, 1.0, %v8828_v28  ;;  %v7412_v33 = vsel %vm2592_vm9, 1.0, %v8828_v28 }
 0xa7d   :  { %5206 = vmatmul.msk.f32.gmra.mxu2 %vm2331_vm11, %v7377_v31 }
 0xa7e   :  { %5215 = vmatmul.msk.f32.vlgmr.msra.gmra.mxu3 %vm8906_vm7, %v2663_v50  ;;  %2746 = vmatpush.msrb.mxu2 %v7242_v47  ;;  %v7400_v47 = vadd.s32 6, %v7270_v2  ;;  %vm2722_vm7 = vcmp.eq.s32.totalorder %v5998_v10, %v7418_v35 }
 0xa80   :  { %8908 = vst [vmem:[#allocation8_spill] sm:$0xff] %v7400_v47  ;;  %vm2656_vm15 = vcmp.eq.s32.totalorder %v5936_v40, %v7400_v47  ;;  %vm2657_vm0 = vcmp.eq.s32.totalorder %v5998_v10, %v7400_v47 }
 0xa81   :  { %v7415_v26 = vsel %vm2656_vm15, 1.0, %v8828_v28  ;;  %v7433_v41 = vsel %vm2657_vm0, 1.0, %v8828_v28 }
 0xa82   :  { %8911 = vst [vmem:[#allocation11_spill] sm:$0xff] %v7433_v41 }
 0xa85   :  { %5221 = vmatmul.msk.f32.vlgmr.msrb.gmra.mxu2 %vm8907_vm14, %v2728_v54  ;;  %v7443_v54 = vsel %vm2722_vm7, 1.0, %v8828_v28  ;;  %v2816_v28 = vand.u32 15, %v7063_v30 }
 0xa86   :  { %8912 = vst [vmem:[#allocation12_spill] sm:$0xff] %v7443_v54 }
 0xa87   :  { %vm2832_vm9 = vcmp.eq.s32.totalorder %v2816_v28, %v5953_v53  ;;  %v2812_v28 = vand.u32 15, %v5946_v46 }
 0xa89   :  { %vm2828_vm7 = vcmp.eq.s32.totalorder %v2812_v28, %v5953_v53  ;;  %v2807_v28 = vand.u32 15, %v5995_v9 }
 0xad5   :  { %v2358_v55 = vpop.f32.mrf.mxu0 }
 0xadd   :  { %v2361_v50 = vpop.f32.mrf.mxu0 }
 0xade   :  { %v2394_v14 = vadd.f32 %v7334_v61, %v2361_v50 }
 0xae9   :  { %v7385_v12 = vpop.f32.mrf.mxu3 }
 0xaeb   :  { %v2518_v35 = vpop.f32.mrf.mxu0 }
 0xaf1   :  { %v7387_v45 = vpop.f32.mrf.mxu3 }
 0xaf8   :  { %v7394_v27 = vpop.f32.mrf.mxu2 }
 0xaf9   :  { %v2618_v21 = vpop.f32.mrf.mxu3 }
 0xafa   :  { %5210 = vmatpush.msk.msrb.mxu1 %vm1911_vm8, %v2618_v21  ;;  %v2819_v21 = vand.u32 15, %v7032_v18 }
 0xafb   :  { %5211 = vmatmul.msk.f32.vlgmr.msrb.gmra.mxu1 %vm2331_vm11, %v7397_v4 }
 0xafc   :  { %vm2835_vm14 = vcmp.eq.s32.totalorder %v2819_v21, %v5953_v53  ;;  %v2814_v21 = vand.u32 15, %v7097_v43 }
 0xafe   :  { %vm2830_vm12 = vcmp.eq.s32.totalorder %v2814_v21, %v5953_v53  ;;  %v2391_v21 = vadd.f32 %v7317_v29, %v2358_v55  ;;  %v2806_v29 = vand.u32 15, %v5998_v10  ;;  %v2460_v55 = vadd.f32 %v7387_v45, %v2394_v14  ;;  %v7504_v45 = vld [vmem:[%s8808_s12] sm:$0x7] }
 0xb00   :  { %v7409_v42 = vpop.f32.mrf.mxu2 }
 0xb01   :  { %v2683_v5 = vpop.f32.mrf.mxu3 }
 0xb02   :  { %5216 = vmatpush.msk.msra.mxu0 %vm1911_vm8, %v2683_v5  ;;  %v2818_v5 = vand.u32 15, %v7036_v3 }
 0xb03   :  { %5212 = vmatmul.msk.f32.gmra.mxu1 %vm2331_vm11, %v7412_v33  ;;  %5217 = vmatmul.msk.f32.vlgmr.msra.gmra.mxu0 %vm2331_vm11, %v7415_v26 }
 0xb04   :  { %vm2834_vm13 = vcmp.eq.s32.totalorder %v2818_v5, %v5953_v53  ;;  %v2813_v5 = vand.u32 15, %v7102_v11 }
 0xb06   :  { %vm2829_vm0 = vcmp.eq.s32.totalorder %v2813_v5, %v5953_v53  ;;  %v2808_v5 = vand.u32 15, %v5992_v8 }
 0xb08   :  { %v2748_v52 = vpop.f32.mrf.mxu2 }
 0xb09   :  { %5222 = vmatpush.msk.msrb.mxu3 %vm1911_vm8, %v2748_v52  ;;  %vm2836_vm8 = vcmp.eq.s32.totalorder %v2820_v51, %v5953_v53  ;;  %v2817_v52 = vand.u32 15, %v7044_v17  ;;  %v2815_v51 = vand.u32 15, %v7069_v57 }
 0xb0a   :  { %5223 = vmatmul.msk.f32.vlgmr.msrb.gmra.mxu3 %vm2331_vm11, %v7430_v37  ;;  %5241 = vmatpush.msk.msra.mxu1 %vm2836_vm8, %v8843_v1  ;;  %v2810_v37 = vand.u32 15, %v5966_v59 }
 0xb0b   :  { %5218 = vmatmul.msk.f32.gmra.mxu0 %vm2331_vm11, %v7433_v41  ;;  %vm2831_vm15 = vcmp.eq.s32.totalorder %v2815_v51, %v5953_v53  ;;  %v2809_v51 = vand.u32 15, %v5984_v6  ;;  %v2459_v41 = vadd.f32 %v7385_v12, %v2391_v21  ;;  %v2805_v12 = vand.u32 15, %v5936_v40 }
 0xb0c   :  { %5242 = vmatpush.msk.msra.mxu1 %vm2835_vm14, %v8843_v1  ;;  %vm2826_vm14 = vcmp.eq.s32.totalorder %v2810_v37, %v5953_v53 }
 0xb0d   :  { %v2524_v37 = vadd.f32 %v2518_v35, %v2459_v41 }
 0xb0e   :  { %5243 = vmatpush.msk.msra.mxu1 %vm2834_vm13, %v8843_v1  ;;  %vm2825_vm13 = vcmp.eq.s32.totalorder %v2809_v51, %v5953_v53  ;;  %v2837_v51 = vand.u32 15, %v5953_v53 }
 0xb0f   :  { %v2588_v21 = vadd.f32 %v7394_v27, %v2524_v37 }
 0xb12   :  { %5224 = vmatmul.msk.f32.gmra.mxu3 %vm2331_vm11, %v7443_v54  ;;  %vm2833_vm11 = vcmp.eq.s32.totalorder %v2817_v52, %v5953_v53  ;;  %v2521_v52 = vpop.f32.mrf.mxu0  ;;  %v2811_v54 = vand.u32 15, %v5956_v56 }
 0xb13   :  { %5244 = vmatpush.msk.msra.mxu1 %vm2833_vm11, %v8843_v1  ;;  %vm2824_vm11 = vcmp.eq.s32.totalorder %v2808_v5, %v5953_v53  ;;  %v2525_v35 = vadd.f32 %v2521_v52, %v2460_v55 }
 0xb14   :  { %vm2827_vm8 = vcmp.eq.s32.totalorder %v2811_v54, %v5953_v53 }
 0xb15   :  { %5245 = vmatpush.msk.msra.mxu1 %vm2832_vm9, %v8843_v1  ;;  %vm2823_vm9 = vcmp.eq.s32.totalorder %v2807_v28, %v5953_v53  ;;  %v2589_v27 = vadd.f32 %v7409_v42, %v2525_v35 }
 0xb17   :  { %5246 = vmatpush.msk.msra.mxu1 %vm2831_vm15, %v8843_v1  ;;  %vm2822_vm15 = vcmp.eq.s32.totalorder %v2806_v29, %v5953_v53 }
 0xb19   :  { %5247 = vmatpush.msk.msra.mxu1 %vm2830_vm12, %v8843_v1  ;;  %vm2839_vm12 = vcmp.eq.s32.totalorder %v2837_v51, %v5998_v10 }
 0xb1a   :  { %5259 = vmatpush.msk.msra.mxu2 %vm2839_vm12, %v8843_v1 }
 0xb1b   :  { %5248 = vmatpush.msk.msra.mxu1 %vm2829_vm0, %v8843_v1  ;;  %vm2821_vm0 = vcmp.eq.s32.totalorder %v2805_v12, %v5953_v53  ;;  %v2785_v53 = vperm.slane %v7504_v45, 0 }
 0xb1d   :  { %5249 = vmatpush.msk.msra.mxu1 %vm2828_vm7, %v8843_v1  ;;  %vm8913_vm7 = vcmp.eq.s32.totalorder %v5936_v40, 0 }
 0xb1f   :  { %5250 = vmatpush.msk.msra.mxu1 %vm2827_vm8, %v8843_v1  ;;  %vm2838_vm8 = vcmp.eq.s32.totalorder %v2837_v51, %v5936_v40 }
 0xb21   :  { %5251 = vmatpush.msk.msra.mxu1 %vm2826_vm14, %v8843_v1  ;;  %vm8915_vm14 = vcmask 130048  }
 0xb22   :  { %vm8917_vm12 = vmmov %vm8915_vm14 }
 0xb23   :  { %5252 = vmatpush.msk.msra.mxu1 %vm2825_vm13, %v8843_v1 }
 0xb25   :  { %5253 = vmatpush.msk.msra.mxu1 %vm2824_vm11, %v8843_v1 }
 0xb27   :  { %5254 = vmatpush.msk.msra.mxu1 %vm2823_vm9, %v8843_v1 }
 0xb29   :  { %5255 = vmatpush.msk.msra.mxu1 %vm2822_vm15, %v8843_v1  ;;  %vm8916_vm15 = vmmov %vm8915_vm14 }
 0xb2b   :  { %5256 = vmatpush.msk.msra.mxu1 %vm2821_vm0, %v8843_v1  ;;  %vm8918_vm0 = vmmov %vm8917_vm12 }
 0xb78   :  { %v2647_v47 = vpop.f32.mrf.mxu1 }
 0xb79   :  { %v2653_v41 = vadd.f32 %v2647_v47, %v2588_v21 }
 0xb80   :  { %v2712_v54 = vpop.f32.mrf.mxu0  ;;  %v2650_v14 = vpop.f32.mrf.mxu1 }
 0xb81   :  { %v2718_v50 = vadd.f32 %v2712_v54, %v2653_v41  ;;  %v2654_v10 = vadd.f32 %v2650_v14, %v2589_v27 }
 0xb88   :  { %v2715_v5 = vpop.f32.mrf.mxu0 }
 0xb89   :  { %v2719_v52 = vadd.f32 %v2715_v5, %v2654_v10 }
 0xb8d   :  { %v2777_v61 = vpop.f32.mrf.mxu3 }
 0xb8e   :  { %v2783_v47 = vadd.f32 %v2777_v61, %v2718_v50 }
 0xb90   :  { %v2786_v29 = vadd.f32 %v2785_v53, %v2783_v47  ;;  %v8914_v47 = vmov 1.0  }
 0xb91   :  { %5260 = vmatpush.msk.msra.mxu2 %vm2838_vm8, %v8914_v47  ;;  %vm8920_vm8 = vmmov %vm8918_vm0 }
 0xb92   :  { %v2795_v12 = vmul.f32 %v2786_v29, %v2786_v29 }
 0xb95   :  { %v2780_v28 = vpop.f32.mrf.mxu3 }
 0xb96   :  { %v2784_v37 = vadd.f32 %v2780_v28, %v2719_v52  ;;  %v7523_v28 = vld [vmem:[%s8809_s13] sm:$0xff] }
 0xb98   :  { %v2787_v55 = vadd.f32 %v2785_v53, %v2784_v37 }
 0xb9a   :  { %v2788_v21 = vadd.f32 %v2787_v55, %v2786_v29  ;;  %v2796_v60 = vmul.f32 %v2787_v55, %v2787_v55 }
 0xb9c   :  { %v2789_v16 = vrot.slane %v2788_v21, 4  ;;  %v2797_v49 = vadd.f32 %v2796_v60, %v2795_v12 }
 0xb9e   :  { %v2790_v0 = vadd.f32 %v2789_v16, %v2788_v21  ;;  %v2798_v42 = vrot.slane %v2797_v49, 4 }
 0xba0   :  { %v2791_v54 = vrot.slane %v2790_v0, 2  ;;  %v2799_v35 = vadd.f32 %v2798_v42, %v2797_v49 }
 0xba2   :  { %v2792_v41 = vadd.f32 %v2791_v54, %v2790_v0  ;;  %v2800_v1 = vrot.slane %v2799_v35, 2 }
 0xba4   :  { %v2793_v14 = vrot.slane %v2792_v41, 1  ;;  %v2801_v61 = vadd.f32 %v2800_v1, %v2799_v35  ;;  %v7518_v1 = vld [vmem:[%s8809_s13 + $0x8] sm:$0xff]  ;;  %s5603_s13 = smov 112  }
 0xba5   :  { %3013 = vmatpush.msrb.mxu0 %v7518_v1  ;;  %3086 = vmatpush.msrb.mxu2 %v7518_v1 }
 0xba6   :  { %v2802_v27 = vrot.slane %v2801_v61, 1  ;;  %v2794_v50 = vadd.f32 %v2793_v14, %v2792_v41  ;;  %3381 = vmatpush.msrb.mxu1 %v7518_v1 }
 0xba7   :  { %3014 = vmatpush.msrb.mxu0 %v7523_v28  ;;  %3087 = vmatpush.msrb.mxu2 %v7523_v28 }
 0xba8   :  { %v2803_v5 = vadd.f32 %v2802_v27, %v2801_v61  ;;  %3382 = vmatpush.msrb.mxu1 %v7523_v28 }
 0xbaa   :  { %v2804_v10 = vsel %vm8913_vm7, %v2794_v50, %v2803_v5  ;;  %v2944_v50 = vperm.slane %v7504_v45, 2  ;;  %vm8919_vm7 = vmmov %vm8918_vm0 }
 0xbab   :  { %2888 = vmatmul.f32.vlgmr.msra.gmra.mxu1 %v2804_v10 }
 0xbac   :  { %3581 = vmatpush.msra.mxu1 %v7518_v1 }
 0xbae   :  { %3582 = vmatpush.msra.mxu1 %v7523_v28 }
 0xc28   :  { %v2889_v60 = vpop.f32.mrf.mxu1 }
 0xc29   :  { %5261 = vmatmul.msk.f32.vlgmr.msra.gmra.mxu2 %vm8915_vm14, %v2889_v60  ;;  %vm8921_vm14 = vmmov %vm8918_vm0 }
 0xcac   :  { %v2916_v16 = vpop.f32.mrf.mxu2 }
 0xcad   :  { %v2919_v49 = vmul.f32 0.0078125, %v2916_v16 }
 0xcaf   :  { %v2920_v0 = vmul.f32 %v2919_v49, %v2919_v49  ;;  %v2937_v14 = vperm.slane %v2919_v49, 0 }
 0xcb1   :  { %v2922_v53 = vrot.slane %v2920_v0, 7  ;;  %v2938_v5 = vsub.f32 %v2786_v29, %v2937_v14  ;;  %v2939_v10 = vsub.f32 %v2787_v55, %v2937_v14 }
 0xcb3   :  { %v2924_v52 = vsub.f32 %v2919_v49, %v2922_v53 }
 0xcb5   :  { %v2925_v51 = vmax.f32 %v2924_v52, 0.0 }
 0xcb7   :  { %v2926_v37 = vadd.f32 1e-05, %v2925_v51 }
 0xcb9   :  { %5594 = vrsqrt.f32 %v2926_v37  ;;  %vm2933_vm11 = vweird.f32 %v2926_v37 }
 0xcbf   :  { %v5595_v12 = vpop.eup %5594 }
 0xcc0   :  { %v2928_v21 = vmul.f32 %v5595_v12, %v2926_v37  ;;  %vm2934_vm13 = vweird.f32 %v5595_v12 }
 0xcc1   :  { %vm2935_vm9 = vmor %vm2933_vm11, %vm2934_vm13  ;;  %vm2959_vm11 = vcmp.eq.s32.totalorder %v7069_v57, %v7270_v2 }
 0xcc2   :  { %v2929_v42 = vmul.f32 %v5595_v12, %v2928_v21  ;;  %vm8922_vm13 = vmmov %vm8918_vm0 }
 0xcc4   :  { %v2930_v54 = vmul.f32 0.5, %v2929_v42 }
 0xcc6   :  { %v2931_v35 = vsub.f32 1.5, %v2930_v54  ;;  %v8923_v54 = vmov 0.0  }
 0xcc8   :  { %v2932_v41 = vmul.f32 %v5595_v12, %v2931_v35  ;;  %v5270_v35 = vsel %vm2959_vm11, 1.0, %v8923_v54  ;;  %vm2962_vm11 = vcmp.eq.s32.totalorder %v7036_v3, %v7270_v2 }
 0xcca   :  { %v2936_v61 = vsel %vm2935_vm9, %v5595_v12, %v2932_v41  ;;  %vm8924_vm9 = vmmov %vm8918_vm0 }
 0xccb   :  { %v2940_v27 = vmul.f32 %v2936_v61, %v7504_v45 }
 0xccd   :  { %v2941_v60 = vperm.slane %v2940_v27, 1 }
 0xccf   :  { %v2942_v16 = vmul.f32 %v2941_v60, %v2938_v5  ;;  %v2943_v0 = vmul.f32 %v2941_v60, %v2939_v10 }
 0xcd1   :  { %v2945_v53 = vadd.f32 %v2944_v50, %v2942_v16  ;;  %v2946_v52 = vadd.f32 %v2944_v50, %v2943_v0 }
 0xcd3   :  { %v2947_v51 = vmax.f32 %v2945_v53, 0.0  ;;  %v2948_v21 = vmax.f32 %v2946_v52, 0.0 }
 0xcd5   :  { %3361 = vrot.lane.b32.xlu1 %v2948_v21, %s5601_s3  ;;  %3064 = vrot.lane.b32.xlu2 %v2947_v51, %s5603_s13 }
 0xcd6   :  { %3359 = vrot.lane.b32.xlu0 %v2947_v51, %s5601_s3  ;;  %5276 = vmatmul.msk.f32.vlgmr.msrb.gmra.mxu0 %vm8916_vm15, %v2947_v51  ;;  %vm8925_vm15 = vmmov %vm8918_vm0 }
 0xcdd   :  { %3559 = vrot.lane.b32.xlu1 %v2947_v51, %s5604_s1  ;;  %3561 = vrot.lane.b32.xlu2 %v2948_v21, %s5604_s1 }
 0xcde   :  { %3066 = vrot.lane.b32.xlu0 %v2948_v21, %s5603_s13  ;;  %5277 = vmatmul.msk.f32.gmra.mxu0 %vm8917_vm12, %v2948_v21  ;;  %vm8926_vm12 = vmmov %vm8918_vm0 }
 0xce5   :  { %3961 = vrot.lane.b32.xlu1 %v2948_v21, %s5605_s30  ;;  %4159 = vrot.lane.b32.xlu2 %v2947_v51, %s5600_s11 }
 0xce6   :  { %3959 = vrot.lane.b32.xlu0 %v2947_v51, %s5605_s30 }
 0xced   :  { %3759 = vrot.lane.b32.xlu1 %v2947_v51, %s5602_s2  ;;  %4359 = vrot.lane.b32.xlu2 %v2947_v51, %s5606_s18 }
 0xcee   :  { %4161 = vrot.lane.b32.xlu0 %v2948_v21, %s5600_s11 }
 0xcf5   :  { %4361 = vrot.lane.b32.xlu1 %v2948_v21, %s5606_s18 }
 0xcf6   :  { %3761 = vrot.lane.b32.xlu0 %v2948_v21, %s5602_s2 }
 0xd2f   :  { %v3065_v45 = vpop.permute.xlu2 %3064 }
 0xd30   :  { %5292 = vmatmul.msk.f32.vlgmr.msrb.gmra.mxu2 %vm8918_vm0, %v3065_v45  ;;  %vm2960_vm0 = vcmp.eq.s32.totalorder %v7063_v30, %v7270_v2 }
 0xd31   :  { %v5271_v14 = vsel %vm2960_vm0, 1.0, %v8923_v54  ;;  %vm2964_vm0 = vcmp.eq.s32.totalorder %v7025_v63, %v7270_v2 }
 0xd37   :  { %v3562_v41 = vpop.permute.xlu2 %3561 }
 0xd47   :  { %v3362_v55 = vpop.permute.xlu1 %3361 }
 0xd48   :  { %v3360_v29 = vpop.permute.xlu0 %3359 }
 0xd49   :  { %5340 = vmatmul.msk.f32.vlgmr.msrb.gmra.mxu1 %vm8919_vm7, %v3360_v29 }
 0xd4f   :  { %v3560_v12 = vpop.permute.xlu1 %3559 }
 0xd50   :  { %v3067_v49 = vpop.permute.xlu0 %3066 }
 0xd51   :  { %5293 = vmatmul.msk.f32.gmra.mxu2 %vm8920_vm8, %v3067_v49  ;;  %5341 = vmatmul.msk.f32.gmra.mxu1 %vm8921_vm14, %v3362_v55  ;;  %vm8927_vm8 = vmmov %vm8919_vm7  ;;  %vm2961_vm14 = vcmp.eq.s32.totalorder %v7044_v17, %v7270_v2 }
 0xd52   :  { %v5272_v61 = vsel %vm2961_vm14, 1.0, %v8923_v54  ;;  %vm8931_vm14 = vmmov %vm8919_vm7 }
 0xd53   :  { %v3016_v37 = vpop.f32.mrf.mxu0 }
 0xd59   :  { %5372 = vmatmul.msk.f32.vlgmr.msra.gmra.mxu1 %vm8922_vm13, %v3560_v12  ;;  %vm8928_vm13 = vmmov %vm8919_vm7 }
 0xd5b   :  { %v3019_v42 = vpop.f32.mrf.mxu0 }
 0xd5c   :  { %3266 = vmatpush.msra.mxu0 %v3019_v42  ;;  %5571 = vmatpush.msra.mxu2 %v3019_v42 }
 0xd5e   :  { %3267 = vmatpush.msra.mxu0 %v3016_v37  ;;  %5572 = vmatpush.msra.mxu2 %v3016_v37 }
 0xd5f   :  { %5320 = vmatmul.msk.f32.vlgmr.msra.gmra.mxu2 %vm8924_vm9, %v5270_v35  ;;  %5310 = vmatmul.msk.f32.vlgmr.msra.gmra.mxu0 %vm8925_vm15, %v7276_v32  ;;  %v5273_v32 = vsel %vm2962_vm11, 1.0, %v8923_v54  ;;  %vm8929_vm9 = vmmov %vm8919_vm7  ;;  %vm2963_vm15 = vcmp.eq.s32.totalorder %v7032_v18, %v7270_v2  ;;  %vm2952_vm11 = vcmp.eq.s32.totalorder %v5992_v8, %v7270_v2 }
 0xd60   :  { %v5274_v27 = vsel %vm2963_vm15, 1.0, %v8923_v54  ;;  %v5263_v16 = vsel %vm2952_vm11, 1.0, %v8923_v54  ;;  %vm8934_vm15 = vmmov %vm8919_vm7 }
 0xd61   :  { %5373 = vmatmul.msk.f32.gmra.mxu1 %vm8926_vm12, %v3562_v41  ;;  %vm8930_vm12 = vmmov %vm8919_vm7 }
 0xd67   :  { %5321 = vmatmul.msk.f32.gmra.mxu2 %vm8919_vm7, %v5271_v14  ;;  %5311 = vmatmul.msk.f32.gmra.mxu0 %vm8927_vm8, %v7287_v15  ;;  %v5275_v15 = vsel %vm2964_vm0, 1.0, %v8923_v54  ;;  %vm2951_vm8 = vcmp.eq.s32.totalorder %v5995_v9, %v7270_v2  ;;  %vm2953_vm0 = vcmp.eq.s32.totalorder %v5984_v6, %v7270_v2 }
 0xd68   :  { %v5262_v5 = vsel %vm2951_vm8, 1.0, %v8923_v54 }
 0xd6f   :  { %5322 = vmatmul.msk.f32.gmra.mxu2 %vm8928_vm13, %v5272_v61  ;;  %5312 = vmatmul.msk.f32.gmra.mxu0 %vm8931_vm14, %v5262_v5  ;;  %vm8932_vm13 = vmmov %vm8919_vm7 }
 0xd77   :  { %5323 = vmatmul.msk.f32.gmra.mxu2 %vm8929_vm9, %v5273_v32  ;;  %vm8933_vm9 = vmmov %vm8919_vm7 }
 0xd78   :  { %5313 = vmatmul.msk.f32.gmra.mxu0 %vm8933_vm9, %v5263_v16  ;;  %vm8936_vm8 = vmmov %vm8933_vm9  ;;  %vm3022_vm9 = vcmp.eq.s32.totalorder %v5995_v9, %v7295_v34 }
 0xd79   :  { %vm8937_vm14 = vmmov %vm8936_vm8 }
 0xd7a   :  { %vm8939_vm11 = vmmov %vm8936_vm8 }
 0xd7f   :  { %5324 = vmatmul.msk.f32.gmra.mxu2 %vm8930_vm12, %v5274_v27  ;;  %vm8935_vm12 = vmmov %vm8919_vm7 }
 0xd87   :  { %5325 = vmatmul.msk.f32.gmra.mxu2 %vm8919_vm7, %v5275_v15  ;;  %vm3317_vm7 = vcmp.eq.s32.totalorder %v5995_v9, %v7308_v36 }
 0xd88   :  { %v5326_v52 = vsel %vm3317_vm7, 1.0, %v8923_v54 }
 0xdb3   :  { %v3089_v10 = vpop.f32.mrf.mxu2 }
 0xdc6   :  { %v3384_v50 = vpop.f32.mrf.mxu1 }
 0xdce   :  { %v3387_v60 = vpop.f32.mrf.mxu1 }
 0xdcf   :  { %3450 = vmatpush.msrb.mxu2 %v3387_v60 }
 0xdd1   :  { %3451 = vmatpush.msrb.mxu2 %v3384_v50 }
 0xdd2   :  { %5342 = vmatmul.msk.f32.vlgmr.msrb.gmra.mxu2 %vm8932_vm13, %v7320_v48  ;;  %v5264_v48 = vsel %vm2953_vm0, 1.0, %v8923_v54  ;;  %vm8938_vm13 = vmmov %vm8936_vm8 }
 0xdd3   :  { %3981 = vmatpush.msra.mxu2 %v7518_v1  ;;  %5314 = vmatmul.msk.f32.gmra.mxu0 %vm8936_vm8, %v5264_v48  ;;  %vm8940_vm0 = vmmov %vm8936_vm8 }
 0xdd4   :  { %v3092_v0 = vpop.f32.mrf.mxu2  ;;  %vm8941_vm7 = vmmov %vm8940_vm0 }
 0xdd5   :  { %3155 = vmatpush.msra.mxu3 %v3092_v0  ;;  %3982 = vmatpush.msra.mxu2 %v7523_v28  ;;  %vm8942_vm8 = vmmov %vm8940_vm0 }
 0xdd6   :  { %v3584_v53 = vpop.f32.mrf.mxu1 }
 0xdd7   :  { %4181 = vmatpush.msrb.mxu2 %v7518_v1  ;;  %3156 = vmatpush.msra.mxu3 %v3089_v10 }
 0xdd8   :  { %5294 = vmatmul.msk.f32.vlgmr.msra.gmra.mxu3 %vm8934_vm15, %v7300_v25  ;;  %vm2954_vm15 = vcmp.eq.s32.totalorder %v5966_v59, %v7270_v2 }
 0xdd9   :  { %4182 = vmatpush.msrb.mxu2 %v7523_v28  ;;  %3781 = vmatpush.msrb.mxu3 %v7518_v1 }
 0xdda   :  { %5343 = vmatmul.msk.f32.gmra.mxu2 %vm8935_vm12, %v7337_v44  ;;  %v5265_v44 = vsel %vm2954_vm15, 1.0, %v8923_v54  ;;  %vm3318_vm12 = vcmp.eq.s32.totalorder %v5992_v8, %v7308_v36  ;;  %vm3517_vm15 = vcmp.eq.s32.totalorder %v5995_v9, %v7323_v62 }
 0xddb   :  { %3782 = vmatpush.msrb.mxu3 %v7523_v28  ;;  %5315 = vmatmul.msk.f32.gmra.mxu0 %vm8940_vm0, %v5265_v44  ;;  %v5327_v51 = vsel %vm3318_vm12, 1.0, %v8923_v54  ;;  %vm8944_vm12 = vmmov %vm8940_vm0  ;;  %v5358_v45 = vsel %vm3517_vm15, 1.0, %v8923_v54 }
 0xddc   :  { %vm8947_vm15 = vmmov %vm8940_vm0 }
 0xdde   :  { %v3587_v25 = vpop.f32.mrf.mxu1 }
 0xddf   :  { %3650 = vmatpush.msrb.mxu1 %v3587_v25 }
 0xde0   :  { %5295 = vmatmul.msk.f32.gmra.mxu3 %vm8937_vm14, %v7311_v20  ;;  %v5278_v20 = vsel %vm3022_vm9, 1.0, %v8923_v54  ;;  %vm8943_vm14 = vmmov %vm8940_vm0  ;;  %vm3319_vm9 = vcmp.eq.s32.totalorder %v5984_v6, %v7308_v36 }
 0xde1   :  { %3651 = vmatpush.msrb.mxu1 %v3584_v53 }
 0xde2   :  { %5344 = vmatmul.msk.f32.gmra.mxu2 %vm8938_vm13, %v5326_v52  ;;  %5374 = vmatmul.msk.f32.vlgmr.msrb.gmra.mxu1 %vm8939_vm11, %v7340_v23  ;;  %vm3023_vm13 = vcmp.eq.s32.totalorder %v5992_v8, %v7295_v34  ;;  %vm2955_vm11 = vcmp.eq.s32.totalorder %v5956_v56, %v7270_v2  ;;  %v7709_v16 = vpop.f32.mrf.mxu2 }
 0xde3   :  { %v5266_v23 = vsel %vm2955_vm11, 1.0, %v8923_v54  ;;  %v5279_v21 = vsel %vm3023_vm13, 1.0, %v8923_v54  ;;  %vm2956_vm11 = vcmp.eq.s32.totalorder %v5946_v46, %v7270_v2  ;;  %vm3320_vm13 = vcmp.eq.s32.totalorder %v5966_v59, %v7308_v36  ;;  %8961 = vst [vmem:[#allocation13_spill] sm:$0xff] %v7709_v16 }
 0xde4   :  { %5316 = vmatmul.msk.f32.gmra.mxu0 %vm8944_vm12, %v5266_v23  ;;  %v5267_v29 = vsel %vm2956_vm11, 1.0, %v8923_v54  ;;  %v5329_v49 = vsel %vm3320_vm13, 1.0, %v8923_v54  ;;  %vm8948_vm12 = vmmov %vm8940_vm0  ;;  %vm2957_vm11 = vcmp.eq.s32.totalorder %v7102_v11, %v7270_v2  ;;  %vm3519_vm13 = vcmp.eq.s32.totalorder %v5984_v6, %v7323_v62 }
 0xde5   :  { %v5268_v12 = vsel %vm2957_vm11, 1.0, %v8923_v54  ;;  %v5360_v41 = vsel %vm3519_vm13, 1.0, %v8923_v54  ;;  %vm2958_vm11 = vcmp.eq.s32.totalorder %v7097_v43, %v7270_v2  ;;  %vm8953_vm13 = vmmov %vm8940_vm0 }
 0xde6   :  { %v5269_v14 = vsel %vm2958_vm11, 1.0, %v8923_v54  ;;  %vm3323_vm11 = vcmp.eq.s32.totalorder %v7102_v11, %v7308_v36 }
 0xde7   :  { %v5332_v15 = vsel %vm3323_vm11, 1.0, %v8923_v54 }
 0xde8   :  { %5296 = vmatmul.msk.f32.gmra.mxu3 %vm8941_vm7, %v5278_v20  ;;  %vm8945_vm7 = vmmov %vm8940_vm0 }
 0xdea   :  { %5345 = vmatmul.msk.f32.gmra.mxu2 %vm8942_vm8, %v5327_v51  ;;  %5375 = vmatmul.msk.f32.gmra.mxu1 %vm8943_vm14, %v7362_v39  ;;  %v5328_v39 = vsel %vm3319_vm9, 1.0, %v8923_v54  ;;  %vm8946_vm8 = vmmov %vm8940_vm0  ;;  %vm3024_vm14 = vcmp.eq.s32.totalorder %v5984_v6, %v7295_v34  ;;  %vm3518_vm9 = vcmp.eq.s32.totalorder %v5992_v8, %v7323_v62  ;;  %v7727_v25 = vpop.f32.mrf.mxu2 }
 0xdeb   :  { %v5280_v55 = vsel %vm3024_vm14, 1.0, %v8923_v54  ;;  %v5359_v37 = vsel %vm3518_vm9, 1.0, %v8923_v54  ;;  %vm3321_vm14 = vcmp.eq.s32.totalorder %v5956_v56, %v7308_v36  ;;  %vm8950_vm9 = vmmov %vm8940_vm0  ;;  %8967 = vst [vmem:[#allocation14_spill] sm:$0xff] %v7727_v25 }
 0xdec   :  { %5317 = vmatmul.msk.f32.gmra.mxu0 %vm8947_vm15, %v5267_v29  ;;  %v5330_v35 = vsel %vm3321_vm14, 1.0, %v8923_v54  ;;  %vm8951_vm15 = vmmov %vm8940_vm0  ;;  %vm3520_vm14 = vcmp.eq.s32.totalorder %v5966_v59, %v7323_v62 }
 0xded   :  { %v5361_v27 = vsel %vm3520_vm14, 1.0, %v8923_v54 }
 0xdf0   :  { %5297 = vmatmul.msk.f32.gmra.mxu3 %vm8940_vm0, %v5279_v21 }
 0xdf2   :  { %5346 = vmatmul.msk.f32.gmra.mxu2 %vm8945_vm7, %v5328_v39  ;;  %5376 = vmatmul.msk.f32.gmra.mxu1 %vm8946_vm8, %v5358_v45  ;;  %vm8949_vm7 = vmmov %vm8940_vm0  ;;  %vm3025_vm8 = vcmp.eq.s32.totalorder %v5966_v59, %v7295_v34  ;;  %v7746_v23 = vpop.f32.mrf.mxu2 }
 0xdf3   :  { %v5281_v42 = vsel %vm3025_vm8, 1.0, %v8923_v54  ;;  %vm3322_vm8 = vcmp.eq.s32.totalorder %v5946_v46, %v7308_v36  ;;  %8971 = vst [vmem:[#allocation15_spill] sm:$0xff] %v7746_v23 }
 0xdf4   :  { %5318 = vmatmul.msk.f32.gmra.mxu0 %vm8950_vm9, %v5268_v12  ;;  %v5331_v32 = vsel %vm3322_vm8, 1.0, %v8923_v54  ;;  %vm8954_vm9 = vmmov %vm8940_vm0 }
 0xdf8   :  { %5298 = vmatmul.msk.f32.gmra.mxu3 %vm8948_vm12, %v5280_v55  ;;  %vm8952_vm12 = vmmov %vm8940_vm0 }
 0xdfa   :  { %5347 = vmatmul.msk.f32.gmra.mxu2 %vm8940_vm0, %v5329_v49  ;;  %5377 = vmatmul.msk.f32.gmra.mxu1 %vm8949_vm7, %v5359_v37  ;;  %vm3026_vm7 = vcmp.eq.s32.totalorder %v5956_v56, %v7295_v34  ;;  %v7762_v49 = vpop.f32.mrf.mxu2 }
 0xdfb   :  { %v5282_v61 = vsel %vm3026_vm7, 1.0, %v8923_v54  ;;  %vm8957_vm7 = vmmov %vm8954_vm9  ;;  %8975 = vst [vmem:[#allocation16_spill] sm:$0xff] %v7762_v49 }
 0xdfc   :  { %5319 = vmatmul.msk.f32.gmra.mxu0 %vm8953_vm13, %v5269_v14  ;;  %vm3521_vm13 = vcmp.eq.s32.totalorder %v5956_v56, %v7323_v62  ;;  %vm8958_vm8 = vmmov %vm8957_vm7 }
 0xdfd   :  { %v5362_v50 = vsel %vm3521_vm13, 1.0, %v8923_v54  ;;  %vm8959_vm14 = vmmov %vm8957_vm7 }
 0xe00   :  { %5299 = vmatmul.msk.f32.gmra.mxu3 %vm8951_vm15, %v5281_v42  ;;  %vm8955_vm15 = vmmov %vm8940_vm0 }
 0xe02   :  { %5348 = vmatmul.msk.f32.gmra.mxu2 %vm8952_vm12, %v5330_v35  ;;  %5378 = vmatmul.msk.f32.gmra.mxu1 %vm8940_vm0, %v5360_v41  ;;  %vm8956_vm12 = vmmov %vm8940_vm0  ;;  %vm3027_vm0 = vcmp.eq.s32.totalorder %v5946_v46, %v7295_v34  ;;  %v7777_v35 = vpop.f32.mrf.mxu2 }
 0xe03   :  { %v5283_v2 = vsel %vm3027_vm0, 1.0, %v8923_v54  ;;  %vm8960_vm0 = vmmov %vm8957_vm7 }
 0xe04   :  { %vm8962_vm11 = vmmov %vm8960_vm0 }
 0xe05   :  { %vm8963_vm13 = vmmov %vm8960_vm0 }
 0xe08   :  { %5300 = vmatmul.msk.f32.gmra.mxu3 %vm8954_vm9, %v5282_v61  ;;  %vm3028_vm9 = vcmp.eq.s32.totalorder %v7102_v11, %v7295_v34 }
 0xe09   :  { %v5284_v5 = vsel %vm3028_vm9, 1.0, %v8923_v54  ;;  %vm8964_vm9 = vmmov %vm8960_vm0 }
 0xe0a   :  { %5349 = vmatmul.msk.f32.gmra.mxu2 %vm8955_vm15, %v5331_v32  ;;  %5379 = vmatmul.msk.f32.gmra.mxu1 %vm8956_vm12, %v5361_v27  ;;  %vm3324_vm15 = vcmp.eq.s32.totalorder %v7097_v43, %v7308_v36  ;;  %vm3522_vm12 = vcmp.eq.s32.totalorder %v5946_v46, %v7323_v62  ;;  %v3960_v32 = vpop.permute.xlu0 %3959  ;;  %v3962_v27 = vpop.permute.xlu1 %3961 }
 0xe0b   :  { %v5333_v10 = vsel %vm3324_vm15, 1.0, %v8923_v54  ;;  %v5363_v60 = vsel %vm3522_vm12, 1.0, %v8923_v54  ;;  %vm8965_vm15 = vmmov %vm8960_vm0 }
 0xe0c   :  { %vm8966_vm12 = vmmov %vm8960_vm0 }
 0xe10   :  { %5301 = vmatmul.msk.f32.gmra.mxu3 %vm8957_vm7, %v5283_v2  ;;  %vm3029_vm7 = vcmp.eq.s32.totalorder %v7097_v43, %v7295_v34 }
 0xe11   :  { %v5285_v0 = vsel %vm3029_vm7, 1.0, %v8923_v54  ;;  %vm8968_vm7 = vmmov %vm8964_vm9 }
 0xe12   :  { %5350 = vmatmul.msk.f32.gmra.mxu2 %vm8958_vm8, %v5332_v15  ;;  %5380 = vmatmul.msk.f32.gmra.mxu1 %vm8959_vm14, %v5362_v50  ;;  %vm3325_vm8 = vcmp.eq.s32.totalorder %v7069_v57, %v7308_v36  ;;  %vm3523_vm14 = vcmp.eq.s32.totalorder %v7102_v11, %v7323_v62 }
 0xe13   :  { %v5334_v53 = vsel %vm3325_vm8, 1.0, %v8923_v54  ;;  %v5364_v48 = vsel %vm3523_vm14, 1.0, %v8923_v54  ;;  %vm8969_vm8 = vmmov %vm8968_vm7 }
 0xe14   :  { %vm8970_vm14 = vmmov %vm8968_vm7 }
 0xe18   :  { %5302 = vmatmul.msk.f32.gmra.mxu3 %vm8960_vm0, %v5284_v5  ;;  %vm3030_vm0 = vcmp.eq.s32.totalorder %v7069_v57, %v7295_v34  ;;  %v3760_v5 = vpop.permute.xlu1 %3759 }
 0xe19   :  { %v5286_v52 = vsel %vm3030_vm0, 1.0, %v8923_v54  ;;  %vm8972_vm0 = vmmov %vm8968_vm7 }
 0xe1a   :  { %5351 = vmatmul.msk.f32.gmra.mxu2 %vm8962_vm11, %v5333_v10  ;;  %5381 = vmatmul.msk.f32.gmra.mxu1 %vm8963_vm13, %v5363_v60  ;;  %vm3326_vm11 = vcmp.eq.s32.totalorder %v7063_v30, %v7308_v36  ;;  %vm3524_vm13 = vcmp.eq.s32.totalorder %v7097_v43, %v7323_v62 }
 0xe1b   :  { %v5335_v44 = vsel %vm3326_vm11, 1.0, %v8923_v54  ;;  %v5365_v20 = vsel %vm3524_vm13, 1.0, %v8923_v54  ;;  %vm8973_vm11 = vmmov %vm8972_vm0 }
 0xe1c   :  { %vm8974_vm13 = vmmov %vm8972_vm0 }
 0xe20   :  { %5303 = vmatmul.msk.f32.gmra.mxu3 %vm8964_vm9, %v5285_v0  ;;  %vm3031_vm9 = vcmp.eq.s32.totalorder %v7063_v30, %v7295_v34 }
 0xe21   :  { %v5287_v51 = vsel %vm3031_vm9, 1.0, %v8923_v54  ;;  %vm8976_vm9 = vmmov %vm8972_vm0 }
 0xe22   :  { %5352 = vmatmul.msk.f32.gmra.mxu2 %vm8965_vm15, %v5334_v53  ;;  %5382 = vmatmul.msk.f32.gmra.mxu1 %vm8966_vm12, %v5364_v48  ;;  %vm3327_vm15 = vcmp.eq.s32.totalorder %v7044_v17, %v7308_v36  ;;  %vm3525_vm12 = vcmp.eq.s32.totalorder %v7069_v57, %v7323_v62  ;;  %v4160_v53 = vpop.permute.xlu2 %4159 }
 0xe23   :  { %v5336_v21 = vsel %vm3327_vm15, 1.0, %v8923_v54  ;;  %v5366_v39 = vsel %vm3525_vm12, 1.0, %v8923_v54  ;;  %vm8977_vm15 = vmmov %vm8972_vm0 }
 0xe24   :  { %vm8978_vm12 = vmmov %vm8972_vm0 }
 0xe28   :  { %5304 = vmatmul.msk.f32.gmra.mxu3 %vm8968_vm7, %v5286_v52  ;;  %vm3032_vm7 = vcmp.eq.s32.totalorder %v7044_v17, %v7295_v34 }
 0xe29   :  { %v5288_v45 = vsel %vm3032_vm7, 1.0, %v8923_v54  ;;  %vm8979_vm7 = vmmov %vm8976_vm9 }
 0xe2a   :  { %5353 = vmatmul.msk.f32.gmra.mxu2 %vm8969_vm8, %v5335_v44  ;;  %5383 = vmatmul.msk.f32.gmra.mxu1 %vm8970_vm14, %v5365_v20  ;;  %vm3328_vm8 = vcmp.eq.s32.totalorder %v7036_v3, %v7308_v36  ;;  %vm3526_vm14 = vcmp.eq.s32.totalorder %v7063_v30, %v7323_v62 }
 0xe2b   :  { %v5337_v29 = vsel %vm3328_vm8, 1.0, %v8923_v54  ;;  %v5367_v55 = vsel %vm3526_vm14, 1.0, %v8923_v54  ;;  %vm8980_vm8 = vmmov %vm8979_vm7 }
 0xe2c   :  { %vm8981_vm14 = vmmov %vm8979_vm7 }
 0xe30   :  { %5305 = vmatmul.msk.f32.gmra.mxu3 %vm8972_vm0, %v5287_v51  ;;  %vm3033_vm0 = vcmp.eq.s32.totalorder %v7036_v3, %v7295_v34 }
 0xe31   :  { %v5289_v37 = vsel %vm3033_vm0, 1.0, %v8923_v54  ;;  %vm8982_vm0 = vmmov %vm8979_vm7 }
 0xe32   :  { %5354 = vmatmul.msk.f32.gmra.mxu2 %vm8973_vm11, %v5336_v21  ;;  %5384 = vmatmul.msk.f32.gmra.mxu1 %vm8974_vm13, %v5366_v39  ;;  %vm3329_vm11 = vcmp.eq.s32.totalorder %v7032_v18, %v7308_v36  ;;  %vm3527_vm13 = vcmp.eq.s32.totalorder %v7044_v17, %v7323_v62  ;;  %v4360_v21 = vpop.permute.xlu2 %4359 }
 0xe33   :  { %v5338_v12 = vsel %vm3329_vm11, 1.0, %v8923_v54  ;;  %v5368_v42 = vsel %vm3527_vm13, 1.0, %v8923_v54  ;;  %vm8983_vm11 = vmmov %vm8982_vm0 }
 0xe34   :  { %vm8984_vm13 = vmmov %vm8982_vm0 }
 0xe38   :  { %5306 = vmatmul.msk.f32.gmra.mxu3 %vm8976_vm9, %v5288_v45  ;;  %vm3034_vm9 = vcmp.eq.s32.totalorder %v7032_v18, %v7295_v34 }
 0xe39   :  { %v5290_v41 = vsel %vm3034_vm9, 1.0, %v8923_v54  ;;  %vm8987_vm9 = vmmov %vm8982_vm0 }
 0xe3a   :  { %5355 = vmatmul.msk.f32.gmra.mxu2 %vm8977_vm15, %v5337_v29  ;;  %5385 = vmatmul.msk.f32.gmra.mxu1 %vm8978_vm12, %v5367_v55  ;;  %vm3330_vm15 = vcmp.eq.s32.totalorder %v7025_v63, %v7308_v36  ;;  %vm3528_vm12 = vcmp.eq.s32.totalorder %v7036_v3, %v7323_v62  ;;  %v7795_v36 = vpop.f32.mrf.mxu2  ;;  %v4362_v55 = vpop.permute.xlu1 %4361 }
 0xe3b   :  { %v5339_v14 = vsel %vm3330_vm15, 1.0, %v8923_v54  ;;  %v5369_v61 = vsel %vm3528_vm12, 1.0, %v8923_v54  ;;  %8985 = vst [vmem:[#allocation17_spill] sm:$0xff] %v7795_v36  ;;  %vm8988_vm15 = vmmov %vm8982_vm0  ;;  %vm3530_vm12 = vcmp.eq.s32.totalorder %v7025_v63, %v7323_v62 }
 0xe3c   :  { %v5371_v10 = vsel %vm3530_vm12, 1.0, %v8923_v54  ;;  %vm9015_vm12 = vmmov %vm8982_vm0 }
 0xe40   :  { %5307 = vmatmul.msk.f32.gmra.mxu3 %vm8979_vm7, %v5289_v37  ;;  %vm3035_vm7 = vcmp.eq.s32.totalorder %v7025_v63, %v7295_v34  ;;  %v4162_v34 = vpop.permute.xlu0 %4161 }
 0xe41   :  { %v5291_v2 = vsel %vm3035_vm7, 1.0, %v8923_v54  ;;  %vm8991_vm7 = vmmov %vm8982_vm0 }
 0xe42   :  { %5356 = vmatmul.msk.f32.gmra.mxu2 %vm8980_vm8, %v5338_v12  ;;  %5386 = vmatmul.msk.f32.gmra.mxu1 %vm8981_vm14, %v5368_v42  ;;  %vm3529_vm8 = vcmp.eq.s32.totalorder %v7032_v18, %v7323_v62  ;;  %vm8986_vm14 = vmmov %vm8982_vm0 }
 0xe43   :  { %v5370_v15 = vsel %vm3529_vm8, 1.0, %v8923_v54  ;;  %vm8992_vm8 = vmmov %vm8982_vm0 }
 0xe48   :  { %5308 = vmatmul.msk.f32.gmra.mxu3 %vm8982_vm0, %v5290_v41  ;;  %v3762_v0 = vpop.permute.xlu0 %3761 }
 0xe4a   :  { %5357 = vmatmul.msk.f32.gmra.mxu2 %vm8983_vm11, %v5339_v14  ;;  %5387 = vmatmul.msk.f32.gmra.mxu1 %vm8984_vm13, %v5369_v61  ;;  %vm8989_vm11 = vmmov %vm8982_vm0 }
 0xe4b   :  { %vm8990_vm13 = vmmov %vm8982_vm0 }
 0xe50   :  { %5309 = vmatmul.msk.f32.gmra.mxu3 %vm8986_vm14, %v5291_v2  ;;  %vm8993_vm14 = vmmov %vm8982_vm0 }
 0xe52   :  { %5388 = vmatmul.msk.f32.gmra.mxu1 %vm8987_vm9, %v5370_v15  ;;  %5436 = vmatmul.msk.f32.vlgmr.msra.gmra.mxu2 %vm8988_vm15, %v3960_v32  ;;  %vm8994_vm9 = vmmov %vm8982_vm0 }
 0xe53   :  { %4381 = vmatpush.msra.mxu2 %v7518_v1  ;;  %vm8995_vm15 = vmmov %vm8982_vm0 }
 0xe55   :  { %v7807_v50 = vpop.f32.mrf.mxu2  ;;  %4382 = vmatpush.msra.mxu2 %v7523_v28 }
 0xe58   :  { %5404 = vmatmul.msk.f32.vlgmr.msrb.gmra.mxu3 %vm8982_vm0, %v3760_v5 }
 0xe5a   :  { %5389 = vmatmul.msk.f32.gmra.mxu1 %vm8989_vm11, %v5371_v10  ;;  %5437 = vmatmul.msk.f32.gmra.mxu2 %vm8990_vm13, %v3962_v27  ;;  %vm9016_vm11 = vmmov %vm8982_vm0  ;;  %vm3917_vm13 = vcmp.eq.s32.totalorder %v5995_v9, %v7390_v22 }
 0xe5b   :  { %v7814_v60 = vpop.f32.mrf.mxu3 }
 0xe5d   :  { %v7816_v1 = vpop.f32.mrf.mxu2 }
 0xe5f   :  { %v7818_v62 = vpop.f32.mrf.mxu1 }
 0xe60   :  { %5405 = vmatmul.msk.f32.gmra.mxu3 %vm8991_vm7, %v3762_v0  ;;  %vm3717_vm7 = vcmp.eq.s32.totalorder %v5995_v9, %v9020_v58 }
 0xe61   :  { %v5390_v19 = vsel %vm3717_vm7, 1.0, %v8923_v54  ;;  %vm3920_vm7 = vcmp.eq.s32.totalorder %v5966_v59, %v7390_v22 }
 0xe62   :  { %5468 = vmatmul.msk.f32.vlgmr.msrb.gmra.mxu2 %vm8992_vm8, %v4160_v53 }
 0xe63   :  { %v7822_v28 = vpop.f32.mrf.mxu3 }
 0xe65   :  { %v7824_v48 = vpop.f32.mrf.mxu2 }
 0xe67   :  { %v7826_v52 = vpop.f32.mrf.mxu1 }
 0xe6a   :  { %5469 = vmatmul.msk.f32.gmra.mxu2 %vm8993_vm14, %v4162_v34  ;;  %vm9030_vm14 = vmmov %vm8982_vm0 }
 0xe6b   :  { %v7829_v44 = vpop.f32.mrf.mxu3 }
 0xe6d   :  { %v7831_v20 = vpop.f32.mrf.mxu2 }
 0xe6f   :  { %v7833_v51 = vpop.f32.mrf.mxu1 }
 0xe72   :  { %5500 = vmatmul.msk.f32.vlgmr.msra.gmra.mxu2 %vm8994_vm9, %v4360_v21  ;;  %vm3718_vm9 = vcmp.eq.s32.totalorder %v5992_v8, %v9020_v58 }
 0xe73   :  { %v7836_v39 = vpop.f32.mrf.mxu3 }
 0xe75   :  { %v7838_v45 = vpop.f32.mrf.mxu2 }
 0xe77   :  { %v7840_v29 = vpop.f32.mrf.mxu1 }
 0xe7a   :  { %5501 = vmatmul.msk.f32.gmra.mxu2 %vm8995_vm15, %v4362_v55 }
 0xe7b   :  { %v7843_v37 = vpop.f32.mrf.mxu3 }
 0xe7d   :  { %v7845_v12 = vpop.f32.mrf.mxu2 }
 0xe7f   :  { %v7847_v42 = vpop.f32.mrf.mxu1 }
 0xe83   :  { %v7849_v41 = vpop.f32.mrf.mxu3 }
 0xe85   :  { %v7851_v14 = vpop.f32.mrf.mxu2 }
 0xe87   :  { %v7853_v61 = vpop.f32.mrf.mxu1 }
 0xe88   :  { %8996 = vst [vmem:[#allocation18_spill] sm:$0xff] %v7853_v61 }
 0xe8b   :  { %v7855_v32 = vpop.f32.mrf.mxu3 }
 0xe8d   :  { %v7857_v27 = vpop.f32.mrf.mxu2 }
 0xe8e   :  { %8997 = vst [vmem:[#allocation19_spill] sm:$0xff] %v7857_v27 }
 0xe8f   :  { %v7859_v2 = vpop.f32.mrf.mxu1 }
 0xe90   :  { %8998 = vst [vmem:[#allocation20_spill] sm:$0xff] %v7859_v2 }
 0xe93   :  { %v7861_v15 = vpop.f32.mrf.mxu3 }
 0xe95   :  { %v7863_v34 = vpop.f32.mrf.mxu2 }
 0xe96   :  { %8999 = vst [vmem:[#allocation21_spill] sm:$0xff] %v7863_v34 }
 0xe97   :  { %v7865_v5 = vpop.f32.mrf.mxu1 }
 0xe98   :  { %9000 = vst [vmem:[#allocation22_spill] sm:$0xff] %v7865_v5 }
 0xe9b   :  { %v7867_v10 = vpop.f32.mrf.mxu3 }
 0xe9d   :  { %v7869_v0 = vpop.f32.mrf.mxu2 }
 0xe9e   :  { %9001 = vst [vmem:[#allocation23_spill] sm:$0xff] %v7869_v0 }
 0xe9f   :  { %v7871_v53 = vpop.f32.mrf.mxu1 }
 0xea0   :  { %9002 = vst [vmem:[#allocation24_spill] sm:$0xff] %v7871_v53 }
 0xea3   :  { %v7873_v21 = vpop.f32.mrf.mxu3 }
 0xea5   :  { %v7875_v55 = vpop.f32.mrf.mxu2 }
 0xea6   :  { %9003 = vst [vmem:[#allocation25_spill] sm:$0xff] %v7875_v55 }
 0xea7   :  { %v7877_v40 = vpop.f32.mrf.mxu1 }
 0xea8   :  { %9004 = vst [vmem:[#allocation26_spill] sm:$0xff] %v7877_v40 }
 0xeab   :  { %v7879_v36 = vpop.f32.mrf.mxu3 }
 0xeac   :  { %9005 = vst [vmem:[#allocation27_spill] sm:$0xff] %v7879_v36 }
 0xead   :  { %v7881_v2 = vpop.f32.mrf.mxu2 }
 0xeae   :  { %9006 = vst [vmem:[#allocation28_spill] sm:$0xff] %v7881_v2 }
 0xeaf   :  { %v7883_v49 = vpop.f32.mrf.mxu1 }
 0xeb0   :  { %9007 = vst [vmem:[#allocation29_spill] sm:$0xff] %v7883_v49 }
 0xeb3   :  { %v7885_v34 = vpop.f32.mrf.mxu3 }
 0xeb4   :  { %9008 = vst [vmem:[#allocation30_spill] sm:$0xff] %v7885_v34 }
 0xeb5   :  { %v7887_v5 = vpop.f32.mrf.mxu2 }
 0xeb6   :  { %9009 = vst [vmem:[#allocation31_spill] sm:$0xff] %v7887_v5 }
 0xeb7   :  { %v7889_v27 = vpop.f32.mrf.mxu1 }
 0xeb8   :  { %9010 = vst [vmem:[#allocation32_spill] sm:$0xff] %v7889_v27 }
 0xebb   :  { %v7891_v0 = vpop.f32.mrf.mxu3 }
 0xebc   :  { %9011 = vst [vmem:[#allocation33_spill] sm:$0xff] %v7891_v0 }
 0xebd   :  { %v7893_v53 = vpop.f32.mrf.mxu2 }
 0xebe   :  { %9012 = vst [vmem:[#allocation34_spill] sm:$0xff] %v7893_v53 }
 0xebf   :  { %v7895_v61 = vpop.f32.mrf.mxu1 }
 0xec0   :  { %9013 = vst [vmem:[#allocation35_spill] sm:$0xff] %v7895_v61 }
 0xec3   :  { %v7897_v55 = vpop.f32.mrf.mxu3 }
 0xec5   :  { %v3495_v40 = vpop.f32.mrf.mxu2 }
 0xec7   :  { %v7899_v23 = vpop.f32.mrf.mxu1 }
 0xec8   :  { %9014 = vst [vmem:[#allocation36_spill] sm:$0xff] %v7899_v23 }
 0xecb   :  { %v3200_v2 = vpop.f32.mrf.mxu3 }
 0xecc   :  { %v3312_v49 = vadd.f32 %v7777_v35, %v3200_v2  ;;  %v7974_v2 = vpop.f32.mrf.mxu0 }
 0xecd   :  { %v7902_v25 = vpop.f32.mrf.mxu2 }
 0xece   :  { %v3515_v34 = vadd.f32 %v3495_v40, %v3312_v49  ;;  %v5391_v49 = vsel %vm3718_vm9, 1.0, %v8923_v54 }
 0xecf   :  { %v3695_v5 = vpop.f32.mrf.mxu1 }
 0xed0   :  { %v7904_v16 = vadd.f32 %v3695_v5, %v3515_v34 }
 0xed3   :  { %v7906_v27 = vpop.f32.mrf.mxu3 }
 0xed5   :  { %v3984_v0 = vpop.f32.mrf.mxu2 }
 0xedb   :  { %v3784_v53 = vpop.f32.mrf.mxu3 }
 0xedd   :  { %v3987_v36 = vpop.f32.mrf.mxu2 }
 0xede   :  { %4050 = vmatpush.msra.mxu3 %v3987_v36 }
 0xee0   :  { %4051 = vmatpush.msra.mxu3 %v3984_v0  ;;  %v5425_v0 = vsel %vm3920_vm7, 1.0, %v8923_v54  ;;  %vm3922_vm7 = vcmp.eq.s32.totalorder %v5946_v46, %v7390_v22 }
 0xee1   :  { %5438 = vmatmul.msk.f32.vlgmr.msra.gmra.mxu3 %vm9015_vm12, %v7397_v4  ;;  %vm3919_vm12 = vcmp.eq.s32.totalorder %v5984_v6, %v7390_v22 }
 0xee2   :  { %v5424_v36 = vsel %vm3919_vm12, 1.0, %v8923_v54  ;;  %vm9042_vm12 = vmmov %vm8982_vm0 }
 0xee3   :  { %v3787_v23 = vpop.f32.mrf.mxu3 }
 0xee4   :  { %3850 = vmatpush.msrb.mxu0 %v3787_v23  ;;  %v9031_v23 = vld [vmem:[#allocation8_spill] sm:$0xff] }
 0xee5   :  { %v4184_v61 = vpop.f32.mrf.mxu2  ;;  %vm4117_vm15 = vcmp.eq.s32.totalorder %v5995_v9, %v9031_v23 }
 0xee6   :  { %3851 = vmatpush.msrb.mxu0 %v3784_v53  ;;  %v9038_v53 = vld [vmem:[#allocation12_spill] sm:$0xff] }
 0xee7   :  { %5406 = vmatmul.msk.f32.vlgmr.msrb.gmra.mxu0 %vm8982_vm0, %v7359_v24  ;;  %v5422_v24 = vsel %vm3917_vm13, 1.0, %v8923_v54  ;;  %vm9034_vm13 = vmmov %vm8982_vm0 }
 0xee8   :  { %5518 = vmatpush.msk.msra.mxu0 %vm5961_vm1, %v8914_v47  ;;  %vm9017_vm1 = vmmov %vm8982_vm0 }
 0xee9   :  { %5439 = vmatmul.msk.f32.gmra.mxu3 %vm9016_vm11, %v7412_v33  ;;  %v9025_v33 = vld [vmem:[#allocation5_spill] sm:$0xff]  ;;  %vm9032_vm11 = vmmov %vm8982_vm0 }
 0xeea   :  { %5519 = vmatpush.msk.msra.mxu0 %vm5987_vm2, %v8914_v47  ;;  %vm9018_vm2 = vmmov %vm8982_vm0  ;;  %vm9026_vm8 = vnez %v9025_v33 }
 0xeec   :  { %5520 = vmatpush.msk.msra.mxu0 %vm6008_vm3, %v8914_v47  ;;  %vm9019_vm3 = vmmov %vm8982_vm0 }
 0xeed   :  { %v4187_v40 = vpop.f32.mrf.mxu2 }
 0xeee   :  { %4250 = vmatpush.msra.mxu1 %v4187_v40  ;;  %5521 = vmatpush.msk.msra.mxu0 %vm6028_vm4, %v8914_v47  ;;  %vm3918_vm4 = vcmp.eq.s32.totalorder %v5992_v8, %v7390_v22  ;;  %v9041_v40 = vld [vmem:[#allocation9_spill] sm:$0xff] }
 0xeef   :  { %5407 = vmatmul.msk.f32.gmra.mxu0 %vm9017_vm1, %v7377_v31  ;;  %v5423_v4 = vsel %vm3918_vm4, 1.0, %v8923_v54  ;;  %vm3719_vm1 = vcmp.eq.s32.totalorder %v5984_v6, %v9020_v58  ;;  %vm9036_vm4 = vmmov %vm8982_vm0  ;;  %vm4317_vm9 = vcmp.eq.s32.totalorder %v5995_v9, %v9041_v40 }
 0xef0   :  { %4251 = vmatpush.msra.mxu1 %v4184_v61  ;;  %5522 = vmatpush.msk.msra.mxu0 %vm6035_vm5, %v8914_v47  ;;  %vm9024_vm5 = vnez %v9023_v38  ;;  %v9033_v61 = vld [vmem:[#allocation10_spill] sm:$0xff]  ;;  %v5392_v34 = vsel %vm3719_vm1, 1.0, %v8923_v54  ;;  %vm9044_vm1 = vmmov %vm8982_vm0 }
 0xef1   :  { %5470 = vmatmul.msk.f32.vlgmr.msra.gmra.mxu1 %vm9018_vm2, %v7415_v26  ;;  %5440 = vmatmul.msk.f32.gmra.mxu3 %vm9019_vm3, %v5422_v24  ;;  %v9028_v26 = vld [vmem:[#allocation11_spill] sm:$0xff]  ;;  %vm9035_vm2 = vmmov %vm8982_vm0  ;;  %vm4118_vm3 = vcmp.eq.s32.totalorder %v5992_v8, %v9031_v23  ;;  %v7995_v24 = vpop.f32.mrf.mxu0 }
 0xef2   :  { %5523 = vmatpush.msk.msra.mxu0 %vm6055_vm6, %v8914_v47  ;;  %5527 = vmatpush.msk.msrb.mxu1 %vm6158_vm10, %v8914_v47  ;;  %vm9027_vm6 = vmmov %vm8982_vm0  ;;  %v5455_v5 = vsel %vm4118_vm3, 1.0, %v8923_v54  ;;  %vm4318_vm3 = vcmp.eq.s32.totalorder %v5992_v8, %v9041_v40 }
 0xef3   :  { %vm9029_vm10 = vmmov %vm8982_vm0  ;;  %v5487_v33 = vsel %vm4318_vm3, 1.0, %v8923_v54  ;;  %vm4320_vm3 = vcmp.eq.s32.totalorder %v5966_v59, %v9041_v40 }
 0xef4   :  { %5524 = vmatpush.msk.msra.mxu0 %vm9024_vm5, %v8914_v47  ;;  %vm9037_vm5 = vmmov %vm8982_vm0 }
 0xef5   :  { %v4384_v31 = vpop.f32.mrf.mxu2 }
 0xef6   :  { %5525 = vmatpush.msk.msra.mxu0 %vm9026_vm8, %v8914_v47  ;;  %v5454_v47 = vsel %vm4117_vm15, 1.0, %v8923_v54  ;;  %vm9039_vm8 = vmmov %vm8982_vm0  ;;  %vm3921_vm15 = vcmp.eq.s32.totalorder %v5956_v56, %v7390_v22 }
 0xef7   :  { %5408 = vmatmul.msk.f32.gmra.mxu0 %vm9027_vm6, %v5390_v19  ;;  %vm3720_vm6 = vcmp.eq.s32.totalorder %v5966_v59, %v9020_v58  ;;  %v5486_v19 = vsel %vm4317_vm9, 1.0, %v8923_v54  ;;  %v5426_v38 = vsel %vm3921_vm15, 1.0, %v8923_v54  ;;  %vm4319_vm9 = vcmp.eq.s32.totalorder %v5984_v6, %v9041_v40 }
 0xef8   :  { %v5393_v7 = vsel %vm3720_vm6, 1.0, %v8923_v54  ;;  %vm3722_vm6 = vcmp.eq.s32.totalorder %v5946_v46, %v9020_v58  ;;  %vm3923_vm15 = vcmp.eq.s32.totalorder %v7102_v11, %v7390_v22 }
 0xef9   :  { %5471 = vmatmul.msk.f32.gmra.mxu1 %vm9029_vm10, %v9028_v26  ;;  %5441 = vmatmul.msk.f32.gmra.mxu3 %vm9030_vm14, %v5423_v4  ;;  %vm9040_vm10 = vmmov %vm8982_vm0  ;;  %vm4119_vm14 = vcmp.eq.s32.totalorder %v5984_v6, %v9031_v23  ;;  %v5427_v26 = vsel %vm3922_vm7, 1.0, %v8923_v54  ;;  %v5395_v8 = vsel %vm3722_vm6, 1.0, %v8923_v54  ;;  %vm3924_vm7 = vcmp.eq.s32.totalorder %v7097_v43, %v7390_v22 }
 0xefa   :  { %v5456_v13 = vsel %vm4119_vm14, 1.0, %v8923_v54  ;;  %vm4121_vm14 = vcmp.eq.s32.totalorder %v5956_v56, %v9031_v23  ;;  %vm3724_vm6 = vcmp.eq.s32.totalorder %v7097_v43, %v9020_v58 }
 0xefd   :  { %v4387_v35 = vpop.f32.mrf.mxu2 }
 0xefe   :  { %4450 = vmatpush.msrb.mxu2 %v4387_v35  ;;  %v5488_v35 = vsel %vm4319_vm9, 1.0, %v8923_v54  ;;  %vm4321_vm9 = vcmp.eq.s32.totalorder %v5956_v56, %v9041_v40 }
 0xeff   :  { %5409 = vmatmul.msk.f32.gmra.mxu0 %vm8982_vm0, %v5391_v49  ;;  %v5458_v49 = vsel %vm4121_vm14, 1.0, %v8923_v54  ;;  %vm4123_vm14 = vcmp.eq.s32.totalorder %v7102_v11, %v9031_v23 }
 0xf00   :  { %4451 = vmatpush.msrb.mxu2 %v4384_v31  ;;  %v8016_v31 = vpop.f32.mrf.mxu0 }
 0xf01   :  { %5472 = vmatmul.msk.f32.gmra.mxu1 %vm9032_vm11, %v5454_v47  ;;  %5502 = vmatmul.msk.f32.vlgmr.msrb.gmra.mxu2 %vm9034_vm13, %v9033_v61  ;;  %vm9043_vm11 = vmmov %vm8982_vm0  ;;  %vm3721_vm13 = vcmp.eq.s32.totalorder %v5956_v56, %v9020_v58  ;;  %v5428_v47 = vsel %vm3923_vm15, 1.0, %v8923_v54  ;;  %vm3925_vm15 = vcmp.eq.s32.totalorder %v7069_v57, %v7390_v22 }
 0xf02   :  { %5442 = vmatmul.msk.f32.gmra.mxu3 %vm9035_vm2, %v5424_v36  ;;  %vm4120_vm2 = vcmp.eq.s32.totalorder %v5966_v59, %v9031_v23  ;;  %v5394_v9 = vsel %vm3721_vm13, 1.0, %v8923_v54  ;;  %vm3723_vm13 = vcmp.eq.s32.totalorder %v7102_v11, %v9020_v58 }
 0xf03   :  { %v5457_v4 = vsel %vm4120_vm2, 1.0, %v8923_v54  ;;  %vm4122_vm2 = vcmp.eq.s32.totalorder %v5946_v46, %v9031_v23  ;;  %v5396_v6 = vsel %vm3723_vm13, 1.0, %v8923_v54  ;;  %vm3725_vm13 = vcmp.eq.s32.totalorder %v7069_v57, %v9020_v58 }
 0xf04   :  { %v5459_v61 = vsel %vm4122_vm2, 1.0, %v8923_v54  ;;  %vm4124_vm2 = vcmp.eq.s32.totalorder %v7097_v43, %v9031_v23 }
 0xf07   :  { %5410 = vmatmul.msk.f32.gmra.mxu0 %vm9036_vm4, %v5392_v34  ;;  %vm9045_vm4 = vmmov %vm8982_vm0  ;;  %v5489_v34 = vsel %vm4320_vm3, 1.0, %v8923_v54  ;;  %vm4322_vm3 = vcmp.eq.s32.totalorder %v5946_v46, %v9041_v40 }
 0xf08   :  { %v8038_v36 = vpop.f32.mrf.mxu0 }
 0xf09   :  { %5473 = vmatmul.msk.f32.gmra.mxu1 %vm9037_vm5, %v5455_v5  ;;  %5503 = vmatmul.msk.f32.gmra.mxu2 %vm9039_vm8, %v9038_v53  ;;  %vm9046_vm5 = vmmov %vm8982_vm0  ;;  %v5429_v5 = vsel %vm3924_vm7, 1.0, %v8923_v54  ;;  %v5460_v53 = vsel %vm4123_vm14, 1.0, %v8923_v54  ;;  %vm3926_vm7 = vcmp.eq.s32.totalorder %v7063_v30, %v7390_v22  ;;  %vm4125_vm14 = vcmp.eq.s32.totalorder %v7069_v57, %v9031_v23 }
 0xf0a   :  { %5443 = vmatmul.msk.f32.gmra.mxu3 %vm9040_vm10, %v5425_v0  ;;  %vm9047_vm8 = vmmov %vm8982_vm0  ;;  %v5397_v0 = vsel %vm3724_vm6, 1.0, %v8923_v54  ;;  %vm3726_vm6 = vcmp.eq.s32.totalorder %v7063_v30, %v9020_v58 }
 0xf0b   :  { %vm9048_vm10 = vmmov %vm8982_vm0  ;;  %v5399_v46 = vsel %vm3726_vm6, 1.0, %v8923_v54  ;;  %vm3728_vm6 = vcmp.eq.s32.totalorder %v7036_v3, %v9020_v58 }
 0xf0f   :  { %5411 = vmatmul.msk.f32.gmra.mxu0 %vm9042_vm12, %v5393_v7  ;;  %vm9049_vm12 = vmmov %vm8982_vm0  ;;  %v5490_v7 = vsel %vm4321_vm9, 1.0, %v8923_v54  ;;  %vm4323_vm9 = vcmp.eq.s32.totalorder %v7102_v11, %v9041_v40 }
 0xf10   :  { %v8060_v59 = vpop.f32.mrf.mxu0 }
 0xf11   :  { %5474 = vmatmul.msk.f32.gmra.mxu1 %vm8982_vm0, %v5456_v13  ;;  %5504 = vmatmul.msk.f32.gmra.mxu2 %vm9043_vm11, %v5486_v19  ;;  %vm9050_vm11 = vmmov %vm8982_vm0  ;;  %v5430_v13 = vsel %vm3925_vm15, 1.0, %v8923_v54  ;;  %v5398_v19 = vsel %vm3725_vm13, 1.0, %v8923_v54  ;;  %vm3927_vm15 = vcmp.eq.s32.totalorder %v7044_v17, %v7390_v22  ;;  %vm3727_vm13 = vcmp.eq.s32.totalorder %v7044_v17, %v9020_v58 }
 0xf12   :  { %5444 = vmatmul.msk.f32.gmra.mxu3 %vm9044_vm1, %v5426_v38  ;;  %vm9051_vm1 = vmmov %vm8982_vm0  ;;  %v5461_v38 = vsel %vm4124_vm2, 1.0, %v8923_v54  ;;  %vm4126_vm2 = vcmp.eq.s32.totalorder %v7063_v30, %v9031_v23  ;;  %v5400_v11 = vsel %vm3727_vm13, 1.0, %v8923_v54  ;;  %vm3729_vm13 = vcmp.eq.s32.totalorder %v7032_v18, %v9020_v58 }
 0xf17   :  { %5412 = vmatmul.msk.f32.gmra.mxu0 %vm9045_vm4, %v5394_v9  ;;  %vm9052_vm4 = vmmov %vm8982_vm0  ;;  %v5491_v9 = vsel %vm4322_vm3, 1.0, %v8923_v54  ;;  %vm4324_vm3 = vcmp.eq.s32.totalorder %v7097_v43, %v9041_v40  ;;  %v5401_v43 = vsel %vm3728_vm6, 1.0, %v8923_v54  ;;  %vm3730_vm6 = vcmp.eq.s32.totalorder %v7025_v63, %v9020_v58 }
 0xf18   :  { %v8083_v56 = vpop.f32.mrf.mxu0 }
 0xf19   :  { %5475 = vmatmul.msk.f32.gmra.mxu1 %vm9046_vm5, %v5457_v4  ;;  %5505 = vmatmul.msk.f32.gmra.mxu2 %vm9047_vm8, %v5487_v33  ;;  %vm9053_vm5 = vmmov %vm8982_vm0  ;;  %v5431_v4 = vsel %vm3926_vm7, 1.0, %v8923_v54  ;;  %vm3928_vm7 = vcmp.eq.s32.totalorder %v7036_v3, %v7390_v22 }
 0xf1a   :  { %5445 = vmatmul.msk.f32.gmra.mxu3 %vm9048_vm10, %v5427_v26  ;;  %vm9054_vm8 = vmmov %vm8982_vm0  ;;  %v5462_v26 = vsel %vm4125_vm14, 1.0, %v8923_v54  ;;  %vm4127_vm14 = vcmp.eq.s32.totalorder %v7044_v17, %v9031_v23 }
 0xf1b   :  { %vm9055_vm10 = vmmov %vm8982_vm0 }
 0xf1f   :  { %5413 = vmatmul.msk.f32.gmra.mxu0 %vm9049_vm12, %v5395_v8  ;;  %vm9056_vm12 = vmmov %vm8982_vm0  ;;  %v5492_v8 = vsel %vm4323_vm9, 1.0, %v8923_v54  ;;  %vm4325_vm9 = vcmp.eq.s32.totalorder %v7069_v57, %v9041_v40 }
 0xf20   :  { %v8104_v33 = vpop.f32.mrf.mxu0 }
 0xf21   :  { %5476 = vmatmul.msk.f32.gmra.mxu1 %vm8982_vm0, %v5458_v49  ;;  %5506 = vmatmul.msk.f32.gmra.mxu2 %vm9050_vm11, %v5488_v35  ;;  %vm9057_vm11 = vmmov %vm8982_vm0  ;;  %v5432_v49 = vsel %vm3927_vm15, 1.0, %v8923_v54  ;;  %v5463_v35 = vsel %vm4126_vm2, 1.0, %v8923_v54  ;;  %vm3929_vm15 = vcmp.eq.s32.totalorder %v7032_v18, %v7390_v22  ;;  %vm4128_vm2 = vcmp.eq.s32.totalorder %v7036_v3, %v9031_v23 }
 0xf22   :  { %5446 = vmatmul.msk.f32.gmra.mxu3 %vm9051_vm1, %v5428_v47  ;;  %vm9058_vm1 = vmmov %vm8982_vm0  ;;  %v5493_v47 = vsel %vm4324_vm3, 1.0, %v8923_v54  ;;  %vm4326_vm3 = vcmp.eq.s32.totalorder %v7063_v30, %v9041_v40 }
 0xf27   :  { %5414 = vmatmul.msk.f32.gmra.mxu0 %vm9052_vm4, %v5396_v6  ;;  %vm9059_vm4 = vmmov %vm8982_vm0  ;;  %v5433_v6 = vsel %vm3928_vm7, 1.0, %v8923_v54  ;;  %vm3930_vm7 = vcmp.eq.s32.totalorder %v7025_v63, %v7390_v22  ;;  %v5403_v22 = vsel %vm3730_vm6, 1.0, %v8923_v54 }
 0xf29   :  { %5477 = vmatmul.msk.f32.gmra.mxu1 %vm9053_vm5, %v5459_v61  ;;  %5507 = vmatmul.msk.f32.gmra.mxu2 %vm9054_vm8, %v5489_v34  ;;  %vm9060_vm5 = vmmov %vm8982_vm0  ;;  %v8126_v61 = vpop.f32.mrf.mxu0  ;;  %v5464_v34 = vsel %vm4127_vm14, 1.0, %v8923_v54  ;;  %vm4129_vm14 = vcmp.eq.s32.totalorder %v7032_v18, %v9031_v23 }
 0xf2a   :  { %5447 = vmatmul.msk.f32.gmra.mxu3 %vm9055_vm10, %v5429_v5  ;;  %vm9061_vm8 = vmmov %vm8982_vm0  ;;  %v5494_v5 = vsel %vm4325_vm9, 1.0, %v8923_v54  ;;  %vm4327_vm9 = vcmp.eq.s32.totalorder %v7044_v17, %v9041_v40 }
 0xf2b   :  { %vm9062_vm10 = vmmov %vm8982_vm0 }
 0xf2f   :  { %5415 = vmatmul.msk.f32.gmra.mxu0 %vm9056_vm12, %v5397_v0  ;;  %vm9063_vm12 = vmmov %vm8982_vm0  ;;  %v5434_v0 = vsel %vm3929_vm15, 1.0, %v8923_v54 }
 0xf30   :  { %vm9077_vm15 = vmmov %vm8982_vm0 }
 0xf31   :  { %5478 = vmatmul.msk.f32.gmra.mxu1 %vm8982_vm0, %v5460_v53  ;;  %5508 = vmatmul.msk.f32.gmra.mxu2 %vm9057_vm11, %v5490_v7  ;;  %vm9064_vm11 = vmmov %vm8982_vm0  ;;  %v8148_v57 = vpop.f32.mrf.mxu0  ;;  %v5402_v53 = vsel %vm3729_vm13, 1.0, %v8923_v54  ;;  %v5465_v7 = vsel %vm4128_vm2, 1.0, %v8923_v54  ;;  %vm4328_vm13 = vcmp.eq.s32.totalorder %v7036_v3, %v9041_v40 }
 0xf32   :  { %5448 = vmatmul.msk.f32.gmra.mxu3 %vm9058_vm1, %v5430_v13  ;;  %vm9065_vm1 = vmmov %vm8982_vm0  ;;  %v5495_v13 = vsel %vm4326_vm3, 1.0, %v8923_v54  ;;  %vm4329_vm3 = vcmp.eq.s32.totalorder %v7032_v18, %v9041_v40 }
 0xf33   :  { %vm9080_vm2 = vmmov %vm8982_vm0  ;;  %v5498_v3 = vsel %vm4329_vm3, 1.0, %v8923_v54 }
 0xf37   :  { %5416 = vmatmul.msk.f32.gmra.mxu0 %vm9059_vm4, %v5398_v19  ;;  %vm9066_vm4 = vmmov %vm8982_vm0  ;;  %v5435_v19 = vsel %vm3930_vm7, 1.0, %v8923_v54 }
 0xf38   :  { %vm9081_vm7 = vmmov %vm8982_vm0 }
 0xf39   :  { %5479 = vmatmul.msk.f32.gmra.mxu1 %vm9060_vm5, %v5461_v38  ;;  %5509 = vmatmul.msk.f32.gmra.mxu2 %vm9061_vm8, %v5491_v9  ;;  %vm9067_vm5 = vmmov %vm8982_vm0  ;;  %v8171_v30 = vpop.f32.mrf.mxu0  ;;  %v5466_v38 = vsel %vm4129_vm14, 1.0, %v8923_v54  ;;  %v5496_v9 = vsel %vm4327_vm9, 1.0, %v8923_v54 }
 0xf3a   :  { %5449 = vmatmul.msk.f32.gmra.mxu3 %vm9062_vm10, %v5431_v4  ;;  %vm9068_vm8 = vmmov %vm8982_vm0  ;;  %v8183_v4 = vpop.f32.mrf.mxu1 }
 0xf3b   :  { %vm9069_vm10 = vmmov %vm8982_vm0 }
 0xf3f   :  { %5417 = vmatmul.msk.f32.gmra.mxu0 %vm9063_vm12, %v5399_v46  ;;  %vm9070_vm12 = vmmov %vm8982_vm0 }
 0xf41   :  { %5480 = vmatmul.msk.f32.gmra.mxu1 %vm8982_vm0, %v5462_v26  ;;  %5510 = vmatmul.msk.f32.gmra.mxu2 %vm9064_vm11, %v5492_v8  ;;  %vm9071_vm11 = vmmov %vm8982_vm0  ;;  %v5497_v26 = vsel %vm4328_vm13, 1.0, %v8923_v54 }
 0xf42   :  { %5450 = vmatmul.msk.f32.gmra.mxu3 %vm9065_vm1, %v5432_v49  ;;  %vm9072_vm1 = vmmov %vm8982_vm0 }
 0xf47   :  { %5418 = vmatmul.msk.f32.gmra.mxu0 %vm9066_vm4, %v5400_v11  ;;  %vm9073_vm4 = vmmov %vm8982_vm0  ;;  %v3270_v11 = vadd.f32 %v7974_v2, %v7814_v60 }
 0xf49   :  { %5481 = vmatmul.msk.f32.gmra.mxu1 %vm9067_vm5, %v5463_v35  ;;  %5511 = vmatmul.msk.f32.gmra.mxu2 %vm9068_vm8, %v5493_v47  ;;  %vm9074_vm5 = vmmov %vm8982_vm0  ;;  %v3501_v18 = vadd.f32 %v7807_v50, %v3270_v11 }
 0xf4a   :  { %5451 = vmatmul.msk.f32.gmra.mxu3 %vm9069_vm10, %v5433_v6  ;;  %vm9075_vm8 = vmmov %vm8982_vm0 }
 0xf4b   :  { %vm9076_vm10 = vmmov %vm8982_vm0 }
 0xf4f   :  { %5419 = vmatmul.msk.f32.gmra.mxu0 %vm9070_vm12, %v5401_v43  ;;  %vm9078_vm12 = vmmov %vm8982_vm0 }
 0xf51   :  { %5482 = vmatmul.msk.f32.gmra.mxu1 %vm8982_vm0, %v5464_v34  ;;  %5512 = vmatmul.msk.f32.gmra.mxu2 %vm9071_vm11, %v5494_v5  ;;  %vm4130_vm11 = vcmp.eq.s32.totalorder %v7025_v63, %v9031_v23  ;;  %v3701_v34 = vadd.f32 %v7818_v62, %v3501_v18  ;;  %v3273_v5 = vadd.f32 %v7995_v24, %v7822_v28 }
 0xf52   :  { %5452 = vmatmul.msk.f32.gmra.mxu3 %vm9072_vm1, %v5434_v0  ;;  %v5467_v46 = vsel %vm4130_vm11, 1.0, %v8923_v54  ;;  %vm9079_vm1 = vmmov %vm8982_vm0 }
 0xf57   :  { %5420 = vmatmul.msk.f32.gmra.mxu0 %vm9073_vm4, %v5402_v53  ;;  %vm4330_vm4 = vcmp.eq.s32.totalorder %v7025_v63, %v9041_v40  ;;  %v3502_v63 = vadd.f32 %v7816_v1, %v3273_v5  ;;  %v3279_v1 = vadd.f32 %v8038_v36, %v7836_v39 }
 0xf58   :  { %v5499_v43 = vsel %vm4330_vm4, 1.0, %v8923_v54  ;;  %v3276_v54 = vadd.f32 %v8016_v31, %v7829_v44 }
 0xf59   :  { %5483 = vmatmul.msk.f32.gmra.mxu1 %vm9074_vm5, %v5465_v7  ;;  %5513 = vmatmul.msk.f32.gmra.mxu2 %vm9075_vm8, %v5495_v13  ;;  %vm9082_vm5 = vmmov %vm8982_vm0  ;;  %v3702_v7 = vadd.f32 %v7826_v52, %v3502_v63  ;;  %vm9107_vm8 = vcmask 523264  }
 0xf5a   :  { %5453 = vmatmul.msk.f32.gmra.mxu3 %vm9076_vm10, %v5435_v19  ;;  %v3503_v28 = vadd.f32 %v7824_v48, %v3276_v54  ;;  %vm9108_vm6 = vmmov %vm9107_vm8 }
 0xf5b   :  { %vm9109_vm10 = vmmov %vm9108_vm6 }
 0xf5c   :  { %vm9110_vm14 = vmmov %vm9108_vm6 }
 0xf5d   :  { %vm9111_vm9 = vmmov %vm9108_vm6 }
 0xf5f   :  { %5421 = vmatmul.msk.f32.gmra.mxu0 %vm9077_vm15, %v5403_v22  ;;  %vm9112_vm15 = vmmov %vm9108_vm6 }
 0xf61   :  { %5484 = vmatmul.msk.f32.gmra.mxu1 %vm9078_vm12, %v5466_v38  ;;  %5514 = vmatmul.msk.f32.gmra.mxu2 %vm8982_vm0, %v5496_v9  ;;  %vm9113_vm12 = vmmov %vm9108_vm6 }
 0xf62   :  { %vm9114_vm0 = vmmov %vm9108_vm6 }
 0xf63   :  { %vm9115_vm11 = vmmov %vm9114_vm0 }
 0xf64   :  { %v3853_v17 = vpop.f32.mrf.mxu0  ;;  %v4053_v58 = vpop.f32.mrf.mxu3  ;;  %vm9116_vm13 = vmmov %vm9114_vm0 }
 0xf65   :  { %v3901_v53 = vadd.f32 %v3853_v17, %v3701_v34  ;;  %v3703_v17 = vadd.f32 %v7833_v51, %v3503_v28  ;;  %v3282_v51 = vadd.f32 %v8060_v59, %v7843_v37  ;;  %vm9119_vm3 = vmmov %vm9114_vm0 }
 0xf66   :  { %vm9121_vm4 = vmmov %vm9114_vm0 }
 0xf67   :  { %v4101_v40 = vadd.f32 %v4053_v58, %v3901_v53 }
 0xf69   :  { %5485 = vmatmul.msk.f32.gmra.mxu1 %vm9079_vm1, %v5467_v46  ;;  %5515 = vmatmul.msk.f32.gmra.mxu2 %vm9080_vm2, %v5497_v26  ;;  %vm9117_vm1 = vmmov %vm9114_vm0 }
 0xf6a   :  { %vm9118_vm2 = vmmov %vm9114_vm0 }
 0xf6c   :  { %v3856_v8 = vpop.f32.mrf.mxu0  ;;  %v4056_v23 = vpop.f32.mrf.mxu3 }
 0xf6d   :  { %v3902_v22 = vadd.f32 %v3856_v8, %v3702_v7  ;;  %v3504_v8 = vadd.f32 %v7831_v20, %v3279_v1 }
 0xf6e   :  { %v4253_v49 = vpop.f32.mrf.mxu1 }
 0xf6f   :  { %v4301_v50 = vadd.f32 %v4253_v49, %v4101_v40  ;;  %v4102_v9 = vadd.f32 %v4056_v23, %v3902_v22  ;;  %v3704_v48 = vadd.f32 %v7840_v29, %v3504_v8  ;;  %v3288_v8 = vadd.f32 %v8104_v33, %v7855_v32  ;;  %v9083_v33 = vld [vmem:[#allocation27_spill] sm:$0xff] }
 0xf70   :  { %v3297_v32 = vadd.f32 %v8171_v30, %v7873_v21  ;;  %v9091_v30 = vld [vmem:[#allocation16_spill] sm:$0xff] }
 0xf71   :  { %5516 = vmatmul.msk.f32.gmra.mxu2 %vm9081_vm7, %v5498_v3  ;;  %vm9120_vm7 = vmmov %vm9114_vm0 }
 0xf74   :  { %v3859_v35 = vpop.f32.mrf.mxu0  ;;  %v4059_v47 = vpop.f32.mrf.mxu3 }
 0xf75   :  { %v3903_v46 = vadd.f32 %v3859_v35, %v3703_v17 }
 0xf76   :  { %v4256_v6 = vpop.f32.mrf.mxu1 }
 0xf77   :  { %v4302_v52 = vadd.f32 %v4256_v6, %v4102_v9  ;;  %v4103_v49 = vadd.f32 %v4059_v47, %v3903_v46  ;;  %v3505_v6 = vadd.f32 %v7838_v45, %v3282_v51  ;;  %v3285_v46 = vadd.f32 %v8083_v56, %v7849_v41 }
 0xf78   :  { %v3291_v51 = vadd.f32 %v8126_v61, %v7861_v15  ;;  %v3294_v41 = vadd.f32 %v8148_v57, %v7867_v10  ;;  %v3507_v56 = vadd.f32 %v7851_v14, %v3288_v8  ;;  %v9085_v15 = vld [vmem:[#allocation30_spill] sm:$0xff]  ;;  %v9093_v8 = vld [vmem:[#allocation20_spill] sm:$0xff] }
 0xf79   :  { %5517 = vmatmul.msk.f32.gmra.mxu2 %vm9082_vm5, %v5499_v43  ;;  %v3705_v47 = vadd.f32 %v7847_v42, %v3505_v6  ;;  %v9086_v61 = vld [vmem:[#allocation14_spill] sm:$0xff]  ;;  %vm9122_vm5 = vmmov %vm9114_vm0 }
 0xf7a   :  { %v9089_v14 = vld [vmem:[#allocation18_spill] sm:$0xff] }
 0xf7c   :  { %v3862_v0 = vpop.f32.mrf.mxu0  ;;  %v4062_v60 = vpop.f32.mrf.mxu3 }
 0xf7d   :  { %v3904_v36 = vadd.f32 %v3862_v0, %v3704_v48  ;;  %v3506_v48 = vadd.f32 %v7845_v12, %v3285_v46 }
 0xf7e   :  { %v4259_v2 = vpop.f32.mrf.mxu1 }
 0xf7f   :  { %v4303_v23 = vadd.f32 %v4259_v2, %v4103_v49  ;;  %v4104_v20 = vadd.f32 %v4062_v60, %v3904_v36  ;;  %v3706_v57 = vadd.f32 %v9089_v14, %v3506_v48 }
 0xf84   :  { %v3865_v13 = vpop.f32.mrf.mxu0  ;;  %v4453_v19 = vpop.f32.mrf.mxu2 }
 0xf85   :  { %v8207_v62 = vadd.f32 %v4453_v19, %v4301_v50  ;;  %v4065_v24 = vpop.f32.mrf.mxu3  ;;  %v3905_v5 = vadd.f32 %v3865_v13, %v3705_v47  ;;  %v9087_v47 = vld [vmem:[#allocation33_spill] sm:$0xff] }
 0xf86   :  { %v4262_v38 = vpop.f32.mrf.mxu1 }
 0xf87   :  { %v4304_v18 = vadd.f32 %v4262_v38, %v4104_v20  ;;  %v4105_v0 = vadd.f32 %v4065_v24, %v3905_v5  ;;  %v3303_v20 = vadd.f32 %v9086_v61, %v9085_v15  ;;  %v9090_v5 = vld [vmem:[#allocation19_spill] sm:$0xff]  ;;  %v9095_v61 = vld [vmem:[#allocation25_spill] sm:$0xff] }
 0xf88   :  { %v3508_v21 = vadd.f32 %v9090_v5, %v3291_v51  ;;  %v9096_v51 = vld [vmem:[#allocation28_spill] sm:$0xff]  ;;  %v9097_v5 = vld [vmem:[#allocation31_spill] sm:$0xff] }
 0xf89   :  { %v3512_v14 = vadd.f32 %v9096_v51, %v3303_v20 }
 0xf8c   :  { %v4456_v58 = vpop.f32.mrf.mxu2  ;;  %v8215_v31 = vpop.f32.mrf.mxu0 }
 0xf8d   :  { %v8213_v44 = vadd.f32 %v4456_v58, %v4302_v52  ;;  %v8218_v3 = vpop.f32.mrf.mxu3 }
 0xf8e   :  { %v4265_v26 = vpop.f32.mrf.mxu1 }
 0xf8f   :  { %v4305_v2 = vadd.f32 %v4265_v26, %v4105_v0  ;;  %v3309_v0 = vadd.f32 %v9091_v30, %v7897_v55 }
 0xf94   :  { %v4459_v39 = vpop.f32.mrf.mxu2  ;;  %v8228_v43 = vpop.f32.mrf.mxu0 }
 0xf95   :  { %v8223_v11 = vadd.f32 %v4459_v39, %v4303_v23  ;;  %v8231_v34 = vpop.f32.mrf.mxu3  ;;  %v8287_v23 = vld [vmem:[%s8810_s14] sm:$0x7]  ;;  %v9084_v39 = vld [vmem:[#allocation13_spill] sm:$0xff] }
 0xf96   :  { %v8225_v35 = vpop.f32.mrf.mxu1  ;;  %v3300_v36 = vadd.f32 %v9084_v39, %v9083_v33  ;;  %v8305_v10 = vperm.slane %v8287_v23, 0  ;;  %v3707_v33 = vadd.f32 %v9093_v8, %v3507_v56  ;;  %v9094_v39 = vld [vmem:[#allocation23_spill] sm:$0xff] }
 0xf97   :  { %v3510_v15 = vadd.f32 %v9094_v39, %v3297_v32 }
 0xf98   :  { %v8314_v46 = vadd.f32 %v8305_v10, %v8213_v44  ;;  %v9098_v44 = vld [vmem:[#allocation22_spill] sm:$0xff]  ;;  %v3907_v32 = vadd.f32 %v8228_v43, %v3707_v33 }
 0xf99   :  { %v3708_v30 = vadd.f32 %v9098_v44, %v3508_v21  ;;  %v9105_v44 = vld [vmem:[#allocation35_spill] sm:$0xff] }
 0xf9a   :  { %v4572_v20 = vmul.f32 %v8314_v46, %v8314_v46 }
 0xf9c   :  { %v4462_v29 = vpop.f32.mrf.mxu2  ;;  %v3874_v53 = vpop.f32.mrf.mxu0 }
 0xf9d   :  { %v8233_v37 = vadd.f32 %v4462_v29, %v4304_v18  ;;  %v8239_v45 = vpop.f32.mrf.mxu3  ;;  %v9088_v18 = vld [vmem:[#allocation15_spill] sm:$0xff]  ;;  %v3908_v33 = vadd.f32 %v3874_v53, %v3708_v30  ;;  %v4588_v30 = vsel %vm9108_vm6, %v4572_v20, 0.0  ;;  %vm9124_vm6 = vmmov %vm9114_vm0 }
 0xf9e   :  { %v8235_v59 = vpop.f32.mrf.mxu1  ;;  %v3306_v29 = vadd.f32 %v9088_v18, %v9087_v47  ;;  %v3511_v47 = vadd.f32 %v9095_v61, %v3300_v36  ;;  %v3906_v18 = vadd.f32 %v8215_v31, %v3706_v57  ;;  %v9100_v36 = vld [vmem:[#allocation24_spill] sm:$0xff]  ;;  %v9101_v57 = vld [vmem:[#allocation17_spill] sm:$0xff] }
 0xf9f   :  { %v3315_v39 = vadd.f32 %v9101_v57, %v7906_v27  ;;  %v9103_v61 = vld [vmem:[#allocation29_spill] sm:$0xff] }
 0xfa0   :  { %v3513_v55 = vadd.f32 %v9097_v5, %v3306_v29  ;;  %v9102_v29 = vld [vmem:[#allocation26_spill] sm:$0xff]  ;;  %v4106_v43 = vadd.f32 %v8218_v3, %v3906_v18 }
 0xfa1   :  { %v3710_v21 = vadd.f32 %v9102_v29, %v3510_v15 }
 0xfa2   :  { %v3713_v27 = vadd.f32 %v9105_v44, %v3513_v55  ;;  %v4306_v3 = vadd.f32 %v8225_v35, %v4106_v43  ;;  %v4535_v55 = vsel %vm9107_vm8, %v8314_v46, 0.0  ;;  %vm9123_vm8 = vmmov %vm9114_vm0 }
 0xfa4   :  { %v4465_v63 = vpop.f32.mrf.mxu2  ;;  %v8243_v42 = vpop.f32.mrf.mxu0 }
 0xfa5   :  { %v8237_v40 = vadd.f32 %v4465_v63, %v4305_v2  ;;  %v8247_v54 = vpop.f32.mrf.mxu3  ;;  %v9092_v2 = vld [vmem:[#allocation21_spill] sm:$0xff] }
 0xfa6   :  { %v8241_v60 = vpop.f32.mrf.mxu1  ;;  %v3509_v63 = vadd.f32 %v9092_v2, %v3294_v41  ;;  %v8326_v41 = vadd.f32 %v8305_v10, %v8207_v62  ;;  %v9099_v2 = vld [vmem:[#allocation34_spill] sm:$0xff]  ;;  %v8340_v62 = vadd.f32 %v8305_v10, %v8223_v11  ;;  %v8353_v11 = vadd.f32 %v8305_v10, %v8233_v37 }
 0xfa7   :  { %v3514_v56 = vadd.f32 %v9099_v2, %v3309_v0  ;;  %v3711_v0 = vadd.f32 %v9103_v61, %v3511_v47  ;;  %v4107_v47 = vadd.f32 %v8231_v34, %v3907_v32 }
 0xfa8   :  { %v3709_v31 = vadd.f32 %v9100_v36, %v3509_v63  ;;  %v9104_v63 = vld [vmem:[#allocation32_spill] sm:$0xff]  ;;  %v4571_v2 = vmul.f32 %v8326_v41, %v8326_v41  ;;  %v4573_v37 = vmul.f32 %v8340_v62, %v8340_v62  ;;  %v4574_v57 = vmul.f32 %v8353_v11, %v8353_v11 }
 0xfa9   :  { %v3712_v5 = vadd.f32 %v9104_v63, %v3512_v14  ;;  %v9106_v36 = vld [vmem:[#allocation36_spill] sm:$0xff]  ;;  %v8360_v14 = vadd.f32 %v7902_v25, %v3315_v39  ;;  %v4307_v34 = vadd.f32 %v8235_v59, %v4107_v47  ;;  %v4534_v25 = vsel %vm9109_vm10, %v8326_v41, 0.0  ;;  %vm9125_vm10 = vmmov %vm9114_vm0 }
 0xfaa   :  { %v3714_v15 = vadd.f32 %v9106_v36, %v3514_v56  ;;  %v3909_v53 = vadd.f32 %v8243_v42, %v3709_v31  ;;  %v4108_v56 = vadd.f32 %v8239_v45, %v3908_v33  ;;  %v4587_v32 = vsel %vm9110_vm14, %v4571_v2, 0.0  ;;  %vm9126_vm14 = vmmov %vm9114_vm0 }
 0xfab   :  { %v4537_v31 = vsel %vm9111_vm9, %v8340_v62, 0.0  ;;  %v8380_v45 = vadd.f32 %v8305_v10, %v8237_v40  ;;  %v4536_v20 = vadd.f32 %v4535_v55, %v4534_v25  ;;  %v4589_v29 = vadd.f32 %v4588_v30, %v4587_v32  ;;  %vm9127_vm9 = vmmov %vm9114_vm0 }
 0xfac   :  { %v8245_v7 = vpop.f32.mrf.mxu2  ;;  %v8253_v19 = vpop.f32.mrf.mxu0  ;;  %v4109_v59 = vadd.f32 %v8247_v54, %v3909_v53  ;;  %v4592_v2 = vsel %vm9114_vm0, %v4574_v57, 0.0 }
 0xfad   :  { %v8255_v22 = vpop.f32.mrf.mxu3  ;;  %v3910_v35 = vadd.f32 %v8253_v19, %v3710_v21  ;;  %v4506_v42 = vadd.f32 %v8245_v7, %v4306_v3  ;;  %v4308_v19 = vadd.f32 %v8241_v60, %v4108_v56  ;;  %v4590_v21 = vsel %vm9112_vm15, %v4573_v37, 0.0  ;;  %vm9128_vm15 = vmmov %vm9114_vm0 }
 0xfae   :  { %v8249_v50 = vpop.f32.mrf.mxu1  ;;  %v4538_v44 = vadd.f32 %v4537_v31, %v4536_v20  ;;  %v4541_v47 = vsel %vm9115_vm11, %v8380_v45, 0.0  ;;  %vm9130_vm11 = vmmov %vm9114_vm0 }
 0xfaf   :  { %v8388_v43 = vadd.f32 %v8305_v10, %v4506_v42  ;;  %v4110_v33 = vadd.f32 %v8255_v22, %v3910_v35  ;;  %v4309_v40 = vadd.f32 %v8249_v50, %v4109_v59 }
 0xfb1   :  { %v4543_v42 = vsel %vm9117_vm1, %v8388_v43, 0.0  ;;  %vm9132_vm1 = vmmov %vm9114_vm0 }
 0xfb4   :  { %v8251_v13 = vpop.f32.mrf.mxu2  ;;  %v8261_v24 = vpop.f32.mrf.mxu0 }
 0xfb5   :  { %v8263_v9 = vpop.f32.mrf.mxu3  ;;  %v4507_v7 = vadd.f32 %v8251_v13, %v4307_v34  ;;  %v3911_v61 = vadd.f32 %v8261_v24, %v3711_v0  ;;  %v4539_v13 = vsel %vm9113_vm12, %v8353_v11, 0.0  ;;  %v4575_v24 = vmul.f32 %v8380_v45, %v8380_v45  ;;  %vm9129_vm12 = vmmov %vm9114_vm0 }
 0xfb6   :  { %v8257_v38 = vpop.f32.mrf.mxu1  ;;  %v4540_v55 = vadd.f32 %v4539_v13, %v4538_v44 }
 0xfb7   :  { %v8400_v0 = vadd.f32 %v8305_v10, %v4507_v7  ;;  %v4310_v50 = vadd.f32 %v8257_v38, %v4110_v33  ;;  %v4111_v3 = vadd.f32 %v8263_v9, %v3911_v61  ;;  %v4594_v9 = vsel %vm9116_vm13, %v4575_v24, 0.0  ;;  %vm9131_vm13 = vmmov %vm9114_vm0 }
 0xfb8   :  { %v4542_v35 = vadd.f32 %v4541_v47, %v4540_v55  ;;  %v3716_v24 = vadd.f32 %v8183_v4, %v8360_v14 }
 0xfba   :  { %v4544_v7 = vadd.f32 %v4543_v42, %v4542_v35 }
 0xfbc   :  { %v8259_v28 = vpop.f32.mrf.mxu2  ;;  %v8269_v52 = vpop.f32.mrf.mxu0 }
 0xfbd   :  { %v8275_v26 = vpop.f32.mrf.mxu3  ;;  %v4508_v54 = vadd.f32 %v8259_v28, %v4308_v19  ;;  %v3912_v36 = vadd.f32 %v8269_v52, %v3712_v5  ;;  %v4591_v28 = vadd.f32 %v4590_v21, %v4589_v29  ;;  %v4576_v52 = vmul.f32 %v8388_v43, %v8388_v43 }
 0xfbe   :  { %v8267_v1 = vpop.f32.mrf.mxu1 }
 0xfbf   :  { %v8411_v5 = vadd.f32 %v8305_v10, %v4508_v54  ;;  %v4593_v37 = vadd.f32 %v4592_v2, %v4591_v28  ;;  %v4311_v56 = vadd.f32 %v8267_v1, %v4111_v3  ;;  %v4596_v1 = vsel %vm9118_vm2, %v4576_v52, 0.0  ;;  %vm9133_vm2 = vmmov %vm9114_vm0 }
 0xfc1   :  { %v4595_v19 = vadd.f32 %v4594_v9, %v4593_v37  ;;  %v4547_v61 = vsel %vm9121_vm4, %v8411_v5, 0.0  ;;  %vm9136_vm4 = vmmov %vm9114_vm0 }
 0xfc4   :  { %v8265_v17 = vpop.f32.mrf.mxu2  ;;  %v8296_v12 = vpop.f32.mrf.mxu0 }
 0xfc5   :  { %v8320_v48 = vpop.f32.mrf.mxu3  ;;  %v4509_v22 = vadd.f32 %v8265_v17, %v4309_v40  ;;  %v3913_v53 = vadd.f32 %v8296_v12, %v3713_v27  ;;  %v4112_v17 = vadd.f32 %v8275_v26, %v3912_v36  ;;  %v4577_v12 = vmul.f32 %v8400_v0, %v8400_v0 }
 0xfc6   :  { %v8279_v49 = vpop.f32.mrf.mxu1  ;;  %v4597_v40 = vadd.f32 %v4596_v1, %v4595_v19 }
 0xfc7   :  { %v8420_v27 = vadd.f32 %v8305_v10, %v4509_v22  ;;  %v4312_v25 = vadd.f32 %v8279_v49, %v4112_v17  ;;  %v4598_v20 = vsel %vm9120_vm7, %v4577_v12, 0.0  ;;  %vm9135_vm7 = vmmov %vm9114_vm0 }
 0xfc9   :  { %v4579_v29 = vmul.f32 %v8420_v27, %v8420_v27  ;;  %v4549_v44 = vsel %vm9123_vm8, %v8420_v27, 0.0 }
 0xfcc   :  { %v8271_v58 = vpop.f32.mrf.mxu2  ;;  %v3892_v18 = vpop.f32.mrf.mxu0 }
 0xfcd   :  { %v4092_v39 = vpop.f32.mrf.mxu3  ;;  %v4510_v30 = vadd.f32 %v8271_v58, %v4310_v50  ;;  %v3914_v34 = vadd.f32 %v3892_v18, %v3714_v15  ;;  %v4113_v58 = vadd.f32 %v8320_v48, %v3913_v53  ;;  %v4545_v15 = vsel %vm9119_vm3, %v8400_v0, 0.0  ;;  %vm9134_vm3 = vmmov %vm9114_vm0 }
 0xfce   :  { %v8331_v8 = vpop.f32.mrf.mxu1  ;;  %v4578_v18 = vmul.f32 %v8411_v5, %v8411_v5  ;;  %v4602_v50 = vsel %vm9124_vm6, %v4579_v29, 0.0  ;;  %vm9140_vm6 = vmmov %vm9114_vm0 }
 0xfcf   :  { %v8433_v32 = vadd.f32 %v8305_v10, %v4510_v30  ;;  %v4114_v59 = vadd.f32 %v4092_v39, %v3914_v34  ;;  %v4313_v48 = vadd.f32 %v8331_v8, %v4113_v58 }
 0xfd1   :  { %v4580_v54 = vmul.f32 %v8433_v32, %v8433_v32  ;;  %v4551_v28 = vsel %vm9125_vm10, %v8433_v32, 0.0  ;;  %vm9141_vm10 = vcmask 64512  }
 0xfd3   :  { %v4604_v30 = vsel %vm9126_vm14, %v4580_v54, 0.0 }
 0xfd4   :  { %v8298_v6 = vpop.f32.mrf.mxu2  ;;  %v3895_v38 = vpop.f32.mrf.mxu0 }
 0xfd5   :  { %v4511_v26 = vadd.f32 %v8298_v6, %v4311_v56  ;;  %v4095_v31 = vpop.f32.mrf.mxu3  ;;  %v3915_v49 = vadd.f32 %v3895_v38, %v7904_v16  ;;  %v4546_v16 = vadd.f32 %v4545_v15, %v4544_v7 }
 0xfd6   :  { %v4292_v63 = vpop.f32.mrf.mxu1 }
 0xfd7   :  { %v8444_v33 = vadd.f32 %v8305_v10, %v4511_v26  ;;  %v4314_v39 = vadd.f32 %v4292_v63, %v4114_v59  ;;  %v4115_v13 = vadd.f32 %v4095_v31, %v3915_v49  ;;  %v4599_v63 = vadd.f32 %v4598_v20, %v4597_v40 }
 0xfd9   :  { %v4581_v47 = vmul.f32 %v8444_v33, %v8444_v33  ;;  %v4553_v4 = vsel %vm9127_vm9, %v8444_v33, 0.0 }
 0xfdb   :  { %v4606_v12 = vsel %vm9128_vm15, %v4581_v47, 0.0 }
 0xfdc   :  { %v8345_v51 = vpop.f32.mrf.mxu2  ;;  %v3898_v22 = vpop.f32.mrf.mxu0 }
 0xfdd   :  { %v4512_v6 = vadd.f32 %v8345_v51, %v4312_v25  ;;  %v4600_v51 = vsel %vm9122_vm5, %v4578_v18, 0.0  ;;  %v3916_v38 = vadd.f32 %v3898_v22, %v3716_v24  ;;  %v4098_v9 = vpop.f32.mrf.mxu3  ;;  %vm9137_vm5 = vmmov %vm9114_vm0 }
 0xfde   :  { %v4295_v21 = vpop.f32.mrf.mxu1  ;;  %v4601_v55 = vadd.f32 %v4600_v51, %v4599_v63 }
 0xfdf   :  { %v8452_v2 = vadd.f32 %v8305_v10, %v4512_v6  ;;  %v4315_v3 = vadd.f32 %v4295_v21, %v4115_v13  ;;  %v4116_v31 = vadd.f32 %v4098_v9, %v3916_v38 }
 0xfe0   :  { %v4603_v34 = vadd.f32 %v4602_v50, %v4601_v55 }
 0xfe1   :  { %v4582_v37 = vmul.f32 %v8452_v2, %v8452_v2  ;;  %v4555_v42 = vsel %vm9129_vm12, %v8452_v2, 0.0  ;;  %vm9142_vm12 = vmmov %vm9114_vm0 }
 0xfe2   :  { %v4605_v26 = vadd.f32 %v4604_v30, %v4603_v34 }
 0xfe3   :  { %v4608_v18 = vsel %vm9114_vm0, %v4582_v37, 0.0 }
 0xfe4   :  { %v4489_v60 = vpop.f32.mrf.mxu2 }
 0xfe5   :  { %v4513_v8 = vadd.f32 %v4489_v60, %v4313_v48  ;;  %v4548_v60 = vadd.f32 %v4547_v61, %v4546_v16  ;;  %v4607_v48 = vadd.f32 %v4606_v12, %v4605_v26 }
 0xfe6   :  { %v4298_v15 = vpop.f32.mrf.mxu1 }
 0xfe7   :  { %v8462_v53 = vadd.f32 %v8305_v10, %v4513_v8  ;;  %v4550_v52 = vadd.f32 %v4549_v44, %v4548_v60  ;;  %v4316_v19 = vadd.f32 %v4298_v15, %v4116_v31  ;;  %v4609_v29 = vadd.f32 %v4608_v18, %v4607_v48  ;;  %v4769_v15 = vld [vmem:[%s8811_s15 + $0x60] sm:$0xff]  ;;  %v4770_v18 = vld [vmem:[%s8811_s15 + $0x68] sm:$0xff]  ;;  %v4767_v31 = vld [vmem:[%s8811_s15 + $0x50] sm:$0xff] }
 0xfe8   :  { %v4765_v48 = vld [vmem:[%s8811_s15 + $0x40] sm:$0xff] }
 0xfe9   :  { %v4552_v35 = vadd.f32 %v4551_v28, %v4550_v52  ;;  %v4583_v58 = vmul.f32 %v8462_v53, %v8462_v53 }
 0xfeb   :  { %v4554_v1 = vadd.f32 %v4553_v4, %v4552_v35  ;;  %v4610_v6 = vsel %vm9131_vm13, %v4583_v58, 0.0  ;;  %v9138_v35 = vld [vmem:[#allocation2_spill] sm:$0xff]  ;;  %v4771_v58 = vld [vmem:[%s8811_s15 + $0x70] sm:$0xff]  ;;  %vm9144_vm13 = vmmov %vm9114_vm0 }
 0xfec   :  { %v4492_v57 = vpop.f32.mrf.mxu2  ;;  %v4611_v16 = vadd.f32 %v4610_v6, %v4609_v29  ;;  %vm9139_vm8 = vcmp.eq.s32.totalorder %v9138_v35, 0  ;;  %4835 = vmatpush.msrb.mxu0 %v4771_v58  ;;  %v4761_v29 = vld [vmem:[%s8811_s15 + $0x20] sm:$0xff] }
 0xfed   :  { %v4514_v36 = vadd.f32 %v4492_v57, %v4314_v39  ;;  %v4557_v57 = vsel %vm9130_vm11, %v8462_v53, 0.0  ;;  %v4556_v49 = vadd.f32 %v4555_v42, %v4554_v1  ;;  %v4772_v42 = vld [vmem:[%s8811_s15 + $0x78] sm:$0xff]  ;;  %vm9143_vm11 = vmmov %vm9114_vm0 }
 0xfee   :  { %4900 = vmatpush.msrb.mxu3 %v4772_v42  ;;  %4836 = vmatpush.msrb.mxu0 %v4769_v15 }
 0xfef   :  { %v8470_v17 = vadd.f32 %v8305_v10, %v4514_v36  ;;  %v4558_v21 = vadd.f32 %v4557_v57, %v4556_v49  ;;  %v4768_v57 = vld [vmem:[%s8811_s15 + $0x58] sm:$0xff]  ;;  %v4766_v49 = vld [vmem:[%s8811_s15 + $0x48] sm:$0xff] }
 0xff0   :  { %4901 = vmatpush.msrb.mxu3 %v4770_v18  ;;  %4837 = vmatpush.msrb.mxu0 %v4767_v31 }
 0xff1   :  { %v4584_v59 = vmul.f32 %v8470_v17, %v8470_v17  ;;  %v4559_v7 = vsel %vm9132_vm1, %v8470_v17, 0.0  ;;  %vm9145_vm1 = vmmov %vm9114_vm0 }
 0xff2   :  { %v4560_v51 = vadd.f32 %v4559_v7, %v4558_v21  ;;  %4902 = vmatpush.msrb.mxu3 %v4768_v57  ;;  %v4764_v7 = vld [vmem:[%s8811_s15 + $0x38] sm:$0xff]  ;;  %4838 = vmatpush.msrb.mxu0 %v4765_v48  ;;  %v4762_v21 = vld [vmem:[%s8811_s15 + $0x28] sm:$0xff] }
 0xff3   :  { %v4612_v39 = vsel %vm9133_vm2, %v4584_v59, 0.0  ;;  %vm9146_vm2 = vmmov %vm9114_vm0 }
 0xff4   :  { %v4495_v14 = vpop.f32.mrf.mxu2  ;;  %v4613_v13 = vadd.f32 %v4612_v39, %v4611_v16  ;;  %4903 = vmatpush.msrb.mxu3 %v4766_v49  ;;  %v4759_v39 = vld [vmem:[%s8811_s15 + $0x10] sm:$0xff]  ;;  %v4757_v16 = vld [vmem:[%s8811_s15] sm:$0xff] }
 0xff5   :  { %v4515_v56 = vadd.f32 %v4495_v14, %v4315_v3 }
 0xff6   :  { %4904 = vmatpush.msrb.mxu3 %v4764_v7 }
 0xff7   :  { %v8478_v25 = vadd.f32 %v8305_v10, %v4515_v56 }
 0xff8   :  { %4905 = vmatpush.msrb.mxu3 %v4762_v21 }
 0xff9   :  { %v4585_v20 = vmul.f32 %v8478_v25, %v8478_v25  ;;  %v4561_v8 = vsel %vm9134_vm3, %v8478_v25, 0.0  ;;  %vm9147_vm3 = vmmov %vm9114_vm0 }
 0xffa   :  { %v4562_v36 = vadd.f32 %v4561_v8, %v4560_v51  ;;  %v4760_v8 = vld [vmem:[%s8811_s15 + $0x18] sm:$0xff]  ;;  %v4758_v51 = vld [vmem:[%s8811_s15 + $0x8] sm:$0xff] }
 0xffb   :  { %v4614_v54 = vsel %vm9135_vm7, %v4585_v20, 0.0  ;;  %4906 = vmatpush.msrb.mxu3 %v4760_v8  ;;  %vm9148_vm7 = vmmov %vm9114_vm0 }
 0xffc   :  { %v4498_v61 = vpop.f32.mrf.mxu2  ;;  %v4615_v60 = vadd.f32 %v4614_v54, %v4613_v13 }
 0xffd   :  { %v4516_v40 = vadd.f32 %v4498_v61, %v4316_v19  ;;  %v4763_v19 = vld [vmem:[%s8811_s15 + $0x30] sm:$0xff]  ;;  %4907 = vmatpush.msrb.mxu3 %v4758_v51 }
 0xffe   :  { %4839 = vmatpush.msrb.mxu0 %v4763_v19 }
 0xfff   :  { %v8495_v44 = vadd.f32 %v8305_v10, %v4516_v40 }
0x1000   :  { %4840 = vmatpush.msrb.mxu0 %v4761_v29 }
0x1001   :  { %v4563_v24 = vsel %vm9136_vm4, %v8495_v44, 0.0  ;;  %v4586_v63 = vmul.f32 %v8495_v44, %v8495_v44  ;;  %vm9149_vm4 = vmmov %vm9114_vm0 }
0x1002   :  { %v4564_v50 = vadd.f32 %v4563_v24, %v4562_v36  ;;  %4841 = vmatpush.msrb.mxu0 %v4759_v39 }
0x1003   :  { %v4616_v22 = vsel %vm9137_vm5, %v4586_v63, 0.0  ;;  %vm9150_vm5 = vmmov %vm9114_vm0 }
0x1004   :  { %v4565_v28 = vrot.slane %v4564_v50, 4  ;;  %v4617_v47 = vadd.f32 %v4616_v22, %v4615_v60  ;;  %4842 = vmatpush.msrb.mxu0 %v4757_v16 }
0x1006   :  { %v4566_v3 = vadd.f32 %v4565_v28, %v4564_v50  ;;  %v4618_v55 = vrot.slane %v4617_v47, 4 }
0x1008   :  { %v4567_v52 = vrot.slane %v4566_v3, 2  ;;  %v4619_v30 = vadd.f32 %v4618_v55, %v4617_v47  ;;  %v8558_v47 = vperm.slane %v8287_v23, 2 }
0x100a   :  { %v4568_v10 = vadd.f32 %v4567_v52, %v4566_v3  ;;  %v4620_v4 = vrot.slane %v4619_v30, 2 }
0x100c   :  { %v4569_v14 = vrot.slane %v4568_v10, 1  ;;  %v4621_v38 = vadd.f32 %v4620_v4, %v4619_v30 }
0x100e   :  { %v4622_v37 = vrot.slane %v4621_v38, 1  ;;  %v4570_v56 = vadd.f32 %v4569_v14, %v4568_v10 }
0x1010   :  { %v4623_v34 = vadd.f32 %v4622_v37, %v4621_v38 }
0x1012   :  { %v4624_v9 = vsel %vm9139_vm8, %v4570_v56, %v4623_v34  ;;  %vm9151_vm8 = vmmov %vm9114_vm0 }
0x1013   :  { %5526 = vmatmul.msk.f32.vlgmr.msra.gmra.mxu0 %vm9140_vm6, %v4624_v9  ;;  %vm9152_vm6 = vmmov %vm9114_vm0 }
0x1090   :  { %v4645_v12 = vpop.f32.mrf.mxu0 }
0x1091   :  { %5528 = vmatmul.msk.f32.vlgmr.msrb.gmra.mxu1 %vm9141_vm10, %v4645_v12  ;;  %vm9153_vm10 = vmmov %vm9114_vm0 }
0x110e   :  { %v4668_v26 = vpop.f32.mrf.mxu1 }
0x110f   :  { %v4671_v1 = vmul.f32 0.0009765625, %v4668_v26 }
0x1111   :  { %v4672_v59 = vmul.f32 %v4671_v1, %v4671_v1  ;;  %v8554_v50 = vperm.slane %v4671_v1, 0 }
0x1113   :  { %v4674_v6 = vrot.slane %v4672_v59, 7  ;;  %v4690_v55 = vsub.f32 %v8326_v41, %v8554_v50  ;;  %v4691_v52 = vsub.f32 %v8314_v46, %v8554_v50  ;;  %v4698_v14 = vsub.f32 %v8420_v27, %v8554_v50 }
0x1114   :  { %v4700_v37 = vsub.f32 %v8444_v33, %v8554_v50  ;;  %v4701_v41 = vsub.f32 %v8452_v2, %v8554_v50  ;;  %v4702_v46 = vsub.f32 %v8462_v53, %v8554_v50  ;;  %v4703_v34 = vsub.f32 %v8470_v17, %v8554_v50 }
0x1115   :  { %v4676_v20 = vsub.f32 %v4671_v1, %v4674_v6  ;;  %v4704_v27 = vsub.f32 %v8478_v25, %v8554_v50  ;;  %v4692_v31 = vsub.f32 %v8340_v62, %v8554_v50  ;;  %v4693_v6 = vsub.f32 %v8353_v11, %v8554_v50 }
0x1117   :  { %v4677_v61 = vmax.f32 %v4676_v20, 0.0  ;;  %v4694_v20 = vsub.f32 %v8380_v45, %v8554_v50 }
0x1119   :  { %v4678_v40 = vadd.f32 1e-05, %v4677_v61  ;;  %v4695_v61 = vsub.f32 %v8388_v43, %v8554_v50 }
0x111b   :  { %5596 = vrsqrt.f32 %v4678_v40  ;;  %vm4685_vm9 = vweird.f32 %v4678_v40 }
0x1121   :  { %v5597_v54 = vpop.eup %5596 }
0x1122   :  { %v4680_v13 = vmul.f32 %v5597_v54, %v4678_v40  ;;  %vm4686_vm14 = vweird.f32 %v5597_v54  ;;  %v4696_v40 = vsub.f32 %v8400_v0, %v8554_v50 }
0x1123   :  { %vm4687_vm15 = vmor %vm4685_vm9, %vm4686_vm14 }
0x1124   :  { %v4681_v36 = vmul.f32 %v5597_v54, %v4680_v13  ;;  %vm9154_vm14 = vmmov %vm9114_vm0 }
0x1125   :  { %vm9155_vm9 = vmmov %vm9114_vm0 }
0x1126   :  { %v4682_v24 = vmul.f32 0.5, %v4681_v36 }
0x1128   :  { %v4683_v63 = vsub.f32 1.5, %v4682_v24 }
0x112a   :  { %v4684_v60 = vmul.f32 %v5597_v54, %v4683_v63 }
0x112c   :  { %v4688_v22 = vsel %vm4687_vm15, %v5597_v54, %v4684_v60  ;;  %v4697_v54 = vsub.f32 %v8411_v5, %v8554_v50  ;;  %vm9156_vm15 = vmmov %vm9114_vm0 }
0x112d   :  { %v4706_v28 = vmul.f32 %v4688_v22, %v8287_v23  ;;  %v4699_v23 = vsub.f32 %v8433_v32, %v8554_v50  ;;  %v4705_v32 = vsub.f32 %v8495_v44, %v8554_v50 }
0x112f   :  { %v8560_v3 = vperm.slane %v4706_v28, 1 }
0x1131   :  { %v4708_v30 = vmul.f32 %v8560_v3, %v4690_v55  ;;  %v4709_v10 = vmul.f32 %v8560_v3, %v4691_v52  ;;  %v4716_v33 = vmul.f32 %v8560_v3, %v4698_v14  ;;  %v4717_v2 = vmul.f32 %v8560_v3, %v4699_v23  ;;  %v4773_v55 = vld [vmem:[%s8812_s16] sm:$0x3] }
0x1132   :  { %v4718_v53 = vmul.f32 %v8560_v3, %v4700_v37  ;;  %v4719_v35 = vmul.f32 %v8560_v3, %v4701_v41  ;;  %v4720_v17 = vmul.f32 %v8560_v3, %v4702_v46  ;;  %v4721_v9 = vmul.f32 %v8560_v3, %v4703_v34 }
0x1133   :  { %v4725_v4 = vadd.f32 %v8558_v47, %v4708_v30  ;;  %v4726_v56 = vadd.f32 %v8558_v47, %v4709_v10  ;;  %v4722_v25 = vmul.f32 %v8560_v3, %v4704_v27  ;;  %v4733_v44 = vadd.f32 %v8558_v47, %v4716_v33 }
0x1134   :  { %v4734_v12 = vadd.f32 %v8558_v47, %v4717_v2  ;;  %v4735_v42 = vadd.f32 %v8558_v47, %v4718_v53  ;;  %v4723_v58 = vmul.f32 %v8560_v3, %v4705_v32  ;;  %v4736_v26 = vadd.f32 %v8558_v47, %v4719_v35 }
0x1135   :  { %v4741_v38 = vmax.f32 %v4725_v4, 0.0  ;;  %v4737_v1 = vadd.f32 %v8558_v47, %v4720_v17  ;;  %v4738_v15 = vadd.f32 %v8558_v47, %v4721_v9  ;;  %v4739_v18 = vadd.f32 %v8558_v47, %v4722_v25 }
0x1136   :  { %v8606_v57 = vadd.f32 %v8558_v47, %v4723_v58  ;;  %v4742_v59 = vmax.f32 %v4726_v56, 0.0  ;;  %v4710_v48 = vmul.f32 %v8560_v3, %v4692_v31  ;;  %v4711_v7 = vmul.f32 %v8560_v3, %v4693_v6 }
0x1137   :  { %5529 = vmatmul.msk.f32.vlgmr.msrb.gmra.mxu0 %vm9142_vm12, %v4741_v38  ;;  %5545 = vmatmul.msk.f32.vlgmr.msrb.gmra.mxu3 %vm9114_vm0, %v4741_v38  ;;  %v4712_v21 = vmul.f32 %v8560_v3, %v4694_v20  ;;  %v4713_v8 = vmul.f32 %v8560_v3, %v4695_v61  ;;  %v4714_v51 = vmul.f32 %v8560_v3, %v4696_v40  ;;  %v4749_v63 = vmax.f32 %v4733_v44, 0.0  ;;  %vm9157_vm12 = vmmov %vm9114_vm0 }
0x1138   :  { %v4727_v49 = vadd.f32 %v8558_v47, %v4710_v48  ;;  %v4728_v62 = vadd.f32 %v8558_v47, %v4711_v7  ;;  %v4715_v36 = vmul.f32 %v8560_v3, %v4697_v54  ;;  %v4750_v5 = vmax.f32 %v4734_v12, 0.0 }
0x1139   :  { %v4729_v11 = vadd.f32 %v8558_v47, %v4712_v21  ;;  %v4730_v45 = vadd.f32 %v8558_v47, %v4713_v8  ;;  %v4731_v43 = vadd.f32 %v8558_v47, %v4714_v51  ;;  %v4751_v60 = vmax.f32 %v4735_v42, 0.0 }
0x113a   :  { %v4743_v19 = vmax.f32 %v4727_v49, 0.0  ;;  %v4744_v29 = vmax.f32 %v4728_v62, 0.0  ;;  %v4732_v0 = vadd.f32 %v8558_v47, %v4715_v36  ;;  %v4752_v50 = vmax.f32 %v4736_v26, 0.0 }
0x113b   :  { %v4745_v39 = vmax.f32 %v4729_v11, 0.0  ;;  %v4746_v16 = vmax.f32 %v4730_v45, 0.0  ;;  %v4747_v13 = vmax.f32 %v4731_v43, 0.0  ;;  %v4753_v22 = vmax.f32 %v4737_v1, 0.0 }
0x113c   :  { %v4748_v24 = vmax.f32 %v4732_v0, 0.0  ;;  %v4754_v28 = vmax.f32 %v4738_v15, 0.0  ;;  %v4755_v47 = vmax.f32 %v4739_v18, 0.0  ;;  %v4756_v3 = vmax.f32 %v8606_v57, 0.0 }
0x113d   :  { %v8664_v52 = vperm.slane %v4773_v55, 0  ;;  %v8670_v4 = vperm.slane %v4773_v55, 1 }
0x113f   :  { %5530 = vmatmul.msk.f32.gmra.mxu0 %vm9143_vm11, %v4742_v59  ;;  %5546 = vmatmul.msk.f32.gmra.mxu3 %vm9144_vm13, %v4742_v59  ;;  %vm9158_vm11 = vmmov %vm9114_vm0 }
0x1140   :  { %vm9159_vm13 = vmmov %vm9114_vm0 }
0x1147   :  { %5531 = vmatmul.msk.f32.gmra.mxu0 %vm9145_vm1, %v4743_v19  ;;  %5547 = vmatmul.msk.f32.gmra.mxu3 %vm9146_vm2, %v4743_v19  ;;  %vm9160_vm1 = vmmov %vm9114_vm0 }
0x1148   :  { %vm9161_vm2 = vmmov %vm9114_vm0 }
0x114f   :  { %5532 = vmatmul.msk.f32.gmra.mxu0 %vm9147_vm3, %v4744_v29  ;;  %5548 = vmatmul.msk.f32.gmra.mxu3 %vm9148_vm7, %v4744_v29  ;;  %vm9162_vm3 = vmmov %vm9114_vm0 }
0x1150   :  { %vm9163_vm7 = vmmov %vm9114_vm0 }
0x1157   :  { %5533 = vmatmul.msk.f32.gmra.mxu0 %vm9149_vm4, %v4745_v39  ;;  %5549 = vmatmul.msk.f32.gmra.mxu3 %vm9150_vm5, %v4745_v39  ;;  %vm9164_vm4 = vmmov %vm9114_vm0 }
0x1158   :  { %vm9165_vm5 = vmmov %vm9114_vm0 }
0x115f   :  { %5534 = vmatmul.msk.f32.gmra.mxu0 %vm9151_vm8, %v4746_v16  ;;  %5550 = vmatmul.msk.f32.gmra.mxu3 %vm9152_vm6, %v4746_v16  ;;  %vm9166_vm8 = vmmov %vm9114_vm0 }
0x1160   :  { %vm9167_vm6 = vmmov %vm9114_vm0 }
0x1167   :  { %5535 = vmatmul.msk.f32.gmra.mxu0 %vm9153_vm10, %v4747_v13  ;;  %5551 = vmatmul.msk.f32.gmra.mxu3 %vm9154_vm14, %v4747_v13  ;;  %vm9168_vm10 = vmmov %vm9114_vm0 }
0x1168   :  { %vm9169_vm14 = vmmov %vm9114_vm0 }
0x116f   :  { %5536 = vmatmul.msk.f32.gmra.mxu0 %vm9155_vm9, %v4748_v24  ;;  %5552 = vmatmul.msk.f32.gmra.mxu3 %vm9156_vm15, %v4748_v24  ;;  %vm9170_vm9 = vmmov %vm9114_vm0 }
0x1170   :  { %vm9171_vm15 = vmmov %vm9114_vm0 }
0x1177   :  { %5537 = vmatmul.msk.f32.gmra.mxu0 %vm9157_vm12, %v4749_v63  ;;  %5553 = vmatmul.msk.f32.gmra.mxu3 %vm9114_vm0, %v4749_v63 }
0x117f   :  { %5538 = vmatmul.msk.f32.gmra.mxu0 %vm9158_vm11, %v4750_v5  ;;  %5554 = vmatmul.msk.f32.gmra.mxu3 %vm9159_vm13, %v4750_v5 }
0x1187   :  { %5539 = vmatmul.msk.f32.gmra.mxu0 %vm9160_vm1, %v4751_v60  ;;  %5555 = vmatmul.msk.f32.gmra.mxu3 %vm9161_vm2, %v4751_v60 }
0x118f   :  { %5540 = vmatmul.msk.f32.gmra.mxu0 %vm9162_vm3, %v4752_v50  ;;  %5556 = vmatmul.msk.f32.gmra.mxu3 %vm9163_vm7, %v4752_v50 }
0x1197   :  { %5541 = vmatmul.msk.f32.gmra.mxu0 %vm9164_vm4, %v4753_v22  ;;  %5557 = vmatmul.msk.f32.gmra.mxu3 %vm9165_vm5, %v4753_v22 }
0x119f   :  { %5542 = vmatmul.msk.f32.gmra.mxu0 %vm9166_vm8, %v4754_v28  ;;  %5558 = vmatmul.msk.f32.gmra.mxu3 %vm9167_vm6, %v4754_v28 }
0x11a7   :  { %5543 = vmatmul.msk.f32.gmra.mxu0 %vm9168_vm10, %v4755_v47  ;;  %5559 = vmatmul.msk.f32.gmra.mxu3 %vm9169_vm14, %v4755_v47 }
0x11af   :  { %5544 = vmatmul.msk.f32.gmra.mxu0 %vm9170_vm9, %v4756_v3  ;;  %5560 = vmatmul.msk.f32.gmra.mxu3 %vm9171_vm15, %v4756_v3 }
0x11b4   :  { %v4844_v30 = vpop.f32.mrf.mxu0 }
0x11b5   :  { %v4845_v10 = vadd.f32 %v4844_v30, %v8664_v52 }
0x11b7   :  { %4957 = vst [vmem:[%s8813_s17] sm:$0xff] %v4845_v10 }
0x11ba   :  { %v4909_v14 = vpop.f32.mrf.mxu3 }
0x11bb   :  { %v4910_v23 = vadd.f32 %v4909_v14, %v8670_v4 }
0x11bc   :  { %v4847_v38 = vpop.f32.mrf.mxu0 }
0x11bd   :  { %4958 = vst [vmem:[%s8813_s17 + $0x8] sm:$0xff] %v4910_v23  ;;  %v4848_v37 = vadd.f32 %v4847_v38, %v8664_v52 }
0x11bf   :  { %4959 = vst [vmem:[%s8813_s17 + $0x10] sm:$0xff] %v4848_v37 }
0x11c2   :  { %v4912_v41 = vpop.f32.mrf.mxu3 }
0x11c3   :  { %v4913_v46 = vadd.f32 %v4912_v41, %v8670_v4 }
0x11c4   :  { %v4850_v56 = vpop.f32.mrf.mxu0 }
0x11c5   :  { %4960 = vst [vmem:[%s8813_s17 + $0x18] sm:$0xff] %v4913_v46  ;;  %v4851_v34 = vadd.f32 %v4850_v56, %v8664_v52 }
0x11c7   :  { %4961 = vst [vmem:[%s8813_s17 + $0x20] sm:$0xff] %v4851_v34 }
0x11ca   :  { %v4915_v27 = vpop.f32.mrf.mxu3 }
0x11cb   :  { %v4916_v32 = vadd.f32 %v4915_v27, %v8670_v4 }
0x11cc   :  { %v4853_v33 = vpop.f32.mrf.mxu0 }
0x11cd   :  { %4962 = vst [vmem:[%s8813_s17 + $0x28] sm:$0xff] %v4916_v32  ;;  %v4854_v2 = vadd.f32 %v4853_v33, %v8664_v52 }
0x11cf   :  { %4963 = vst [vmem:[%s8813_s17 + $0x30] sm:$0xff] %v4854_v2 }
0x11d2   :  { %v4918_v53 = vpop.f32.mrf.mxu3 }
0x11d3   :  { %v4919_v35 = vadd.f32 %v4918_v53, %v8670_v4 }
0x11d4   :  { %v4856_v17 = vpop.f32.mrf.mxu0 }
0x11d5   :  { %4964 = vst [vmem:[%s8813_s17 + $0x38] sm:$0xff] %v4919_v35  ;;  %v4857_v9 = vadd.f32 %v4856_v17, %v8664_v52 }
0x11d7   :  { %4965 = vst [vmem:[%s8813_s17 + $0x40] sm:$0xff] %v4857_v9 }
0x11da   :  { %v4921_v25 = vpop.f32.mrf.mxu3 }
0x11db   :  { %v4922_v44 = vadd.f32 %v4921_v25, %v8670_v4 }
0x11dc   :  { %v4859_v12 = vpop.f32.mrf.mxu0 }
0x11dd   :  { %4966 = vst [vmem:[%s8813_s17 + $0x48] sm:$0xff] %v4922_v44  ;;  %v4860_v42 = vadd.f32 %v4859_v12, %v8664_v52 }
0x11df   :  { %4967 = vst [vmem:[%s8813_s17 + $0x50] sm:$0xff] %v4860_v42 }
0x11e2   :  { %v4924_v58 = vpop.f32.mrf.mxu3 }
0x11e3   :  { %v4925_v26 = vadd.f32 %v4924_v58, %v8670_v4 }
0x11e4   :  { %v4862_v1 = vpop.f32.mrf.mxu0 }
0x11e5   :  { %4968 = vst [vmem:[%s8813_s17 + $0x58] sm:$0xff] %v4925_v26  ;;  %v4863_v15 = vadd.f32 %v4862_v1, %v8664_v52 }
0x11e7   :  { %4969 = vst [vmem:[%s8813_s17 + $0x60] sm:$0xff] %v4863_v15 }
0x11ea   :  { %v4927_v18 = vpop.f32.mrf.mxu3 }
0x11eb   :  { %v4928_v31 = vadd.f32 %v4927_v18, %v8670_v4 }
0x11ec   :  { %v4865_v57 = vpop.f32.mrf.mxu0 }
0x11ed   :  { %4970 = vst [vmem:[%s8813_s17 + $0x68] sm:$0xff] %v4928_v31  ;;  %v4866_v59 = vadd.f32 %v4865_v57, %v8664_v52 }
0x11ef   :  { %4971 = vst [vmem:[%s8813_s17 + $0x70] sm:$0xff] %v4866_v59 }
0x11f2   :  { %v4930_v48 = vpop.f32.mrf.mxu3 }
0x11f3   :  { %v4931_v49 = vadd.f32 %v4930_v48, %v8670_v4 }
0x11f4   :  { %v4868_v6 = vpop.f32.mrf.mxu0 }
0x11f5   :  { %4972 = vst [vmem:[%s8813_s17 + $0x78] sm:$0xff] %v4931_v49  ;;  %v4869_v19 = vadd.f32 %v4868_v6, %v8664_v52 }
0x11f7   :  { %4973 = vst [vmem:[%s8813_s17 + $0x80] sm:$0xff] %v4869_v19 }
0x11fa   :  { %v4933_v7 = vpop.f32.mrf.mxu3 }
0x11fb   :  { %v4934_v62 = vadd.f32 %v4933_v7, %v8670_v4 }
0x11fc   :  { %v4871_v20 = vpop.f32.mrf.mxu0 }
0x11fd   :  { %4974 = vst [vmem:[%s8813_s17 + $0x88] sm:$0xff] %v4934_v62  ;;  %v4872_v29 = vadd.f32 %v4871_v20, %v8664_v52 }
0x11ff   :  { %4975 = vst [vmem:[%s8813_s17 + $0x90] sm:$0xff] %v4872_v29 }
0x1202   :  { %v4936_v21 = vpop.f32.mrf.mxu3 }
0x1203   :  { %v4937_v11 = vadd.f32 %v4936_v21, %v8670_v4 }
0x1204   :  { %v4874_v61 = vpop.f32.mrf.mxu0 }
0x1205   :  { %4976 = vst [vmem:[%s8813_s17 + $0x98] sm:$0xff] %v4937_v11  ;;  %v4875_v39 = vadd.f32 %v4874_v61, %v8664_v52 }
0x1207   :  { %4977 = vst [vmem:[%s8813_s17 + $0xa0] sm:$0xff] %v4875_v39 }
0x120a   :  { %v4939_v8 = vpop.f32.mrf.mxu3 }
0x120b   :  { %v4940_v45 = vadd.f32 %v4939_v8, %v8670_v4 }
0x120c   :  { %v4877_v40 = vpop.f32.mrf.mxu0 }
0x120d   :  { %4978 = vst [vmem:[%s8813_s17 + $0xa8] sm:$0xff] %v4940_v45  ;;  %v4878_v16 = vadd.f32 %v4877_v40, %v8664_v52 }
0x120f   :  { %4979 = vst [vmem:[%s8813_s17 + $0xb0] sm:$0xff] %v4878_v16 }
0x1212   :  { %v4942_v51 = vpop.f32.mrf.mxu3 }
0x1213   :  { %v4943_v43 = vadd.f32 %v4942_v51, %v8670_v4 }
0x1214   :  { %v4880_v54 = vpop.f32.mrf.mxu0 }
0x1215   :  { %4980 = vst [vmem:[%s8813_s17 + $0xb8] sm:$0xff] %v4943_v43  ;;  %v4881_v13 = vadd.f32 %v4880_v54, %v8664_v52 }
0x1217   :  { %4981 = vst [vmem:[%s8813_s17 + $0xc0] sm:$0xff] %v4881_v13 }
0x121a   :  { %v4945_v36 = vpop.f32.mrf.mxu3 }
0x121b   :  { %v4946_v0 = vadd.f32 %v4945_v36, %v8670_v4 }
0x121c   :  { %v4883_v24 = vpop.f32.mrf.mxu0 }
0x121d   :  { %4982 = vst [vmem:[%s8813_s17 + $0xc8] sm:$0xff] %v4946_v0  ;;  %v4884_v63 = vadd.f32 %v4883_v24, %v8664_v52 }
0x121f   :  { %4983 = vst [vmem:[%s8813_s17 + $0xd0] sm:$0xff] %v4884_v63 }
0x1222   :  { %v4948_v5 = vpop.f32.mrf.mxu3 }
0x1223   :  { %v4949_v60 = vadd.f32 %v4948_v5, %v8670_v4 }
0x1224   :  { %v4886_v50 = vpop.f32.mrf.mxu0 }
0x1225   :  { %4984 = vst [vmem:[%s8813_s17 + $0xd8] sm:$0xff] %v4949_v60  ;;  %v4887_v22 = vadd.f32 %v4886_v50, %v8664_v52 }
0x1227   :  { %4985 = vst [vmem:[%s8813_s17 + $0xe0] sm:$0xff] %v4887_v22 }
0x122a   :  { %v4951_v28 = vpop.f32.mrf.mxu3 }
0x122b   :  { %v4952_v47 = vadd.f32 %v4951_v28, %v8670_v4 }
0x122c   :  { %v4889_v3 = vpop.f32.mrf.mxu0 }
0x122d   :  { %4986 = vst [vmem:[%s8813_s17 + $0xe8] sm:$0xff] %v4952_v47  ;;  %v4890_v55 = vadd.f32 %v4889_v3, %v8664_v52 }
0x122f   :  { %4987 = vst [vmem:[%s8813_s17 + $0xf0] sm:$0xff] %v4890_v55 }
0x1232   :  { %v4954_v30 = vpop.f32.mrf.mxu3 }
0x1233   :  { %v4955_v10 = vadd.f32 %v4954_v30, %v8670_v4 }
0x1235   :  { %4988 = vst [vmem:[%s8813_s17 + $0xf8] sm:$0xff] %v4955_v10 }

</bundles_post_ra>
